<compile_context>
chip_gen: v6e
topology: v6e:2x2x1
jax: 0.10.0
libtpu: 0.0.40
codegen_flags: <defaults>
</compile_context>

<pallas_src>
import functools
import numpy as np

import jax
import jax.numpy as jnp
from jax import lax
from jax.experimental import pallas as pl
from jax.experimental.pallas import tpu as pltpu


# ----------------------------------------------------------------------------
# Small helpers
# ----------------------------------------------------------------------------

def _gelu(x):
    # TODO(synk): torch nn.GELU() default is the exact erf form; tanh approx
    # (max abs err ~3e-4) used for guaranteed Mosaic lowering / consistency.
    return jax.nn.gelu(x, approximate=True)


_HAS_RECIP = hasattr(pl, "reciprocal")


def _recip(x):
    if _HAS_RECIP:
        return pl.reciprocal(x, approx=True)
    return 1.0 / x


def _bf16(x):
    # No-op (trace-time short-circuit) when the operand is already bf16.
    return x.astype(jnp.bfloat16)


def _mosaic_params(semantics, vmem_mb=48):
    cls = getattr(pltpu, "CompilerParams", None)
    if cls is None:
        return None
    for kwargs in (
        dict(dimension_semantics=semantics,
             vmem_limit_bytes=int(vmem_mb) * 1024 * 1024),
        dict(dimension_semantics=semantics),
        dict(),
    ):
        try:
            return cls(**kwargs)
        except Exception:
            continue
    return None


@functools.lru_cache(maxsize=None)
def _buffered_weights_supported():
    """Probe whether pipeline_mode=pl.Buffered(1) compiles+runs on this backend."""
    if not hasattr(pl, "Buffered"):
        return False
    try:
        def k(x_ref, w_ref, o_ref):
            o_ref[...] = x_ref[...] + w_ref[...]
        out = pl.pallas_call(
            k,
            out_shape=jax.ShapeDtypeStruct((8, 128), jnp.float32),
            grid=(1,),
            in_specs=[pl.BlockSpec((8, 128), lambda i: (0, 0)),
                      pl.BlockSpec((8, 128), lambda i: (0, 0),
                                   pipeline_mode=pl.Buffered(1))],
            out_specs=pl.BlockSpec((8, 128), lambda i: (0, 0)),
        )(jnp.ones((8, 128), jnp.float32), jnp.ones((8, 128), jnp.float32))
        jax.block_until_ready(out)
        return True
    except Exception:
        return False


def _weight_spec(shape):
    """Constant-index (grid-invariant) spec; single-buffered when supported."""
    nd = len(shape)
    idx = lambda *args: (0,) * nd
    if _buffered_weights_supported():
        return pl.BlockSpec(shape, idx, pipeline_mode=pl.Buffered(1))
    return pl.BlockSpec(shape, idx)


_BF16_KEYS = ("txt_w", "img_w", "oa_w1", "oa_w2", "lc_w1", "lc_w2")
_BF16_ENC_KEYS = ("wqkv", "wo", "wi", "wo2")


def cast_matmul_weights(params):
    """Pre-cast every Pallas matmul weight to bf16 (biases / LN params stay f32)."""
    p = dict(params)
    for k in _BF16_KEYS:
        p[k] = p[k].astype(jnp.bfloat16)
    enc = dict(p["enc"])
    for k in _BF16_ENC_KEYS:
        enc[k] = enc[k].astype(jnp.bfloat16)
    p["enc"] = enc
    return p


# ----------------------------------------------------------------------------
# Pallas kernels
# ----------------------------------------------------------------------------

def _linear_act_kernel(x_ref, w_ref, b_ref, o_ref, *, act):
    """y = act(x @ W + b); bf16 matmul operands, f32 accumulation."""
    y = jnp.dot(_bf16(x_ref[...]), _bf16(w_ref[...]),
                preferred_element_type=jnp.float32) + b_ref[...]
    if act == "tanh":
        y = jnp.tanh(y)
    elif act == "gelu":
        y = _gelu(y)
    o_ref[...] = y


def linear_act(x, w, b, act="none", tm=256):
    """Row-tiled linear (+ activation).  grid=(ceil(M/tm),), 'parallel'."""
    M, K = x.shape
    N = w.shape[1]
    tm = min(tm, M)
    return pl.pallas_call(
        functools.partial(_linear_act_kernel, act=act),
        out_shape=jax.ShapeDtypeStruct((M, N), jnp.float32),
        grid=(pl.cdiv(M, tm),),
        in_specs=[pl.BlockSpec((tm, K), lambda i: (i, 0)),
                  _weight_spec((K, N)),
                  _weight_spec((1, N))],
        out_specs=pl.BlockSpec((tm, N), lambda i: (i, 0)),
        compiler_params=_mosaic_params(("parallel",)),
    )(x, w, b.reshape(1, N))


def _mlp2_kernel(x_ref, w1_ref, b1_ref, w2_ref, b2_ref, o_ref):
    """y = gelu(x @ W1 + b1) @ W2 + b2 fused (CL.linear_change)."""
    h = jnp.dot(_bf16(x_ref[...]), _bf16(w1_ref[...]),
                preferred_element_type=jnp.float32) + b1_ref[...]
    h = _gelu(h)
    o_ref[...] = jnp.dot(_bf16(h), _bf16(w2_ref[...]),
                         preferred_element_type=jnp.float32) + b2_ref[...]


def linear_change(x, params, tm=256):
    M, D = x.shape
    tm = min(tm, M)
    return pl.pallas_call(
        _mlp2_kernel,
        out_shape=jax.ShapeDtypeStruct((M, D), jnp.float32),
        grid=(pl.cdiv(M, tm),),
        in_specs=[pl.BlockSpec((tm, D), lambda i: (i, 0)),
                  _weight_spec((D, D)),
                  _weight_spec((1, D)),
                  _weight_spec((D, D)),
                  _weight_spec((1, D))],
        out_specs=pl.BlockSpec((tm, D), lambda i: (i, 0)),
        compiler_params=_mosaic_params(("parallel",)),
    )(x, params["lc_w1"], params["lc_b1"].reshape(1, D),
      params["lc_w2"], params["lc_b2"].reshape(1, D))


def _encoder_layer_kernel(x_ref, mask_ref,
                          wqkv_ref, bqkv_ref, wo_ref, bo_ref,
                          ln1g_ref, ln1b_ref,
                          wi_ref, bi_ref, wo2_ref, bo2_ref,
                          ln2g_ref, ln2b_ref,
                          o_ref, ctx_ref, *, heads, eps):
    """One fused RoBERTa encoder layer for a single batch element.

    x:(S,D)  mask:(1,S) additive  wqkv:(D,3D) bf16  ctx_ref:(S,D) bf16 scratch.
    Packed QKV matmul -> per-head softmax(QK^T)V written into lane slices of
    ctx_ref -> ONE (S,D)@(D,D) output projection -> post-LN -> FFN -> post-LN.
    """
    x = x_ref[...]                       # (S, D) f32
    m = mask_ref[...]                    # (1, S) f32 additive mask
    S, D = x.shape
    Dh = D // heads
    scale = 1.0 / float(np.sqrt(Dh))

    # Packed QKV projection: single wide (N = 3*D) MXU matmul.
    qkv = jnp.dot(_bf16(x), _bf16(wqkv_ref[...]),
                  preferred_element_type=jnp.float32) + bqkv_ref[...]   # (S, 3D)

    # Per-head attention; each head's context goes to its lane slice of ctx_ref.
    for h in range(heads):               # static unroll; all data stays in VMEM
        qh = _bf16(qkv[:, h * Dh:(h + 1) * Dh])
        kh = _bf16(qkv[:, D + h * Dh:D + (h + 1) * Dh])
        vh = _bf16(qkv[:, 2 * D + h * Dh:2 * D + (h + 1) * Dh])
        s = lax.dot_general(qh, kh, (((1,), (1,)), ((), ())),
                            preferred_element_type=jnp.float32) * scale + m
        s = s - jnp.max(s, axis=-1, keepdims=True)
        p = jnp.exp(s)
        p = p * _recip(jnp.sum(p, axis=-1, keepdims=True))
        ctx_ref[:, h * Dh:(h + 1) * Dh] = jnp.dot(
            _bf16(p), vh, preferred_element_type=jnp.float32
        ).astype(jnp.bfloat16)

    # Single full-depth (K = D) output projection on the MXU.
    attn = jnp.dot(ctx_ref[...], _bf16(wo_ref[...]),
                   preferred_element_type=jnp.float32) + bo_ref[...]

    # Post-LayerNorm 1 (residual in f32).
    h1 = attn + x
    mu1 = jnp.mean(h1, axis=-1, keepdims=True)
    var1 = jnp.mean((h1 - mu1) ** 2, axis=-1, keepdims=True)
    x1 = (h1 - mu1) * lax.rsqrt(var1 + eps) * ln1g_ref[...] + ln1b_ref[...]

    # FFN (intermediate GELU) fused with LayerNorm 2.
    inter = jnp.dot(_bf16(x1), _bf16(wi_ref[...]),
                    preferred_element_type=jnp.float32) + bi_ref[...]
    inter = _gelu(inter)
    ffn = jnp.dot(_bf16(inter), _bf16(wo2_ref[...]),
                  preferred_element_type=jnp.float32) + bo2_ref[...]

    h2 = ffn + x1
    mu2 = jnp.mean(h2, axis=-1, keepdims=True)
    var2 = jnp.mean((h2 - mu2) ** 2, axis=-1, keepdims=True)
    o_ref[...] = (h2 - mu2) * lax.rsqrt(var2 + eps) * ln2g_ref[...] + ln2b_ref[...]


def encoder_layer(x, add_mask, enc, heads, eps=1e-5):
    """One RoBERTa encoder layer. x:(B,S,D), add_mask:(B,S) additive."""
    B, S, D = x.shape
    INTER = enc["wi"].shape[1]
    return pl.pallas_call(
        functools.partial(_encoder_layer_kernel, heads=heads, eps=eps),
        out_shape=jax.ShapeDtypeStruct((B, S, D), jnp.float32),
        grid=(B,),
        in_specs=[
            pl.BlockSpec((None, S, D), lambda b: (b, 0, 0)),      # x
            pl.BlockSpec((None, 1, S), lambda b: (b, 0, 0)),      # additive mask
            _weight_spec((D, 3 * D)),                             # wqkv (bf16)
            _weight_spec((1, 3 * D)),                             # bqkv
            _weight_spec((D, D)),                                 # wo (bf16)
            _weight_spec((1, D)),                                 # bo
            _weight_spec((1, D)),                                 # ln1_g
            _weight_spec((1, D)),                                 # ln1_b
            _weight_spec((D, INTER)),                             # wi (bf16)
            _weight_spec((1, INTER)),                             # bi
            _weight_spec((INTER, D)),                             # wo2 (bf16)
            _weight_spec((1, D)),                                 # bo2
            _weight_spec((1, D)),                                 # ln2_g
            _weight_spec((1, D)),                                 # ln2_b
        ],
        out_specs=pl.BlockSpec((None, S, D), lambda b: (b, 0, 0)),
        scratch_shapes=[pltpu.VMEM((S, D), jnp.bfloat16)],        # ctx slab
        compiler_params=_mosaic_params(("parallel",)),
    )(x, add_mask.reshape(B, 1, S),
      enc["wqkv"], enc["bqkv"].reshape(1, 3 * D),
      enc["wo"], enc["bo"].reshape(1, D),
      enc["ln1_g"].reshape(1, D), enc["ln1_b"].reshape(1, D),
      enc["wi"], enc["bi"].reshape(1, INTER),
      enc["wo2"], enc["bo2"].reshape(1, D),
      enc["ln2_g"].reshape(1, D), enc["ln2_b"].reshape(1, D))


def _attn_pool_kernel(x_ref, m_ref, w1_ref, b1_ref, w2_ref, b2_ref, o_ref):
    """output_attention (d->d/2 GELU ->1) fused with masked softmax pooling.

    x:(S,D)  m:(1,S) 0/1 mask (lane-dense)  w1:(D,D2)  w2:(1,D2)  ->  (1,D).
    alpha lives as a (1,S) row in VMEM; pooling is a (1,S)@(S,D) MXU matmul.
    """
    x = x_ref[...]                                                   # (S, D)
    m = m_ref[...]                                                   # (1, S)
    a1 = jnp.dot(_bf16(x), _bf16(w1_ref[...]),
                 preferred_element_type=jnp.float32) + b1_ref[...]   # (S, D2)
    a1 = _gelu(a1)
    # (D2 -> 1) projection computed directly in row form: (1,D2) . (S,D2)^T.
    alpha = lax.dot_general(_bf16(w2_ref[...]), _bf16(a1),
                            (((1,), (1,)), ((), ())),
                            preferred_element_type=jnp.float32) + b2_ref[...]  # (1, S)
    alpha = jnp.where(m == 0.0, -1e9, alpha)                         # masked_fill
    alpha = alpha - jnp.max(alpha, axis=-1, keepdims=True)
    e = jnp.exp(alpha)
    p = e * _recip(jnp.sum(e, axis=-1, keepdims=True))               # (1, S)
    o_ref[...] = jnp.dot(_bf16(p), _bf16(x),
                         preferred_element_type=jnp.float32)         # (1, D)


def attention_pool(x, mask, params):
    B, S, D = x.shape
    D2 = params["oa_w1"].shape[1]
    out = pl.pallas_call(
        _attn_pool_kernel,
        out_shape=jax.ShapeDtypeStruct((B, 1, D), jnp.float32),
        grid=(B,),
        in_specs=[
            pl.BlockSpec((None, S, D), lambda b: (b, 0, 0)),
            pl.BlockSpec((None, 1, S), lambda b: (b, 0, 0)),   # lane-dense mask
            _weight_spec((D, D2)),
            _weight_spec((1, D2)),
            _weight_spec((1, D2)),
            _weight_spec((1, 1)),
        ],
        out_specs=pl.BlockSpec((None, 1, D), lambda b: (b, 0, 0)),
        compiler_params=_mosaic_params(("parallel",)),
    )(x, mask.reshape(B, 1, S),
      params["oa_w1"], params["oa_b1"].reshape(1, D2),
      params["oa_w2"].reshape(1, D2), params["oa_b2"].reshape(1, 1))
    return out.reshape(B, D)


# ----------------------------------------------------------------------------
# Model glue (plain JAX around the kernels)
# ----------------------------------------------------------------------------

def init_params(key, hidden, img_dim, d, inter):
    ks = iter(jax.random.split(key, 32))

    def w(shape, scale=0.05):
        return scale * jax.random.normal(next(ks), shape, jnp.float32)

    def z(n):
        return jnp.zeros((n,), jnp.float32)

    enc = dict(  # one RobertaEncoder layer; QKV weights packed as (d, 3d)
        wqkv=w((d, 3 * d)), bqkv=z(3 * d),
        wo=w((d, d)), bo=z(d),
        ln1_g=jnp.ones((d,), jnp.float32), ln1_b=z(d),
        wi=w((d, inter)), bi=z(inter), wo2=w((inter, d)), bo2=z(d),
        ln2_g=jnp.ones((d,), jnp.float32), ln2_b=z(d),
    )
    return dict(
        enc=enc,
        txt_w=w((hidden, d)), txt_b=z(d),          # text_change
        img_w=w((img_dim, d)), img_b=z(d),         # image_change
        oa_w1=w((d, d // 2)), oa_b1=z(d // 2),     # output_attention
        oa_w2=w((d // 2, 1)), oa_b2=z(1),
        cls_w1=w((d, d // 2)), cls_b1=z(d // 2),   # CL.classifier (plain XLA)
        cls_w2=w((d // 2, 3)), cls_b2=z(3),
        lc_w1=w((d, d)), lc_b1=z(d),               # CL.linear_change
        lc_w2=w((d, d)), lc_b2=z(d),
    )


def mlf_forward(params, text_hidden, text_mask, image_feats, heads):
    """MLF.forward with backbone outputs supplied as inputs."""
    B, T, H = text_hidden.shape
    _, NI, IMG = image_feats.shape
    d = params["txt_w"].shape[1]

    # image_change: Linear(2048->d) + Tanh
    img = linear_act(image_feats.reshape(B * NI, IMG),
                     params["img_w"], params["img_b"], act="tanh").reshape(B, NI, d)

    image_attention = jnp.ones((B, NI), jnp.float32)

    # First encoder call: attention_mask=None -> zero additive mask in self-attn.
    image_encoded = encoder_layer(img, jnp.zeros((B, NI), jnp.float32),
                                  params["enc"], heads)

    # text_change: Linear(hidden->d) + Tanh
    txt = linear_act(text_hidden.reshape(B * T, H),
                     params["txt_w"], params["txt_b"], act="tanh").reshape(B, T, d)

    # NOTE: original code concatenates features as (text, image) but the mask as
    # (image, text); that quirk is reproduced verbatim.
    ti_features = jnp.concatenate([txt, image_encoded], axis=1)           # [B, T+NI, d]
    ti_attention = jnp.concatenate([image_attention, text_mask], axis=1)  # [B, NI+T]
    ext_mask = (1.0 - ti_attention) * -10000.0

    ti_encoded = encoder_layer(ti_features, ext_mask, params["enc"], heads)

    # output_attention + masked softmax pooling, fused in one kernel.
    pooled = attention_pool(ti_encoded, ti_attention, params)             # [B, d]
    return pooled


@functools.partial(jax.jit, static_argnames=("heads",))
def cl_forward(params, aug_text, aug_text_mask, aug_image,
               text, text_mask, image, cl_self_labels, inv_temp, *, heads):
    B = text.shape[0]

    # Single batched MLF pass over (org, aug): grid length 2B, one weight fetch.
    text_all = jnp.concatenate([text, aug_text], axis=0)
    mask_all = jnp.concatenate([text_mask, aug_text_mask], axis=0)
    image_all = jnp.concatenate([image, aug_image], axis=0)
    pooled = mlf_forward(params, text_all, mask_all, image_all, heads)    # (2B, d)
    org = pooled[:B]

    # classifier (Dropout(0.3) identity in eval); 2x3 output -> plain XLA.
    # TODO(synk): Dropout omitted (inference semantics).
    c1 = _gelu(org @ params["cls_w1"] + params["cls_b1"])
    output = c1 @ params["cls_w2"] + params["cls_b2"]

    # linear_change on the already-stacked (org, aug) rows -> one fused kernel.
    both = linear_change(pooled, params)                                  # (2B, d)
    org_ch, aug_ch = both[:B], both[B:]

    # Contrastive logits are BxB (tiny) -> plain XLA (Pallas overhead >> compute).
    l_pos_neg = (org_ch @ aug_ch.T) * inv_temp
    cl_labels = jnp.arange(B, dtype=jnp.int32)

    l_self = jax.nn.log_softmax(org_ch @ org_ch.T, axis=-1) * inv_temp
    gathered = jnp.take(l_self.reshape(-1), cl_self_labels)
    cl_self_loss = -gathered.sum() / cl_self_labels.shape[0]

    return output, l_pos_neg, cl_labels, cl_self_loss


def build_cl_self_labels(labels, target_labels):
    """Host-side (numpy) replica of the reference gather-index loop."""
    sel = [np.asarray(target_labels[int(labels[0])], dtype=np.int32)]
    for index in range(1, labels.shape[0]):
        sel.append(np.asarray(target_labels[int(labels[index])], dtype=np.int32)
                   + index * labels.shape[0])
    return np.concatenate(sel).astype(np.int32)


# ----------------------------------------------------------------------------
# Main
# ----------------------------------------------------------------------------

if __name__ == "__main__":
    # Small-shape stand-ins (feature dims padded to 128 multiples for lane-dense
    # stores): hidden_size 768 -> 128, resnet feature 2048 -> 256,
    # train_dim 768 -> 128, 49 image tokens kept, 8 text tokens, batch 2.
    B, T, NI = 2, 8, 49
    HIDDEN, IMG_DIM, D, HEADS, INTER = 128, 256, 128, 4, 256
    TEMPERATURE = 0.07

    key = jax.random.PRNGKey(0)
    k_par, k_txt, k_img, k_atxt, k_aimg = jax.random.split(key, 5)

    # Pre-cast all matmul weights to bf16 once (biases / LN params stay f32).
    params = cast_matmul_weights(init_params(k_par, HIDDEN, IMG_DIM, D, INTER))

    text_hidden = jax.random.normal(k_txt, (B, T, HIDDEN), jnp.float32)
    image_feats = jax.random.normal(k_img, (B, NI, IMG_DIM), jnp.float32)
    aug_text_hidden = jax.random.normal(k_atxt, (B, T, HIDDEN), jnp.float32)
    aug_image_feats = jax.random.normal(k_aimg, (B, NI, IMG_DIM), jnp.float32)

    text_mask = jnp.array([[1, 1, 1, 1, 1, 1, 0, 0],
                           [1, 1, 1, 1, 1, 1, 1, 1]], jnp.float32)
    aug_text_mask = jnp.ones((B, T), jnp.float32)

    labels = np.array([0, 1], dtype=np.int32)
    target_labels = [np.array([0], np.int32),
                     np.array([1], np.int32),
                     np.array([], np.int32)]

    # Precompute gather indices on host (numpy) -> no device->host syncs.
    cl_self_labels = jnp.asarray(build_cl_self_labels(labels, target_labels))

    # Warm the Buffered(1) support probe outside the jit trace.
    _buffered_weights_supported()

    out = cl_forward(params, aug_text_hidden, aug_text_mask, aug_image_feats,
                     text_hidden, text_mask, image_feats,
                     cl_self_labels, jnp.float32(1.0 / TEMPERATURE), heads=HEADS)
    jax.block_until_ready(out)

    output, l_pos_neg, cl_labels, cl_self_loss = out
    assert output.shape == (B, 3)
    assert l_pos_neg.shape == (B, B)
    assert cl_labels.shape == (B,)
    assert cl_self_loss.shape == ()
    print("KERNEL_OK")
</pallas_src>

<mosaic_0001>
module attributes {stable_mosaic.version = 11 : i64} {
  func.func @k(%arg0: i32, %arg1: memref<8x128xf32, #tpu.memory_space<vmem>>, %arg2: memref<8x128xf32, #tpu.memory_space<vmem>>, %arg3: memref<8x128xf32, #tpu.memory_space<vmem>>) attributes {dimension_semantics = [#tpu.dimension_semantics<arbitrary>], iteration_bounds = array<i64: 1>, scalar_prefetch = 0 : i64, scratch_operands = 0 : i64, tpu.core_type = #tpu.core_type<tc>, window_params = [{pipeline_mode = #tpu.pipeline_mode<synchronous>, transform_indices = @transform_0, window_bounds = array<i64: 8, 128>}, {pipeline_mode = #tpu.pipeline_mode<synchronous>, transform_indices = @transform_1, window_bounds = array<i64: 8, 128>}, {pipeline_mode = #tpu.pipeline_mode<synchronous>, transform_indices = @transform_2, window_bounds = array<i64: 8, 128>}]} {
    %c0 = arith.constant 0 : index
    %c0_0 = arith.constant 0 : index
    %0 = vector.load %arg1[%c0, %c0_0] : memref<8x128xf32, #tpu.memory_space<vmem>>, vector<8x128xf32>
    %c0_1 = arith.constant 0 : index
    %c0_2 = arith.constant 0 : index
    %1 = vector.load %arg2[%c0_1, %c0_2] : memref<8x128xf32, #tpu.memory_space<vmem>>, vector<8x128xf32>
    %2 = arith.addf %0, %1 : vector<8x128xf32>
    %c0_3 = arith.constant 0 : index
    %c0_4 = arith.constant 0 : index
    %3 = vector.load %arg3[%c0_3, %c0_4] : memref<8x128xf32, #tpu.memory_space<vmem>>, vector<8x128xf32>
    tpu.vector_store %arg3[%c0_3, %c0_4], %2 {strides = array<i32>} : memref<8x128xf32, #tpu.memory_space<vmem>>, vector<8x128xf32>,
    return
  }
  func.func @transform_0(%arg0: i32) -> (i32, i32) {
    %c0_i32 = arith.constant 0 : i32
    %c0_i32_0 = arith.constant 0 : i32
    %c0_i32_1 = arith.constant 0 : i32
    return %c0_i32, %c0_i32_0 : i32, i32
  }
  func.func @transform_1(%arg0: i32) -> (i32, i32) {
    %c0_i32 = arith.constant 0 : i32
    %c0_i32_0 = arith.constant 0 : i32
    %c0_i32_1 = arith.constant 0 : i32
    return %c0_i32, %c0_i32_0 : i32, i32
  }
  func.func @transform_2(%arg0: i32) -> (i32, i32) {
    %c0_i32 = arith.constant 0 : i32
    %c0_i32_0 = arith.constant 0 : i32
    %c0_i32_1 = arith.constant 0 : i32
    return %c0_i32, %c0_i32_0 : i32, i32
  }
}

module attributes {stable_mosaic.version = 11 : i64} {
  func.func @_linear_act_kernel(%arg0: i32, %arg1: memref<196x256xf32, #tpu.memory_space<vmem>>, %arg2: memref<256x128xbf16, #tpu.memory_space<vmem>>, %arg3: memref<1x128xf32, #tpu.memory_space<vmem>>, %arg4: memref<196x128xf32, #tpu.memory_space<vmem>>) attributes {dimension_semantics = [#tpu.dimension_semantics<parallel>], iteration_bounds = array<i64: 1>, scalar_prefetch = 0 : i64, scratch_operands = 0 : i64, tpu.core_type = #tpu.core_type<tc>, window_params = [{transform_indices = @transform_0, window_bounds = array<i64: 196, 256>}, {pipeline_mode = #tpu.pipeline_mode<synchronous>, transform_indices = @transform_1, window_bounds = array<i64: 256, 128>}, {pipeline_mode = #tpu.pipeline_mode<synchronous>, transform_indices = @transform_2, window_bounds = array<i64: 1, 128>}, {transform_indices = @transform_3, window_bounds = array<i64: 196, 128>}]} {
    %c0 = arith.constant 0 : index
    %c0_0 = arith.constant 0 : index
    %0 = vector.load %arg1[%c0, %c0_0] : memref<196x256xf32, #tpu.memory_space<vmem>>, vector<196x256xf32>
    %1 = arith.truncf %0 : vector<196x256xf32> to vector<196x256xbf16>
    %c0_1 = arith.constant 0 : index
    %c0_2 = arith.constant 0 : index
    %2 = vector.load %arg2[%c0_1, %c0_2] : memref<256x128xbf16, #tpu.memory_space<vmem>>, vector<256x128xbf16>
    %cst = arith.constant dense<0.000000e+00> : vector<196x128xf32>
    %3 = tpu.matmul %1, %2, %cst {dimension_numbers = #tpu.dot_dimension_numbers<[1], [0], [0], [1], [0, 0, 1, 1], [], []>} : vector<196x256xbf16>, vector<256x128xbf16>, vector<196x128xf32> -> vector<196x128xf32>
    %c0_3 = arith.constant 0 : index
    %c0_4 = arith.constant 0 : index
    %4 = vector.load %arg3[%c0_3, %c0_4] : memref<1x128xf32, #tpu.memory_space<vmem>>, vector<1x128xf32>
    %5 = vector.broadcast %4 : vector<1x128xf32> to vector<196x128xf32>
    %6 = arith.addf %3, %5 : vector<196x128xf32>
    %7 = math.tanh %6 : vector<196x128xf32>
    %c0_5 = arith.constant 0 : index
    %c0_6 = arith.constant 0 : index
    %8 = vector.load %arg4[%c0_5, %c0_6] : memref<196x128xf32, #tpu.memory_space<vmem>>, vector<196x128xf32>
    tpu.vector_store %arg4[%c0_5, %c0_6], %7 {strides = array<i32>} : memref<196x128xf32, #tpu.memory_space<vmem>>, vector<196x128xf32>,
    return
  }
  func.func @transform_0(%arg0: i32) -> (i32, i32) {
    %c0_i32 = arith.constant 0 : i32
    %c0_i32_0 = arith.constant 0 : i32
    return %arg0, %c0_i32 : i32, i32
  }
  func.func @transform_1(%arg0: i32) -> (i32, i32) {
    %c0_i32 = arith.constant 0 : i32
    %c0_i32_0 = arith.constant 0 : i32
    %c0_i32_1 = arith.constant 0 : i32
    return %c0_i32, %c0_i32_0 : i32, i32
  }
  func.func @transform_2(%arg0: i32) -> (i32, i32) {
    %c0_i32 = arith.constant 0 : i32
    %c0_i32_0 = arith.constant 0 : i32
    %c0_i32_1 = arith.constant 0 : i32
    return %c0_i32, %c0_i32_0 : i32, i32
  }
  func.func @transform_3(%arg0: i32) -> (i32, i32) {
    %c0_i32 = arith.constant 0 : i32
    %c0_i32_0 = arith.constant 0 : i32
    return %arg0, %c0_i32 : i32, i32
  }
}

module attributes {stable_mosaic.version = 11 : i64} {
  func.func @_encoder_layer_kernel(%arg0: i32, %arg1: memref<1x49x128xf32, #tpu.memory_space<vmem>>, %arg2: memref<1x1x49xf32, #tpu.memory_space<vmem>>, %arg3: memref<128x384xbf16, #tpu.memory_space<vmem>>, %arg4: memref<1x384xf32, #tpu.memory_space<vmem>>, %arg5: memref<128x128xbf16, #tpu.memory_space<vmem>>, %arg6: memref<1x128xf32, #tpu.memory_space<vmem>>, %arg7: memref<1x128xf32, #tpu.memory_space<vmem>>, %arg8: memref<1x128xf32, #tpu.memory_space<vmem>>, %arg9: memref<128x256xbf16, #tpu.memory_space<vmem>>, %arg10: memref<1x256xf32, #tpu.memory_space<vmem>>, %arg11: memref<256x128xbf16, #tpu.memory_space<vmem>>, %arg12: memref<1x128xf32, #tpu.memory_space<vmem>>, %arg13: memref<1x128xf32, #tpu.memory_space<vmem>>, %arg14: memref<1x128xf32, #tpu.memory_space<vmem>>, %arg15: memref<1x49x128xf32, #tpu.memory_space<vmem>>, %arg16: memref<49x128xbf16, #tpu.memory_space<vmem>>) attributes {dimension_semantics = [#tpu.dimension_semantics<parallel>], iteration_bounds = array<i64: 4>, scalar_prefetch = 0 : i64, scratch_operands = 1 : i64, tpu.core_type = #tpu.core_type<tc>, window_params = [{transform_indices = @transform_0, window_bounds = array<i64: 1, 49, 128>}, {transform_indices = @transform_1, window_bounds = array<i64: 1, 1, 49>}, {pipeline_mode = #tpu.pipeline_mode<synchronous>, transform_indices = @transform_2, window_bounds = array<i64: 128, 384>}, {pipeline_mode = #tpu.pipeline_mode<synchronous>, transform_indices = @transform_3, window_bounds = array<i64: 1, 384>}, {pipeline_mode = #tpu.pipeline_mode<synchronous>, transform_indices = @transform_4, window_bounds = array<i64: 128, 128>}, {pipeline_mode = #tpu.pipeline_mode<synchronous>, transform_indices = @transform_5, window_bounds = array<i64: 1, 128>}, {pipeline_mode = #tpu.pipeline_mode<synchronous>, transform_indices = @transform_6, window_bounds = array<i64: 1, 128>}, {pipeline_mode = #tpu.pipeline_mode<synchronous>, transform_indices = @transform_7, window_bounds = array<i64: 1, 128>}, {pipeline_mode = #tpu.pipeline_mode<synchronous>, transform_indices = @transform_8, window_bounds = array<i64: 128, 256>}, {pipeline_mode = #tpu.pipeline_mode<synchronous>, transform_indices = @transform_9, window_bounds = array<i64: 1, 256>}, {pipeline_mode = #tpu.pipeline_mode<synchronous>, transform_indices = @transform_10, window_bounds = array<i64: 256, 128>}, {pipeline_mode = #tpu.pipeline_mode<synchronous>, transform_indices = @transform_11, window_bounds = array<i64: 1, 128>}, {pipeline_mode = #tpu.pipeline_mode<synchronous>, transform_indices = @transform_12, window_bounds = array<i64: 1, 128>}, {pipeline_mode = #tpu.pipeline_mode<synchronous>, transform_indices = @transform_13, window_bounds = array<i64: 1, 128>}, {transform_indices = @transform_14, window_bounds = array<i64: 1, 49, 128>}]} {
    %c0 = arith.constant 0 : index
    %c0_0 = arith.constant 0 : index
    %c0_1 = arith.constant 0 : index
    %0 = vector.load %arg1[%c0, %c0_0, %c0_1] : memref<1x49x128xf32, #tpu.memory_space<vmem>>, vector<1x49x128xf32>
    %1 = vector.shape_cast %0 : vector<1x49x128xf32> to vector<49x128xf32>
    %c0_2 = arith.constant 0 : index
    %c0_3 = arith.constant 0 : index
    %c0_4 = arith.constant 0 : index
    %2 = vector.load %arg2[%c0_2, %c0_3, %c0_4] : memref<1x1x49xf32, #tpu.memory_space<vmem>>, vector<1x1x49xf32>
    %3 = vector.shape_cast %2 : vector<1x1x49xf32> to vector<1x49xf32>
    %4 = arith.truncf %1 : vector<49x128xf32> to vector<49x128xbf16>
    %c0_5 = arith.constant 0 : index
    %c0_6 = arith.constant 0 : index
    %5 = vector.load %arg3[%c0_5, %c0_6] : memref<128x384xbf16, #tpu.memory_space<vmem>>, vector<128x384xbf16>
    %cst = arith.constant dense<0.000000e+00> : vector<49x384xf32>
    %6 = tpu.matmul %4, %5, %cst {dimension_numbers = #tpu.dot_dimension_numbers<[1], [0], [0], [1], [0, 0, 1, 1], [], []>} : vector<49x128xbf16>, vector<128x384xbf16>, vector<49x384xf32> -> vector<49x384xf32>
    %c0_7 = arith.constant 0 : index
    %c0_8 = arith.constant 0 : index
    %7 = vector.load %arg4[%c0_7, %c0_8] : memref<1x384xf32, #tpu.memory_space<vmem>>, vector<1x384xf32>
    %8 = vector.broadcast %7 : vector<1x384xf32> to vector<49x384xf32>
    %9 = arith.addf %6, %8 : vector<49x384xf32>
    %10 = vector.extract_strided_slice %9 {offsets = [0, 0], sizes = [49, 32], strides = [1, 1]} : vector<49x384xf32> to vector<49x32xf32>
    %11 = arith.truncf %10 : vector<49x32xf32> to vector<49x32xbf16>
    %12 = vector.extract_strided_slice %9 {offsets = [0, 128], sizes = [49, 32], strides = [1, 1]} : vector<49x384xf32> to vector<49x32xf32>
    %13 = arith.truncf %12 : vector<49x32xf32> to vector<49x32xbf16>
    %14 = vector.extract_strided_slice %9 {offsets = [0, 256], sizes = [49, 32], strides = [1, 1]} : vector<49x384xf32> to vector<49x32xf32>
    %15 = arith.truncf %14 : vector<49x32xf32> to vector<49x32xbf16>
    %cst_9 = arith.constant dense<0.000000e+00> : vector<49x49xf32>
    %16 = tpu.matmul %11, %13, %cst_9 {dimension_numbers = #tpu.dot_dimension_numbers<[1], [1], [0], [0], [0, 0, 1, 0], [], []>} : vector<49x32xbf16>, vector<49x32xbf16>, vector<49x49xf32> -> vector<49x49xf32>
    %cst_10 = arith.constant 0.176776692 : f32
    %17 = vector.broadcast %cst_10 : f32 to vector<49x49xf32>
    %18 = arith.mulf %16, %17 : vector<49x49xf32>
    %19 = vector.broadcast %3 : vector<1x49xf32> to vector<49x49xf32>
    %20 = arith.addf %18, %19 : vector<49x49xf32>
    %cst_11 = arith.constant dense<0xFF800000> : vector<49xf32>
    %21 = vector.multi_reduction <maximumf>, %20, %cst_11 [1] : vector<49x49xf32> to vector<49xf32>
    %22 = vector.shape_cast %21 : vector<49xf32> to vector<49x1xf32>
    %23 = vector.broadcast %22 : vector<49x1xf32> to vector<49x49xf32>
    %24 = arith.subf %20, %23 : vector<49x49xf32>
    %25 = math.exp %24 : vector<49x49xf32>
    %cst_12 = arith.constant dense<0.000000e+00> : vector<49xf32>
    %26 = vector.multi_reduction <add>, %25, %cst_12 [1] : vector<49x49xf32> to vector<49xf32>
    %27 = vector.shape_cast %26 : vector<49xf32> to vector<49x1xf32>
    %28 = tpu.reciprocal %27 {approx = true} : vector<49x1xf32> -> vector<49x1xf32>
    %29 = vector.broadcast %28 : vector<49x1xf32> to vector<49x49xf32>
    %30 = arith.mulf %25, %29 : vector<49x49xf32>
    %31 = arith.truncf %30 : vector<49x49xf32> to vector<49x49xbf16>
    %cst_13 = arith.constant dense<0.000000e+00> : vector<49x32xf32>
    %32 = tpu.matmul %31, %15, %cst_13 {dimension_numbers = #tpu.dot_dimension_numbers<[1], [0], [0], [1], [0, 0, 1, 1], [], []>} : vector<49x49xbf16>, vector<49x32xbf16>, vector<49x32xf32> -> vector<49x32xf32>
    %33 = arith.truncf %32 : vector<49x32xf32> to vector<49x32xbf16>
    %c0_14 = arith.constant 0 : index
    %c0_15 = arith.constant 0 : index
    %34 = vector.load %arg16[%c0_14, %c0_15] : memref<49x128xbf16, #tpu.memory_space<vmem>>, vector<49x32xbf16>
    tpu.vector_store %arg16[%c0_14, %c0_15], %33 {strides = array<i32>} : memref<49x128xbf16, #tpu.memory_space<vmem>>, vector<49x32xbf16>,
    %35 = vector.extract_strided_slice %9 {offsets = [0, 32], sizes = [49, 32], strides = [1, 1]} : vector<49x384xf32> to vector<49x32xf32>
    %36 = arith.truncf %35 : vector<49x32xf32> to vector<49x32xbf16>
    %37 = vector.extract_strided_slice %9 {offsets = [0, 160], sizes = [49, 32], strides = [1, 1]} : vector<49x384xf32> to vector<49x32xf32>
    %38 = arith.truncf %37 : vector<49x32xf32> to vector<49x32xbf16>
    %39 = vector.extract_strided_slice %9 {offsets = [0, 288], sizes = [49, 32], strides = [1, 1]} : vector<49x384xf32> to vector<49x32xf32>
    %40 = arith.truncf %39 : vector<49x32xf32> to vector<49x32xbf16>
    %cst_16 = arith.constant dense<0.000000e+00> : vector<49x49xf32>
    %41 = tpu.matmul %36, %38, %cst_16 {dimension_numbers = #tpu.dot_dimension_numbers<[1], [1], [0], [0], [0, 0, 1, 0], [], []>} : vector<49x32xbf16>, vector<49x32xbf16>, vector<49x49xf32> -> vector<49x49xf32>
    %cst_17 = arith.constant 0.176776692 : f32
    %42 = vector.broadcast %cst_17 : f32 to vector<49x49xf32>
    %43 = arith.mulf %41, %42 : vector<49x49xf32>
    %44 = vector.broadcast %3 : vector<1x49xf32> to vector<49x49xf32>
    %45 = arith.addf %43, %44 : vector<49x49xf32>
    %cst_18 = arith.constant dense<0xFF800000> : vector<49xf32>
    %46 = vector.multi_reduction <maximumf>, %45, %cst_18 [1] : vector<49x49xf32> to vector<49xf32>
    %47 = vector.shape_cast %46 : vector<49xf32> to vector<49x1xf32>
    %48 = vector.broadcast %47 : vector<49x1xf32> to vector<49x49xf32>
    %49 = arith.subf %45, %48 : vector<49x49xf32>
    %50 = math.exp %49 : vector<49x49xf32>
    %cst_19 = arith.constant dense<0.000000e+00> : vector<49xf32>
    %51 = vector.multi_reduction <add>, %50, %cst_19 [1] : vector<49x49xf32> to vector<49xf32>
    %52 = vector.shape_cast %51 : vector<49xf32> to vector<49x1xf32>
    %53 = tpu.reciprocal %52 {approx = true} : vector<49x1xf32> -> vector<49x1xf32>
    %54 = vector.broadcast %53 : vector<49x1xf32> to vector<49x49xf32>
    %55 = arith.mulf %50, %54 : vector<49x49xf32>
    %56 = arith.truncf %55 : vector<49x49xf32> to vector<49x49xbf16>
    %cst_20 = arith.constant dense<0.000000e+00> : vector<49x32xf32>
    %57 = tpu.matmul %56, %40, %cst_20 {dimension_numbers = #tpu.dot_dimension_numbers<[1], [0], [0], [1], [0, 0, 1, 1], [], []>} : vector<49x49xbf16>, vector<49x32xbf16>, vector<49x32xf32> -> vector<49x32xf32>
    %58 = arith.truncf %57 : vector<49x32xf32> to vector<49x32xbf16>
    %c0_21 = arith.constant 0 : index
    %c32 = arith.constant 32 : index
    %59 = vector.load %arg16[%c0_21, %c32] : memref<49x128xbf16, #tpu.memory_space<vmem>>, vector<49x32xbf16>
    tpu.vector_store %arg16[%c0_21, %c32], %58 {strides = array<i32>} : memref<49x128xbf16, #tpu.memory_space<vmem>>, vector<49x32xbf16>,
    %60 = vector.extract_strided_slice %9 {offsets = [0, 64], sizes = [49, 32], strides = [1, 1]} : vector<49x384xf32> to vector<49x32xf32>
    %61 = arith.truncf %60 : vector<49x32xf32> to vector<49x32xbf16>
    %62 = vector.extract_strided_slice %9 {offsets = [0, 192], sizes = [49, 32], strides = [1, 1]} : vector<49x384xf32> to vector<49x32xf32>
    %63 = arith.truncf %62 : vector<49x32xf32> to vector<49x32xbf16>
    %64 = vector.extract_strided_slice %9 {offsets = [0, 320], sizes = [49, 32], strides = [1, 1]} : vector<49x384xf32> to vector<49x32xf32>
    %65 = arith.truncf %64 : vector<49x32xf32> to vector<49x32xbf16>
    %cst_22 = arith.constant dense<0.000000e+00> : vector<49x49xf32>
    %66 = tpu.matmul %61, %63, %cst_22 {dimension_numbers = #tpu.dot_dimension_numbers<[1], [1], [0], [0], [0, 0, 1, 0], [], []>} : vector<49x32xbf16>, vector<49x32xbf16>, vector<49x49xf32> -> vector<49x49xf32>
    %cst_23 = arith.constant 0.176776692 : f32
    %67 = vector.broadcast %cst_23 : f32 to vector<49x49xf32>
    %68 = arith.mulf %66, %67 : vector<49x49xf32>
    %69 = vector.broadcast %3 : vector<1x49xf32> to vector<49x49xf32>
    %70 = arith.addf %68, %69 : vector<49x49xf32>
    %cst_24 = arith.constant dense<0xFF800000> : vector<49xf32>
    %71 = vector.multi_reduction <maximumf>, %70, %cst_24 [1] : vector<49x49xf32> to vector<49xf32>
    %72 = vector.shape_cast %71 : vector<49xf32> to vector<49x1xf32>
    %73 = vector.broadcast %72 : vector<49x1xf32> to vector<49x49xf32>
    %74 = arith.subf %70, %73 : vector<49x49xf32>
    %75 = math.exp %74 : vector<49x49xf32>
    %cst_25 = arith.constant dense<0.000000e+00> : vector<49xf32>
    %76 = vector.multi_reduction <add>, %75, %cst_25 [1] : vector<49x49xf32> to vector<49xf32>
    %77 = vector.shape_cast %76 : vector<49xf32> to vector<49x1xf32>
    %78 = tpu.reciprocal %77 {approx = true} : vector<49x1xf32> -> vector<49x1xf32>
    %79 = vector.broadcast %78 : vector<49x1xf32> to vector<49x49xf32>
    %80 = arith.mulf %75, %79 : vector<49x49xf32>
    %81 = arith.truncf %80 : vector<49x49xf32> to vector<49x49xbf16>
    %cst_26 = arith.constant dense<0.000000e+00> : vector<49x32xf32>
    %82 = tpu.matmul %81, %65, %cst_26 {dimension_numbers = #tpu.dot_dimension_numbers<[1], [0], [0], [1], [0, 0, 1, 1], [], []>} : vector<49x49xbf16>, vector<49x32xbf16>, vector<49x32xf32> -> vector<49x32xf32>
    %83 = arith.truncf %82 : vector<49x32xf32> to vector<49x32xbf16>
    %c0_27 = arith.constant 0 : index
    %c64 = arith.constant 64 : index
    %84 = vector.load %arg16[%c0_27, %c64] : memref<49x128xbf16, #tpu.memory_space<vmem>>, vector<49x32xbf16>
    tpu.vector_store %arg16[%c0_27, %c64], %83 {strides = array<i32>} : memref<49x128xbf16, #tpu.memory_space<vmem>>, vector<49x32xbf16>,
    %85 = vector.extract_strided_slice %9 {offsets = [0, 96], sizes = [49, 32], strides = [1, 1]} : vector<49x384xf32> to vector<49x32xf32>
    %86 = arith.truncf %85 : vector<49x32xf32> to vector<49x32xbf16>
    %87 = vector.extract_strided_slice %9 {offsets = [0, 224], sizes = [49, 32], strides = [1, 1]} : vector<49x384xf32> to vector<49x32xf32>
    %88 = arith.truncf %87 : vector<49x32xf32> to vector<49x32xbf16>
    %89 = vector.extract_strided_slice %9 {offsets = [0, 352], sizes = [49, 32], strides = [1, 1]} : vector<49x384xf32> to vector<49x32xf32>
    %90 = arith.truncf %89 : vector<49x32xf32> to vector<49x32xbf16>
    %cst_28 = arith.constant dense<0.000000e+00> : vector<49x49xf32>
    %91 = tpu.matmul %86, %88, %cst_28 {dimension_numbers = #tpu.dot_dimension_numbers<[1], [1], [0], [0], [0, 0, 1, 0], [], []>} : vector<49x32xbf16>, vector<49x32xbf16>, vector<49x49xf32> -> vector<49x49xf32>
    %cst_29 = arith.constant 0.176776692 : f32
    %92 = vector.broadcast %cst_29 : f32 to vector<49x49xf32>
    %93 = arith.mulf %91, %92 : vector<49x49xf32>
    %94 = vector.broadcast %3 : vector<1x49xf32> to vector<49x49xf32>
    %95 = arith.addf %93, %94 : vector<49x49xf32>
    %cst_30 = arith.constant dense<0xFF800000> : vector<49xf32>
    %96 = vector.multi_reduction <maximumf>, %95, %cst_30 [1] : vector<49x49xf32> to vector<49xf32>
    %97 = vector.shape_cast %96 : vector<49xf32> to vector<49x1xf32>
    %98 = vector.broadcast %97 : vector<49x1xf32> to vector<49x49xf32>
    %99 = arith.subf %95, %98 : vector<49x49xf32>
    %100 = math.exp %99 : vector<49x49xf32>
    %cst_31 = arith.constant dense<0.000000e+00> : vector<49xf32>
    %101 = vector.multi_reduction <add>, %100, %cst_31 [1] : vector<49x49xf32> to vector<49xf32>
    %102 = vector.shape_cast %101 : vector<49xf32> to vector<49x1xf32>
    %103 = tpu.reciprocal %102 {approx = true} : vector<49x1xf32> -> vector<49x1xf32>
    %104 = vector.broadcast %103 : vector<49x1xf32> to vector<49x49xf32>
    %105 = arith.mulf %100, %104 : vector<49x49xf32>
    %106 = arith.truncf %105 : vector<49x49xf32> to vector<49x49xbf16>
    %cst_32 = arith.constant dense<0.000000e+00> : vector<49x32xf32>
    %107 = tpu.matmul %106, %90, %cst_32 {dimension_numbers = #tpu.dot_dimension_numbers<[1], [0], [0], [1], [0, 0, 1, 1], [], []>} : vector<49x49xbf16>, vector<49x32xbf16>, vector<49x32xf32> -> vector<49x32xf32>
    %108 = arith.truncf %107 : vector<49x32xf32> to vector<49x32xbf16>
    %c0_33 = arith.constant 0 : index
    %c96 = arith.constant 96 : index
    %109 = vector.load %arg16[%c0_33, %c96] : memref<49x128xbf16, #tpu.memory_space<vmem>>, vector<49x32xbf16>
    tpu.vector_store %arg16[%c0_33, %c96], %108 {strides = array<i32>} : memref<49x128xbf16, #tpu.memory_space<vmem>>, vector<49x32xbf16>,
    %c0_34 = arith.constant 0 : index
    %c0_35 = arith.constant 0 : index
    %110 = vector.load %arg16[%c0_34, %c0_35] : memref<49x128xbf16, #tpu.memory_space<vmem>>, vector<49x128xbf16>
    %c0_36 = arith.constant 0 : index
    %c0_37 = arith.constant 0 : index
    %111 = vector.load %arg5[%c0_36, %c0_37] : memref<128x128xbf16, #tpu.memory_space<vmem>>, vector<128x128xbf16>
    %cst_38 = arith.constant dense<0.000000e+00> : vector<49x128xf32>
    %112 = tpu.matmul %110, %111, %cst_38 {dimension_numbers = #tpu.dot_dimension_numbers<[1], [0], [0], [1], [0, 0, 1, 1], [], []>} : vector<49x128xbf16>, vector<128x128xbf16>, vector<49x128xf32> -> vector<49x128xf32>
    %c0_39 = arith.constant 0 : index
    %c0_40 = arith.constant 0 : index
    %113 = vector.load %arg6[%c0_39, %c0_40] : memref<1x128xf32, #tpu.memory_space<vmem>>, vector<1x128xf32>
    %114 = vector.broadcast %113 : vector<1x128xf32> to vector<49x128xf32>
    %115 = arith.addf %112, %114 : vector<49x128xf32>
    %116 = arith.addf %115, %1 : vector<49x128xf32>
    %cst_41 = arith.constant dense<0.000000e+00> : vector<49xf32>
    %117 = vector.multi_reduction <add>, %116, %cst_41 [1] : vector<49x128xf32> to vector<49xf32>
    %118 = vector.shape_cast %117 : vector<49xf32> to vector<49x1xf32>
    %cst_42 = arith.constant 1.280000e+02 : f32
    %119 = vector.broadcast %cst_42 : f32 to vector<49x1xf32>
    %120 = arith.divf %118, %119 : vector<49x1xf32>
    %121 = vector.broadcast %120 : vector<49x1xf32> to vector<49x128xf32>
    %122 = arith.subf %116, %121 : vector<49x128xf32>
    %123 = arith.mulf %122, %122 : vector<49x128xf32>
    %cst_43 = arith.constant dense<0.000000e+00> : vector<49xf32>
    %124 = vector.multi_reduction <add>, %123, %cst_43 [1] : vector<49x128xf32> to vector<49xf32>
    %125 = vector.shape_cast %124 : vector<49xf32> to vector<49x1xf32>
    %cst_44 = arith.constant 1.280000e+02 : f32
    %126 = vector.broadcast %cst_44 : f32 to vector<49x1xf32>
    %127 = arith.divf %125, %126 : vector<49x1xf32>
    %128 = vector.broadcast %120 : vector<49x1xf32> to vector<49x128xf32>
    %129 = arith.subf %116, %128 : vector<49x128xf32>
    %cst_45 = arith.constant 9.99999974E-6 : f32
    %130 = vector.broadcast %cst_45 : f32 to vector<49x1xf32>
    %131 = arith.addf %127, %130 : vector<49x1xf32>
    %132 = math.rsqrt %131 : vector<49x1xf32>
    %133 = vector.broadcast %132 : vector<49x1xf32> to vector<49x128xf32>
    %134 = arith.mulf %129, %133 : vector<49x128xf32>
    %c0_46 = arith.constant 0 : index
    %c0_47 = arith.constant 0 : index
    %135 = vector.load %arg7[%c0_46, %c0_47] : memref<1x128xf32, #tpu.memory_space<vmem>>, vector<1x128xf32>
    %136 = vector.broadcast %135 : vector<1x128xf32> to vector<49x128xf32>
    %137 = arith.mulf %134, %136 : vector<49x128xf32>
    %c0_48 = arith.constant 0 : index
    %c0_49 = arith.constant 0 : index
    %138 = vector.load %arg8[%c0_48, %c0_49] : memref<1x128xf32, #tpu.memory_space<vmem>>, vector<1x128xf32>
    %139 = vector.broadcast %138 : vector<1x128xf32> to vector<49x128xf32>
    %140 = arith.addf %137, %139 : vector<49x128xf32>
    %141 = arith.truncf %140 : vector<49x128xf32> to vector<49x128xbf16>
    %c0_50 = arith.constant 0 : index
    %c0_51 = arith.constant 0 : index
    %142 = vector.load %arg9[%c0_50, %c0_51] : memref<128x256xbf16, #tpu.memory_space<vmem>>, vector<128x256xbf16>
    %cst_52 = arith.constant dense<0.000000e+00> : vector<49x256xf32>
    %143 = tpu.matmul %141, %142, %cst_52 {dimension_numbers = #tpu.dot_dimension_numbers<[1], [0], [0], [1], [0, 0, 1, 1], [], []>} : vector<49x128xbf16>, vector<128x256xbf16>, vector<49x256xf32> -> vector<49x256xf32>
    %c0_53 = arith.constant 0 : index
    %c0_54 = arith.constant 0 : index
    %144 = vector.load %arg10[%c0_53, %c0_54] : memref<1x256xf32, #tpu.memory_space<vmem>>, vector<1x256xf32>
    %145 = vector.broadcast %144 : vector<1x256xf32> to vector<49x256xf32>
    %146 = arith.addf %143, %145 : vector<49x256xf32>
    %147 = arith.mulf %146, %146 : vector<49x256xf32>
    %148 = arith.mulf %146, %147 : vector<49x256xf32>
    %cst_55 = arith.constant 4.471500e-02 : f32
    %149 = vector.broadcast %cst_55 : f32 to vector<49x256xf32>
    %150 = arith.mulf %149, %148 : vector<49x256xf32>
    %151 = arith.addf %146, %150 : vector<49x256xf32>
    %cst_56 = arith.constant 0.797884583 : f32
    %152 = vector.broadcast %cst_56 : f32 to vector<49x256xf32>
    %153 = arith.mulf %152, %151 : vector<49x256xf32>
    %154 = math.tanh %153 : vector<49x256xf32>
    %cst_57 = arith.constant 1.000000e+00 : f32
    %155 = vector.broadcast %cst_57 : f32 to vector<49x256xf32>
    %156 = arith.addf %155, %154 : vector<49x256xf32>
    %cst_58 = arith.constant 5.000000e-01 : f32
    %157 = vector.broadcast %cst_58 : f32 to vector<49x256xf32>
    %158 = arith.mulf %157, %156 : vector<49x256xf32>
    %159 = arith.mulf %146, %158 : vector<49x256xf32>
    %160 = arith.truncf %159 : vector<49x256xf32> to vector<49x256xbf16>
    %c0_59 = arith.constant 0 : index
    %c0_60 = arith.constant 0 : index
    %161 = vector.load %arg11[%c0_59, %c0_60] : memref<256x128xbf16, #tpu.memory_space<vmem>>, vector<256x128xbf16>
    %cst_61 = arith.constant dense<0.000000e+00> : vector<49x128xf32>
    %162 = tpu.matmul %160, %161, %cst_61 {dimension_numbers = #tpu.dot_dimension_numbers<[1], [0], [0], [1], [0, 0, 1, 1], [], []>} : vector<49x256xbf16>, vector<256x128xbf16>, vector<49x128xf32> -> vector<49x128xf32>
    %c0_62 = arith.constant 0 : index
    %c0_63 = arith.constant 0 : index
    %163 = vector.load %arg12[%c0_62, %c0_63] : memref<1x128xf32, #tpu.memory_space<vmem>>, vector<1x128xf32>
    %164 = vector.broadcast %163 : vector<1x128xf32> to vector<49x128xf32>
    %165 = arith.addf %162, %164 : vector<49x128xf32>
    %166 = arith.addf %165, %140 : vector<49x128xf32>
    %cst_64 = arith.constant dense<0.000000e+00> : vector<49xf32>
    %167 = vector.multi_reduction <add>, %166, %cst_64 [1] : vector<49x128xf32> to vector<49xf32>
    %168 = vector.shape_cast %167 : vector<49xf32> to vector<49x1xf32>
    %cst_65 = arith.constant 1.280000e+02 : f32
    %169 = vector.broadcast %cst_65 : f32 to vector<49x1xf32>
    %170 = arith.divf %168, %169 : vector<49x1xf32>
    %171 = vector.broadcast %170 : vector<49x1xf32> to vector<49x128xf32>
    %172 = arith.subf %166, %171 : vector<49x128xf32>
    %173 = arith.mulf %172, %172 : vector<49x128xf32>
    %cst_66 = arith.constant dense<0.000000e+00> : vector<49xf32>
    %174 = vector.multi_reduction <add>, %173, %cst_66 [1] : vector<49x128xf32> to vector<49xf32>
    %175 = vector.shape_cast %174 : vector<49xf32> to vector<49x1xf32>
    %cst_67 = arith.constant 1.280000e+02 : f32
    %176 = vector.broadcast %cst_67 : f32 to vector<49x1xf32>
    %177 = arith.divf %175, %176 : vector<49x1xf32>
    %178 = vector.broadcast %170 : vector<49x1xf32> to vector<49x128xf32>
    %179 = arith.subf %166, %178 : vector<49x128xf32>
    %cst_68 = arith.constant 9.99999974E-6 : f32
    %180 = vector.broadcast %cst_68 : f32 to vector<49x1xf32>
    %181 = arith.addf %177, %180 : vector<49x1xf32>
    %182 = math.rsqrt %181 : vector<49x1xf32>
    %183 = vector.broadcast %182 : vector<49x1xf32> to vector<49x128xf32>
    %184 = arith.mulf %179, %183 : vector<49x128xf32>
    %c0_69 = arith.constant 0 : index
    %c0_70 = arith.constant 0 : index
    %185 = vector.load %arg13[%c0_69, %c0_70] : memref<1x128xf32, #tpu.memory_space<vmem>>, vector<1x128xf32>
    %186 = vector.broadcast %185 : vector<1x128xf32> to vector<49x128xf32>
    %187 = arith.mulf %184, %186 : vector<49x128xf32>
    %c0_71 = arith.constant 0 : index
    %c0_72 = arith.constant 0 : index
    %188 = vector.load %arg14[%c0_71, %c0_72] : memref<1x128xf32, #tpu.memory_space<vmem>>, vector<1x128xf32>
    %189 = vector.broadcast %188 : vector<1x128xf32> to vector<49x128xf32>
    %190 = arith.addf %187, %189 : vector<49x128xf32>
    %c0_73 = arith.constant 0 : index
    %c0_74 = arith.constant 0 : index
    %c0_75 = arith.constant 0 : index
    %191 = vector.load %arg15[%c0_73, %c0_74, %c0_75] : memref<1x49x128xf32, #tpu.memory_space<vmem>>, vector<1x49x128xf32>
    %192 = vector.shape_cast %191 : vector<1x49x128xf32> to vector<49x128xf32>
    %193 = vector.shape_cast %190 : vector<49x128xf32> to vector<1x49x128xf32>
    tpu.vector_store %arg15[%c0_73, %c0_74, %c0_75], %193 {strides = array<i32>} : memref<1x49x128xf32, #tpu.memory_space<vmem>>, vector<1x49x128xf32>,
    return
  }
  func.func @transform_0(%arg0: i32) -> (i32, i32, i32) {
    %c0_i32 = arith.constant 0 : i32
    %c0_i32_0 = arith.constant 0 : i32
    %c0_i32_1 = arith.constant 0 : i32
    return %arg0, %c0_i32, %c0_i32_0 : i32, i32, i32
  }
  func.func @transform_1(%arg0: i32) -> (i32, i32, i32) {
    %c0_i32 = arith.constant 0 : i32
    %c0_i32_0 = arith.constant 0 : i32
    %c0_i32_1 = arith.constant 0 : i32
    return %arg0, %c0_i32, %c0_i32_0 : i32, i32, i32
  }
  func.func @transform_2(%arg0: i32) -> (i32, i32) {
    %c0_i32 = arith.constant 0 : i32
    %c0_i32_0 = arith.constant 0 : i32
    %c0_i32_1 = arith.constant 0 : i32
    return %c0_i32, %c0_i32_0 : i32, i32
  }
  func.func @transform_3(%arg0: i32) -> (i32, i32) {
    %c0_i32 = arith.constant 0 : i32
    %c0_i32_0 = arith.constant 0 : i32
    %c0_i32_1 = arith.constant 0 : i32
    return %c0_i32, %c0_i32_0 : i32, i32
  }
  func.func @transform_4(%arg0: i32) -> (i32, i32) {
    %c0_i32 = arith.constant 0 : i32
    %c0_i32_0 = arith.constant 0 : i32
    %c0_i32_1 = arith.constant 0 : i32
    return %c0_i32, %c0_i32_0 : i32, i32
  }
  func.func @transform_5(%arg0: i32) -> (i32, i32) {
    %c0_i32 = arith.constant 0 : i32
    %c0_i32_0 = arith.constant 0 : i32
    %c0_i32_1 = arith.constant 0 : i32
    return %c0_i32, %c0_i32_0 : i32, i32
  }
  func.func @transform_6(%arg0: i32) -> (i32, i32) {
    %c0_i32 = arith.constant 0 : i32
    %c0_i32_0 = arith.constant 0 : i32
    %c0_i32_1 = arith.constant 0 : i32
    return %c0_i32, %c0_i32_0 : i32, i32
  }
  func.func @transform_7(%arg0: i32) -> (i32, i32) {
    %c0_i32 = arith.constant 0 : i32
    %c0_i32_0 = arith.constant 0 : i32
    %c0_i32_1 = arith.constant 0 : i32
    return %c0_i32, %c0_i32_0 : i32, i32
  }
  func.func @transform_8(%arg0: i32) -> (i32, i32) {
    %c0_i32 = arith.constant 0 : i32
    %c0_i32_0 = arith.constant 0 : i32
    %c0_i32_1 = arith.constant 0 : i32
    return %c0_i32, %c0_i32_0 : i32, i32
  }
  func.func @transform_9(%arg0: i32) -> (i32, i32) {
    %c0_i32 = arith.constant 0 : i32
    %c0_i32_0 = arith.constant 0 : i32
    %c0_i32_1 = arith.constant 0 : i32
    return %c0_i32, %c0_i32_0 : i32, i32
  }
  func.func @transform_10(%arg0: i32) -> (i32, i32) {
    %c0_i32 = arith.constant 0 : i32
    %c0_i32_0 = arith.constant 0 : i32
    %c0_i32_1 = arith.constant 0 : i32
    return %c0_i32, %c0_i32_0 : i32, i32
  }
  func.func @transform_11(%arg0: i32) -> (i32, i32) {
    %c0_i32 = arith.constant 0 : i32
    %c0_i32_0 = arith.constant 0 : i32
    %c0_i32_1 = arith.constant 0 : i32
    return %c0_i32, %c0_i32_0 : i32, i32
  }
  func.func @transform_12(%arg0: i32) -> (i32, i32) {
    %c0_i32 = arith.constant 0 : i32
    %c0_i32_0 = arith.constant 0 : i32
    %c0_i32_1 = arith.constant 0 : i32
    return %c0_i32, %c0_i32_0 : i32, i32
  }
  func.func @transform_13(%arg0: i32) -> (i32, i32) {
    %c0_i32 = arith.constant 0 : i32
    %c0_i32_0 = arith.constant 0 : i32
    %c0_i32_1 = arith.constant 0 : i32
    return %c0_i32, %c0_i32_0 : i32, i32
  }
  func.func @transform_14(%arg0: i32) -> (i32, i32, i32) {
    %c0_i32 = arith.constant 0 : i32
    %c0_i32_0 = arith.constant 0 : i32
    %c0_i32_1 = arith.constant 0 : i32
    return %arg0, %c0_i32, %c0_i32_0 : i32, i32, i32
  }
}

module attributes {stable_mosaic.version = 11 : i64} {
  func.func @_linear_act_kernel(%arg0: i32, %arg1: memref<32x128xf32, #tpu.memory_space<vmem>>, %arg2: memref<128x128xbf16, #tpu.memory_space<vmem>>, %arg3: memref<1x128xf32, #tpu.memory_space<vmem>>, %arg4: memref<32x128xf32, #tpu.memory_space<vmem>>) attributes {dimension_semantics = [#tpu.dimension_semantics<parallel>], iteration_bounds = array<i64: 1>, scalar_prefetch = 0 : i64, scratch_operands = 0 : i64, tpu.core_type = #tpu.core_type<tc>, window_params = [{transform_indices = @transform_0, window_bounds = array<i64: 32, 128>}, {pipeline_mode = #tpu.pipeline_mode<synchronous>, transform_indices = @transform_1, window_bounds = array<i64: 128, 128>}, {pipeline_mode = #tpu.pipeline_mode<synchronous>, transform_indices = @transform_2, window_bounds = array<i64: 1, 128>}, {transform_indices = @transform_3, window_bounds = array<i64: 32, 128>}]} {
    %c0 = arith.constant 0 : index
    %c0_0 = arith.constant 0 : index
    %0 = vector.load %arg1[%c0, %c0_0] : memref<32x128xf32, #tpu.memory_space<vmem>>, vector<32x128xf32>
    %1 = arith.truncf %0 : vector<32x128xf32> to vector<32x128xbf16>
    %c0_1 = arith.constant 0 : index
    %c0_2 = arith.constant 0 : index
    %2 = vector.load %arg2[%c0_1, %c0_2] : memref<128x128xbf16, #tpu.memory_space<vmem>>, vector<128x128xbf16>
    %cst = arith.constant dense<0.000000e+00> : vector<32x128xf32>
    %3 = tpu.matmul %1, %2, %cst {dimension_numbers = #tpu.dot_dimension_numbers<[1], [0], [0], [1], [0, 0, 1, 1], [], []>} : vector<32x128xbf16>, vector<128x128xbf16>, vector<32x128xf32> -> vector<32x128xf32>
    %c0_3 = arith.constant 0 : index
    %c0_4 = arith.constant 0 : index
    %4 = vector.load %arg3[%c0_3, %c0_4] : memref<1x128xf32, #tpu.memory_space<vmem>>, vector<1x128xf32>
    %5 = vector.broadcast %4 : vector<1x128xf32> to vector<32x128xf32>
    %6 = arith.addf %3, %5 : vector<32x128xf32>
    %7 = math.tanh %6 : vector<32x128xf32>
    %c0_5 = arith.constant 0 : index
    %c0_6 = arith.constant 0 : index
    %8 = vector.load %arg4[%c0_5, %c0_6] : memref<32x128xf32, #tpu.memory_space<vmem>>, vector<32x128xf32>
    tpu.vector_store %arg4[%c0_5, %c0_6], %7 {strides = array<i32>} : memref<32x128xf32, #tpu.memory_space<vmem>>, vector<32x128xf32>,
    return
  }
  func.func @transform_0(%arg0: i32) -> (i32, i32) {
    %c0_i32 = arith.constant 0 : i32
    %c0_i32_0 = arith.constant 0 : i32
    return %arg0, %c0_i32 : i32, i32
  }
  func.func @transform_1(%arg0: i32) -> (i32, i32) {
    %c0_i32 = arith.constant 0 : i32
    %c0_i32_0 = arith.constant 0 : i32
    %c0_i32_1 = arith.constant 0 : i32
    return %c0_i32, %c0_i32_0 : i32, i32
  }
  func.func @transform_2(%arg0: i32) -> (i32, i32) {
    %c0_i32 = arith.constant 0 : i32
    %c0_i32_0 = arith.constant 0 : i32
    %c0_i32_1 = arith.constant 0 : i32
    return %c0_i32, %c0_i32_0 : i32, i32
  }
  func.func @transform_3(%arg0: i32) -> (i32, i32) {
    %c0_i32 = arith.constant 0 : i32
    %c0_i32_0 = arith.constant 0 : i32
    return %arg0, %c0_i32 : i32, i32
  }
}

module attributes {stable_mosaic.version = 11 : i64} {
  func.func @_encoder_layer_kernel(%arg0: i32, %arg1: memref<1x57x128xf32, #tpu.memory_space<vmem>>, %arg2: memref<1x1x57xf32, #tpu.memory_space<vmem>>, %arg3: memref<128x384xbf16, #tpu.memory_space<vmem>>, %arg4: memref<1x384xf32, #tpu.memory_space<vmem>>, %arg5: memref<128x128xbf16, #tpu.memory_space<vmem>>, %arg6: memref<1x128xf32, #tpu.memory_space<vmem>>, %arg7: memref<1x128xf32, #tpu.memory_space<vmem>>, %arg8: memref<1x128xf32, #tpu.memory_space<vmem>>, %arg9: memref<128x256xbf16, #tpu.memory_space<vmem>>, %arg10: memref<1x256xf32, #tpu.memory_space<vmem>>, %arg11: memref<256x128xbf16, #tpu.memory_space<vmem>>, %arg12: memref<1x128xf32, #tpu.memory_space<vmem>>, %arg13: memref<1x128xf32, #tpu.memory_space<vmem>>, %arg14: memref<1x128xf32, #tpu.memory_space<vmem>>, %arg15: memref<1x57x128xf32, #tpu.memory_space<vmem>>, %arg16: memref<57x128xbf16, #tpu.memory_space<vmem>>) attributes {dimension_semantics = [#tpu.dimension_semantics<parallel>], iteration_bounds = array<i64: 4>, scalar_prefetch = 0 : i64, scratch_operands = 1 : i64, tpu.core_type = #tpu.core_type<tc>, window_params = [{transform_indices = @transform_0, window_bounds = array<i64: 1, 57, 128>}, {transform_indices = @transform_1, window_bounds = array<i64: 1, 1, 57>}, {pipeline_mode = #tpu.pipeline_mode<synchronous>, transform_indices = @transform_2, window_bounds = array<i64: 128, 384>}, {pipeline_mode = #tpu.pipeline_mode<synchronous>, transform_indices = @transform_3, window_bounds = array<i64: 1, 384>}, {pipeline_mode = #tpu.pipeline_mode<synchronous>, transform_indices = @transform_4, window_bounds = array<i64: 128, 128>}, {pipeline_mode = #tpu.pipeline_mode<synchronous>, transform_indices = @transform_5, window_bounds = array<i64: 1, 128>}, {pipeline_mode = #tpu.pipeline_mode<synchronous>, transform_indices = @transform_6, window_bounds = array<i64: 1, 128>}, {pipeline_mode = #tpu.pipeline_mode<synchronous>, transform_indices = @transform_7, window_bounds = array<i64: 1, 128>}, {pipeline_mode = #tpu.pipeline_mode<synchronous>, transform_indices = @transform_8, window_bounds = array<i64: 128, 256>}, {pipeline_mode = #tpu.pipeline_mode<synchronous>, transform_indices = @transform_9, window_bounds = array<i64: 1, 256>}, {pipeline_mode = #tpu.pipeline_mode<synchronous>, transform_indices = @transform_10, window_bounds = array<i64: 256, 128>}, {pipeline_mode = #tpu.pipeline_mode<synchronous>, transform_indices = @transform_11, window_bounds = array<i64: 1, 128>}, {pipeline_mode = #tpu.pipeline_mode<synchronous>, transform_indices = @transform_12, window_bounds = array<i64: 1, 128>}, {pipeline_mode = #tpu.pipeline_mode<synchronous>, transform_indices = @transform_13, window_bounds = array<i64: 1, 128>}, {transform_indices = @transform_14, window_bounds = array<i64: 1, 57, 128>}]} {
    %c0 = arith.constant 0 : index
    %c0_0 = arith.constant 0 : index
    %c0_1 = arith.constant 0 : index
    %0 = vector.load %arg1[%c0, %c0_0, %c0_1] : memref<1x57x128xf32, #tpu.memory_space<vmem>>, vector<1x57x128xf32>
    %1 = vector.shape_cast %0 : vector<1x57x128xf32> to vector<57x128xf32>
    %c0_2 = arith.constant 0 : index
    %c0_3 = arith.constant 0 : index
    %c0_4 = arith.constant 0 : index
    %2 = vector.load %arg2[%c0_2, %c0_3, %c0_4] : memref<1x1x57xf32, #tpu.memory_space<vmem>>, vector<1x1x57xf32>
    %3 = vector.shape_cast %2 : vector<1x1x57xf32> to vector<1x57xf32>
    %4 = arith.truncf %1 : vector<57x128xf32> to vector<57x128xbf16>
    %c0_5 = arith.constant 0 : index
    %c0_6 = arith.constant 0 : index
    %5 = vector.load %arg3[%c0_5, %c0_6] : memref<128x384xbf16, #tpu.memory_space<vmem>>, vector<128x384xbf16>
    %cst = arith.constant dense<0.000000e+00> : vector<57x384xf32>
    %6 = tpu.matmul %4, %5, %cst {dimension_numbers = #tpu.dot_dimension_numbers<[1], [0], [0], [1], [0, 0, 1, 1], [], []>} : vector<57x128xbf16>, vector<128x384xbf16>, vector<57x384xf32> -> vector<57x384xf32>
    %c0_7 = arith.constant 0 : index
    %c0_8 = arith.constant 0 : index
    %7 = vector.load %arg4[%c0_7, %c0_8] : memref<1x384xf32, #tpu.memory_space<vmem>>, vector<1x384xf32>
    %8 = vector.broadcast %7 : vector<1x384xf32> to vector<57x384xf32>
    %9 = arith.addf %6, %8 : vector<57x384xf32>
    %10 = vector.extract_strided_slice %9 {offsets = [0, 0], sizes = [57, 32], strides = [1, 1]} : vector<57x384xf32> to vector<57x32xf32>
    %11 = arith.truncf %10 : vector<57x32xf32> to vector<57x32xbf16>
    %12 = vector.extract_strided_slice %9 {offsets = [0, 128], sizes = [57, 32], strides = [1, 1]} : vector<57x384xf32> to vector<57x32xf32>
    %13 = arith.truncf %12 : vector<57x32xf32> to vector<57x32xbf16>
    %14 = vector.extract_strided_slice %9 {offsets = [0, 256], sizes = [57, 32], strides = [1, 1]} : vector<57x384xf32> to vector<57x32xf32>
    %15 = arith.truncf %14 : vector<57x32xf32> to vector<57x32xbf16>
    %cst_9 = arith.constant dense<0.000000e+00> : vector<57x57xf32>
    %16 = tpu.matmul %11, %13, %cst_9 {dimension_numbers = #tpu.dot_dimension_numbers<[1], [1], [0], [0], [0, 0, 1, 0], [], []>} : vector<57x32xbf16>, vector<57x32xbf16>, vector<57x57xf32> -> vector<57x57xf32>
    %cst_10 = arith.constant 0.176776692 : f32
    %17 = vector.broadcast %cst_10 : f32 to vector<57x57xf32>
    %18 = arith.mulf %16, %17 : vector<57x57xf32>
    %19 = vector.broadcast %3 : vector<1x57xf32> to vector<57x57xf32>
    %20 = arith.addf %18, %19 : vector<57x57xf32>
    %cst_11 = arith.constant dense<0xFF800000> : vector<57xf32>
    %21 = vector.multi_reduction <maximumf>, %20, %cst_11 [1] : vector<57x57xf32> to vector<57xf32>
    %22 = vector.shape_cast %21 : vector<57xf32> to vector<57x1xf32>
    %23 = vector.broadcast %22 : vector<57x1xf32> to vector<57x57xf32>
    %24 = arith.subf %20, %23 : vector<57x57xf32>
    %25 = math.exp %24 : vector<57x57xf32>
    %cst_12 = arith.constant dense<0.000000e+00> : vector<57xf32>
    %26 = vector.multi_reduction <add>, %25, %cst_12 [1] : vector<57x57xf32> to vector<57xf32>
    %27 = vector.shape_cast %26 : vector<57xf32> to vector<57x1xf32>
    %28 = tpu.reciprocal %27 {approx = true} : vector<57x1xf32> -> vector<57x1xf32>
    %29 = vector.broadcast %28 : vector<57x1xf32> to vector<57x57xf32>
    %30 = arith.mulf %25, %29 : vector<57x57xf32>
    %31 = arith.truncf %30 : vector<57x57xf32> to vector<57x57xbf16>
    %cst_13 = arith.constant dense<0.000000e+00> : vector<57x32xf32>
    %32 = tpu.matmul %31, %15, %cst_13 {dimension_numbers = #tpu.dot_dimension_numbers<[1], [0], [0], [1], [0, 0, 1, 1], [], []>} : vector<57x57xbf16>, vector<57x32xbf16>, vector<57x32xf32> -> vector<57x32xf32>
    %33 = arith.truncf %32 : vector<57x32xf32> to vector<57x32xbf16>
    %c0_14 = arith.constant 0 : index
    %c0_15 = arith.constant 0 : index
    %34 = vector.load %arg16[%c0_14, %c0_15] : memref<57x128xbf16, #tpu.memory_space<vmem>>, vector<57x32xbf16>
    tpu.vector_store %arg16[%c0_14, %c0_15], %33 {strides = array<i32>} : memref<57x128xbf16, #tpu.memory_space<vmem>>, vector<57x32xbf16>,
    %35 = vector.extract_strided_slice %9 {offsets = [0, 32], sizes = [57, 32], strides = [1, 1]} : vector<57x384xf32> to vector<57x32xf32>
    %36 = arith.truncf %35 : vector<57x32xf32> to vector<57x32xbf16>
    %37 = vector.extract_strided_slice %9 {offsets = [0, 160], sizes = [57, 32], strides = [1, 1]} : vector<57x384xf32> to vector<57x32xf32>
    %38 = arith.truncf %37 : vector<57x32xf32> to vector<57x32xbf16>
    %39 = vector.extract_strided_slice %9 {offsets = [0, 288], sizes = [57, 32], strides = [1, 1]} : vector<57x384xf32> to vector<57x32xf32>
    %40 = arith.truncf %39 : vector<57x32xf32> to vector<57x32xbf16>
    %cst_16 = arith.constant dense<0.000000e+00> : vector<57x57xf32>
    %41 = tpu.matmul %36, %38, %cst_16 {dimension_numbers = #tpu.dot_dimension_numbers<[1], [1], [0], [0], [0, 0, 1, 0], [], []>} : vector<57x32xbf16>, vector<57x32xbf16>, vector<57x57xf32> -> vector<57x57xf32>
    %cst_17 = arith.constant 0.176776692 : f32
    %42 = vector.broadcast %cst_17 : f32 to vector<57x57xf32>
    %43 = arith.mulf %41, %42 : vector<57x57xf32>
    %44 = vector.broadcast %3 : vector<1x57xf32> to vector<57x57xf32>
    %45 = arith.addf %43, %44 : vector<57x57xf32>
    %cst_18 = arith.constant dense<0xFF800000> : vector<57xf32>
    %46 = vector.multi_reduction <maximumf>, %45, %cst_18 [1] : vector<57x57xf32> to vector<57xf32>
    %47 = vector.shape_cast %46 : vector<57xf32> to vector<57x1xf32>
    %48 = vector.broadcast %47 : vector<57x1xf32> to vector<57x57xf32>
    %49 = arith.subf %45, %48 : vector<57x57xf32>
    %50 = math.exp %49 : vector<57x57xf32>
    %cst_19 = arith.constant dense<0.000000e+00> : vector<57xf32>
    %51 = vector.multi_reduction <add>, %50, %cst_19 [1] : vector<57x57xf32> to vector<57xf32>
    %52 = vector.shape_cast %51 : vector<57xf32> to vector<57x1xf32>
    %53 = tpu.reciprocal %52 {approx = true} : vector<57x1xf32> -> vector<57x1xf32>
    %54 = vector.broadcast %53 : vector<57x1xf32> to vector<57x57xf32>
    %55 = arith.mulf %50, %54 : vector<57x57xf32>
    %56 = arith.truncf %55 : vector<57x57xf32> to vector<57x57xbf16>
    %cst_20 = arith.constant dense<0.000000e+00> : vector<57x32xf32>
    %57 = tpu.matmul %56, %40, %cst_20 {dimension_numbers = #tpu.dot_dimension_numbers<[1], [0], [0], [1], [0, 0, 1, 1], [], []>} : vector<57x57xbf16>, vector<57x32xbf16>, vector<57x32xf32> -> vector<57x32xf32>
    %58 = arith.truncf %57 : vector<57x32xf32> to vector<57x32xbf16>
    %c0_21 = arith.constant 0 : index
    %c32 = arith.constant 32 : index
    %59 = vector.load %arg16[%c0_21, %c32] : memref<57x128xbf16, #tpu.memory_space<vmem>>, vector<57x32xbf16>
    tpu.vector_store %arg16[%c0_21, %c32], %58 {strides = array<i32>} : memref<57x128xbf16, #tpu.memory_space<vmem>>, vector<57x32xbf16>,
    %60 = vector.extract_strided_slice %9 {offsets = [0, 64], sizes = [57, 32], strides = [1, 1]} : vector<57x384xf32> to vector<57x32xf32>
    %61 = arith.truncf %60 : vector<57x32xf32> to vector<57x32xbf16>
    %62 = vector.extract_strided_slice %9 {offsets = [0, 192], sizes = [57, 32], strides = [1, 1]} : vector<57x384xf32> to vector<57x32xf32>
    %63 = arith.truncf %62 : vector<57x32xf32> to vector<57x32xbf16>
    %64 = vector.extract_strided_slice %9 {offsets = [0, 320], sizes = [57, 32], strides = [1, 1]} : vector<57x384xf32> to vector<57x32xf32>
    %65 = arith.truncf %64 : vector<57x32xf32> to vector<57x32xbf16>
    %cst_22 = arith.constant dense<0.000000e+00> : vector<57x57xf32>
    %66 = tpu.matmul %61, %63, %cst_22 {dimension_numbers = #tpu.dot_dimension_numbers<[1], [1], [0], [0], [0, 0, 1, 0], [], []>} : vector<57x32xbf16>, vector<57x32xbf16>, vector<57x57xf32> -> vector<57x57xf32>
    %cst_23 = arith.constant 0.176776692 : f32
    %67 = vector.broadcast %cst_23 : f32 to vector<57x57xf32>
    %68 = arith.mulf %66, %67 : vector<57x57xf32>
    %69 = vector.broadcast %3 : vector<1x57xf32> to vector<57x57xf32>
    %70 = arith.addf %68, %69 : vector<57x57xf32>
    %cst_24 = arith.constant dense<0xFF800000> : vector<57xf32>
    %71 = vector.multi_reduction <maximumf>, %70, %cst_24 [1] : vector<57x57xf32> to vector<57xf32>
    %72 = vector.shape_cast %71 : vector<57xf32> to vector<57x1xf32>
    %73 = vector.broadcast %72 : vector<57x1xf32> to vector<57x57xf32>
    %74 = arith.subf %70, %73 : vector<57x57xf32>
    %75 = math.exp %74 : vector<57x57xf32>
    %cst_25 = arith.constant dense<0.000000e+00> : vector<57xf32>
    %76 = vector.multi_reduction <add>, %75, %cst_25 [1] : vector<57x57xf32> to vector<57xf32>
    %77 = vector.shape_cast %76 : vector<57xf32> to vector<57x1xf32>
    %78 = tpu.reciprocal %77 {approx = true} : vector<57x1xf32> -> vector<57x1xf32>
    %79 = vector.broadcast %78 : vector<57x1xf32> to vector<57x57xf32>
    %80 = arith.mulf %75, %79 : vector<57x57xf32>
    %81 = arith.truncf %80 : vector<57x57xf32> to vector<57x57xbf16>
    %cst_26 = arith.constant dense<0.000000e+00> : vector<57x32xf32>
    %82 = tpu.matmul %81, %65, %cst_26 {dimension_numbers = #tpu.dot_dimension_numbers<[1], [0], [0], [1], [0, 0, 1, 1], [], []>} : vector<57x57xbf16>, vector<57x32xbf16>, vector<57x32xf32> -> vector<57x32xf32>
    %83 = arith.truncf %82 : vector<57x32xf32> to vector<57x32xbf16>
    %c0_27 = arith.constant 0 : index
    %c64 = arith.constant 64 : index
    %84 = vector.load %arg16[%c0_27, %c64] : memref<57x128xbf16, #tpu.memory_space<vmem>>, vector<57x32xbf16>
    tpu.vector_store %arg16[%c0_27, %c64], %83 {strides = array<i32>} : memref<57x128xbf16, #tpu.memory_space<vmem>>, vector<57x32xbf16>,
    %85 = vector.extract_strided_slice %9 {offsets = [0, 96], sizes = [57, 32], strides = [1, 1]} : vector<57x384xf32> to vector<57x32xf32>
    %86 = arith.truncf %85 : vector<57x32xf32> to vector<57x32xbf16>
    %87 = vector.extract_strided_slice %9 {offsets = [0, 224], sizes = [57, 32], strides = [1, 1]} : vector<57x384xf32> to vector<57x32xf32>
    %88 = arith.truncf %87 : vector<57x32xf32> to vector<57x32xbf16>
    %89 = vector.extract_strided_slice %9 {offsets = [0, 352], sizes = [57, 32], strides = [1, 1]} : vector<57x384xf32> to vector<57x32xf32>
    %90 = arith.truncf %89 : vector<57x32xf32> to vector<57x32xbf16>
    %cst_28 = arith.constant dense<0.000000e+00> : vector<57x57xf32>
    %91 = tpu.matmul %86, %88, %cst_28 {dimension_numbers = #tpu.dot_dimension_numbers<[1], [1], [0], [0], [0, 0, 1, 0], [], []>} : vector<57x32xbf16>, vector<57x32xbf16>, vector<57x57xf32> -> vector<57x57xf32>
    %cst_29 = arith.constant 0.176776692 : f32
    %92 = vector.broadcast %cst_29 : f32 to vector<57x57xf32>
    %93 = arith.mulf %91, %92 : vector<57x57xf32>
    %94 = vector.broadcast %3 : vector<1x57xf32> to vector<57x57xf32>
    %95 = arith.addf %93, %94 : vector<57x57xf32>
    %cst_30 = arith.constant dense<0xFF800000> : vector<57xf32>
    %96 = vector.multi_reduction <maximumf>, %95, %cst_30 [1] : vector<57x57xf32> to vector<57xf32>
    %97 = vector.shape_cast %96 : vector<57xf32> to vector<57x1xf32>
    %98 = vector.broadcast %97 : vector<57x1xf32> to vector<57x57xf32>
    %99 = arith.subf %95, %98 : vector<57x57xf32>
    %100 = math.exp %99 : vector<57x57xf32>
    %cst_31 = arith.constant dense<0.000000e+00> : vector<57xf32>
    %101 = vector.multi_reduction <add>, %100, %cst_31 [1] : vector<57x57xf32> to vector<57xf32>
    %102 = vector.shape_cast %101 : vector<57xf32> to vector<57x1xf32>
    %103 = tpu.reciprocal %102 {approx = true} : vector<57x1xf32> -> vector<57x1xf32>
    %104 = vector.broadcast %103 : vector<57x1xf32> to vector<57x57xf32>
    %105 = arith.mulf %100, %104 : vector<57x57xf32>
    %106 = arith.truncf %105 : vector<57x57xf32> to vector<57x57xbf16>
    %cst_32 = arith.constant dense<0.000000e+00> : vector<57x32xf32>
    %107 = tpu.matmul %106, %90, %cst_32 {dimension_numbers = #tpu.dot_dimension_numbers<[1], [0], [0], [1], [0, 0, 1, 1], [], []>} : vector<57x57xbf16>, vector<57x32xbf16>, vector<57x32xf32> -> vector<57x32xf32>
    %108 = arith.truncf %107 : vector<57x32xf32> to vector<57x32xbf16>
    %c0_33 = arith.constant 0 : index
    %c96 = arith.constant 96 : index
    %109 = vector.load %arg16[%c0_33, %c96] : memref<57x128xbf16, #tpu.memory_space<vmem>>, vector<57x32xbf16>
    tpu.vector_store %arg16[%c0_33, %c96], %108 {strides = array<i32>} : memref<57x128xbf16, #tpu.memory_space<vmem>>, vector<57x32xbf16>,
    %c0_34 = arith.constant 0 : index
    %c0_35 = arith.constant 0 : index
    %110 = vector.load %arg16[%c0_34, %c0_35] : memref<57x128xbf16, #tpu.memory_space<vmem>>, vector<57x128xbf16>
    %c0_36 = arith.constant 0 : index
    %c0_37 = arith.constant 0 : index
    %111 = vector.load %arg5[%c0_36, %c0_37] : memref<128x128xbf16, #tpu.memory_space<vmem>>, vector<128x128xbf16>
    %cst_38 = arith.constant dense<0.000000e+00> : vector<57x128xf32>
    %112 = tpu.matmul %110, %111, %cst_38 {dimension_numbers = #tpu.dot_dimension_numbers<[1], [0], [0], [1], [0, 0, 1, 1], [], []>} : vector<57x128xbf16>, vector<128x128xbf16>, vector<57x128xf32> -> vector<57x128xf32>
    %c0_39 = arith.constant 0 : index
    %c0_40 = arith.constant 0 : index
    %113 = vector.load %arg6[%c0_39, %c0_40] : memref<1x128xf32, #tpu.memory_space<vmem>>, vector<1x128xf32>
    %114 = vector.broadcast %113 : vector<1x128xf32> to vector<57x128xf32>
    %115 = arith.addf %112, %114 : vector<57x128xf32>
    %116 = arith.addf %115, %1 : vector<57x128xf32>
    %cst_41 = arith.constant dense<0.000000e+00> : vector<57xf32>
    %117 = vector.multi_reduction <add>, %116, %cst_41 [1] : vector<57x128xf32> to vector<57xf32>
    %118 = vector.shape_cast %117 : vector<57xf32> to vector<57x1xf32>
    %cst_42 = arith.constant 1.280000e+02 : f32
    %119 = vector.broadcast %cst_42 : f32 to vector<57x1xf32>
    %120 = arith.divf %118, %119 : vector<57x1xf32>
    %121 = vector.broadcast %120 : vector<57x1xf32> to vector<57x128xf32>
    %122 = arith.subf %116, %121 : vector<57x128xf32>
    %123 = arith.mulf %122, %122 : vector<57x128xf32>
    %cst_43 = arith.constant dense<0.000000e+00> : vector<57xf32>
    %124 = vector.multi_reduction <add>, %123, %cst_43 [1] : vector<57x128xf32> to vector<57xf32>
    %125 = vector.shape_cast %124 : vector<57xf32> to vector<57x1xf32>
    %cst_44 = arith.constant 1.280000e+02 : f32
    %126 = vector.broadcast %cst_44 : f32 to vector<57x1xf32>
    %127 = arith.divf %125, %126 : vector<57x1xf32>
    %128 = vector.broadcast %120 : vector<57x1xf32> to vector<57x128xf32>
    %129 = arith.subf %116, %128 : vector<57x128xf32>
    %cst_45 = arith.constant 9.99999974E-6 : f32
    %130 = vector.broadcast %cst_45 : f32 to vector<57x1xf32>
    %131 = arith.addf %127, %130 : vector<57x1xf32>
    %132 = math.rsqrt %131 : vector<57x1xf32>
    %133 = vector.broadcast %132 : vector<57x1xf32> to vector<57x128xf32>
    %134 = arith.mulf %129, %133 : vector<57x128xf32>
    %c0_46 = arith.constant 0 : index
    %c0_47 = arith.constant 0 : index
    %135 = vector.load %arg7[%c0_46, %c0_47] : memref<1x128xf32, #tpu.memory_space<vmem>>, vector<1x128xf32>
    %136 = vector.broadcast %135 : vector<1x128xf32> to vector<57x128xf32>
    %137 = arith.mulf %134, %136 : vector<57x128xf32>
    %c0_48 = arith.constant 0 : index
    %c0_49 = arith.constant 0 : index
    %138 = vector.load %arg8[%c0_48, %c0_49] : memref<1x128xf32, #tpu.memory_space<vmem>>, vector<1x128xf32>
    %139 = vector.broadcast %138 : vector<1x128xf32> to vector<57x128xf32>
    %140 = arith.addf %137, %139 : vector<57x128xf32>
    %141 = arith.truncf %140 : vector<57x128xf32> to vector<57x128xbf16>
    %c0_50 = arith.constant 0 : index
    %c0_51 = arith.constant 0 : index
    %142 = vector.load %arg9[%c0_50, %c0_51] : memref<128x256xbf16, #tpu.memory_space<vmem>>, vector<128x256xbf16>
    %cst_52 = arith.constant dense<0.000000e+00> : vector<57x256xf32>
    %143 = tpu.matmul %141, %142, %cst_52 {dimension_numbers = #tpu.dot_dimension_numbers<[1], [0], [0], [1], [0, 0, 1, 1], [], []>} : vector<57x128xbf16>, vector<128x256xbf16>, vector<57x256xf32> -> vector<57x256xf32>
    %c0_53 = arith.constant 0 : index
    %c0_54 = arith.constant 0 : index
    %144 = vector.load %arg10[%c0_53, %c0_54] : memref<1x256xf32, #tpu.memory_space<vmem>>, vector<1x256xf32>
    %145 = vector.broadcast %144 : vector<1x256xf32> to vector<57x256xf32>
    %146 = arith.addf %143, %145 : vector<57x256xf32>
    %147 = arith.mulf %146, %146 : vector<57x256xf32>
    %148 = arith.mulf %146, %147 : vector<57x256xf32>
    %cst_55 = arith.constant 4.471500e-02 : f32
    %149 = vector.broadcast %cst_55 : f32 to vector<57x256xf32>
    %150 = arith.mulf %149, %148 : vector<57x256xf32>
    %151 = arith.addf %146, %150 : vector<57x256xf32>
    %cst_56 = arith.constant 0.797884583 : f32
    %152 = vector.broadcast %cst_56 : f32 to vector<57x256xf32>
    %153 = arith.mulf %152, %151 : vector<57x256xf32>
    %154 = math.tanh %153 : vector<57x256xf32>
    %cst_57 = arith.constant 1.000000e+00 : f32
    %155 = vector.broadcast %cst_57 : f32 to vector<57x256xf32>
    %156 = arith.addf %155, %154 : vector<57x256xf32>
    %cst_58 = arith.constant 5.000000e-01 : f32
    %157 = vector.broadcast %cst_58 : f32 to vector<57x256xf32>
    %158 = arith.mulf %157, %156 : vector<57x256xf32>
    %159 = arith.mulf %146, %158 : vector<57x256xf32>
    %160 = arith.truncf %159 : vector<57x256xf32> to vector<57x256xbf16>
    %c0_59 = arith.constant 0 : index
    %c0_60 = arith.constant 0 : index
    %161 = vector.load %arg11[%c0_59, %c0_60] : memref<256x128xbf16, #tpu.memory_space<vmem>>, vector<256x128xbf16>
    %cst_61 = arith.constant dense<0.000000e+00> : vector<57x128xf32>
    %162 = tpu.matmul %160, %161, %cst_61 {dimension_numbers = #tpu.dot_dimension_numbers<[1], [0], [0], [1], [0, 0, 1, 1], [], []>} : vector<57x256xbf16>, vector<256x128xbf16>, vector<57x128xf32> -> vector<57x128xf32>
    %c0_62 = arith.constant 0 : index
    %c0_63 = arith.constant 0 : index
    %163 = vector.load %arg12[%c0_62, %c0_63] : memref<1x128xf32, #tpu.memory_space<vmem>>, vector<1x128xf32>
    %164 = vector.broadcast %163 : vector<1x128xf32> to vector<57x128xf32>
    %165 = arith.addf %162, %164 : vector<57x128xf32>
    %166 = arith.addf %165, %140 : vector<57x128xf32>
    %cst_64 = arith.constant dense<0.000000e+00> : vector<57xf32>
    %167 = vector.multi_reduction <add>, %166, %cst_64 [1] : vector<57x128xf32> to vector<57xf32>
    %168 = vector.shape_cast %167 : vector<57xf32> to vector<57x1xf32>
    %cst_65 = arith.constant 1.280000e+02 : f32
    %169 = vector.broadcast %cst_65 : f32 to vector<57x1xf32>
    %170 = arith.divf %168, %169 : vector<57x1xf32>
    %171 = vector.broadcast %170 : vector<57x1xf32> to vector<57x128xf32>
    %172 = arith.subf %166, %171 : vector<57x128xf32>
    %173 = arith.mulf %172, %172 : vector<57x128xf32>
    %cst_66 = arith.constant dense<0.000000e+00> : vector<57xf32>
    %174 = vector.multi_reduction <add>, %173, %cst_66 [1] : vector<57x128xf32> to vector<57xf32>
    %175 = vector.shape_cast %174 : vector<57xf32> to vector<57x1xf32>
    %cst_67 = arith.constant 1.280000e+02 : f32
    %176 = vector.broadcast %cst_67 : f32 to vector<57x1xf32>
    %177 = arith.divf %175, %176 : vector<57x1xf32>
    %178 = vector.broadcast %170 : vector<57x1xf32> to vector<57x128xf32>
    %179 = arith.subf %166, %178 : vector<57x128xf32>
    %cst_68 = arith.constant 9.99999974E-6 : f32
    %180 = vector.broadcast %cst_68 : f32 to vector<57x1xf32>
    %181 = arith.addf %177, %180 : vector<57x1xf32>
    %182 = math.rsqrt %181 : vector<57x1xf32>
    %183 = vector.broadcast %182 : vector<57x1xf32> to vector<57x128xf32>
    %184 = arith.mulf %179, %183 : vector<57x128xf32>
    %c0_69 = arith.constant 0 : index
    %c0_70 = arith.constant 0 : index
    %185 = vector.load %arg13[%c0_69, %c0_70] : memref<1x128xf32, #tpu.memory_space<vmem>>, vector<1x128xf32>
    %186 = vector.broadcast %185 : vector<1x128xf32> to vector<57x128xf32>
    %187 = arith.mulf %184, %186 : vector<57x128xf32>
    %c0_71 = arith.constant 0 : index
    %c0_72 = arith.constant 0 : index
    %188 = vector.load %arg14[%c0_71, %c0_72] : memref<1x128xf32, #tpu.memory_space<vmem>>, vector<1x128xf32>
    %189 = vector.broadcast %188 : vector<1x128xf32> to vector<57x128xf32>
    %190 = arith.addf %187, %189 : vector<57x128xf32>
    %c0_73 = arith.constant 0 : index
    %c0_74 = arith.constant 0 : index
    %c0_75 = arith.constant 0 : index
    %191 = vector.load %arg15[%c0_73, %c0_74, %c0_75] : memref<1x57x128xf32, #tpu.memory_space<vmem>>, vector<1x57x128xf32>
    %192 = vector.shape_cast %191 : vector<1x57x128xf32> to vector<57x128xf32>
    %193 = vector.shape_cast %190 : vector<57x128xf32> to vector<1x57x128xf32>
    tpu.vector_store %arg15[%c0_73, %c0_74, %c0_75], %193 {strides = array<i32>} : memref<1x57x128xf32, #tpu.memory_space<vmem>>, vector<1x57x128xf32>,
    return
  }
  func.func @transform_0(%arg0: i32) -> (i32, i32, i32) {
    %c0_i32 = arith.constant 0 : i32
    %c0_i32_0 = arith.constant 0 : i32
    %c0_i32_1 = arith.constant 0 : i32
    return %arg0, %c0_i32, %c0_i32_0 : i32, i32, i32
  }
  func.func @transform_1(%arg0: i32) -> (i32, i32, i32) {
    %c0_i32 = arith.constant 0 : i32
    %c0_i32_0 = arith.constant 0 : i32
    %c0_i32_1 = arith.constant 0 : i32
    return %arg0, %c0_i32, %c0_i32_0 : i32, i32, i32
  }
  func.func @transform_2(%arg0: i32) -> (i32, i32) {
    %c0_i32 = arith.constant 0 : i32
    %c0_i32_0 = arith.constant 0 : i32
    %c0_i32_1 = arith.constant 0 : i32
    return %c0_i32, %c0_i32_0 : i32, i32
  }
  func.func @transform_3(%arg0: i32) -> (i32, i32) {
    %c0_i32 = arith.constant 0 : i32
    %c0_i32_0 = arith.constant 0 : i32
    %c0_i32_1 = arith.constant 0 : i32
    return %c0_i32, %c0_i32_0 : i32, i32
  }
  func.func @transform_4(%arg0: i32) -> (i32, i32) {
    %c0_i32 = arith.constant 0 : i32
    %c0_i32_0 = arith.constant 0 : i32
    %c0_i32_1 = arith.constant 0 : i32
    return %c0_i32, %c0_i32_0 : i32, i32
  }
  func.func @transform_5(%arg0: i32) -> (i32, i32) {
    %c0_i32 = arith.constant 0 : i32
    %c0_i32_0 = arith.constant 0 : i32
    %c0_i32_1 = arith.constant 0 : i32
    return %c0_i32, %c0_i32_0 : i32, i32
  }
  func.func @transform_6(%arg0: i32) -> (i32, i32) {
    %c0_i32 = arith.constant 0 : i32
    %c0_i32_0 = arith.constant 0 : i32
    %c0_i32_1 = arith.constant 0 : i32
    return %c0_i32, %c0_i32_0 : i32, i32
  }
  func.func @transform_7(%arg0: i32) -> (i32, i32) {
    %c0_i32 = arith.constant 0 : i32
    %c0_i32_0 = arith.constant 0 : i32
    %c0_i32_1 = arith.constant 0 : i32
    return %c0_i32, %c0_i32_0 : i32, i32
  }
  func.func @transform_8(%arg0: i32) -> (i32, i32) {
    %c0_i32 = arith.constant 0 : i32
    %c0_i32_0 = arith.constant 0 : i32
    %c0_i32_1 = arith.constant 0 : i32
    return %c0_i32, %c0_i32_0 : i32, i32
  }
  func.func @transform_9(%arg0: i32) -> (i32, i32) {
    %c0_i32 = arith.constant 0 : i32
    %c0_i32_0 = arith.constant 0 : i32
    %c0_i32_1 = arith.constant 0 : i32
    return %c0_i32, %c0_i32_0 : i32, i32
  }
  func.func @transform_10(%arg0: i32) -> (i32, i32) {
    %c0_i32 = arith.constant 0 : i32
    %c0_i32_0 = arith.constant 0 : i32
    %c0_i32_1 = arith.constant 0 : i32
    return %c0_i32, %c0_i32_0 : i32, i32
  }
  func.func @transform_11(%arg0: i32) -> (i32, i32) {
    %c0_i32 = arith.constant 0 : i32
    %c0_i32_0 = arith.constant 0 : i32
    %c0_i32_1 = arith.constant 0 : i32
    return %c0_i32, %c0_i32_0 : i32, i32
  }
  func.func @transform_12(%arg0: i32) -> (i32, i32) {
    %c0_i32 = arith.constant 0 : i32
    %c0_i32_0 = arith.constant 0 : i32
    %c0_i32_1 = arith.constant 0 : i32
    return %c0_i32, %c0_i32_0 : i32, i32
  }
  func.func @transform_13(%arg0: i32) -> (i32, i32) {
    %c0_i32 = arith.constant 0 : i32
    %c0_i32_0 = arith.constant 0 : i32
    %c0_i32_1 = arith.constant 0 : i32
    return %c0_i32, %c0_i32_0 : i32, i32
  }
  func.func @transform_14(%arg0: i32) -> (i32, i32, i32) {
    %c0_i32 = arith.constant 0 : i32
    %c0_i32_0 = arith.constant 0 : i32
    %c0_i32_1 = arith.constant 0 : i32
    return %arg0, %c0_i32, %c0_i32_0 : i32, i32, i32
  }
}

module attributes {stable_mosaic.version = 11 : i64} {
  func.func @_attn_pool_kernel(%arg0: i32, %arg1: memref<1x57x128xf32, #tpu.memory_space<vmem>>, %arg2: memref<1x1x57xf32, #tpu.memory_space<vmem>>, %arg3: memref<128x64xbf16, #tpu.memory_space<vmem>>, %arg4: memref<1x64xf32, #tpu.memory_space<vmem>>, %arg5: memref<1x64xbf16, #tpu.memory_space<vmem>>, %arg6: memref<1x1xf32, #tpu.memory_space<vmem>>, %arg7: memref<1x1x128xf32, #tpu.memory_space<vmem>>) attributes {dimension_semantics = [#tpu.dimension_semantics<parallel>], iteration_bounds = array<i64: 4>, scalar_prefetch = 0 : i64, scratch_operands = 0 : i64, tpu.core_type = #tpu.core_type<tc>, window_params = [{transform_indices = @transform_0, window_bounds = array<i64: 1, 57, 128>}, {transform_indices = @transform_1, window_bounds = array<i64: 1, 1, 57>}, {pipeline_mode = #tpu.pipeline_mode<synchronous>, transform_indices = @transform_2, window_bounds = array<i64: 128, 64>}, {pipeline_mode = #tpu.pipeline_mode<synchronous>, transform_indices = @transform_3, window_bounds = array<i64: 1, 64>}, {pipeline_mode = #tpu.pipeline_mode<synchronous>, transform_indices = @transform_4, window_bounds = array<i64: 1, 64>}, {pipeline_mode = #tpu.pipeline_mode<synchronous>, transform_indices = @transform_5, window_bounds = array<i64: 1, 1>}, {transform_indices = @transform_6, window_bounds = array<i64: 1, 1, 128>}]} {
    %c0 = arith.constant 0 : index
    %c0_0 = arith.constant 0 : index
    %c0_1 = arith.constant 0 : index
    %0 = vector.load %arg1[%c0, %c0_0, %c0_1] : memref<1x57x128xf32, #tpu.memory_space<vmem>>, vector<1x57x128xf32>
    %1 = vector.shape_cast %0 : vector<1x57x128xf32> to vector<57x128xf32>
    %c0_2 = arith.constant 0 : index
    %c0_3 = arith.constant 0 : index
    %c0_4 = arith.constant 0 : index
    %2 = vector.load %arg2[%c0_2, %c0_3, %c0_4] : memref<1x1x57xf32, #tpu.memory_space<vmem>>, vector<1x1x57xf32>
    %3 = vector.shape_cast %2 : vector<1x1x57xf32> to vector<1x57xf32>
    %4 = arith.truncf %1 : vector<57x128xf32> to vector<57x128xbf16>
    %c0_5 = arith.constant 0 : index
    %c0_6 = arith.constant 0 : index
    %5 = vector.load %arg3[%c0_5, %c0_6] : memref<128x64xbf16, #tpu.memory_space<vmem>>, vector<128x64xbf16>
    %cst = arith.constant dense<0.000000e+00> : vector<57x64xf32>
    %6 = tpu.matmul %4, %5, %cst {dimension_numbers = #tpu.dot_dimension_numbers<[1], [0], [0], [1], [0, 0, 1, 1], [], []>} : vector<57x128xbf16>, vector<128x64xbf16>, vector<57x64xf32> -> vector<57x64xf32>
    %c0_7 = arith.constant 0 : index
    %c0_8 = arith.constant 0 : index
    %7 = vector.load %arg4[%c0_7, %c0_8] : memref<1x64xf32, #tpu.memory_space<vmem>>, vector<1x64xf32>
    %8 = vector.broadcast %7 : vector<1x64xf32> to vector<57x64xf32>
    %9 = arith.addf %6, %8 : vector<57x64xf32>
    %10 = arith.mulf %9, %9 : vector<57x64xf32>
    %11 = arith.mulf %9, %10 : vector<57x64xf32>
    %cst_9 = arith.constant 4.471500e-02 : f32
    %12 = vector.broadcast %cst_9 : f32 to vector<57x64xf32>
    %13 = arith.mulf %12, %11 : vector<57x64xf32>
    %14 = arith.addf %9, %13 : vector<57x64xf32>
    %cst_10 = arith.constant 0.797884583 : f32
    %15 = vector.broadcast %cst_10 : f32 to vector<57x64xf32>
    %16 = arith.mulf %15, %14 : vector<57x64xf32>
    %17 = math.tanh %16 : vector<57x64xf32>
    %cst_11 = arith.constant 1.000000e+00 : f32
    %18 = vector.broadcast %cst_11 : f32 to vector<57x64xf32>
    %19 = arith.addf %18, %17 : vector<57x64xf32>
    %cst_12 = arith.constant 5.000000e-01 : f32
    %20 = vector.broadcast %cst_12 : f32 to vector<57x64xf32>
    %21 = arith.mulf %20, %19 : vector<57x64xf32>
    %22 = arith.mulf %9, %21 : vector<57x64xf32>
    %c0_13 = arith.constant 0 : index
    %c0_14 = arith.constant 0 : index
    %23 = vector.load %arg5[%c0_13, %c0_14] : memref<1x64xbf16, #tpu.memory_space<vmem>>, vector<1x64xbf16>
    %24 = arith.truncf %22 : vector<57x64xf32> to vector<57x64xbf16>
    %cst_15 = arith.constant dense<0.000000e+00> : vector<1x57xf32>
    %25 = tpu.matmul %23, %24, %cst_15 {dimension_numbers = #tpu.dot_dimension_numbers<[1], [1], [0], [0], [0, 0, 1, 0], [], []>} : vector<1x64xbf16>, vector<57x64xbf16>, vector<1x57xf32> -> vector<1x57xf32>
    %c0_16 = arith.constant 0 : index
    %c0_17 = arith.constant 0 : index
    %26 = vector.load %arg6[%c0_16, %c0_17] : memref<1x1xf32, #tpu.memory_space<vmem>>, vector<1x1xf32>
    %27 = vector.broadcast %26 : vector<1x1xf32> to vector<1x57xf32>
    %28 = arith.addf %25, %27 : vector<1x57xf32>
    %cst_18 = arith.constant 0.000000e+00 : f32
    %29 = vector.broadcast %cst_18 : f32 to vector<1x57xf32>
    %30 = arith.cmpf oeq, %3, %29 : vector<1x57xf32>
    %cst_19 = arith.constant -1.000000e+09 : f32
    %31 = vector.broadcast %cst_19 : f32 to vector<1x57xf32>
    %32 = arith.select %30, %31, %28 : vector<1x57xi1>, vector<1x57xf32>
    %cst_20 = arith.constant dense<0xFF800000> : vector<1xf32>
    %33 = vector.multi_reduction <maximumf>, %32, %cst_20 [1] : vector<1x57xf32> to vector<1xf32>
    %34 = vector.shape_cast %33 : vector<1xf32> to vector<1x1xf32>
    %35 = vector.broadcast %34 : vector<1x1xf32> to vector<1x57xf32>
    %36 = arith.subf %32, %35 : vector<1x57xf32>
    %37 = math.exp %36 : vector<1x57xf32>
    %cst_21 = arith.constant dense<0.000000e+00> : vector<1xf32>
    %38 = vector.multi_reduction <add>, %37, %cst_21 [1] : vector<1x57xf32> to vector<1xf32>
    %39 = vector.shape_cast %38 : vector<1xf32> to vector<1x1xf32>
    %40 = tpu.reciprocal %39 {approx = true} : vector<1x1xf32> -> vector<1x1xf32>
    %41 = vector.broadcast %40 : vector<1x1xf32> to vector<1x57xf32>
    %42 = arith.mulf %37, %41 : vector<1x57xf32>
    %43 = arith.truncf %42 : vector<1x57xf32> to vector<1x57xbf16>
    %44 = arith.truncf %1 : vector<57x128xf32> to vector<57x128xbf16>
    %cst_22 = arith.constant dense<0.000000e+00> : vector<1x128xf32>
    %45 = tpu.matmul %43, %44, %cst_22 {dimension_numbers = #tpu.dot_dimension_numbers<[1], [0], [0], [1], [0, 0, 1, 1], [], []>} : vector<1x57xbf16>, vector<57x128xbf16>, vector<1x128xf32> -> vector<1x128xf32>
    %c0_23 = arith.constant 0 : index
    %c0_24 = arith.constant 0 : index
    %c0_25 = arith.constant 0 : index
    %46 = vector.load %arg7[%c0_23, %c0_24, %c0_25] : memref<1x1x128xf32, #tpu.memory_space<vmem>>, vector<1x1x128xf32>
    %47 = vector.shape_cast %46 : vector<1x1x128xf32> to vector<1x128xf32>
    %48 = vector.shape_cast %45 : vector<1x128xf32> to vector<1x1x128xf32>
    tpu.vector_store %arg7[%c0_23, %c0_24, %c0_25], %48 {strides = array<i32>} : memref<1x1x128xf32, #tpu.memory_space<vmem>>, vector<1x1x128xf32>,
    return
  }
  func.func @transform_0(%arg0: i32) -> (i32, i32, i32) {
    %c0_i32 = arith.constant 0 : i32
    %c0_i32_0 = arith.constant 0 : i32
    %c0_i32_1 = arith.constant 0 : i32
    return %arg0, %c0_i32, %c0_i32_0 : i32, i32, i32
  }
  func.func @transform_1(%arg0: i32) -> (i32, i32, i32) {
    %c0_i32 = arith.constant 0 : i32
    %c0_i32_0 = arith.constant 0 : i32
    %c0_i32_1 = arith.constant 0 : i32
    return %arg0, %c0_i32, %c0_i32_0 : i32, i32, i32
  }
  func.func @transform_2(%arg0: i32) -> (i32, i32) {
    %c0_i32 = arith.constant 0 : i32
    %c0_i32_0 = arith.constant 0 : i32
    %c0_i32_1 = arith.constant 0 : i32
    return %c0_i32, %c0_i32_0 : i32, i32
  }
  func.func @transform_3(%arg0: i32) -> (i32, i32) {
    %c0_i32 = arith.constant 0 : i32
    %c0_i32_0 = arith.constant 0 : i32
    %c0_i32_1 = arith.constant 0 : i32
    return %c0_i32, %c0_i32_0 : i32, i32
  }
  func.func @transform_4(%arg0: i32) -> (i32, i32) {
    %c0_i32 = arith.constant 0 : i32
    %c0_i32_0 = arith.constant 0 : i32
    %c0_i32_1 = arith.constant 0 : i32
    return %c0_i32, %c0_i32_0 : i32, i32
  }
  func.func @transform_5(%arg0: i32) -> (i32, i32) {
    %c0_i32 = arith.constant 0 : i32
    %c0_i32_0 = arith.constant 0 : i32
    %c0_i32_1 = arith.constant 0 : i32
    return %c0_i32, %c0_i32_0 : i32, i32
  }
  func.func @transform_6(%arg0: i32) -> (i32, i32, i32) {
    %c0_i32 = arith.constant 0 : i32
    %c0_i32_0 = arith.constant 0 : i32
    %c0_i32_1 = arith.constant 0 : i32
    return %arg0, %c0_i32, %c0_i32_0 : i32, i32, i32
  }
}

module attributes {stable_mosaic.version = 11 : i64} {
  func.func @_mlp2_kernel(%arg0: i32, %arg1: memref<4x128xf32, #tpu.memory_space<vmem>>, %arg2: memref<128x128xbf16, #tpu.memory_space<vmem>>, %arg3: memref<1x128xf32, #tpu.memory_space<vmem>>, %arg4: memref<128x128xbf16, #tpu.memory_space<vmem>>, %arg5: memref<1x128xf32, #tpu.memory_space<vmem>>, %arg6: memref<4x128xf32, #tpu.memory_space<vmem>>) attributes {dimension_semantics = [#tpu.dimension_semantics<parallel>], iteration_bounds = array<i64: 1>, scalar_prefetch = 0 : i64, scratch_operands = 0 : i64, tpu.core_type = #tpu.core_type<tc>, window_params = [{transform_indices = @transform_0, window_bounds = array<i64: 4, 128>}, {pipeline_mode = #tpu.pipeline_mode<synchronous>, transform_indices = @transform_1, window_bounds = array<i64: 128, 128>}, {pipeline_mode = #tpu.pipeline_mode<synchronous>, transform_indices = @transform_2, window_bounds = array<i64: 1, 128>}, {pipeline_mode = #tpu.pipeline_mode<synchronous>, transform_indices = @transform_3, window_bounds = array<i64: 128, 128>}, {pipeline_mode = #tpu.pipeline_mode<synchronous>, transform_indices = @transform_4, window_bounds = array<i64: 1, 128>}, {transform_indices = @transform_5, window_bounds = array<i64: 4, 128>}]} {
    %c0 = arith.constant 0 : index
    %c0_0 = arith.constant 0 : index
    %0 = vector.load %arg1[%c0, %c0_0] : memref<4x128xf32, #tpu.memory_space<vmem>>, vector<4x128xf32>
    %1 = arith.truncf %0 : vector<4x128xf32> to vector<4x128xbf16>
    %c0_1 = arith.constant 0 : index
    %c0_2 = arith.constant 0 : index
    %2 = vector.load %arg2[%c0_1, %c0_2] : memref<128x128xbf16, #tpu.memory_space<vmem>>, vector<128x128xbf16>
    %cst = arith.constant dense<0.000000e+00> : vector<4x128xf32>
    %3 = tpu.matmul %1, %2, %cst {dimension_numbers = #tpu.dot_dimension_numbers<[1], [0], [0], [1], [0, 0, 1, 1], [], []>} : vector<4x128xbf16>, vector<128x128xbf16>, vector<4x128xf32> -> vector<4x128xf32>
    %c0_3 = arith.constant 0 : index
    %c0_4 = arith.constant 0 : index
    %4 = vector.load %arg3[%c0_3, %c0_4] : memref<1x128xf32, #tpu.memory_space<vmem>>, vector<1x128xf32>
    %5 = vector.broadcast %4 : vector<1x128xf32> to vector<4x128xf32>
    %6 = arith.addf %3, %5 : vector<4x128xf32>
    %7 = arith.mulf %6, %6 : vector<4x128xf32>
    %8 = arith.mulf %6, %7 : vector<4x128xf32>
    %cst_5 = arith.constant 4.471500e-02 : f32
    %9 = vector.broadcast %cst_5 : f32 to vector<4x128xf32>
    %10 = arith.mulf %9, %8 : vector<4x128xf32>
    %11 = arith.addf %6, %10 : vector<4x128xf32>
    %cst_6 = arith.constant 0.797884583 : f32
    %12 = vector.broadcast %cst_6 : f32 to vector<4x128xf32>
    %13 = arith.mulf %12, %11 : vector<4x128xf32>
    %14 = math.tanh %13 : vector<4x128xf32>
    %cst_7 = arith.constant 1.000000e+00 : f32
    %15 = vector.broadcast %cst_7 : f32 to vector<4x128xf32>
    %16 = arith.addf %15, %14 : vector<4x128xf32>
    %cst_8 = arith.constant 5.000000e-01 : f32
    %17 = vector.broadcast %cst_8 : f32 to vector<4x128xf32>
    %18 = arith.mulf %17, %16 : vector<4x128xf32>
    %19 = arith.mulf %6, %18 : vector<4x128xf32>
    %20 = arith.truncf %19 : vector<4x128xf32> to vector<4x128xbf16>
    %c0_9 = arith.constant 0 : index
    %c0_10 = arith.constant 0 : index
    %21 = vector.load %arg4[%c0_9, %c0_10] : memref<128x128xbf16, #tpu.memory_space<vmem>>, vector<128x128xbf16>
    %cst_11 = arith.constant dense<0.000000e+00> : vector<4x128xf32>
    %22 = tpu.matmul %20, %21, %cst_11 {dimension_numbers = #tpu.dot_dimension_numbers<[1], [0], [0], [1], [0, 0, 1, 1], [], []>} : vector<4x128xbf16>, vector<128x128xbf16>, vector<4x128xf32> -> vector<4x128xf32>
    %c0_12 = arith.constant 0 : index
    %c0_13 = arith.constant 0 : index
    %23 = vector.load %arg5[%c0_12, %c0_13] : memref<1x128xf32, #tpu.memory_space<vmem>>, vector<1x128xf32>
    %24 = vector.broadcast %23 : vector<1x128xf32> to vector<4x128xf32>
    %25 = arith.addf %22, %24 : vector<4x128xf32>
    %c0_14 = arith.constant 0 : index
    %c0_15 = arith.constant 0 : index
    %26 = vector.load %arg6[%c0_14, %c0_15] : memref<4x128xf32, #tpu.memory_space<vmem>>, vector<4x128xf32>
    tpu.vector_store %arg6[%c0_14, %c0_15], %25 {strides = array<i32>} : memref<4x128xf32, #tpu.memory_space<vmem>>, vector<4x128xf32>,
    return
  }
  func.func @transform_0(%arg0: i32) -> (i32, i32) {
    %c0_i32 = arith.constant 0 : i32
    %c0_i32_0 = arith.constant 0 : i32
    return %arg0, %c0_i32 : i32, i32
  }
  func.func @transform_1(%arg0: i32) -> (i32, i32) {
    %c0_i32 = arith.constant 0 : i32
    %c0_i32_0 = arith.constant 0 : i32
    %c0_i32_1 = arith.constant 0 : i32
    return %c0_i32, %c0_i32_0 : i32, i32
  }
  func.func @transform_2(%arg0: i32) -> (i32, i32) {
    %c0_i32 = arith.constant 0 : i32
    %c0_i32_0 = arith.constant 0 : i32
    %c0_i32_1 = arith.constant 0 : i32
    return %c0_i32, %c0_i32_0 : i32, i32
  }
  func.func @transform_3(%arg0: i32) -> (i32, i32) {
    %c0_i32 = arith.constant 0 : i32
    %c0_i32_0 = arith.constant 0 : i32
    %c0_i32_1 = arith.constant 0 : i32
    return %c0_i32, %c0_i32_0 : i32, i32
  }
  func.func @transform_4(%arg0: i32) -> (i32, i32) {
    %c0_i32 = arith.constant 0 : i32
    %c0_i32_0 = arith.constant 0 : i32
    %c0_i32_1 = arith.constant 0 : i32
    return %c0_i32, %c0_i32_0 : i32, i32
  }
  func.func @transform_5(%arg0: i32) -> (i32, i32) {
    %c0_i32 = arith.constant 0 : i32
    %c0_i32_0 = arith.constant 0 : i32
    return %arg0, %c0_i32 : i32, i32
  }
}

</mosaic_0001>

<bundles_post_ra>
// kernel: tpu_custom_call.1
= control target key start
LH: loop header
LB: loop body
LE: loop exit
PB: predicated region body
PF: predicated region fallthrough
CT: control target
= control target key end

     0   :  { %7 = vsyncpa [#allocation3], 0  ;;  %s152_s0 = inlined_call_operand.hbm [shape: f32[8,128], index: 0, kind: input, shape index: {}]   ;;  %s153_s1 = inlined_call_operand.hbm [shape: f32[8,128], index: 1, kind: input, shape index: {}]   ;;  %s154_s2 = inlined_call_operand.hbm [shape: f32[8,128], index: 2, kind: output, shape index: {}]  }
   0x1   :  { %8 = vsyncpa [#allocation6], 0 }
   0x2   :  { %9 = vsyncpa [#allocation4], 0  ;;  %s125_s9 = smov [#allocation2]   ;;  %s126_s11 = smov [#allocation5]  }
   0x3   :  { %s16_s10 = sshll.u32 %s125_s9, 4  ;;  %s26_s12 = sshll.u32 %s126_s11, 4  ;;  %s17_s10 = int_to_ptr.vmem [resolvable:$true] %s16_s10  ;;  %s27_s12 = int_to_ptr.vmem [resolvable:$true] %s26_s12 }
   0x4   :  { %s67_s13 = scalar_lea.vmem %s17_s10, 128  ;;  %p72_p1 = scmp.lt.s32.totalorder %s17_s10, %s17_s10 }
   0x5   :  { %p68_p0 = scmp.ne.s32.totalorder %s17_s10, %s67_s13  ;;  %p73_p2 = scmp.lt.s32.totalorder %s67_s13, %s67_s13 }
   0x7   :  { %p74_p3 = por %p73_p2, %p72_p1 }
   0x9   :  { %p75_p4 = pnand %p74_p3, %p68_p0 }
   0xb   :  { %78 = shalt.err (!%p75_p4)
}
   0xc   :  { %19 = dma.hbm_to_vmem [thread:$0]  %s152_s0, 128, %s17_s10, [#allocation3]  }
   0xd   :  { %s87_s16 = scalar_lea.vmem %s27_s12, 128  ;;  %p92_p6 = scmp.lt.s32.totalorder %s27_s12, %s27_s12 }
   0xe   :  { %p88_p5 = scmp.ne.s32.totalorder %s27_s12, %s87_s16  ;;  %p93_p7 = scmp.lt.s32.totalorder %s87_s16, %s87_s16 }
  0x10   :  { %p94_p8 = por %p93_p7, %p92_p6 }
  0x12   :  { %p95_p9 = pnand %p94_p8, %p88_p5 }
  0x14   :  { %98 = shalt.err (!%p95_p9)
}
  0x15   :  { %29 = dma.hbm_to_vmem [thread:$0]  %s153_s1, 128, %s27_s12, [#allocation6]  }
  0x16   :  { %119 = dma.done.wait [#allocation3], 128  }
  0x17   :  { %120 = vsyncadd [#allocation3], 4294967168 }
  0x18   :  { %121 = dma.done.wait [#allocation6], 128  }
  0x19   :  { %122 = vsyncadd [#allocation6], 4294967168  ;;  %s127_s19 = smov [#allocation7]   ;;  %v36_v0 = vld [vmem:[#allocation2] sm:$0xff]  ;;  %v37_v1 = vld [vmem:[#allocation5] sm:$0xff] }
  0x1a   :  { %s46_s20 = sshll.u32 %s127_s19, 4  ;;  %v38_v2 = vadd.f32 %v37_v1, %v36_v0  ;;  %s47_s20 = int_to_ptr.vmem [resolvable:$true] %s46_s20 }
  0x1b   :  { %s99_s0 = scalar_lea.vmem %s47_s20, 128  ;;  %p104_p11 = scmp.lt.s32.totalorder %s47_s20, %s47_s20 }
  0x1c   :  { %39 = vst [vmem:[#allocation7] sm:$0xff] %v38_v2  ;;  %p100_p10 = scmp.ne.s32.totalorder %s47_s20, %s99_s0  ;;  %p105_p12 = scmp.lt.s32.totalorder %s99_s0, %s99_s0 }
  0x1e   :  { %p106_p13 = por %p105_p12, %p104_p11 }
  0x20   :  { %p107_p0 = pnand %p106_p13, %p100_p10 }
  0x22   :  { %110 = shalt.err (!%p107_p0)
}
  0x23   :  { %49 = dma.vmem_to_hbm [thread:$0]  %s47_s20, 128, %s154_s2, [#allocation4]  }
  0x24   :  { %123 = dma.done.wait [#allocation4], 128  }
  0x25   :  { %124 = vsyncadd [#allocation4], 4294967168 }
  0x26   :  { %53 = vsyncpa [#allocation3], 1 }
  0x27   :  { %54 = vsyncpa [#allocation6], 1 }
  0x28   :  { %55 = vsyncpa [#allocation4], 1 }

// kernel: cl_forward.6
= control target key start
LH: loop header
LB: loop body
LE: loop exit
PB: predicated region body
PF: predicated region fallthrough
CT: control target
= control target key end

     0   :  { %s932_s1 = inlined_call_operand.vmem [shape: bf16[256,128], index: 1, kind: input, shape index: {}]   ;;  %s933_s0 = inlined_call_operand.vmem [shape: f32[196,256], index: 0, kind: input, shape index: {}]   ;;  %s934_s2 = inlined_call_operand.vmem [shape: f32[1,128], index: 2, kind: input, shape index: {}]   ;;  %s935_s3 = inlined_call_operand.vmem [shape: f32[196,128], index: 3, kind: output, shape index: {}]  }
   0x1   :  { %v543_v0 = vld [vmem:[%s932_s1 + $0x78] sm:$0xff]   ;;  %v545_v2 = vld [vmem:[%s932_s1 + $0x70] sm:$0xff]   ;;  %v547_v4 = vld [vmem:[%s932_s1 + $0x68] sm:$0xff]  }
   0x2   :  { %v544_v1 = vld [vmem:[%s932_s1 + $0x38] sm:$0xff]   ;;  %433 = vmatprep.subr.bf16.mxu0 %v543_v0  ;;  %527 = vmatprep.subr.bf16.mxu1 %v543_v0  ;;  %v546_v3 = vld [vmem:[%s932_s1 + $0x30] sm:$0xff]   ;;  %v548_v5 = vld [vmem:[%s932_s1 + $0x28] sm:$0xff]  }
   0x3   :  { %434 = vmatpush3.bf16.msra.mxu0 %v544_v1  ;;  %535 = vmatpush3.bf16.msra.mxu1 %v544_v1  ;;  %v549_v6 = vld [vmem:[%s932_s1 + $0x60] sm:$0xff]   ;;  %v551_v8 = vld [vmem:[%s932_s1 + $0x58] sm:$0xff]   ;;  %v553_v10 = vld [vmem:[%s932_s1 + $0x50] sm:$0xff]  }
   0x4   :  { %435 = vmatprep.subr.bf16.mxu0 %v545_v2  ;;  %528 = vmatprep.subr.bf16.mxu1 %v545_v2  ;;  %v550_v7 = vld [vmem:[%s932_s1 + $0x20] sm:$0xff]   ;;  %v552_v9 = vld [vmem:[%s932_s1 + $0x18] sm:$0xff]   ;;  %v16_v11 = vld [vmem:[%s933_s0 + $0x8] sm:$0xff] }
   0x5   :  { %v18_v12 = vld [vmem:[%s933_s0 + $0x18] sm:$0xff]  ;;  %v44_v14 = vld [vmem:[%s933_s0 + $0xe8] sm:$0xff]  ;;  %v554_v17 = vld [vmem:[%s932_s1 + $0x10] sm:$0xff]  }
   0x6   :  { %v66_v13 = vpack.c.bf16 %v18_v12, %v16_v11  ;;  %v46_v15 = vld [vmem:[%s933_s0 + $0xf8] sm:$0xff]  ;;  %v555_v18 = vld [vmem:[%s932_s1 + $0x48] sm:$0xff]   ;;  %v557_v20 = vld [vmem:[%s932_s1 + $0x40] sm:$0xff]  }
   0x7   :  { %436 = vmatpush3.bf16.msra.mxu0 %v546_v3  ;;  %536 = vmatpush3.bf16.msra.mxu1 %v546_v3  ;;  %v80_v16 = vpack.c.bf16 %v46_v15, %v44_v14  ;;  %v556_v19 = vld [vmem:[%s932_s1 + $0x8] sm:$0xff]   ;;  %v558_v21 = vld [vmem:[%s932_s1] sm:$0xff]   ;;  %v17_v23 = vld [vmem:[%s933_s0 + $0x10] sm:$0xff] }
   0x8   :  { %437 = vmatprep.subr.bf16.mxu0 %v547_v4  ;;  %529 = vmatprep.subr.bf16.mxu1 %v547_v4  ;;  %v15_v22 = vld [vmem:[%s933_s0] sm:$0xff]  ;;  %v45_v25 = vld [vmem:[%s933_s0 + $0xf0] sm:$0xff]  ;;  %v20_v26 = vld [vmem:[%s933_s0 + $0x28] sm:$0xff] }
   0x9   :  { %258 = vmatprep.mubr.bf16.mxu0 %v66_v13  ;;  %314 = vmatprep.mubr.bf16.mxu1 %v80_v16  ;;  %v43_v24 = vld [vmem:[%s933_s0 + $0xe0] sm:$0xff]  ;;  %v22_v27 = vld [vmem:[%s933_s0 + $0x38] sm:$0xff]  ;;  %v48_v28 = vld [vmem:[%s933_s0 + $0x108] sm:$0xff]  ;;  %v65_v30 = vpack.c.bf16 %v17_v23, %v15_v22 }
   0xa   :  { %v50_v29 = vld [vmem:[%s933_s0 + $0x118] sm:$0xff]  ;;  %v79_v31 = vpack.c.bf16 %v45_v25, %v43_v24  ;;  %v68_v32 = vpack.c.bf16 %v22_v27, %v20_v26  ;;  %v19_v34 = vld [vmem:[%s933_s0 + $0x20] sm:$0xff]  ;;  %v21_v35 = vld [vmem:[%s933_s0 + $0x30] sm:$0xff] }
   0xb   :  { %438 = vmatpush3.bf16.msra.mxu0 %v548_v5  ;;  %537 = vmatpush3.bf16.msra.mxu1 %v548_v5  ;;  %v82_v33 = vpack.c.bf16 %v50_v29, %v48_v28  ;;  %v47_v36 = vld [vmem:[%s933_s0 + $0x100] sm:$0xff]  ;;  %v49_v37 = vld [vmem:[%s933_s0 + $0x110] sm:$0xff]  ;;  %v24_v38 = vld [vmem:[%s933_s0 + $0x48] sm:$0xff]  ;;  %v67_v42 = vpack.c.bf16 %v21_v35, %v19_v34 }
   0xc   :  { %439 = vmatprep.subr.bf16.mxu0 %v549_v6  ;;  %530 = vmatprep.subr.bf16.mxu1 %v549_v6  ;;  %v26_v39 = vld [vmem:[%s933_s0 + $0x58] sm:$0xff]  ;;  %v52_v40 = vld [vmem:[%s933_s0 + $0x128] sm:$0xff]  ;;  %v81_v43 = vpack.c.bf16 %v49_v37, %v47_v36  ;;  %v23_v46 = vld [vmem:[%s933_s0 + $0x40] sm:$0xff] }
   0xd   :  { %v54_v41 = vld [vmem:[%s933_s0 + $0x138] sm:$0xff]  ;;  %v70_v44 = vpack.c.bf16 %v26_v39, %v24_v38  ;;  %v25_v47 = vld [vmem:[%s933_s0 + $0x50] sm:$0xff]  ;;  %v51_v48 = vld [vmem:[%s933_s0 + $0x120] sm:$0xff] }
   0xe   :  { %v84_v45 = vpack.c.bf16 %v54_v41, %v52_v40  ;;  %v53_v49 = vld [vmem:[%s933_s0 + $0x130] sm:$0xff]  ;;  %v28_v50 = vld [vmem:[%s933_s0 + $0x68] sm:$0xff]  ;;  %v30_v51 = vld [vmem:[%s933_s0 + $0x78] sm:$0xff]  ;;  %v69_v54 = vpack.c.bf16 %v25_v47, %v23_v46 }
   0xf   :  { %440 = vmatpush3.bf16.msra.mxu0 %v550_v7  ;;  %538 = vmatpush3.bf16.msra.mxu1 %v550_v7  ;;  %v56_v52 = vld [vmem:[%s933_s0 + $0x148] sm:$0xff]  ;;  %v58_v53 = vld [vmem:[%s933_s0 + $0x158] sm:$0xff]  ;;  %v83_v55 = vpack.c.bf16 %v53_v49, %v51_v48  ;;  %v72_v56 = vpack.c.bf16 %v30_v51, %v28_v50  ;;  %v27_v58 = vld [vmem:[%s933_s0 + $0x60] sm:$0xff] }
  0x10   :  { %441 = vmatprep.subr.bf16.mxu0 %v551_v8  ;;  %531 = vmatprep.subr.bf16.mxu1 %v551_v8  ;;  %v86_v57 = vpack.c.bf16 %v58_v53, %v56_v52  ;;  %v29_v59 = vld [vmem:[%s933_s0 + $0x70] sm:$0xff]  ;;  %v55_v60 = vld [vmem:[%s933_s0 + $0x140] sm:$0xff]  ;;  %v32_v62 = vld [vmem:[%s933_s0 + $0x88] sm:$0xff] }
  0x11   :  { %v57_v61 = vld [vmem:[%s933_s0 + $0x150] sm:$0xff]  ;;  %v34_v63 = vld [vmem:[%s933_s0 + $0x98] sm:$0xff]  ;;  %v60_v0 = vld [vmem:[%s933_s0 + $0x168] sm:$0xff]  ;;  %v71_v2 = vpack.c.bf16 %v29_v59, %v27_v58 }
  0x12   :  { %v62_v1 = vld [vmem:[%s933_s0 + $0x178] sm:$0xff]  ;;  %v85_v3 = vpack.c.bf16 %v57_v61, %v55_v60  ;;  %v74_v4 = vpack.c.bf16 %v34_v63, %v32_v62  ;;  %v31_v6 = vld [vmem:[%s933_s0 + $0x80] sm:$0xff]  ;;  %v33_v7 = vld [vmem:[%s933_s0 + $0x90] sm:$0xff] }
  0x13   :  { %442 = vmatpush3.bf16.msra.mxu0 %v552_v9  ;;  %539 = vmatpush3.bf16.msra.mxu1 %v552_v9  ;;  %v88_v5 = vpack.c.bf16 %v62_v1, %v60_v0  ;;  %v59_v8 = vld [vmem:[%s933_s0 + $0x160] sm:$0xff]  ;;  %v61_v9 = vld [vmem:[%s933_s0 + $0x170] sm:$0xff]  ;;  %v38_v11 = vld [vmem:[%s933_s0 + $0xb8] sm:$0xff]  ;;  %v73_v13 = vpack.c.bf16 %v33_v7, %v31_v6 }
  0x14   :  { %443 = vmatprep.subr.bf16.mxu0 %v553_v10  ;;  %532 = vmatprep.subr.bf16.mxu1 %v553_v10  ;;  %v36_v10 = vld [vmem:[%s933_s0 + $0xa8] sm:$0xff]  ;;  %v87_v14 = vpack.c.bf16 %v61_v9, %v59_v8  ;;  %v39_v25 = vld [vmem:[%s933_s0 + $0xc0] sm:$0xff]  ;;  %v41_v26 = vld [vmem:[%s933_s0 + $0xd0] sm:$0xff] }
  0x15   :  { %v64_v12 = vld [vmem:[%s933_s0 + $0x188] sm:$0xf]  ;;  %v76_v15 = vpack.c.bf16 %v38_v11, %v36_v10  ;;  %v77_v27 = vpack.c.bf16 %v41_v26, %v39_v25 }
  0x16   :  { %v90_v16 = vpack.c.bf16 %v64_v12, %v64_v12 }
  0x17   :  { %444 = vmatpush3.bf16.msra.mxu0 %v554_v17  ;;  %540 = vmatpush3.bf16.msra.mxu1 %v554_v17  ;;  %v35_v17 = vld [vmem:[%s933_s0 + $0xa0] sm:$0xff] }
  0x18   :  { %445 = vmatprep.subr.bf16.mxu0 %v555_v18  ;;  %533 = vmatprep.subr.bf16.mxu1 %v555_v18  ;;  %v37_v18 = vld [vmem:[%s933_s0 + $0xb0] sm:$0xff] }
  0x19   :  { %v75_v22 = vpack.c.bf16 %v37_v18, %v35_v17 }
  0x1b   :  { %446 = vmatpush3.bf16.msra.mxu0 %v556_v19  ;;  %541 = vmatpush3.bf16.msra.mxu1 %v556_v19  ;;  %v63_v19 = vld [vmem:[%s933_s0 + $0x180] sm:$0xf] }
  0x1c   :  { %447 = vmatprep.subr.bf16.mxu0 %v557_v20  ;;  %534 = vmatprep.subr.bf16.mxu1 %v557_v20  ;;  %v40_v20 = vld [vmem:[%s933_s0 + $0xc8] sm:$0xff]  ;;  %v89_v23 = vpack.c.bf16 %v63_v19, %v63_v19 }
  0x1f   :  { %448 = vmatpush3.bf16.msra.mxu0 %v558_v21  ;;  %542 = vmatpush3.bf16.msra.mxu1 %v558_v21  ;;  %v42_v21 = vld [vmem:[%s933_s0 + $0xd8] sm:$0xff] }
  0x20   :  { %v78_v24 = vpack.c.bf16 %v42_v21, %v40_v20 }
  0x22   :  { %259 = vmatmul.mubr.bf16.vlgmr.msra.gmra.mxu0 %v65_v30  ;;  %315 = vmatmul.mubr.bf16.vlgmr.msra.gmra.mxu1 %v79_v31  ;;  %v830_v30 = vld [vmem:[%s934_s2] ss:$0 sm:$0xff] }
  0x23   :  { %266 = vmatprep.mubr.bf16.mxu0 %v68_v32  ;;  %322 = vmatprep.mubr.bf16.mxu1 %v82_v33 }
  0x2a   :  { %267 = vmatmul.mubr.bf16.gmra.mxu0 %v67_v42  ;;  %323 = vmatmul.mubr.bf16.gmra.mxu1 %v81_v43 }
  0x2b   :  { %274 = vmatprep.mubr.bf16.mxu0 %v70_v44  ;;  %330 = vmatprep.mubr.bf16.mxu1 %v84_v45 }
  0x32   :  { %275 = vmatmul.mubr.bf16.gmra.mxu0 %v69_v54  ;;  %331 = vmatmul.mubr.bf16.gmra.mxu1 %v83_v55 }
  0x33   :  { %282 = vmatprep.mubr.bf16.mxu0 %v72_v56  ;;  %338 = vmatprep.mubr.bf16.mxu1 %v86_v57 }
  0x3a   :  { %283 = vmatmul.mubr.bf16.gmra.mxu0 %v71_v2  ;;  %339 = vmatmul.mubr.bf16.gmra.mxu1 %v85_v3 }
  0x3b   :  { %290 = vmatprep.mubr.bf16.mxu0 %v74_v4  ;;  %346 = vmatprep.mubr.bf16.mxu1 %v88_v5 }
  0x42   :  { %291 = vmatmul.mubr.bf16.gmra.mxu0 %v73_v13  ;;  %347 = vmatmul.mubr.bf16.gmra.mxu1 %v87_v14 }
  0x43   :  { %298 = vmatprep.mubr.bf16.mxu0 %v76_v15  ;;  %354 = vmatprep.mubr.bf16.mxu1 %v90_v16 }
  0x4a   :  { %299 = vmatmul.mubr.bf16.gmra.mxu0 %v75_v22  ;;  %355 = vmatmul.mubr.bf16.gmra.mxu1 %v89_v23 }
  0x4b   :  { %306 = vmatprep.mubr.bf16.mxu0 %v78_v24 }
  0x52   :  { %307 = vmatmul.mubr.bf16.gmra.mxu0 %v77_v27 }
  0xe2   :  { %v449_v28 = vpop.f32.mrf.mxu0  ;;  %v491_v29 = vpop.f32.mrf.mxu1 }
  0xe4   :  { %v450_v31 = vpop.f32.mrf.mxu0  ;;  %v492_v32 = vpop.f32.mrf.mxu1 }
  0xe5   :  { %v451_v33 = vadd.f32 %v450_v31, %v449_v28  ;;  %v493_v34 = vadd.f32 %v492_v32, %v491_v29 }
  0xe6   :  { %v452_v35 = vpop.f32.mrf.mxu0  ;;  %v494_v36 = vpop.f32.mrf.mxu1 }
  0xe7   :  { %v261_v37 = vadd.f32 %v451_v33, %v830_v30  ;;  %v317_v38 = vadd.f32 %v493_v34, %v830_v30 }
  0xe8   :  { %v453_v39 = vpop.f32.mrf.mxu0  ;;  %v495_v40 = vpop.f32.mrf.mxu1 }
  0xe9   :  { %559 = vtanh.f32 %v261_v37  ;;  %v454_v41 = vadd.f32 %v453_v39, %v452_v35  ;;  %v496_v42 = vadd.f32 %v495_v40, %v494_v36 }
  0xea   :  { %v455_v43 = vpop.f32.mrf.mxu0  ;;  %561 = vtanh.f32 %v317_v38  ;;  %v497_v44 = vpop.f32.mrf.mxu1 }
  0xeb   :  { %v264_v45 = vadd.f32 %v454_v41, %v830_v30  ;;  %v320_v46 = vadd.f32 %v496_v42, %v830_v30 }
  0xec   :  { %v456_v47 = vpop.f32.mrf.mxu0  ;;  %v498_v48 = vpop.f32.mrf.mxu1 }
  0xed   :  { %563 = vtanh.f32 %v264_v45  ;;  %v457_v49 = vadd.f32 %v456_v47, %v455_v43  ;;  %v499_v50 = vadd.f32 %v498_v48, %v497_v44 }
  0xee   :  { %v458_v51 = vpop.f32.mrf.mxu0  ;;  %565 = vtanh.f32 %v320_v46  ;;  %v500_v52 = vpop.f32.mrf.mxu1 }
  0xef   :  { %v269_v53 = vadd.f32 %v457_v49, %v830_v30  ;;  %v325_v54 = vadd.f32 %v499_v50, %v830_v30 }
  0xf0   :  { %v459_v55 = vpop.f32.mrf.mxu0  ;;  %v501_v56 = vpop.f32.mrf.mxu1 }
  0xf1   :  { %567 = vtanh.f32 %v269_v53  ;;  %v460_v57 = vadd.f32 %v459_v55, %v458_v51  ;;  %v502_v58 = vadd.f32 %v501_v56, %v500_v52 }
  0xf2   :  { %v461_v59 = vpop.f32.mrf.mxu0  ;;  %569 = vtanh.f32 %v325_v54  ;;  %v503_v60 = vpop.f32.mrf.mxu1 }
  0xf3   :  { %v272_v61 = vadd.f32 %v460_v57, %v830_v30  ;;  %v328_v62 = vadd.f32 %v502_v58, %v830_v30 }
  0xf4   :  { %v462_v63 = vpop.f32.mrf.mxu0  ;;  %v504_v0 = vpop.f32.mrf.mxu1 }
  0xf5   :  { %571 = vtanh.f32 %v272_v61  ;;  %v463_v1 = vadd.f32 %v462_v63, %v461_v59  ;;  %v505_v2 = vadd.f32 %v504_v0, %v503_v60 }
  0xf6   :  { %v560_v3 = vpop.eup %559  ;;  %v464_v4 = vpop.f32.mrf.mxu0  ;;  %573 = vtanh.f32 %v328_v62 }
  0xf7   :  { %v506_v5 = vpop.f32.mrf.mxu1  ;;  %v562_v6 = vpop.eup %561  ;;  %387 = vst [vmem:[%s935_s3] sm:$0xff] %v560_v3  ;;  %v277_v7 = vadd.f32 %v463_v1, %v830_v30  ;;  %v333_v8 = vadd.f32 %v505_v2, %v830_v30 }
  0xf8   :  { %401 = vst [vmem:[%s935_s3 + $0x70] sm:$0xff] %v562_v6  ;;  %v465_v9 = vpop.f32.mrf.mxu0 }
  0xf9   :  { %v507_v10 = vpop.f32.mrf.mxu1  ;;  %575 = vtanh.f32 %v277_v7  ;;  %v466_v11 = vadd.f32 %v465_v9, %v464_v4 }
  0xfa   :  { %v508_v12 = vadd.f32 %v507_v10, %v506_v5  ;;  %v564_v13 = vpop.eup %563  ;;  %v467_v14 = vpop.f32.mrf.mxu0  ;;  %577 = vtanh.f32 %v333_v8 }
  0xfb   :  { %v509_v15 = vpop.f32.mrf.mxu1  ;;  %v566_v16 = vpop.eup %565  ;;  %388 = vst [vmem:[%s935_s3 + $0x8] sm:$0xff] %v564_v13  ;;  %v280_v17 = vadd.f32 %v466_v11, %v830_v30 }
  0xfc   :  { %v336_v18 = vadd.f32 %v508_v12, %v830_v30  ;;  %402 = vst [vmem:[%s935_s3 + $0x78] sm:$0xff] %v566_v16  ;;  %v468_v19 = vpop.f32.mrf.mxu0 }
  0xfd   :  { %v510_v20 = vpop.f32.mrf.mxu1  ;;  %579 = vtanh.f32 %v280_v17  ;;  %v469_v21 = vadd.f32 %v468_v19, %v467_v14 }
  0xfe   :  { %v511_v22 = vadd.f32 %v510_v20, %v509_v15  ;;  %v568_v23 = vpop.eup %567  ;;  %v470_v24 = vpop.f32.mrf.mxu0  ;;  %581 = vtanh.f32 %v336_v18 }
  0xff   :  { %v512_v25 = vpop.f32.mrf.mxu1  ;;  %v570_v26 = vpop.eup %569  ;;  %389 = vst [vmem:[%s935_s3 + $0x10] sm:$0xff] %v568_v23  ;;  %v285_v27 = vadd.f32 %v469_v21, %v830_v30 }
 0x100   :  { %v341_v28 = vadd.f32 %v511_v22, %v830_v30  ;;  %403 = vst [vmem:[%s935_s3 + $0x80] sm:$0xff] %v570_v26  ;;  %v471_v29 = vpop.f32.mrf.mxu0 }
 0x101   :  { %v513_v31 = vpop.f32.mrf.mxu1  ;;  %583 = vtanh.f32 %v285_v27  ;;  %v472_v32 = vadd.f32 %v471_v29, %v470_v24 }
 0x102   :  { %v514_v33 = vadd.f32 %v513_v31, %v512_v25  ;;  %v572_v34 = vpop.eup %571  ;;  %v473_v35 = vpop.f32.mrf.mxu0  ;;  %585 = vtanh.f32 %v341_v28 }
 0x103   :  { %v515_v36 = vpop.f32.mrf.mxu1  ;;  %v574_v37 = vpop.eup %573  ;;  %390 = vst [vmem:[%s935_s3 + $0x18] sm:$0xff] %v572_v34  ;;  %v288_v38 = vadd.f32 %v472_v32, %v830_v30 }
 0x104   :  { %v344_v39 = vadd.f32 %v514_v33, %v830_v30  ;;  %404 = vst [vmem:[%s935_s3 + $0x88] sm:$0xff] %v574_v37  ;;  %v474_v40 = vpop.f32.mrf.mxu0 }
 0x105   :  { %v516_v41 = vpop.f32.mrf.mxu1  ;;  %587 = vtanh.f32 %v288_v38  ;;  %v475_v42 = vadd.f32 %v474_v40, %v473_v35 }
 0x106   :  { %v517_v43 = vadd.f32 %v516_v41, %v515_v36  ;;  %v576_v44 = vpop.eup %575  ;;  %v476_v45 = vpop.f32.mrf.mxu0  ;;  %589 = vtanh.f32 %v344_v39 }
 0x107   :  { %v518_v46 = vpop.f32.mrf.mxu1  ;;  %v578_v47 = vpop.eup %577  ;;  %391 = vst [vmem:[%s935_s3 + $0x20] sm:$0xff] %v576_v44  ;;  %v293_v48 = vadd.f32 %v475_v42, %v830_v30 }
 0x108   :  { %v349_v49 = vadd.f32 %v517_v43, %v830_v30  ;;  %405 = vst [vmem:[%s935_s3 + $0x90] sm:$0xff] %v578_v47  ;;  %v477_v50 = vpop.f32.mrf.mxu0 }
 0x109   :  { %v519_v51 = vpop.f32.mrf.mxu1  ;;  %591 = vtanh.f32 %v293_v48  ;;  %v478_v52 = vadd.f32 %v477_v50, %v476_v45 }
 0x10a   :  { %v520_v53 = vadd.f32 %v519_v51, %v518_v46  ;;  %v580_v54 = vpop.eup %579  ;;  %v479_v55 = vpop.f32.mrf.mxu0  ;;  %593 = vtanh.f32 %v349_v49 }
 0x10b   :  { %v521_v56 = vpop.f32.mrf.mxu1  ;;  %v582_v57 = vpop.eup %581  ;;  %392 = vst [vmem:[%s935_s3 + $0x28] sm:$0xff] %v580_v54  ;;  %v296_v58 = vadd.f32 %v478_v52, %v830_v30 }
 0x10c   :  { %v352_v59 = vadd.f32 %v520_v53, %v830_v30  ;;  %406 = vst [vmem:[%s935_s3 + $0x98] sm:$0xff] %v582_v57  ;;  %v480_v60 = vpop.f32.mrf.mxu0 }
 0x10d   :  { %v522_v61 = vpop.f32.mrf.mxu1  ;;  %595 = vtanh.f32 %v296_v58  ;;  %v481_v62 = vadd.f32 %v480_v60, %v479_v55 }
 0x10e   :  { %v523_v63 = vadd.f32 %v522_v61, %v521_v56  ;;  %v584_v0 = vpop.eup %583  ;;  %v482_v1 = vpop.f32.mrf.mxu0  ;;  %597 = vtanh.f32 %v352_v59 }
 0x10f   :  { %v524_v2 = vpop.f32.mrf.mxu1  ;;  %v586_v3 = vpop.eup %585  ;;  %393 = vst [vmem:[%s935_s3 + $0x30] sm:$0xff] %v584_v0  ;;  %v301_v4 = vadd.f32 %v481_v62, %v830_v30 }
 0x110   :  { %v357_v5 = vadd.f32 %v523_v63, %v830_v30  ;;  %407 = vst [vmem:[%s935_s3 + $0xa0] sm:$0xff] %v586_v3  ;;  %v483_v6 = vpop.f32.mrf.mxu0 }
 0x111   :  { %v525_v7 = vpop.f32.mrf.mxu1  ;;  %599 = vtanh.f32 %v301_v4  ;;  %v484_v8 = vadd.f32 %v483_v6, %v482_v1 }
 0x112   :  { %v588_v9 = vpop.eup %587  ;;  %v485_v10 = vpop.f32.mrf.mxu0  ;;  %601 = vtanh.f32 %v357_v5 }
 0x113   :  { %v590_v11 = vpop.eup %589  ;;  %394 = vst [vmem:[%s935_s3 + $0x38] sm:$0xff] %v588_v9  ;;  %v304_v12 = vadd.f32 %v484_v8, %v830_v30 }
 0x114   :  { %408 = vst [vmem:[%s935_s3 + $0xa8] sm:$0xff] %v590_v11  ;;  %v486_v13 = vpop.f32.mrf.mxu0 }
 0x115   :  { %603 = vtanh.f32 %v304_v12  ;;  %v487_v14 = vadd.f32 %v486_v13, %v485_v10 }
 0x116   :  { %v592_v15 = vpop.eup %591  ;;  %v488_v16 = vpop.f32.mrf.mxu0 }
 0x117   :  { %v594_v17 = vpop.eup %593  ;;  %395 = vst [vmem:[%s935_s3 + $0x40] sm:$0xff] %v592_v15  ;;  %v309_v18 = vadd.f32 %v487_v14, %v830_v30 }
 0x118   :  { %409 = vst [vmem:[%s935_s3 + $0xb0] sm:$0xff] %v594_v17  ;;  %v489_v19 = vpop.f32.mrf.mxu0 }
 0x119   :  { %605 = vtanh.f32 %v309_v18  ;;  %v490_v20 = vadd.f32 %v489_v19, %v488_v16 }
 0x11a   :  { %v596_v21 = vpop.eup %595 }
 0x11b   :  { %v598_v22 = vpop.eup %597  ;;  %396 = vst [vmem:[%s935_s3 + $0x48] sm:$0xff] %v596_v21  ;;  %v312_v23 = vadd.f32 %v490_v20, %v830_v30 }
 0x11c   :  { %410 = vst [vmem:[%s935_s3 + $0xb8] sm:$0xff] %v598_v22 }
 0x11d   :  { %607 = vtanh.f32 %v312_v23 }
 0x11e   :  { %v600_v24 = vpop.eup %599 }
 0x11f   :  { %v602_v25 = vpop.eup %601  ;;  %397 = vst [vmem:[%s935_s3 + $0x50] sm:$0xff] %v600_v24 }
 0x120   :  { %411 = vst [vmem:[%s935_s3 + $0xc0] sm:$0xf] %v602_v25 }
 0x122   :  { %v604_v26 = vpop.eup %603 }
 0x123   :  { %398 = vst [vmem:[%s935_s3 + $0x58] sm:$0xff] %v604_v26 }
 0x126   :  { %v606_v30 = vpop.eup %605 }
 0x127   :  { %399 = vst [vmem:[%s935_s3 + $0x60] sm:$0xff] %v606_v30 }
 0x12a   :  { %v608_v27 = vpop.eup %607 }
 0x12b   :  { %400 = vst [vmem:[%s935_s3 + $0x68] sm:$0xff] %v608_v27 }

// kernel: cl_forward.8
= control target key start
LH: loop header
LB: loop body
LE: loop exit
PB: predicated region body
PF: predicated region fallthrough
CT: control target
= control target key end

     0   :  { %s279_s1 = inlined_call_operand.vmem [shape: bf16[128,128], index: 1, kind: input, shape index: {}]   ;;  %s280_s0 = inlined_call_operand.vmem [shape: f32[32,128], index: 0, kind: input, shape index: {}]   ;;  %s281_s2 = inlined_call_operand.vmem [shape: f32[1,128], index: 2, kind: input, shape index: {}]   ;;  %s282_s3 = inlined_call_operand.vmem [shape: f32[32,128], index: 3, kind: output, shape index: {}]  }
   0x1   :  { %v192_v0 = vld [vmem:[%s279_s1 + $0x38] sm:$0xff]   ;;  %v193_v1 = vld [vmem:[%s279_s1 + $0x30] sm:$0xff]   ;;  %v194_v2 = vld [vmem:[%s279_s1 + $0x28] sm:$0xff]  }
   0x2   :  { %172 = vmatprep.subr.bf16.mxu0 %v192_v0  ;;  %v195_v3 = vld [vmem:[%s279_s1 + $0x20] sm:$0xff]   ;;  %v16_v5 = vld [vmem:[%s280_s0 + $0x8] sm:$0xff]  ;;  %v196_v7 = vld [vmem:[%s279_s1 + $0x18] sm:$0xff]  }
   0x3   :  { %173 = vmatpush3.bf16.msra.mxu0 %v192_v0  ;;  %v15_v4 = vld [vmem:[%s280_s0] sm:$0xff]  ;;  %v197_v8 = vld [vmem:[%s279_s1 + $0x10] sm:$0xff]   ;;  %v198_v9 = vld [vmem:[%s279_s1 + $0x8] sm:$0xff]  }
   0x4   :  { %174 = vmatprep.subr.bf16.mxu0 %v193_v1  ;;  %v19_v6 = vpack.c.bf16 %v16_v5, %v15_v4  ;;  %v199_v10 = vld [vmem:[%s279_s1] sm:$0xff]   ;;  %v17_v11 = vld [vmem:[%s280_s0 + $0x10] sm:$0xff]  ;;  %v18_v12 = vld [vmem:[%s280_s0 + $0x18] sm:$0xff] }
   0x5   :  { %v20_v13 = vpack.c.bf16 %v18_v12, %v17_v11  ;;  %v153_v14 = vld [vmem:[%s281_s2] ss:$0 sm:$0xff] }
   0x6   :  { %188 = vmatprep.mubr.bf16.mxu0 %v19_v6 }
   0x7   :  { %175 = vmatpush3.bf16.msra.mxu0 %v193_v1 }
   0x8   :  { %176 = vmatprep.subr.bf16.mxu0 %v194_v2 }
   0xb   :  { %177 = vmatpush3.bf16.msra.mxu0 %v194_v2 }
   0xc   :  { %178 = vmatprep.subr.bf16.mxu0 %v195_v3 }
   0xf   :  { %179 = vmatpush3.bf16.msra.mxu0 %v195_v3 }
  0x10   :  { %180 = vmatprep.subr.bf16.mxu0 %v196_v7 }
  0x13   :  { %181 = vmatpush3.bf16.msra.mxu0 %v196_v7 }
  0x14   :  { %182 = vmatprep.subr.bf16.mxu0 %v197_v8 }
  0x17   :  { %183 = vmatpush3.bf16.msra.mxu0 %v197_v8 }
  0x18   :  { %184 = vmatprep.subr.bf16.mxu0 %v198_v9 }
  0x1b   :  { %185 = vmatpush3.bf16.msra.mxu0 %v198_v9 }
  0x1c   :  { %186 = vmatprep.subr.bf16.mxu0 %v199_v10 }
  0x1f   :  { %187 = vmatpush3.bf16.msra.mxu0 %v199_v10 }
  0x22   :  { %189 = vmatmul.mubr.bf16.vlgmr.msra.gmra.mxu0 %v20_v13 }
  0xe2   :  { %v190_v15 = vpop.f32.mrf.mxu0 }
  0xe3   :  { %v135_v16 = vadd.f32 %v190_v15, %v153_v14 }
  0xe4   :  { %v126_v17 = vpop.f32.mrf.mxu0 }
  0xe5   :  { %200 = vtanh.f32 %v135_v16  ;;  %v127_v18 = vadd.f32 %v153_v14, %v126_v17 }
  0xe6   :  { %v191_v19 = vpop.f32.mrf.mxu0 }
  0xe7   :  { %202 = vtanh.f32 %v127_v18  ;;  %v138_v20 = vadd.f32 %v191_v19, %v153_v14 }
  0xe8   :  { %v129_v21 = vpop.f32.mrf.mxu0 }
  0xe9   :  { %204 = vtanh.f32 %v138_v20  ;;  %v130_v22 = vadd.f32 %v153_v14, %v129_v21 }
  0xeb   :  { %206 = vtanh.f32 %v130_v22 }
  0xf2   :  { %v201_v23 = vpop.eup %200 }
  0xf3   :  { %147 = vst [vmem:[%s282_s3 + $0x10] sm:$0xff] %v201_v23 }
  0xf4   :  { %v203_v24 = vpop.eup %202 }
  0xf5   :  { %145 = vst [vmem:[%s282_s3] sm:$0xff] %v203_v24 }
  0xf6   :  { %v205_v25 = vpop.eup %204 }
  0xf7   :  { %148 = vst [vmem:[%s282_s3 + $0x18] sm:$0xff] %v205_v25 }
  0xf8   :  { %v207_v26 = vpop.eup %206 }
  0xf9   :  { %146 = vst [vmem:[%s282_s3 + $0x8] sm:$0xff] %v207_v26 }

// kernel: cl_forward.10
= control target key start
LH: loop header
LB: loop body
LE: loop exit
PB: predicated region body
PF: predicated region fallthrough
CT: control target
= control target key end

     0   :  { %s862_s23 = smov 0   ;;  %s991_s0 = inlined_call_operand.vmem [shape: f32[4,57,128], index: 0, kind: input, shape index: {}]   ;;  %s992_s1 = inlined_call_operand.vmem [shape: f32[4,1,57], index: 1, kind: input, shape index: {}]   ;;  %s993_s2 = inlined_call_operand.vmem [shape: bf16[128,64], index: 2, kind: input, shape index: {}]   ;;  %s994_s3 = inlined_call_operand.vmem [shape: f32[1,64], index: 3, kind: input, shape index: {}]   ;;  %s995_s4 = inlined_call_operand.vmem [shape: bf16[1,64], index: 4, kind: input, shape index: {}]   ;;  %s996_s5 = inlined_call_operand.<no memory space> [shape: f32[1,1], index: 5, kind: input, shape index: {}]   ;;  %s997_s6 = inlined_call_operand.vmem [shape: f32[4,1,128], index: 6, kind: output, shape index: {}]  }
   0x1   :  { %v11_v0 = vstv %s996_s5 }
   0x2   :  { %12 = vst [vmem:[#allocation2] sm:$0x1] %v11_v0 }
   0x3 LB: > { %s680_s24 = sadd.s32 4294967295, %s818_s23   ;;  %p684_p0 = scmp.ge.s32.totalorder %s818_s23, 1  ;;  %s818_s23 = sphi %s862_s23, %s18_s23  }
   0x4   : > { %p222_p1 = scmp.lt.s32.totalorder %s818_s23, 5 }
   0x6   : > { %p223_p2 = pnand %p684_p0, %p222_p1 }
   0x7   : > { %p253_p3 = scmp.lt.s32.totalorder (!%p223_p2), %s680_s24, 3 }
   0x8   : > { %226 = sbr.rel (%p223_p2) target bundleno = 1026 (0x402), region = 44 }
   0xd   : > { %v784_v1 = vld [vmem:[%s993_s2 + $0x38] sm:$0xff]   ;;  %v785_v2 = vld [vmem:[%s993_s2 + $0x30] sm:$0xff]   ;;  %s999_s24 = smov (!%p253_p3, %s680_s24), 3  ;;  %v786_v3 = vld [vmem:[%s993_s2 + $0x28] sm:$0xff]   ;;  %vm576_vm0 = vcmask 1043456   ;;  %vm577_vm1 = vcmask 1044480  }
   0xe   : > { %723 = vmatprep.subr.bf16.mxu0 %v784_v1  ;;  %s700_s30 = sshll.u32 %s999_s24, 6  ;;  %v787_v4 = vld [vmem:[%s993_s2 + $0x20] sm:$0xff]   ;;  %v788_v8 = vld [vmem:[%s993_s2 + $0x18] sm:$0xff]   ;;  %v789_v9 = vld [vmem:[%s993_s2 + $0x10] sm:$0xff]   ;;  %v820_v21 = vmov 65535   ;;  %v821_v25 = vmov 0.0   ;;  %s260_s27 = scalar_lea.vmem %s992_s1, %s999_s24 }
   0xf   : > { %724 = vmatpush3.bf16.msra.mxu0 %v784_v1  ;;  %s885_s9 = scalar_lea.vmem %s991_s0, %s700_s30  ;;  %v790_v10 = vld [vmem:[%s993_s2 + $0x8] sm:$0xff]   ;;  %v791_v11 = vld [vmem:[%s993_s2] sm:$0xff]   ;;  %v578_v22 = vsel %vm576_vm0, 4294967295, %v820_v21  ;;  %747 = vmatprep.subr.bf16.mxu1 %v821_v25  ;;  %vm822_vm2 = vmmov 0   ;;  %v823_v27 = vmov 0   ;;  %vm501_vm3 = vcmask 523264   ;;  %s263_s30 = scalar_lea.vmem %s997_s6, %s999_s24 }
  0x10   : > { %725 = vmatprep.subr.bf16.mxu0 %v785_v2  ;;  %v265_v5 = vld [vmem:[%s885_s9] sm:$0xff]  ;;  %v266_v6 = vld [vmem:[%s885_s9 + $0x8] sm:$0xff]  ;;  %v267_v12 = vld [vmem:[%s885_s9 + $0x10] sm:$0xff]  ;;  %v579_v23 = vsel %vm577_vm1, %v578_v22, 0  ;;  %755 = vmatprep.mubr.msk.bf16.mxu1 %vm822_vm2, %v821_v25  ;;  %vm559_vm5 = vcmask 458752   ;;  %vm572_vm6 = vcmask 465920  }
  0x11   : > { %v274_v7 = vpack.c.bf16 %v266_v6, %v265_v5  ;;  %v268_v13 = vld [vmem:[%s885_s9 + $0x18] sm:$0xff]  ;;  %v269_v14 = vld [vmem:[%s885_s9 + $0x20] sm:$0xff]  ;;  %v270_v15 = vld [vmem:[%s885_s9 + $0x28] sm:$0xff]  ;;  %783 = vset.pattern.permute.xlu0 %v823_v27 }
  0x12   : > { %v275_v16 = vpack.c.bf16 %v268_v13, %v267_v12  ;;  %v276_v17 = vpack.c.bf16 %v270_v15, %v269_v14  ;;  %v271_v18 = vld [vmem:[%s885_s9 + $0x30] sm:$0xff]  ;;  %v272_v19 = vld [vmem:[%s885_s9 + $0x38] sm:$0x1]  ;;  %v491_v26 = vld [vmem:[#allocation2] sm:$0x1] }
  0x13   : > { %726 = vmatpush3.bf16.msra.mxu0 %v785_v2  ;;  %739 = vmatprep.mubr.bf16.mxu0 %v274_v7  ;;  %v277_v20 = vpack.c.bf16 %v272_v19, %v271_v18  ;;  %v687_v32 = vld [vmem:[%s994_s3] ss:$0 sm:$0xff] }
  0x14   : > { %727 = vmatprep.subr.bf16.mxu0 %v786_v3  ;;  %494 = vperm.xlu0 %783, %v491_v26  }
  0x15   : > { %v581_v24 = vand.u32 %v579_v23, %v277_v20 }
  0x17   : > { %728 = vmatpush3.bf16.msra.mxu0 %v786_v3 }
  0x18   : > { %729 = vmatprep.subr.bf16.mxu0 %v787_v4 }
  0x1b   : > { %730 = vmatpush3.bf16.msra.mxu0 %v787_v4 }
  0x1c   : > { %731 = vmatprep.subr.bf16.mxu0 %v788_v8 }
  0x1f   : > { %732 = vmatpush3.bf16.msra.mxu0 %v788_v8 }
  0x20   : > { %733 = vmatprep.subr.bf16.mxu0 %v789_v9 }
  0x23   : > { %734 = vmatpush3.bf16.msra.mxu0 %v789_v9 }
  0x24   : > { %735 = vmatprep.subr.bf16.mxu0 %v790_v10 }
  0x27   : > { %736 = vmatpush3.bf16.msra.mxu0 %v790_v10 }
  0x28   : > { %737 = vmatprep.subr.bf16.mxu0 %v791_v11 }
  0x2b   : > { %738 = vmatpush3.bf16.msra.mxu0 %v791_v11 }
  0x2c   : > { %759 = vmatprep.subr.bf16.mxu0 %v821_v25 }
  0x2e   : > { %740 = vmatmul.mubr.bf16.vlgmr.msra.gmra.mxu0 %v275_v16 }
  0x2f   : > { %743 = vmatprep.mubr.bf16.mxu0 %v276_v17  ;;  %760 = vmatpush3.bf16.msra.mxu0 %v581_v24 }
  0x30   : > { %761 = vmatprep.subr.bf16.mxu0 %v821_v25 }
  0x33   : > { %762 = vmatpush3.bf16.msra.mxu0 %v276_v17 }
  0x34   : > { %763 = vmatprep.subr.bf16.mxu0 %v821_v25 }
  0x36   : > { %744 = vmatmul.mubr.bf16.gmra.mxu0 %v277_v20 }
  0x37   : > { %764 = vmatpush3.bf16.msra.mxu0 %v275_v16  ;;  %767 = vmatprep.mubr.msk.bf16.mxu0 %vm822_vm2, %v821_v25 }
  0x38   : > { %765 = vmatprep.subr.bf16.mxu0 %v821_v25 }
  0x3b   : > { %766 = vmatpush3.bf16.msra.mxu0 %v274_v7 }
  0xee   : > { %v741_v28 = vpop.f32.mrf.mxu0 }
  0xef   : > { %v922_v35 = vadd.f32 %v741_v28, %v687_v32 }
  0xf0   : > { %v383_v29 = vpop.f32.mrf.mxu0 }
  0xf1   : > { %v416_v42 = vmul.f32 %v922_v35, %v922_v35  ;;  %v943_v53 = vadd.f32 %v687_v32, %v383_v29 }
  0xf2   : > { %v742_v30 = vpop.f32.mrf.mxu0 }
  0xf3   : > { %v920_v33 = vadd.f32 %v742_v30, %v687_v32  ;;  %v424_v55 = vmul.f32 %v416_v42, %v922_v35  ;;  %v414_v1 = vmul.f32 %v943_v53, %v943_v53 }
  0xf4   : > { %v386_v31 = vpop.f32.mrf.mxu0 }
  0xf5   : > { %v417_v38 = vmul.f32 %v920_v33, %v920_v33  ;;  %v937_v47 = vadd.f32 %v687_v32, %v386_v31  ;;  %v432_v3 = vmul.f32 0.044715, %v424_v55  ;;  %v422_v12 = vmul.f32 %v414_v1, %v943_v53 }
  0xf6   : > { %v745_v34 = vpop.f32.mrf.mxu0  ;;  %v497_v1 = vlaneseq }
  0xf7   : > { %v924_v36 = vadd.f32 %v745_v34, %v687_v32  ;;  %v425_v49 = vmul.f32 %v417_v38, %v920_v33  ;;  %v415_v59 = vmul.f32 %v937_v47, %v937_v47  ;;  %v440_v11 = vadd.f32 %v432_v3, %v922_v35 }
  0xf8   : > { %v399_v37 = vpop.f32.mrf.mxu0  ;;  %v430_v16 = vmul.f32 0.044715, %v422_v12 }
  0xf9   : > { %v420_v39 = vmul.f32 %v924_v36, %v924_v36  ;;  %v930_v40 = vadd.f32 %v687_v32, %v399_v37  ;;  %v433_v61 = vmul.f32 0.044715, %v425_v49  ;;  %v423_v8 = vmul.f32 %v415_v59, %v937_v47 }
  0xfa   : > { %v746_v41 = vpop.f32.mrf.mxu0  ;;  %v448_v15 = vmul.f32 0.7978846, %v440_v11  ;;  %v438_v18 = vadd.f32 %v430_v16, %v943_v53 }
  0xfb   : > { %v428_v43 = vmul.f32 %v420_v39, %v924_v36  ;;  %v418_v44 = vmul.f32 %v930_v40, %v930_v40  ;;  %v411_v45 = vadd.f32 %v746_v41, %v687_v32  ;;  %v441_v7 = vadd.f32 %v433_v61, %v920_v33 }
  0xfc   : > { %v402_v46 = vpop.f32.mrf.mxu0  ;;  %v431_v14 = vmul.f32 0.044715, %v423_v8  ;;  %v446_v23 = vmul.f32 0.7978846, %v438_v18 }
  0xfd   : > { %v939_v48 = vadd.f32 %v687_v32, %v402_v46  ;;  %v436_v50 = vmul.f32 0.044715, %v428_v43  ;;  %v426_v51 = vmul.f32 %v418_v44, %v930_v40  ;;  %v421_v52 = vmul.f32 %v411_v45, %v411_v45 }
  0xfe   : > { %v449_v13 = vmul.f32 0.7978846, %v441_v7  ;;  %v439_v17 = vadd.f32 %v431_v14, %v937_v47 }
  0xff   : > { %v419_v54 = vmul.f32 %v939_v48, %v939_v48  ;;  %v444_v56 = vadd.f32 %v436_v50, %v924_v36  ;;  %v434_v57 = vmul.f32 0.044715, %v426_v51  ;;  %v429_v58 = vmul.f32 %v421_v52, %v411_v45 }
 0x100   : > { %v447_v20 = vmul.f32 0.7978846, %v439_v17 }
 0x101   : > { %v427_v60 = vmul.f32 %v419_v54, %v939_v48  ;;  %v452_v62 = vmul.f32 0.7978846, %v444_v56  ;;  %v442_v63 = vadd.f32 %v434_v57, %v930_v40  ;;  %v437_v0 = vmul.f32 0.044715, %v429_v58 }
 0x103   : > { %v435_v2 = vmul.f32 0.044715, %v427_v60  ;;  %792 = vtanh.f32 %v452_v62  ;;  %v450_v4 = vmul.f32 0.7978846, %v442_v63  ;;  %v445_v5 = vadd.f32 %v437_v0, %v411_v45 }
 0x105   : > { %v443_v6 = vadd.f32 %v435_v2, %v939_v48  ;;  %v453_v9 = vmul.f32 0.7978846, %v445_v5  ;;  %794 = vtanh.f32 %v450_v4  ;;  %v498_v2 = vshrl.u32 %v497_v1, 7  ;;  %v495_v4 = vpop.permute.xlu0 %494 }
 0x107   : > { %v451_v10 = vmul.f32 0.7978846, %v443_v6  ;;  %796 = vtanh.f32 %v453_v9  ;;  %v499_v3 = vsub.s32 0, %v498_v2 }
 0x109   : > { %798 = vtanh.f32 %v451_v10 }
 0x10a   : > { %800 = vtanh.f32 %v449_v13 }
 0x10b   : > { %802 = vtanh.f32 %v448_v15 }
 0x10c   : > { %804 = vtanh.f32 %v447_v20 }
 0x10d   : > { %806 = vtanh.f32 %v446_v23 }
 0x110   : > { %v793_v19 = vpop.eup %792 }
 0x111   : > { %v468_v21 = vadd.f32 1.0, %v793_v19 }
 0x112   : > { %v795_v22 = vpop.eup %794 }
 0x113   : > { %v476_v28 = vmul.f32 0.5, %v468_v21  ;;  %v466_v31 = vadd.f32 1.0, %v795_v22 }
 0x114   : > { %v797_v24 = vpop.eup %796 }
 0x115   : > { %v469_v27 = vadd.f32 1.0, %v797_v24  ;;  %v484_v32 = vmul.f32 %v476_v28, %v924_v36  ;;  %v474_v41 = vmul.f32 0.5, %v466_v31 }
 0x116   : > { %v799_v26 = vpop.eup %798 }
 0x117   : > { %v467_v29 = vadd.f32 1.0, %v799_v26  ;;  %v477_v30 = vmul.f32 0.5, %v469_v27  ;;  %v801_v38 = vpop.eup %800  ;;  %v482_v49 = vmul.f32 %v474_v41, %v930_v40 }
 0x118   : > { %v803_v42 = vpop.eup %802  ;;  %v465_v46 = vadd.f32 1.0, %v801_v38 }
 0x119   : > { %v485_v34 = vmul.f32 %v477_v30, %v411_v45  ;;  %v475_v37 = vmul.f32 0.5, %v467_v29  ;;  %v464_v50 = vadd.f32 1.0, %v803_v42  ;;  %v805_v45 = vpop.eup %804 }
 0x11a   : > { %v473_v36 = vmul.f32 0.5, %v465_v46  ;;  %v807_v54 = vpop.eup %806  ;;  %v463_v57 = vadd.f32 1.0, %v805_v45 }
 0x11b   : > { %v490_v39 = vpack.c.bf16 %v485_v34, %v484_v32  ;;  %v483_v44 = vmul.f32 %v475_v37, %v939_v48  ;;  %v472_v52 = vmul.f32 0.5, %v464_v50  ;;  %v462_v58 = vadd.f32 1.0, %v807_v54 }
 0x11c   : > { %v481_v56 = vmul.f32 %v473_v36, %v920_v33  ;;  %v471_v60 = vmul.f32 0.5, %v463_v57 }
 0x11d   : > { %v515_v43 = vsel %vm501_vm3, %v490_v39, 0  ;;  %v489_v51 = vpack.c.bf16 %v483_v44, %v482_v49  ;;  %v480_v48 = vmul.f32 %v472_v52, %v922_v35  ;;  %v470_v40 = vmul.f32 0.5, %v462_v58  ;;  %v486_v35 = vld [vmem:[%s995_s4] sm:$0x1] }
 0x11e   : > { %748 = vmatpush3.bf16.xpose.msra.mxu1 %v515_v43  ;;  %v479_v62 = vmul.f32 %v471_v60, %v937_v47  ;;  %v273_v47 = vld [vmem:[%s260_s27] sm:$0x1] }
 0x11f   : > { %749 = vmatprep.subr.bf16.mxu1 %v821_v25  ;;  %v512_v55 = vsel %vm501_vm3, %v489_v51, 0  ;;  %v488_v59 = vpack.c.bf16 %v481_v56, %v480_v48  ;;  %v478_v33 = vmul.f32 %v470_v40, %v943_v53  ;;  %vm557_vm4 = vcmp.eq.f32.partialorder %v273_v47, 0.0 }
 0x121   : > { %v509_v61 = vsel %vm501_vm3, %v488_v59, 0  ;;  %v487_v63 = vpack.c.bf16 %v479_v62, %v478_v33 }
 0x123   : > { %v506_v0 = vsel %vm501_vm3, %v487_v63, 0 }
 0x126   : > { %750 = vmatpush3.bf16.xpose.msra.mxu1 %v512_v55 }
 0x127   : > { %751 = vmatprep.subr.bf16.mxu1 %v821_v25 }
 0x12e   : > { %752 = vmatpush3.bf16.xpose.msra.mxu1 %v509_v61 }
 0x12f   : > { %753 = vmatprep.subr.bf16.mxu1 %v821_v25  ;;  %v500_v25 = vrot.slane %v495_v4, %v499_v3 }
 0x136   : > { %754 = vmatpush3.bf16.xpose.msra.mxu1 %v506_v0 }
 0x13d   : > { %756 = vmatmul.mubr.msk.bf16.vlgmr.msra.gmra.mxu1 %vm501_vm3, %v486_v35 }
 0x1fd   : > { %v551_v53 = vpop.f32.mrf.mxu1 }
 0x1fe   : > { %v552_v5 = vadd.f32 %v551_v53, %v500_v25 }
 0x1ff   : > { %v757_v6 = vpop.f32.mrf.mxu1 }
 0x200   : > { %v558_v7 = vsel %vm557_vm4, -1e+09, %v552_v5 }
 0x201   : > { %v554_v8 = vpop.f32.mrf.mxu1  ;;  %v560_v9 = vsel %vm559_vm5, %v558_v7, -inf }
 0x202   : > { %561 = vmax.xlane.f32.xlu0 %v560_v9 }
 0x203   : > { %v758_v10 = vpop.f32.mrf.mxu1 }
 0x28b   : > { %v562_v11 = vpop.xlane.xlu0 %561 }
 0x28c   : > { %v563_v12 = vsub.f32 %v558_v7, %v562_v11 }
 0x28e   : > { %v564_v13 = vmul.f32 1.442695, %v563_v12 }
 0x290   : > { %808 = vpow2.f32 %v564_v13 }
 0x29d   : > { %v809_v14 = vpop.eup %808 }
 0x29e   : > { %v566_v15 = vsel %vm559_vm5, %v809_v14, 0.0 }
 0x29f   : > { %567 = vadd.xlane.f32.xlu1 %v566_v15 }
 0x328   : > { %v568_v16 = vpop.xlane.xlu1 %567 }
 0x329   : > { %810 = vrcp.f32 %v568_v16 }
 0x336   : > { %v811_v17 = vpop.eup %810 }
 0x337   : > { %v570_v18 = vmul.f32 %v811_v17, %v809_v14 }
 0x339   : > { %v571_v19 = vpack.c.bf16 %v570_v18, %v570_v18 }
 0x33b   : > { %768 = vmatmul.mubr.msk.bf16.vlgmr.msra.gmra.mxu0 %vm572_vm6, %v571_v19 }
 0x3fb   : > { %v617_v20 = vpop.f32.mrf.mxu0 }
 0x3fc   : > { %623 = vst [vmem:[%s263_s30] sm:$0x1] %v617_v20 }
 0x3fd   : > { %v769_v21 = vpop.f32.mrf.mxu0 }
 0x3ff   : > { %v620_v22 = vpop.f32.mrf.mxu0 }
 0x401   : > { %v770_v23 = vpop.f32.mrf.mxu0 }
 0x402 PF: > { %s18_s23 = sadd.s32 1, %s818_s23  }
 0x403   : > { %p15_p4 = scmp.ge.s32.totalorder %s18_s23, 6  }
 0x405   :  { %17 = sbr.rel (!%p15_p4) target bundleno = 3 (0x3), region = 77 }

// kernel: cl_forward.11
= control target key start
LH: loop header
LB: loop body
LE: loop exit
PB: predicated region body
PF: predicated region fallthrough
CT: control target
= control target key end

     0   :  { %v356_v0 = vmov 0.0   ;;  %vm357_vm0 = vmmov 0   ;;  %s448_s1 = inlined_call_operand.vmem [shape: bf16[128,128], index: 1, kind: input, shape index: {}]   ;;  %s449_s0 = inlined_call_operand.vmem [shape: f32[4,128], index: 0, kind: input, shape index: {}]   ;;  %s450_s3 = inlined_call_operand.vmem [shape: bf16[128,128], index: 3, kind: input, shape index: {}]   ;;  %s451_s2 = inlined_call_operand.vmem [shape: f32[1,128], index: 2, kind: input, shape index: {}]   ;;  %s452_s4 = inlined_call_operand.vmem [shape: f32[1,128], index: 4, kind: input, shape index: {}]   ;;  %s453_s5 = inlined_call_operand.vmem [shape: f32[4,128], index: 5, kind: output, shape index: {}]  }
   0x1   :  { %296 = vmatprep.subr.bf16.mxu0 %v356_v0  ;;  %v338_v1 = vld [vmem:[%s448_s1 + $0x38] sm:$0xff]   ;;  %312 = vmatprep.mubr.msk.bf16.mxu0 %vm357_vm0, %v356_v0  ;;  %v339_v2 = vld [vmem:[%s448_s1 + $0x30] sm:$0xff]   ;;  %v340_v3 = vld [vmem:[%s448_s1 + $0x28] sm:$0xff]  }
   0x2   :  { %316 = vmatprep.subr.bf16.mxu1 %v356_v0  ;;  %332 = vmatprep.mubr.msk.bf16.mxu1 %vm357_vm0, %v356_v0  ;;  %v341_v4 = vld [vmem:[%s448_s1 + $0x20] sm:$0xff]   ;;  %v342_v5 = vld [vmem:[%s448_s1 + $0x18] sm:$0xff]   ;;  %v343_v6 = vld [vmem:[%s448_s1 + $0x10] sm:$0xff]  }
   0x3   :  { %297 = vmatpush3.bf16.msra.mxu0 %v338_v1  ;;  %v344_v7 = vld [vmem:[%s448_s1 + $0x8] sm:$0xff]   ;;  %v345_v8 = vld [vmem:[%s448_s1] sm:$0xff]   ;;  %v346_v11 = vld [vmem:[%s450_s3 + $0x38] sm:$0xff]  }
   0x4   :  { %298 = vmatprep.subr.bf16.mxu0 %v356_v0  ;;  %v21_v9 = vld [vmem:[%s449_s0] sm:$0xf]  ;;  %317 = vmatpush3.bf16.msra.mxu1 %v346_v11  ;;  %v347_v12 = vld [vmem:[%s450_s3 + $0x30] sm:$0xff]   ;;  %v348_v13 = vld [vmem:[%s450_s3 + $0x28] sm:$0xff]  }
   0x5   :  { %v22_v10 = vpack.c.bf16 %v21_v9, %v21_v9  ;;  %318 = vmatprep.subr.bf16.mxu1 %v356_v0  ;;  %v349_v14 = vld [vmem:[%s450_s3 + $0x20] sm:$0xff]   ;;  %v350_v15 = vld [vmem:[%s450_s3 + $0x18] sm:$0xff]   ;;  %v351_v16 = vld [vmem:[%s450_s3 + $0x10] sm:$0xff]  }
   0x6   :  { %v352_v17 = vld [vmem:[%s450_s3 + $0x8] sm:$0xff]   ;;  %v353_v18 = vld [vmem:[%s450_s3] sm:$0xff]  }
   0x7   :  { %299 = vmatpush3.bf16.msra.mxu0 %v339_v2  ;;  %v260_v19 = vld [vmem:[%s451_s2] ss:$0 sm:$0xff] }
   0x8   :  { %300 = vmatprep.subr.bf16.mxu0 %v356_v0  ;;  %319 = vmatpush3.bf16.msra.mxu1 %v347_v12  ;;  %v269_v35 = vld [vmem:[%s452_s4] ss:$0 sm:$0xff] }
   0x9   :  { %320 = vmatprep.subr.bf16.mxu1 %v356_v0 }
   0xb   :  { %301 = vmatpush3.bf16.msra.mxu0 %v340_v3 }
   0xc   :  { %302 = vmatprep.subr.bf16.mxu0 %v356_v0  ;;  %321 = vmatpush3.bf16.msra.mxu1 %v348_v13 }
   0xd   :  { %322 = vmatprep.subr.bf16.mxu1 %v356_v0 }
   0xf   :  { %303 = vmatpush3.bf16.msra.mxu0 %v341_v4 }
  0x10   :  { %304 = vmatprep.subr.bf16.mxu0 %v356_v0  ;;  %323 = vmatpush3.bf16.msra.mxu1 %v349_v14 }
  0x11   :  { %324 = vmatprep.subr.bf16.mxu1 %v356_v0 }
  0x13   :  { %305 = vmatpush3.bf16.msra.mxu0 %v342_v5 }
  0x14   :  { %306 = vmatprep.subr.bf16.mxu0 %v356_v0  ;;  %325 = vmatpush3.bf16.msra.mxu1 %v350_v15 }
  0x15   :  { %326 = vmatprep.subr.bf16.mxu1 %v356_v0 }
  0x17   :  { %307 = vmatpush3.bf16.msra.mxu0 %v343_v6 }
  0x18   :  { %308 = vmatprep.subr.bf16.mxu0 %v356_v0  ;;  %327 = vmatpush3.bf16.msra.mxu1 %v351_v16 }
  0x19   :  { %328 = vmatprep.subr.bf16.mxu1 %v356_v0 }
  0x1b   :  { %309 = vmatpush3.bf16.msra.mxu0 %v344_v7 }
  0x1c   :  { %310 = vmatprep.subr.bf16.mxu0 %v356_v0  ;;  %329 = vmatpush3.bf16.msra.mxu1 %v352_v17 }
  0x1d   :  { %330 = vmatprep.subr.bf16.mxu1 %v356_v0 }
  0x1f   :  { %311 = vmatpush3.bf16.msra.mxu0 %v345_v8 }
  0x20   :  { %331 = vmatpush3.bf16.msra.mxu1 %v353_v18 }
  0x22   :  { %313 = vmatmul.mubr.bf16.vlgmr.msra.gmra.mxu0 %v22_v10 }
  0xe2   :  { %v128_v20 = vpop.f32.mrf.mxu0 }
  0xe3   :  { %v129_v21 = vadd.f32 %v260_v19, %v128_v20 }
  0xe4   :  { %v314_v22 = vpop.f32.mrf.mxu0 }
  0xe5   :  { %v134_v23 = vmul.f32 %v129_v21, %v129_v21 }
  0xe6   :  { %v131_v24 = vpop.f32.mrf.mxu0 }
  0xe7   :  { %v135_v25 = vmul.f32 %v134_v23, %v129_v21 }
  0xe8   :  { %v315_v26 = vpop.f32.mrf.mxu0 }
  0xe9   :  { %v136_v27 = vmul.f32 0.044715, %v135_v25 }
  0xeb   :  { %v137_v28 = vadd.f32 %v136_v27, %v129_v21 }
  0xed   :  { %v138_v29 = vmul.f32 0.7978846, %v137_v28 }
  0xef   :  { %354 = vtanh.f32 %v138_v29 }
  0xfc   :  { %v355_v30 = vpop.eup %354 }
  0xfd   :  { %v140_v31 = vadd.f32 1.0, %v355_v30 }
  0xff   :  { %v141_v32 = vmul.f32 0.5, %v140_v31 }
 0x101   :  { %v142_v33 = vmul.f32 %v141_v32, %v129_v21 }
 0x103   :  { %v143_v34 = vpack.c.bf16 %v142_v33, %v142_v33 }
 0x105   :  { %333 = vmatmul.mubr.bf16.vlgmr.msra.gmra.mxu1 %v143_v34 }
 0x1c5   :  { %v249_v36 = vpop.f32.mrf.mxu1 }
 0x1c6   :  { %v250_v37 = vadd.f32 %v269_v35, %v249_v36 }
 0x1c7   :  { %v334_v38 = vpop.f32.mrf.mxu1 }
 0x1c8   :  { %255 = vst [vmem:[%s453_s5] sm:$0xf] %v250_v37 }
 0x1c9   :  { %v252_v39 = vpop.f32.mrf.mxu1 }
 0x1cb   :  { %v335_v40 = vpop.f32.mrf.mxu1 }

// kernel: cl_forward.7
= control target key start
LH: loop header
LB: loop body
LE: loop exit
PB: predicated region body
PF: predicated region fallthrough
CT: control target
= control target key end

     0   :  { %s4011_s29 = smov 0   ;;  %s5091_s0 = inlined_call_operand.vmem [shape: f32[4,49,128], index: 0, kind: input, shape index: {}]   ;;  %s5092_s1 = inlined_call_operand.vmem [shape: f32[4,1,49], index: 1, kind: input, shape index: {}]   ;;  %s5093_s2 = inlined_call_operand.vmem [shape: bf16[128,384], index: 2, kind: input, shape index: {}]   ;;  %s5094_s3 = inlined_call_operand.vmem [shape: f32[1,384], index: 3, kind: input, shape index: {}]   ;;  %s5095_s4 = inlined_call_operand.vmem [shape: bf16[128,128], index: 4, kind: input, shape index: {}]   ;;  %s5096_s5 = inlined_call_operand.vmem [shape: f32[1,128], index: 5, kind: input, shape index: {}]   ;;  %s5097_s6 = inlined_call_operand.vmem [shape: f32[1,128], index: 6, kind: input, shape index: {}]   ;;  %s5098_s7 = inlined_call_operand.vmem [shape: f32[1,128], index: 7, kind: input, shape index: {}]   ;;  %s5099_s8 = inlined_call_operand.vmem [shape: bf16[128,256], index: 8, kind: input, shape index: {}]   ;;  %s5100_s9 = inlined_call_operand.vmem [shape: f32[1,256], index: 9, kind: input, shape index: {}]   ;;  %s5101_s10 = inlined_call_operand.vmem [shape: bf16[256,128], index: 10, kind: input, shape index: {}]   ;;  %s5102_s11 = inlined_call_operand.vmem [shape: f32[1,128], index: 11, kind: input, shape index: {}]   ;;  %s5103_s12 = inlined_call_operand.vmem [shape: f32[1,128], index: 12, kind: input, shape index: {}]   ;;  %s5104_s13 = inlined_call_operand.vmem [shape: f32[1,128], index: 13, kind: input, shape index: {}]   ;;  %s5105_s14 = inlined_call_operand.vmem [shape: f32[4,49,128], index: 14, kind: output, shape index: {}]  }
   0x1 LB: > { %s3159_s30 = sadd.s32 4294967295, %s3930_s29   ;;  %p3163_p0 = scmp.ge.s32.totalorder %s3930_s29, 1  ;;  %s3930_s29 = sphi %s4011_s29, %s24_s29  }
   0x2   : > { %p420_p1 = scmp.lt.s32.totalorder %s3930_s29, 5 }
   0x4   : > { %p421_p2 = pnand %p3163_p0, %p420_p1 }
   0x5   : > { %p469_p3 = scmp.lt.s32.totalorder (!%p421_p2), %s3159_s30, 3  ;;  %s3933_s22 = smov (!%p421_p2), 96  }
   0x6   : > { %424 = sbr.rel (%p421_p2) target bundleno = 3681 (0xe61), region = 76  ;;  %s3934_s23 = smov (!%p421_p2), 64  }
   0x7   : > { %s3935_s24 = smov (!%p421_p2), 32  }
   0xb   : > { %v3664_v0 = vld [vmem:[%s5093_s2 + $0xac] ss:$12 sps:$4 sm:$0xff]   ;;  %v3666_v1 = vld [vmem:[%s5093_s2 + $0xa8] ss:$12 sps:$4 sm:$0xff]   ;;  %v3932_v2 = vmov 0   ;;  %s5107_s30 = smov (!%p469_p3, %s3159_s30), 3  ;;  %v529_v28 = vlaneseq }
   0xc   : > { %704 = vmatprep.mubr.bf16.mxu0 %v3932_v2  ;;  %672 = vmatprep.subr.bf16.mxu0 %v3664_v0  ;;  %v3667_v3 = vld [vmem:[%s5093_s2 + $0x94] ss:$12 sps:$4 sm:$0xff]   ;;  %v3669_v4 = vld [vmem:[%s5093_s2 + $0x90] ss:$12 sps:$4 sm:$0xff]   ;;  %s3651_s25 = smul.u32 56, %s5107_s30  ;;  %vm819_vm0 = vcmask 261120   ;;  %s4183_s21 = scalar_lea.vmem %s5092_s1, %s5107_s30 }
   0xd   : > { %673 = vmatpush1.bf16.msra.mxu0 %v3666_v1  ;;  %v3670_v5 = vld [vmem:[%s5093_s2 + $0x7c] ss:$12 sps:$4 sm:$0xff]   ;;  %v3672_v6 = vld [vmem:[%s5093_s2 + $0x78] ss:$12 sps:$4 sm:$0xff]   ;;  %v3675_v9 = vld [vmem:[%s5093_s2 + $0x60] ss:$12 sps:$4 sm:$0xff]  }
   0xe   : > { %674 = vmatprep.subr.bf16.mxu0 %v3667_v3  ;;  %s4046_s16 = scalar_lea.vmem %s5091_s0, %s3651_s25  ;;  %v3673_v7 = vld [vmem:[%s5093_s2 + $0x64] ss:$12 sps:$4 sm:$0xff]   ;;  %v3676_v11 = vld [vmem:[%s5093_s2 + $0x4c] ss:$12 sps:$4 sm:$0xff]   ;;  %v3678_v13 = vld [vmem:[%s5093_s2 + $0x48] ss:$12 sps:$4 sm:$0xff]  }
   0xf   : > { %v483_v8 = vld [vmem:[%s4046_s16] sm:$0xff]  ;;  %v484_v10 = vld [vmem:[%s4046_s16 + $0x8] sm:$0xff]  ;;  %v3681_v15 = vld [vmem:[%s5093_s2 + $0x30] ss:$12 sps:$4 sm:$0xff]   ;;  %v4097_v29 = vshrl.u32 %v529_v28, 7  ;;  %vm928_vm1 = vcmask 400384  }
  0x10   : > { %v491_v12 = vpack.c.bf16 %v484_v10, %v483_v8  ;;  %v3679_v14 = vld [vmem:[%s5093_s2 + $0x34] ss:$12 sps:$4 sm:$0xff]   ;;  %v3682_v16 = vld [vmem:[%s5093_s2 + $0x1c] ss:$12 sps:$4 sm:$0xff]   ;;  %v3684_v17 = vld [vmem:[%s5093_s2 + $0x18] ss:$12 sps:$4 sm:$0xff]  }
  0x11   : > { %675 = vmatpush1.bf16.msra.mxu0 %v3669_v4  ;;  %v3685_v18 = vld [vmem:[%s5093_s2 + $0x4] ss:$12 sps:$4 sm:$0xff]   ;;  %v3687_v19 = vld [vmem:[%s5093_s2] ss:$12 sps:$4 sm:$0xff]   ;;  %v486_v21 = vld [vmem:[%s4046_s16 + $0x18] sm:$0xff]  ;;  %v531_v30 = vsub.s32 0, %v4097_v29 }
  0x12   : > { %676 = vmatprep.subr.bf16.mxu0 %v3670_v5  ;;  %3475 = vmatprep.mubr.bf16.mxu1 %v491_v12  ;;  %v485_v20 = vld [vmem:[%s4046_s16 + $0x10] sm:$0xff]  ;;  %v487_v23 = vld [vmem:[%s4046_s16 + $0x20] sm:$0xff]  ;;  %v488_v24 = vld [vmem:[%s4046_s16 + $0x28] sm:$0xff]  ;;  %v535_v47 = vsub.s32 1, %v4097_v29  ;;  %vm947_vm2 = vcmask 393216   ;;  %vm1023_vm3 = vcmask 1040384  }
  0x13   : > { %v4083_v22 = vpack.c.bf16 %v486_v21, %v485_v20  ;;  %v4089_v25 = vpack.c.bf16 %v488_v24, %v487_v23  ;;  %v489_v26 = vld [vmem:[%s4046_s16 + $0x30] sm:$0x1]  ;;  %v4103_v31 = vld [vmem:[%s5094_s3] sm:$0x7]  ;;  %v3695_v21 = vld [vmem:[%s5093_s2 + $0x8] ss:$12 sps:$4 sm:$0xff]  }
  0x14   : > { %v4094_v27 = vpack.c.bf16 %v489_v26, %v489_v26  ;;  %v532_v33 = vrot.slane %v4103_v31, %v531_v30  ;;  %v536_v50 = vrot.slane %v4103_v31, %v535_v47  ;;  %v3694_v20 = vld [vmem:[%s5093_s2 + $0x20] ss:$12 sps:$4 sm:$0xff]   ;;  %vm1122_vm4 = vcmask 257024  }
  0x15   : > { %677 = vmatpush1.bf16.msra.mxu0 %v3672_v6  ;;  %v4186_v23 = vld [vmem:[%s4183_s21] ss:$0 sm:$0xff]  ;;  %vm1129_vm5 = vcmask 253952   ;;  %vm1130_vm6 = vsmask.f32 256  ;;  %vm1479_vm8 = vcmask 519424  }
  0x16   : > { %678 = vmatprep.subr.bf16.mxu0 %v3673_v7  ;;  %vm1131_vm7 = vmand %vm1129_vm5, %vm1130_vm6  ;;  %vm1486_vm9 = vcmask 516352   ;;  %vm1823_vm11 = vcmask 781824   ;;  %vm2167_vm12 = vcmask 1044224   ;;  %vm1830_vm13 = vcmask 778752  }
  0x17   : > { %vm1487_vm10 = vmand %vm1486_vm9, %vm1130_vm6  ;;  %vm2174_vm15 = vcmask 1041152  }
  0x18   : > { %vm1831_vm14 = vmand %vm1830_vm13, %vm1130_vm6 }
  0x19   : > { %679 = vmatpush1.bf16.msra.mxu0 %v3675_v9 }
  0x1a   : > { %680 = vmatprep.subr.bf16.mxu0 %v3676_v11 }
  0x1d   : > { %681 = vmatpush1.bf16.msra.mxu0 %v3678_v13 }
  0x1e   : > { %682 = vmatprep.subr.bf16.mxu0 %v3679_v14  ;;  %v3688_v14 = vld [vmem:[%s5093_s2 + $0xb0] ss:$12 sps:$4 sm:$0xff]  }
  0x1f   : > { %3459 = vmatprep.subr.bf16.mxu1 %v3688_v14 }
  0x20   : > { %3460 = vmatpush3.bf16.msra.mxu1 %v3688_v14 }
  0x21   : > { %683 = vmatpush1.bf16.msra.mxu0 %v3681_v15  ;;  %v3689_v15 = vld [vmem:[%s5093_s2 + $0x98] ss:$12 sps:$4 sm:$0xff]  }
  0x22   : > { %684 = vmatprep.subr.bf16.mxu0 %v3682_v16  ;;  %3461 = vmatprep.subr.bf16.mxu1 %v3689_v15  ;;  %v3690_v16 = vld [vmem:[%s5093_s2 + $0x80] ss:$12 sps:$4 sm:$0xff]  }
  0x24   : > { %3462 = vmatpush3.bf16.msra.mxu1 %v3689_v15 }
  0x25   : > { %685 = vmatpush1.bf16.msra.mxu0 %v3684_v17  ;;  %3463 = vmatprep.subr.bf16.mxu1 %v3690_v16  ;;  %v3691_v17 = vld [vmem:[%s5093_s2 + $0x68] ss:$12 sps:$4 sm:$0xff]  }
  0x26   : > { %686 = vmatprep.subr.bf16.mxu0 %v3685_v18  ;;  %v3692_v18 = vld [vmem:[%s5093_s2 + $0x50] ss:$12 sps:$4 sm:$0xff]  }
  0x28   : > { %3464 = vmatpush3.bf16.msra.mxu1 %v3690_v16 }
  0x29   : > { %687 = vmatpush1.bf16.msra.mxu0 %v3687_v19  ;;  %3465 = vmatprep.subr.bf16.mxu1 %v3691_v17  ;;  %v3693_v19 = vld [vmem:[%s5093_s2 + $0x38] ss:$12 sps:$4 sm:$0xff]  }
  0x2c   : > { %705 = vmatmul.mubr.bf16.vlgmr.msra.gmra.mxu0 %v491_v12  ;;  %3466 = vmatpush3.bf16.msra.mxu1 %v3691_v17 }
  0x2d   : > { %714 = vmatprep.mubr.bf16.mxu0 %v3932_v2  ;;  %3467 = vmatprep.subr.bf16.mxu1 %v3692_v18 }
  0x30   : > { %3468 = vmatpush3.bf16.msra.mxu1 %v3692_v18 }
  0x31   : > { %3469 = vmatprep.subr.bf16.mxu1 %v3693_v19 }
  0x34   : > { %715 = vmatmul.mubr.bf16.gmra.mxu0 %v4083_v22  ;;  %3470 = vmatpush3.bf16.msra.mxu1 %v3693_v19 }
  0x35   : > { %724 = vmatprep.mubr.bf16.mxu0 %v3932_v2  ;;  %3471 = vmatprep.subr.bf16.mxu1 %v3694_v20 }
  0x38   : > { %3472 = vmatpush3.bf16.msra.mxu1 %v3694_v20 }
  0x39   : > { %3473 = vmatprep.subr.bf16.mxu1 %v3695_v21 }
  0x3c   : > { %725 = vmatmul.mubr.bf16.gmra.mxu0 %v4089_v25  ;;  %3474 = vmatpush3.bf16.msra.mxu1 %v3695_v21  ;;  %v4215_v21 = vsel %vm1023_vm3, 65535, %v3932_v2 }
  0x3d   : > { %734 = vmatprep.mubr.bf16.mxu0 %v3932_v2 }
  0x3f   : > { %3476 = vmatmul.mubr.bf16.vlgmr.msra.gmra.mxu1 %v4083_v22 }
  0x40   : > { %3479 = vmatprep.mubr.bf16.mxu1 %v4089_v25 }
  0x44   : > { %735 = vmatmul.mubr.bf16.gmra.mxu0 %v4094_v27 }
  0x47   : > { %3480 = vmatmul.mubr.bf16.gmra.mxu1 %v4094_v27 }
  0xec   : > { %v706_v32 = vpop.f32.mrf.mxu0 }
  0xed   : > { %v707_v36 = vadd.f32 %v706_v32, %v532_v33 }
  0xee   : > { %v708_v34 = vpop.f32.mrf.mxu0 }
  0xef   : > { %v709_v1 = vadd.f32 %v708_v34, %v536_v50 }
  0xf0   : > { %v710_v35 = vpop.f32.mrf.mxu0 }
  0xf1   : > { %v711_v37 = vadd.f32 %v710_v35, %v532_v33 }
  0xf2   : > { %v712_v38 = vpop.f32.mrf.mxu0 }
  0xf3   : > { %v4108_v39 = vpack.c.bf16 %v711_v37, %v707_v36  ;;  %v713_v0 = vadd.f32 %v712_v38, %v536_v50 }
  0xf4   : > { %v716_v40 = vpop.f32.mrf.mxu0 }
  0xf5   : > { %3491 = vmatprep.mubr.msk.bf16.mxu0 %vm819_vm0, %v4108_v39  ;;  %v4132_v3 = vpack.c.bf16 %v713_v0, %v709_v1  ;;  %v717_v8 = vadd.f32 %v716_v40, %v532_v33 }
  0xf6   : > { %v718_v41 = vpop.f32.mrf.mxu0 }
  0xf7   : > { %v719_v61 = vadd.f32 %v718_v41, %v536_v50  ;;  %v833_v5 = vsel %vm819_vm0, %v4132_v3, 0 }
  0xf8   : > { %v720_v42 = vpop.f32.mrf.mxu0 }
  0xf9   : > { %v721_v6 = vadd.f32 %v720_v42, %v532_v33 }
  0xfa   : > { %v722_v43 = vpop.f32.mrf.mxu0 }
  0xfb   : > { %v723_v60 = vadd.f32 %v722_v43, %v536_v50  ;;  %v4140_v10 = vpack.c.bf16 %v721_v6, %v717_v8 }
  0xfc   : > { %v726_v44 = vpop.f32.mrf.mxu0 }
  0xfd   : > { %v4126_v62 = vpack.c.bf16 %v723_v60, %v719_v61  ;;  %v727_v9 = vadd.f32 %v726_v44, %v532_v33  ;;  %v539_v60 = vsub.s32 2, %v4097_v29 }
  0xfe   : > { %v728_v45 = vpop.f32.mrf.mxu0 }
  0xff   : > { %v729_v55 = vadd.f32 %v728_v45, %v536_v50  ;;  %v836_v4 = vsel %vm819_vm0, %v4126_v62, 0 }
 0x100   : > { %v730_v46 = vpop.f32.mrf.mxu0 }
 0x101   : > { %v731_v7 = vadd.f32 %v730_v46, %v532_v33 }
 0x102   : > { %v732_v48 = vpop.f32.mrf.mxu0 }
 0x103   : > { %v733_v52 = vadd.f32 %v732_v48, %v536_v50  ;;  %v4142_v11 = vpack.c.bf16 %v731_v7, %v727_v9  ;;  %v540_v7 = vrot.slane %v4103_v31, %v539_v60 }
 0x104   : > { %v736_v49 = vpop.f32.mrf.mxu0 }
 0x105   : > { %v4118_v58 = vpack.c.bf16 %v733_v52, %v729_v55  ;;  %v737_v12 = vadd.f32 %v736_v49, %v532_v33 }
 0x106   : > { %v738_v51 = vpop.f32.mrf.mxu0 }
 0x107   : > { %v739_v53 = vadd.f32 %v738_v51, %v536_v50  ;;  %v839_v63 = vsel %vm819_vm0, %v4118_v58, 0  ;;  %v4148_v13 = vpack.c.bf16 %v737_v12, %v737_v12 }
 0x108   : > { %v740_v54 = vpop.f32.mrf.mxu0 }
 0x109   : > { %v4116_v56 = vpack.c.bf16 %v739_v53, %v739_v53 }
 0x10a   : > { %v741_v57 = vpop.f32.mrf.mxu0 }
 0x10b   : > { %3635 = vmatprep.subr.msk.bf16.mxu0 %vm819_vm0, %v4116_v56  ;;  %v842_v59 = vsel %vm819_vm0, %v4116_v56, 0 }
 0x10c   : > { %3484 = vmatpush3.bf16.xpose.msra.mxu0 %v842_v59  ;;  %v3477_v59 = vpop.f32.mrf.mxu1 }
 0x10d   : > { %3636 = vmatprep.subr.msk.bf16.mxu0 %vm819_vm0, %v4118_v58 }
 0x114   : > { %3486 = vmatpush3.bf16.xpose.msra.mxu0 %v839_v63  ;;  %v777_v63 = vpop.f32.mrf.mxu1 }
 0x115   : > { %3637 = vmatprep.subr.msk.bf16.mxu0 %vm819_vm0, %v4126_v62 }
 0x11c   : > { %3488 = vmatpush3.bf16.xpose.msra.mxu0 %v836_v4  ;;  %v3478_v4 = vpop.f32.mrf.mxu1 }
 0x11d   : > { %3638 = vmatprep.subr.msk.bf16.mxu0 %vm819_vm0, %v4132_v3 }
 0x11e   : > { %v780_v9 = vpop.f32.mrf.mxu1 }
 0x120   : > { %v3481_v16 = vpop.f32.mrf.mxu1 }
 0x121   : > { %v802_v19 = vadd.f32 %v3481_v16, %v540_v7 }
 0x122   : > { %v793_v20 = vpop.f32.mrf.mxu1 }
 0x123   : > { %v4217_v31 = vpack.c.bf16 %v802_v19, %v802_v19 }
 0x124   : > { %3490 = vmatpush3.bf16.xpose.msra.mxu0 %v833_v5 }
 0x12b   : > { %3492 = vmatmul.mubr.msk.bf16.vlgmr.msra.gmra.mxu0 %vm819_vm0, %v4140_v10 }
 0x12c   : > { %3495 = vmatprep.mubr.msk.bf16.mxu0 %vm819_vm0, %v4142_v11 }
 0x133   : > { %3496 = vmatmul.mubr.msk.bf16.gmra.mxu0 %vm819_vm0, %v4148_v13 }
 0x1eb   : > { %v3493_v24 = vpop.f32.mrf.mxu0 }
 0x1ec   : > { %v910_v26 = vmul.f32 0.17677669, %v3493_v24 }
 0x1ed   : > { %v878_v28 = vpop.f32.mrf.mxu0 }
 0x1ee   : > { %v908_v32 = vmul.f32 0.17677669, %v878_v28  ;;  %v923_v33 = vadd.f32 %v4186_v23, %v910_v26  ;;  %v786_v26 = vadd.f32 %v3477_v59, %v540_v7  ;;  %v3482_v28 = vpop.f32.mrf.mxu1 }
 0x1ef   : > { %v3494_v22 = vpop.f32.mrf.mxu0 }
 0x1f0   : > { %v911_v34 = vmul.f32 0.17677669, %v3494_v22  ;;  %v935_v25 = vsel %vm928_vm1, %v923_v33, -inf  ;;  %v921_v27 = vadd.f32 %v4186_v23, %v908_v32  ;;  %v789_v32 = vadd.f32 %v3478_v4, %v540_v7 }
 0x1f1   : > { %936 = vmax.xlane.f32.xlu1 %v935_v25  ;;  %v881_v35 = vpop.f32.mrf.mxu0  ;;  %v1027_v22 = vand.u32 %v4215_v21, %v4217_v31 }
 0x1f2   : > { %v909_v36 = vmul.f32 0.17677669, %v881_v35  ;;  %v929_v37 = vsel %vm928_vm1, %v921_v27, -inf  ;;  %v924_v38 = vadd.f32 %v4186_v23, %v911_v34  ;;  %v796_v34 = vpop.f32.mrf.mxu1  ;;  %v4221_v35 = vpack.c.bf16 %v789_v32, %v786_v26 }
 0x1f3   : > { %930 = vmax.xlane.f32.xlu0 %v929_v37  ;;  %v3497_v40 = vpop.f32.mrf.mxu0  ;;  %v797_v25 = vadd.f32 %v796_v34, %v540_v7  ;;  %3499 = vmatprep.subr.bf16.mxu1 %v1027_v22 }
 0x1f4   : > { %v938_v41 = vsel %vm928_vm1, %v924_v38, -inf  ;;  %v922_v42 = vadd.f32 %v4186_v23, %v909_v36  ;;  %v914_v44 = vmul.f32 0.17677669, %v3497_v40  ;;  %3500 = vmatpush3.bf16.msra.mxu1 %v1027_v22  ;;  %v781_v36 = vadd.f32 %v780_v9, %v540_v7 }
 0x1f5   : > { %939 = vmax.xlane.f32.xlu1 %v938_v41  ;;  %v894_v43 = vpop.f32.mrf.mxu0 }
 0x1f6   : > { %v912_v45 = vmul.f32 0.17677669, %v894_v43  ;;  %v932_v46 = vsel %vm928_vm1, %v922_v42, -inf  ;;  %v4202_v53 = vadd.f32 %v4186_v23, %v914_v44 }
 0x1f7   : > { %933 = vmax.xlane.f32.xlu0 %v932_v46  ;;  %v3498_v48 = vpop.f32.mrf.mxu0 }
 0x1f8   : > { %v4197_v49 = vadd.f32 %v4186_v23, %v912_v45  ;;  %v948_v55 = vsel %vm947_vm2, %v4202_v53, -inf }
 0x1f9   : > { %v897_v50 = vpop.f32.mrf.mxu0 }
 0x1fa   : > { %v913_v51 = vmul.f32 0.17677669, %v897_v50  ;;  %v941_v52 = vsel %vm928_vm1, %v4197_v49, -inf }
 0x1fb   : > { %942 = vmax.xlane.f32.xlu0 %v941_v52 }
 0x1fc   : > { %v4205_v54 = vadd.f32 %v4186_v23, %v913_v51 }
 0x1fe   : > { %v944_v57 = vsel %vm928_vm1, %v4205_v54, -inf }
 0x1ff   : > { %949 = vmax.xlane.f32.xlu0 %v948_v55  ;;  %945 = vmax.xlane.f32.xlu1 %v944_v57 }
 0x27a   : > { %v937_v61 = vpop.xlane.xlu1 %936 }
 0x27b   : > { %v953_v0 = vsub.f32 %v923_v33, %v937_v61  ;;  %v794_v33 = vadd.f32 %v793_v20, %v540_v7 }
 0x27c   : > { %v931_v1 = vpop.xlane.xlu0 %930 }
 0x27d   : > { %v962_v5 = vmul.f32 1.442695, %v953_v0  ;;  %v951_v6 = vsub.f32 %v921_v27, %v931_v1  ;;  %v778_v27 = vadd.f32 %v777_v63, %v540_v7  ;;  %v4223_v37 = vpack.c.bf16 %v797_v25, %v794_v33 }
 0x27e   : > { %v940_v8 = vpop.xlane.xlu1 %939 }
 0x27f   : > { %3748 = vpow2.f32 %v962_v5  ;;  %v958_v12 = vmul.f32 1.442695, %v951_v6  ;;  %v954_v14 = vsub.f32 %v924_v38, %v940_v8  ;;  %3501 = vmatprep.subr.bf16.mxu1 %v4223_v37  ;;  %v4231_v41 = vpack.c.bf16 %v781_v36, %v778_v27 }
 0x280   : > { %v934_v15 = vpop.xlane.xlu0 %933  ;;  %3502 = vmatpush3.bf16.msra.mxu1 %v4223_v37 }
 0x281   : > { %3750 = vpow2.f32 %v958_v12  ;;  %v964_v17 = vmul.f32 1.442695, %v954_v14  ;;  %v952_v18 = vsub.f32 %v922_v42, %v934_v15  ;;  %3503 = vmatprep.subr.bf16.mxu1 %v4221_v35 }
 0x283   : > { %3752 = vpow2.f32 %v964_v17  ;;  %v960_v24 = vmul.f32 1.442695, %v952_v18 }
 0x284   : > { %3504 = vmatpush3.bf16.msra.mxu1 %v4221_v35  ;;  %v943_v50 = vpop.xlane.xlu0 %942 }
 0x285   : > { %3754 = vpow2.f32 %v960_v24  ;;  %3505 = vmatprep.subr.bf16.mxu1 %v4231_v41  ;;  %v955_v60 = vsub.f32 %v4197_v49, %v943_v50 }
 0x287   : > { %v966_v63 = vmul.f32 1.442695, %v955_v60 }
 0x288   : > { %3506 = vmatpush3.bf16.msra.mxu1 %v4231_v41  ;;  %v946_v51 = vpop.xlane.xlu1 %945  ;;  %v950_v55 = vpop.xlane.xlu0 %949 }
 0x289   : > { %v956_v52 = vsub.f32 %v4205_v54, %v946_v51  ;;  %v957_v57 = vsub.f32 %v4202_v53, %v950_v55 }
 0x28b   : > { %v968_v59 = vmul.f32 1.442695, %v956_v52  ;;  %v970_v61 = vmul.f32 1.442695, %v957_v57 }
 0x28c   : > { %v4226_v38 = vpop.eup %3748 }
 0x28d   : > { %v978_v40 = vsel %vm928_vm1, %v4226_v38, 0.0  ;;  %3756 = vpow2.f32 %v968_v59 }
 0x28e   : > { %v4234_v42 = vpop.eup %3750  ;;  %979 = vadd.xlane.f32.xlu1 %v978_v40  ;;  %3758 = vpow2.f32 %v970_v61 }
 0x28f   : > { %v972_v45 = vsel %vm928_vm1, %v4234_v42, 0.0  ;;  %3760 = vpow2.f32 %v966_v63 }
 0x290   : > { %v4236_v43 = vpop.eup %3752 }
 0x291   : > { %v981_v44 = vsel %vm928_vm1, %v4236_v43, 0.0 }
 0x292   : > { %v4244_v46 = vpop.eup %3754  ;;  %982 = vadd.xlane.f32.xlu0 %v981_v44  ;;  %973 = vadd.xlane.f32.xlu1 %v972_v45 }
 0x293   : > { %v975_v48 = vsel %vm928_vm1, %v4244_v46, 0.0 }
 0x296   : > { %976 = vadd.xlane.f32.xlu0 %v975_v48 }
 0x29a   : > { %v4260_v0 = vpop.eup %3756 }
 0x29b   : > { %v987_v1 = vsel %vm928_vm1, %v4260_v0, 0.0  ;;  %v4264_v4 = vpop.eup %3758 }
 0x29c   : > { %v990_v54 = vsel %vm947_vm2, %v4264_v4, 0.0  ;;  %v4268_v53 = vpop.eup %3760 }
 0x29d   : > { %v984_v49 = vsel %vm928_vm1, %v4268_v53, 0.0 }
 0x2a3   : > { %1155 = vrot.lane.b32.xlu1 %v4118_v58, %s3933_s22 }
 0x2a7   : > { %1153 = vrot.lane.b32.xlu1 %v4126_v62, %s3933_s22 }
 0x2ab   : > { %1505 = vrot.lane.b32.xlu1 %v4116_v56, %s3934_s23 }
 0x2ac   : > { %1157 = vrot.lane.b32.xlu0 %v4116_v56, %s3933_s22 }
 0x2cb   : > { %988 = vadd.xlane.f32.xlu0 %v987_v1 }
 0x2cf   : > { %991 = vadd.xlane.f32.xlu1 %v990_v54 }
 0x2d3   : > { %985 = vadd.xlane.f32.xlu1 %v984_v49 }
 0x2e1   : > { %1151 = vrot.lane.b32.xlu0 %v4132_v3, %s3933_s22 }
 0x2e4   : > { %1503 = vrot.lane.b32.xlu1 %v4118_v58, %s3934_s23 }
 0x2e5   : > { %1139 = vrot.lane.b32.xlu0 %v4108_v39, %s3933_s22 }
 0x2e8   : > { %1141 = vrot.lane.b32.xlu1 %v4140_v10, %s3933_s22 }
 0x2e9   : > { %1501 = vrot.lane.b32.xlu0 %v4126_v62, %s3934_s23 }
 0x2ec   : > { %1143 = vrot.lane.b32.xlu1 %v4142_v11, %s3933_s22 }
 0x2ed   : > { %1145 = vrot.lane.b32.xlu0 %v4148_v13, %s3933_s22 }
 0x2f0   : > { %1499 = vrot.lane.b32.xlu1 %v4132_v3, %s3934_s23 }
 0x2f1   : > { %1491 = vrot.lane.b32.xlu0 %v4108_v39, %s3934_s23 }
 0x2f4   : > { %1493 = vrot.lane.b32.xlu1 %v4140_v10, %s3934_s23 }
 0x2f5   : > { %1495 = vrot.lane.b32.xlu0 %v4142_v11, %s3934_s23 }
 0x2f8   : > { %1497 = vrot.lane.b32.xlu1 %v4148_v13, %s3934_s23 }
 0x317   : > { %v980_v5 = vpop.xlane.xlu1 %979 }
 0x31b   : > { %v983_v6 = vpop.xlane.xlu0 %982  ;;  %v974_v7 = vpop.xlane.xlu1 %973 }
 0x31c   : > { %3762 = vrcp.f32 %v983_v6 }
 0x31d   : > { %3764 = vrcp.f32 %v974_v7 }
 0x31e   : > { %3766 = vrcp.f32 %v980_v5 }
 0x31f   : > { %v977_v8 = vpop.xlane.xlu0 %976  ;;  %v1156_v9 = vpop.permute.xlu1 %1155 }
 0x320   : > { %3768 = vrcp.f32 %v977_v8  ;;  %v1178_v25 = vsel %vm819_vm0, %v1156_v9, 0 }
 0x323   : > { %v1158_v12 = vpop.permute.xlu0 %1157  ;;  %v1154_v14 = vpop.permute.xlu1 %1153 }
 0x324   : > { %3639 = vmatprep.subr.msk.bf16.mxu1 %vm819_vm0, %v1158_v12  ;;  %v1181_v34 = vsel %vm819_vm0, %v1158_v12, 0  ;;  %v1175_v27 = vsel %vm819_vm0, %v1154_v14, 0 }
 0x327   : > { %v1506_v15 = vpop.permute.xlu1 %1505 }
 0x328   : > { %3643 = vmatprep.subr.msk.bf16.mxu0 %vm819_vm0, %v1506_v15  ;;  %v1529_v16 = vsel %vm819_vm0, %v1506_v15, 0 }
 0x329   : > { %3548 = vmatpush3.bf16.xpose.msra.mxu0 %v1529_v16  ;;  %v3763_v17 = vpop.eup %3762 }
 0x32a   : > { %v3765_v18 = vpop.eup %3764  ;;  %v1003_v24 = vmul.f32 %v3763_v17, %v4236_v43 }
 0x32b   : > { %v3767_v19 = vpop.eup %3766  ;;  %v1000_v26 = vmul.f32 %v3765_v18, %v4234_v42 }
 0x32c   : > { %v1002_v32 = vmul.f32 %v3767_v19, %v4226_v38 }
 0x32d   : > { %v3769_v20 = vpop.eup %3768 }
 0x32e   : > { %v1001_v28 = vmul.f32 %v3769_v20, %v4244_v46  ;;  %v1008_v22 = vpack.c.bf16 %v1003_v24, %v1002_v32  ;;  %v1132_v20 = vld [vmem:[#allocation2 + $0x18] sm:$0x1] }
 0x330   : > { %v1007_v33 = vpack.c.bf16 %v1001_v28, %v1000_v26 }
 0x332   : > { %3507 = vmatprep.mubr.msk.bf16.mxu1 %vm928_vm1, %v1007_v33 }
 0x333   : > { %3508 = vmatmul.mubr.msk.bf16.vlgmr.msra.gmra.mxu1 %vm928_vm1, %v1008_v22 }
 0x334   : > { %3516 = vmatpush3.bf16.xpose.msra.mxu1 %v1181_v34 }
 0x335   : > { %3640 = vmatprep.subr.msk.bf16.mxu1 %vm819_vm0, %v1156_v9 }
 0x33c   : > { %3518 = vmatpush3.bf16.xpose.msra.mxu1 %v1178_v25 }
 0x33d   : > { %3641 = vmatprep.subr.msk.bf16.mxu1 %vm819_vm0, %v1154_v14 }
 0x344   : > { %3520 = vmatpush3.bf16.xpose.msra.mxu1 %v1175_v27 }
 0x354   : > { %v989_v36 = vpop.xlane.xlu0 %988 }
 0x358   : > { %v1152_v38 = vpop.permute.xlu0 %1151  ;;  %v992_v40 = vpop.xlane.xlu1 %991 }
 0x359   : > { %3642 = vmatprep.subr.msk.bf16.mxu1 %vm819_vm0, %v1152_v38  ;;  %v1172_v42 = vsel %vm819_vm0, %v1152_v38, 0  ;;  %3770 = vrcp.f32 %v992_v40 }
 0x35a   : > { %3522 = vmatpush3.bf16.xpose.msra.mxu1 %v1172_v42  ;;  %3772 = vrcp.f32 %v989_v36 }
 0x35c   : > { %v1140_v43 = vpop.permute.xlu0 %1139  ;;  %v986_v44 = vpop.xlane.xlu1 %985 }
 0x35d   : > { %3774 = vrcp.f32 %v986_v44 }
 0x360   : > { %v1502_v45 = vpop.permute.xlu0 %1501  ;;  %v1504_v46 = vpop.permute.xlu1 %1503 }
 0x361   : > { %3644 = vmatprep.subr.msk.bf16.mxu0 %vm819_vm0, %v1504_v46  ;;  %v1526_v48 = vsel %vm819_vm0, %v1504_v46, 0  ;;  %v1523_v60 = vsel %vm819_vm0, %v1502_v45, 0 }
 0x362   : > { %3550 = vmatpush3.bf16.xpose.msra.mxu0 %v1526_v48 }
 0x363   : > { %3645 = vmatprep.subr.msk.bf16.mxu0 %vm819_vm0, %v1502_v45 }
 0x364   : > { %v1146_v50 = vpop.permute.xlu0 %1145  ;;  %v1142_v51 = vpop.permute.xlu1 %1141 }
 0x366   : > { %v3771_v52 = vpop.eup %3770 }
 0x367   : > { %v3773_v55 = vpop.eup %3772  ;;  %v1006_v63 = vmul.f32 %v3771_v52, %v4264_v4 }
 0x368   : > { %v1492_v57 = vpop.permute.xlu0 %1491  ;;  %v1144_v59 = vpop.permute.xlu1 %1143  ;;  %v1005_v54 = vmul.f32 %v3773_v55, %v4260_v0 }
 0x369   : > { %3555 = vmatprep.mubr.msk.bf16.mxu0 %vm819_vm0, %v1492_v57  ;;  %v1010_v6 = vpack.c.bf16 %v1006_v63, %v1006_v63 }
 0x36a   : > { %v3775_v61 = vpop.eup %3774  ;;  %3552 = vmatpush3.bf16.xpose.msra.mxu0 %v1523_v60 }
 0x36b   : > { %v1004_v1 = vmul.f32 %v3775_v61, %v4268_v53 }
 0x36c   : > { %v1500_v49 = vpop.permute.xlu1 %1499  ;;  %v1496_v4 = vpop.permute.xlu0 %1495 }
 0x36d   : > { %3646 = vmatprep.subr.msk.bf16.mxu0 %vm819_vm0, %v1500_v49  ;;  %v1009_v5 = vpack.c.bf16 %v1005_v54, %v1004_v1  ;;  %v1520_v7 = vsel %vm819_vm0, %v1500_v49, 0 }
 0x36f   : > { %3511 = vmatprep.mubr.msk.bf16.mxu1 %vm928_vm1, %v1009_v5 }
 0x370   : > { %3512 = vmatmul.mubr.msk.bf16.gmra.mxu1 %vm928_vm1, %v1010_v6  ;;  %v1494_v8 = vpop.permute.xlu1 %1493 }
 0x371   : > { %3523 = vmatprep.mubr.msk.bf16.mxu1 %vm819_vm0, %v1140_v43 }
 0x372   : > { %3554 = vmatpush3.bf16.xpose.msra.mxu0 %v1520_v7 }
 0x374   : > { %v1498_v0 = vpop.permute.xlu1 %1497 }
 0x378   : > { %3524 = vmatmul.mubr.msk.bf16.vlgmr.msra.gmra.mxu1 %vm819_vm0, %v1142_v51 }
 0x379   : > { %3527 = vmatprep.mubr.msk.bf16.mxu1 %vm819_vm0, %v1144_v59  ;;  %3556 = vmatmul.mubr.msk.bf16.vlgmr.msra.gmra.mxu0 %vm819_vm0, %v1494_v8 }
 0x37a   : > { %3559 = vmatprep.mubr.msk.bf16.mxu0 %vm819_vm0, %v1496_v4 }
 0x380   : > { %3528 = vmatmul.mubr.msk.bf16.gmra.mxu1 %vm819_vm0, %v1146_v50 }
 0x381   : > { %3560 = vmatmul.mubr.msk.bf16.gmra.mxu0 %vm819_vm0, %v1498_v0 }
 0x3f3   : > { %v3509_v53 = vpop.f32.mrf.mxu1 }
 0x3f4   : > { %v3305_v9 = vpack.c.bf16 %v3509_v53, %v3509_v53 }
 0x3f5   : > { %v1063_v12 = vpop.f32.mrf.mxu1 }
 0x3f6   : > { %1125 = vst.msk [vmem:[#allocation2 + $0x8] sm:$0xf] %vm1122_vm4, %v3305_v9  ;;  %v3303_v14 = vpack.c.bf16 %v1063_v12, %v1063_v12 }
 0x3f7   : > { %v3510_v15 = vpop.f32.mrf.mxu1 }
 0x3f8   : > { %1123 = vst.msk [vmem:[#allocation2] sm:$0xf] %vm1122_vm4, %v3303_v14  ;;  %v3306_v16 = vpack.c.bf16 %v3510_v15, %v3510_v15 }
 0x3f9   : > { %v1066_v17 = vpop.f32.mrf.mxu1 }
 0x3fa   : > { %1126 = vst.msk [vmem:[#allocation2 + $0xc] sm:$0xf] %vm1122_vm4, %v3306_v16  ;;  %v3304_v18 = vpack.c.bf16 %v1066_v17, %v1066_v17 }
 0x3fc   : > { %1124 = vst.msk [vmem:[#allocation2 + $0x4] sm:$0xf] %vm1122_vm4, %v3304_v18 }
 0x430   : > { %v3513_v19 = vpop.f32.mrf.mxu1 }
 0x431   : > { %v3309_v24 = vpack.c.bf16 %v3513_v19, %v3513_v19 }
 0x432   : > { %v1079_v26 = vpop.f32.mrf.mxu1 }
 0x433   : > { %v1133_v28 = vsel %vm1131_vm7, %v3309_v24, %v1132_v20  ;;  %v3307_v32 = vpack.c.bf16 %v1079_v26, %v1079_v26 }
 0x434   : > { %1134 = vst [vmem:[#allocation2 + $0x18] sm:$0x1] %v1133_v28  ;;  %v3514_v33 = vpop.f32.mrf.mxu1 }
 0x435   : > { %1127 = vst.msk [vmem:[#allocation2 + $0x10] sm:$0xf] %vm1122_vm4, %v3307_v32 }
 0x436   : > { %v1082_v22 = vpop.f32.mrf.mxu1 }
 0x437   : > { %v3308_v34 = vpack.c.bf16 %v1082_v22, %v1082_v22 }
 0x438   : > { %v3525_v25 = vpop.f32.mrf.mxu1 }
 0x439   : > { %1128 = vst.msk [vmem:[#allocation2 + $0x14] sm:$0xf] %vm1122_vm4, %v3308_v34  ;;  %v3557_v27 = vpop.f32.mrf.mxu0  ;;  %v1249_v48 = vmul.f32 0.17677669, %v3525_v25 }
 0x43a   : > { %v1217_v36 = vpop.f32.mrf.mxu1  ;;  %v1597_v40 = vmul.f32 0.17677669, %v3557_v27 }
 0x43b   : > { %v1565_v38 = vpop.f32.mrf.mxu0  ;;  %v1247_v1 = vmul.f32 0.17677669, %v1217_v36  ;;  %v4350_v49 = vadd.f32 %v4186_v23, %v1249_v48 }
 0x43c   : > { %v1595_v42 = vmul.f32 0.17677669, %v1565_v38  ;;  %v3526_v43 = vpop.f32.mrf.mxu1  ;;  %v4344_v59 = vadd.f32 %v4186_v23, %v1597_v40 }
 0x43d   : > { %v3558_v44 = vpop.f32.mrf.mxu0  ;;  %v1250_v9 = vmul.f32 0.17677669, %v3526_v43  ;;  %v4360_v12 = vadd.f32 %v4186_v23, %v1247_v1  ;;  %v1267_v16 = vsel %vm928_vm1, %v4350_v49, -inf }
 0x43e   : > { %v1220_v45 = vpop.f32.mrf.mxu1  ;;  %v4339_v46 = vadd.f32 %v4186_v23, %v1595_v42  ;;  %v1615_v7 = vsel %vm928_vm1, %v4344_v59, -inf  ;;  %v1598_v27 = vmul.f32 0.17677669, %v3558_v44 }
 0x43f   : > { %v1568_v50 = vpop.f32.mrf.mxu0  ;;  %v1248_v51 = vmul.f32 0.17677669, %v1220_v45  ;;  %v1261_v18 = vsel %vm928_vm1, %v4360_v12, -inf  ;;  %v1257_v19 = vadd.f32 %v4186_v23, %v1250_v9 }
 0x440   : > { %v1596_v52 = vmul.f32 0.17677669, %v1568_v50  ;;  %v3529_v55 = vpop.f32.mrf.mxu1  ;;  %v1609_v57 = vsel %vm928_vm1, %v4339_v46, -inf  ;;  %v4396_v48 = vadd.f32 %v4186_v23, %v1598_v27 }
 0x441   : > { %1610 = vmax.xlane.f32.xlu1 %v1609_v57  ;;  %v3561_v60 = vpop.f32.mrf.mxu0  ;;  %v4357_v4 = vadd.f32 %v4186_v23, %v1248_v51  ;;  %v1253_v20 = vmul.f32 0.17677669, %v3529_v55  ;;  %v1270_v32 = vsel %vm928_vm1, %v1257_v19, -inf }
 0x442   : > { %v1233_v61 = vpop.f32.mrf.mxu1  ;;  %v4347_v63 = vadd.f32 %v4186_v23, %v1596_v52  ;;  %v1601_v24 = vmul.f32 0.17677669, %v3561_v60  ;;  %v1618_v44 = vsel %vm928_vm1, %v4396_v48, -inf }
 0x443   : > { %v1581_v54 = vpop.f32.mrf.mxu0  ;;  %v1264_v15 = vsel %vm928_vm1, %v4357_v4, -inf  ;;  %v1251_v33 = vmul.f32 0.17677669, %v1233_v61  ;;  %v4381_v34 = vadd.f32 %v4186_v23, %v1253_v20 }
 0x444   : > { %v1599_v5 = vmul.f32 0.17677669, %v1581_v54  ;;  %v3530_v6 = vpop.f32.mrf.mxu1  ;;  %v1612_v8 = vsel %vm928_vm1, %v4347_v63, -inf  ;;  %v4384_v25 = vadd.f32 %v4186_v23, %v1601_v24 }
 0x445   : > { %1616 = vmax.xlane.f32.xlu1 %v1615_v7  ;;  %1613 = vmax.xlane.f32.xlu0 %v1612_v8  ;;  %v3562_v0 = vpop.f32.mrf.mxu0  ;;  %v1279_v36 = vsel %vm947_vm2, %v4381_v34, -inf  ;;  %v4391_v40 = vadd.f32 %v4186_v23, %v1251_v33 }
 0x446   : > { %v1236_v53 = vpop.f32.mrf.mxu1  ;;  %v4367_v17 = vadd.f32 %v4186_v23, %v1599_v5  ;;  %v1627_v38 = vsel %vm947_vm2, %v4384_v25, -inf }
 0x447   : > { %v1252_v14 = vmul.f32 0.17677669, %v1236_v53  ;;  %v1584_v42 = vpop.f32.mrf.mxu0  ;;  %v1273_v45 = vsel %vm928_vm1, %v4391_v40, -inf }
 0x448   : > { %v1621_v26 = vsel %vm928_vm1, %v4367_v17, -inf  ;;  %v1600_v43 = vmul.f32 0.17677669, %v1584_v42 }
 0x449   : > { %1265 = vmax.xlane.f32.xlu1 %v1264_v15  ;;  %1268 = vmax.xlane.f32.xlu0 %v1267_v16  ;;  %v4375_v28 = vadd.f32 %v4186_v23, %v1252_v14 }
 0x44a   : > { %v4401_v50 = vadd.f32 %v4186_v23, %v1600_v43 }
 0x44b   : > { %v1276_v22 = vsel %vm928_vm1, %v4375_v28, -inf }
 0x44c   : > { %v1624_v51 = vsel %vm928_vm1, %v4401_v50, -inf }
 0x44d   : > { %1262 = vmax.xlane.f32.xlu0 %v1261_v18  ;;  %1622 = vmax.xlane.f32.xlu1 %v1621_v26 }
 0x451   : > { %1271 = vmax.xlane.f32.xlu0 %v1270_v32  ;;  %1277 = vmax.xlane.f32.xlu1 %v1276_v22 }
 0x455   : > { %1280 = vmax.xlane.f32.xlu0 %v1279_v36  ;;  %1628 = vmax.xlane.f32.xlu1 %v1627_v38 }
 0x459   : > { %1274 = vmax.xlane.f32.xlu0 %v1273_v45 }
 0x45d   : > { %1619 = vmax.xlane.f32.xlu0 %v1618_v44 }
 0x461   : > { %1625 = vmax.xlane.f32.xlu0 %v1624_v51 }
 0x466   : > { %1352 = vrot.lane.b32.xlu1 %v4217_v31, %s3933_s22 }
 0x46a   : > { %1350 = vrot.lane.b32.xlu1 %v4223_v37, %s3933_s22 }
 0x46e   : > { %1346 = vrot.lane.b32.xlu1 %v4231_v41, %s3933_s22 }
 0x472   : > { %1696 = vrot.lane.b32.xlu1 %v4217_v31, %s3934_s23 }
 0x476   : > { %1694 = vrot.lane.b32.xlu1 %v4223_v37, %s3934_s23 }
 0x47a   : > { %1692 = vrot.lane.b32.xlu1 %v4221_v35, %s3934_s23 }
 0x4ca   : > { %v1611_v23 = vpop.xlane.xlu1 %1610 }
 0x4cb   : > { %v1630_v52 = vsub.f32 %v4339_v46, %v1611_v23 }
 0x4cd   : > { %v1637_v55 = vmul.f32 1.442695, %v1630_v52 }
 0x4ce   : > { %v1614_v57 = vpop.xlane.xlu0 %1613  ;;  %v1617_v60 = vpop.xlane.xlu1 %1616 }
 0x4cf   : > { %3776 = vpow2.f32 %v1637_v55  ;;  %v1631_v61 = vsub.f32 %v4347_v63, %v1614_v57  ;;  %v1632_v1 = vsub.f32 %v4344_v59, %v1617_v60 }
 0x4d1   : > { %v1639_v54 = vmul.f32 1.442695, %v1631_v61  ;;  %v1641_v5 = vmul.f32 1.442695, %v1632_v1 }
 0x4d2   : > { %v4420_v6 = vpop.xlane.xlu0 %1268  ;;  %v1266_v7 = vpop.xlane.xlu1 %1265 }
 0x4d3   : > { %3778 = vpow2.f32 %v1639_v54  ;;  %v1283_v46 = vsub.f32 %v4357_v4, %v1266_v7  ;;  %v1284_v54 = vsub.f32 %v4350_v49, %v4420_v6 }
 0x4d4   : > { %3780 = vpow2.f32 %v1641_v5 }
 0x4d5   : > { %v1291_v63 = vmul.f32 1.442695, %v1283_v46  ;;  %v1293_v5 = vmul.f32 1.442695, %v1284_v54 }
 0x4d6   : > { %v4422_v8 = vpop.xlane.xlu0 %1262  ;;  %v1623_v0 = vpop.xlane.xlu1 %1622 }
 0x4d7   : > { %v1634_v59 = vsub.f32 %v4367_v17, %v1623_v0  ;;  %v1282_v7 = vsub.f32 %v4360_v12, %v4422_v8 }
 0x4d9   : > { %v1645_v4 = vmul.f32 1.442695, %v1634_v59 }
 0x4da   : > { %v1272_v53 = vpop.xlane.xlu0 %1271  ;;  %v1278_v9 = vpop.xlane.xlu1 %1277 }
 0x4db   : > { %v1285_v14 = vsub.f32 %v1257_v19, %v1272_v53  ;;  %v1287_v19 = vsub.f32 %v4375_v28, %v1278_v9 }
 0x4dc   : > { %v4425_v15 = vpop.eup %3776 }
 0x4dd   : > { %v1295_v16 = vmul.f32 1.442695, %v1285_v14  ;;  %v1651_v18 = vsel %vm928_vm1, %v4425_v15, 0.0  ;;  %v1299_v36 = vmul.f32 1.442695, %v1287_v19 }
 0x4de   : > { %v1281_v20 = vpop.xlane.xlu0 %1280  ;;  %1652 = vadd.xlane.f32.xlu0 %v1651_v18  ;;  %v4430_v24 = vpop.xlane.xlu1 %1628 }
 0x4df   : > { %3782 = vpow2.f32 %v1295_v16  ;;  %v1288_v0 = vsub.f32 %v4381_v34, %v1281_v20  ;;  %v1636_v12 = vsub.f32 %v4384_v25, %v4430_v24 }
 0x4e0   : > { %v4432_v26 = vpop.eup %3778  ;;  %3784 = vpow2.f32 %v1291_v63 }
 0x4e1   : > { %v1654_v32 = vsel %vm928_vm1, %v4432_v26, 0.0  ;;  %v4437_v33 = vpop.eup %3780  ;;  %3786 = vpow2.f32 %v1645_v4  ;;  %v1649_v34 = vmul.f32 1.442695, %v1636_v12 }
 0x4e2   : > { %v1275_v17 = vpop.xlane.xlu0 %1274  ;;  %1655 = vadd.xlane.f32.xlu0 %v1654_v32  ;;  %v1353_v22 = vpop.permute.xlu1 %1352  ;;  %v1657_v38 = vsel %vm928_vm1, %v4437_v33, 0.0  ;;  %3788 = vpow2.f32 %v1299_v36 }
 0x4e3   : > { %v1370_v27 = vand.u32 %v1353_v22, %v4215_v21  ;;  %v1286_v49 = vsub.f32 %v4391_v40, %v1275_v17 }
 0x4e5   : > { %3531 = vmatprep.subr.bf16.mxu1 %v1370_v27 }
 0x4e6   : > { %v1620_v42 = vpop.xlane.xlu0 %1619  ;;  %1658 = vadd.xlane.f32.xlu0 %v1657_v38  ;;  %3532 = vmatpush3.bf16.msra.mxu1 %v1370_v27  ;;  %v1351_v28 = vpop.permute.xlu1 %1350 }
 0x4e7   : > { %v1633_v43 = vsub.f32 %v4396_v48, %v1620_v42  ;;  %3533 = vmatprep.subr.bf16.mxu1 %v1351_v28 }
 0x4e9   : > { %v1643_v45 = vmul.f32 1.442695, %v1633_v43 }
 0x4ea   : > { %3534 = vmatpush3.bf16.msra.mxu1 %v1351_v28  ;;  %v1626_v6 = vpop.xlane.xlu0 %1625 }
 0x4eb   : > { %3790 = vpow2.f32 %v1643_v45  ;;  %v1635_v46 = vsub.f32 %v4401_v50, %v1626_v6 }
 0x4ec   : > { %v4443_v44 = vpop.eup %3782  ;;  %3792 = vpow2.f32 %v1293_v5 }
 0x4ed   : > { %v1312_v51 = vsel %vm928_vm1, %v4443_v44, 0.0  ;;  %v4447_v23 = vpop.eup %3784 }
 0x4ee   : > { %1313 = vadd.xlane.f32.xlu1 %v1312_v51  ;;  %v1306_v52 = vsel %vm928_vm1, %v4447_v23, 0.0  ;;  %v4451_v55 = vpop.eup %3786 }
 0x4ef   : > { %v1663_v48 = vsel %vm928_vm1, %v4451_v55, 0.0  ;;  %v4455_v57 = vpop.eup %3788 }
 0x4f0   : > { %v1318_v1 = vsel %vm928_vm1, %v4455_v57, 0.0 }
 0x4f2   : > { %1307 = vadd.xlane.f32.xlu1 %v1306_v52 }
 0x4f6   : > { %1664 = vadd.xlane.f32.xlu1 %v1663_v48 }
 0x4f8   : > { %v4457_v60 = vpop.eup %3790 }
 0x4f9   : > { %v1660_v61 = vsel %vm928_vm1, %v4457_v60, 0.0  ;;  %v4486_v8 = vpop.eup %3792 }
 0x4fa   : > { %1661 = vadd.xlane.f32.xlu0 %v1660_v61  ;;  %1319 = vadd.xlane.f32.xlu1 %v1318_v1 }
 0x50b   : > { %1690 = vrot.lane.b32.xlu1 %v4231_v41, %s3934_s23 }
 0x50f   : > { %1847 = vrot.lane.b32.xlu1 %v4118_v58, %s3935_s24  ;;  %v1289_v58 = vmul.f32 1.442695, %v1282_v7 }
 0x510   : > { %1348 = vrot.lane.b32.xlu0 %v4221_v35, %s3933_s22 }
 0x511   : > { %3794 = vpow2.f32 %v1289_v58 }
 0x513   : > { %1845 = vrot.lane.b32.xlu1 %v4126_v62, %s3935_s24  ;;  %v1301_v62 = vmul.f32 1.442695, %v1288_v0 }
 0x515   : > { %3796 = vpow2.f32 %v1301_v62 }
 0x517   : > { %1843 = vrot.lane.b32.xlu1 %v4132_v3, %s3935_s24  ;;  %v1297_v3 = vmul.f32 1.442695, %v1286_v49 }
 0x519   : > { %3798 = vpow2.f32 %v1297_v3 }
 0x51b   : > { %1837 = vrot.lane.b32.xlu1 %v4140_v10, %s3935_s24  ;;  %v1647_v10 = vmul.f32 1.442695, %v1635_v46 }
 0x51d   : > { %3800 = vpow2.f32 %v1647_v10 }
 0x51e   : > { %v4490_v53 = vpop.eup %3794  ;;  %3802 = vpow2.f32 %v1649_v34 }
 0x51f   : > { %1841 = vrot.lane.b32.xlu1 %v4148_v13, %s3935_s24  ;;  %v1309_v13 = vsel %vm928_vm1, %v4486_v8, 0.0  ;;  %v1303_v40 = vsel %vm928_vm1, %v4490_v53, 0.0 }
 0x522   : > { %v4494_v50 = vpop.eup %3796 }
 0x523   : > { %v1321_v25 = vsel %vm947_vm2, %v4494_v50, 0.0 }
 0x526   : > { %v4498_v9 = vpop.eup %3798 }
 0x527   : > { %v1315_v14 = vsel %vm928_vm1, %v4498_v9, 0.0 }
 0x52a   : > { %v4502_v63 = vpop.eup %3800 }
 0x52b   : > { %v1666_v59 = vsel %vm928_vm1, %v4502_v63, 0.0  ;;  %v4506_v16 = vpop.eup %3802 }
 0x52c   : > { %v1669_v18 = vsel %vm947_vm2, %v4506_v16, 0.0 }
 0x52f   : > { %1310 = vadd.xlane.f32.xlu0 %v1309_v13 }
 0x533   : > { %1304 = vadd.xlane.f32.xlu0 %v1303_v40 }
 0x537   : > { %1322 = vadd.xlane.f32.xlu0 %v1321_v25 }
 0x53b   : > { %1316 = vadd.xlane.f32.xlu0 %v1315_v14 }
 0x53f   : > { %1667 = vadd.xlane.f32.xlu0 %v1666_v59 }
 0x543   : > { %1670 = vadd.xlane.f32.xlu0 %v1669_v18 }
 0x559   : > { %1849 = vrot.lane.b32.xlu0 %v4116_v56, %s3935_s24 }
 0x55d   : > { %1835 = vrot.lane.b32.xlu0 %v4108_v39, %s3935_s24  ;;  %v1347_v39 = vpop.permute.xlu1 %1346 }
 0x561   : > { %1839 = vrot.lane.b32.xlu0 %v4142_v11, %s3935_s24  ;;  %v1697_v36 = vpop.permute.xlu1 %1696 }
 0x562   : > { %v1714_v38 = vand.u32 %v1697_v36, %v4215_v21 }
 0x565   : > { %v1695_v45 = vpop.permute.xlu1 %1694 }
 0x567   : > { %v1653_v20 = vpop.xlane.xlu0 %1652 }
 0x568   : > { %3804 = vrcp.f32 %v1653_v20 }
 0x569   : > { %v1693_v51 = vpop.permute.xlu1 %1692 }
 0x56b   : > { %v1656_v24 = vpop.xlane.xlu0 %1655 }
 0x56c   : > { %3806 = vrcp.f32 %v1656_v24 }
 0x56f   : > { %v1659_v22 = vpop.xlane.xlu0 %1658 }
 0x570   : > { %3808 = vrcp.f32 %v1659_v22 }
 0x575   : > { %v3805_v4 = vpop.eup %3804 }
 0x576   : > { %v4517_v32 = vmul.f32 %v3805_v4, %v4425_v15 }
 0x577   : > { %v1314_v52 = vpop.xlane.xlu1 %1313 }
 0x579   : > { %v3807_v19 = vpop.eup %3806 }
 0x57a   : > { %v4520_v17 = vmul.f32 %v3807_v19, %v4432_v26 }
 0x57b   : > { %v1308_v48 = vpop.xlane.xlu1 %1307 }
 0x57c   : > { %v1686_v56 = vpack.c.bf16 %v4520_v17, %v4517_v32 }
 0x57d   : > { %v3809_v15 = vpop.eup %3808 }
 0x57e   : > { %v4526_v42 = vmul.f32 %v3809_v15, %v4437_v33 }
 0x57f   : > { %v1665_v1 = vpop.xlane.xlu1 %1664 }
 0x583   : > { %v1662_v27 = vpop.xlane.xlu0 %1661  ;;  %v1320_v5 = vpop.xlane.xlu1 %1319 }
 0x584   : > { %3810 = vrcp.f32 %v1662_v27 }
 0x587   : > { %v1349_v11 = vpop.permute.xlu0 %1348  ;;  %v1691_v20 = vpop.permute.xlu1 %1690 }
 0x588   : > { %3535 = vmatprep.subr.bf16.mxu1 %v1349_v11 }
 0x589   : > { %3536 = vmatpush3.bf16.msra.mxu1 %v1349_v11 }
 0x58a   : > { %3537 = vmatprep.subr.bf16.mxu1 %v1347_v39 }
 0x58b   : > { %v1848_v32 = vpop.permute.xlu1 %1847 }
 0x58c   : > { %v1870_v17 = vsel %vm819_vm0, %v1848_v32, 0 }
 0x58d   : > { %3538 = vmatpush3.bf16.msra.mxu1 %v1347_v39 }
 0x58e   : > { %3563 = vmatprep.subr.bf16.mxu1 %v1714_v38 }
 0x58f   : > { %v1846_v39 = vpop.permute.xlu1 %1845 }
 0x590   : > { %v1867_v27 = vsel %vm819_vm0, %v1846_v39, 0 }
 0x591   : > { %v3811_v26 = vpop.eup %3810 }
 0x592   : > { %v4529_v28 = vmul.f32 %v3811_v26, %v4457_v60 }
 0x593   : > { %v1844_v11 = vpop.permute.xlu1 %1843 }
 0x594   : > { %v1687_v43 = vpack.c.bf16 %v4529_v28, %v4526_v42 }
 0x597   : > { %v1838_v36 = vpop.permute.xlu1 %1837 }
 0x59b   : > { %v1842_v15 = vpop.permute.xlu1 %1841 }
 0x5b8   : > { %v1311_v61 = vpop.xlane.xlu0 %1310 }
 0x5b9   : > { %3812 = vrcp.f32 %v1311_v61 }
 0x5ba   : > { %3814 = vrcp.f32 %v1308_v48 }
 0x5bb   : > { %3816 = vrcp.f32 %v1314_v52 }
 0x5bc   : > { %v1305_v54 = vpop.xlane.xlu0 %1304 }
 0x5bd   : > { %3818 = vrcp.f32 %v1305_v54 }
 0x5c0   : > { %v1323_v33 = vpop.xlane.xlu0 %1322 }
 0x5c1   : > { %3820 = vrcp.f32 %v1323_v33 }
 0x5c2   : > { %3822 = vrcp.f32 %v1320_v5 }
 0x5c4   : > { %v1317_v60 = vpop.xlane.xlu0 %1316 }
 0x5c5   : > { %3824 = vrcp.f32 %v1317_v60 }
 0x5c6   : > { %v3813_v7 = vpop.eup %3812 }
 0x5c7   : > { %v3815_v58 = vpop.eup %3814  ;;  %v1333_v6 = vmul.f32 %v3813_v7, %v4486_v8 }
 0x5c8   : > { %v1668_v0 = vpop.xlane.xlu0 %1667  ;;  %v3817_v62 = vpop.eup %3816  ;;  %v1332_v46 = vmul.f32 %v3815_v58, %v4447_v23 }
 0x5c9   : > { %3826 = vrcp.f32 %v1668_v0  ;;  %v1334_v12 = vmul.f32 %v3817_v62, %v4443_v44 }
 0x5ca   : > { %v3819_v49 = vpop.eup %3818  ;;  %3828 = vrcp.f32 %v1665_v1 }
 0x5cb   : > { %v1331_v3 = vmul.f32 %v3819_v49, %v4490_v53  ;;  %v1339_v34 = vpack.c.bf16 %v1334_v12, %v1333_v6 }
 0x5cc   : > { %v1671_v40 = vpop.xlane.xlu0 %1670 }
 0x5cd   : > { %v1338_v10 = vpack.c.bf16 %v1332_v46, %v1331_v3  ;;  %3830 = vrcp.f32 %v1671_v40  ;;  %v3916_v46 = vld [vmem:[%s4183_s21] ss:$0 sm:$0xff] }
 0x5ce   : > { %v3821_v13 = vpop.eup %3820 }
 0x5cf   : > { %3539 = vmatprep.mubr.msk.bf16.mxu1 %vm928_vm1, %v1338_v10  ;;  %v3823_v25 = vpop.eup %3822  ;;  %v1337_v8 = vmul.f32 %v3821_v13, %v4494_v50 }
 0x5d0   : > { %3540 = vmatmul.mubr.msk.bf16.vlgmr.msra.gmra.mxu1 %vm928_vm1, %v1339_v34  ;;  %v1336_v44 = vmul.f32 %v3823_v25, %v4455_v57 }
 0x5d1   : > { %3564 = vmatpush3.bf16.msra.mxu1 %v1714_v38  ;;  %v1341_v59 = vpack.c.bf16 %v1337_v8, %v1337_v8 }
 0x5d2   : > { %v3825_v14 = vpop.eup %3824  ;;  %3565 = vmatprep.subr.bf16.mxu1 %v1695_v45 }
 0x5d3   : > { %v1335_v23 = vmul.f32 %v3825_v14, %v4498_v9  ;;  %v1850_v9 = vpop.permute.xlu0 %1849 }
 0x5d4   : > { %v1873_v22 = vsel %vm819_vm0, %v1850_v9, 0 }
 0x5d5   : > { %3566 = vmatpush3.bf16.msra.mxu1 %v1695_v45  ;;  %v1340_v53 = vpack.c.bf16 %v1336_v44, %v1335_v23 }
 0x5d6   : > { %3567 = vmatprep.subr.bf16.mxu1 %v1693_v51  ;;  %v3827_v18 = vpop.eup %3826 }
 0x5d7   : > { %3543 = vmatprep.mubr.msk.bf16.mxu1 %vm928_vm1, %v1340_v53  ;;  %v3829_v50 = vpop.eup %3828  ;;  %v1684_v57 = vmul.f32 %v3827_v18, %v4502_v63 }
 0x5d8   : > { %3544 = vmatmul.mubr.msk.bf16.gmra.mxu1 %vm928_vm1, %v1341_v59  ;;  %v1683_v24 = vmul.f32 %v3829_v50, %v4451_v55 }
 0x5d9   : > { %3568 = vmatpush3.bf16.msra.mxu1 %v1693_v51  ;;  %3571 = vmatprep.mubr.msk.bf16.mxu1 %vm928_vm1, %v1686_v56  ;;  %v1836_v56 = vpop.permute.xlu0 %1835 }
 0x5da   : > { %3569 = vmatprep.subr.bf16.mxu1 %v1691_v20  ;;  %v3831_v4 = vpop.eup %3830  ;;  %v1688_v19 = vpack.c.bf16 %v1684_v57, %v1683_v24 }
 0x5db   : > { %v1685_v63 = vmul.f32 %v3831_v4, %v4506_v16  ;;  %v1864_v16 = vsel %vm819_vm0, %v1844_v11, 0 }
 0x5dd   : > { %3570 = vmatpush3.bf16.msra.mxu1 %v1691_v20  ;;  %v1689_v55 = vpack.c.bf16 %v1685_v63, %v1685_v63  ;;  %v1840_v38 = vpop.permute.xlu0 %1839 }
 0x5de   : > { %3647 = vmatprep.subr.msk.bf16.mxu1 %vm819_vm0, %v1850_v9 }
 0x5e0   : > { %3572 = vmatmul.mubr.msk.bf16.vlgmr.msra.gmra.mxu1 %vm928_vm1, %v1687_v43 }
 0x5e1   : > { %3580 = vmatpush3.bf16.xpose.msra.mxu1 %v1873_v22  ;;  %3575 = vmatprep.mubr.msk.bf16.mxu1 %vm928_vm1, %v1688_v19 }
 0x5e2   : > { %3648 = vmatprep.subr.msk.bf16.mxu1 %vm819_vm0, %v1848_v32 }
 0x5e8   : > { %3576 = vmatmul.mubr.msk.bf16.gmra.mxu1 %vm928_vm1, %v1689_v55 }
 0x5e9   : > { %3582 = vmatpush3.bf16.xpose.msra.mxu1 %v1870_v17  ;;  %3587 = vmatprep.mubr.msk.bf16.mxu1 %vm819_vm0, %v1836_v56 }
 0x5ea   : > { %3649 = vmatprep.subr.msk.bf16.mxu1 %vm819_vm0, %v1846_v39 }
 0x5f1   : > { %3584 = vmatpush3.bf16.xpose.msra.mxu1 %v1867_v27 }
 0x5f2   : > { %3650 = vmatprep.subr.msk.bf16.mxu1 %vm819_vm0, %v1844_v11 }
 0x5f9   : > { %3586 = vmatpush3.bf16.xpose.msra.mxu1 %v1864_v16 }
 0x600   : > { %3588 = vmatmul.mubr.msk.bf16.vlgmr.msra.gmra.mxu1 %vm819_vm0, %v1838_v36 }
 0x601   : > { %3591 = vmatprep.mubr.msk.bf16.mxu1 %vm819_vm0, %v1840_v38 }
 0x608   : > { %3592 = vmatmul.mubr.msk.bf16.gmra.mxu1 %vm819_vm0, %v1842_v15  ;;  %vm2175_vm0 = vmand %vm2174_vm15, %vm1130_vm6 }
 0x609   : > { %2602 = vmatprep.mubr.bf16.mxu1 %v3932_v2 }
 0x690   : > { %v4570_v26 = vpop.f32.mrf.mxu1 }
 0x692   : > { %v4572_v42 = vpop.f32.mrf.mxu1 }
 0x694   : > { %v4574_v28 = vpop.f32.mrf.mxu1 }
 0x696   : > { %v4576_v43 = vpop.f32.mrf.mxu1 }
 0x698   : > { %v4578_v45 = vpop.f32.mrf.mxu1 }
 0x69a   : > { %v4580_v51 = vpop.f32.mrf.mxu1 }
 0x69c   : > { %v3546_v52 = vpop.f32.mrf.mxu1 }
 0x69e   : > { %v4582_v48 = vpop.f32.mrf.mxu1 }
 0x6a0   : > { %v4584_v61 = vpop.f32.mrf.mxu1 }
 0x6a2   : > { %v4586_v1 = vpop.f32.mrf.mxu1 }
 0x6a4   : > { %v4588_v54 = vpop.f32.mrf.mxu1 }
 0x6a6   : > { %v4590_v5 = vpop.f32.mrf.mxu1 }
 0x6a8   : > { %v4592_v33 = vpop.f32.mrf.mxu1 }
 0x6aa   : > { %v4594_v60 = vpop.f32.mrf.mxu1 }
 0x6ac   : > { %v3578_v7 = vpop.f32.mrf.mxu1 }
 0x6ae   : > { %v4596_v58 = vpop.f32.mrf.mxu1 }
 0x6c0   : > { %v3589_v0 = vpop.f32.mrf.mxu1 }
 0x6c1   : > { %v1941_v49 = vmul.f32 0.17677669, %v3589_v0 }
 0x6c2   : > { %v1909_v62 = vpop.f32.mrf.mxu1 }
 0x6c3   : > { %v1939_v6 = vmul.f32 0.17677669, %v1909_v62  ;;  %v1948_v25 = vadd.f32 %v3916_v46, %v1941_v49 }
 0x6c4   : > { %v3590_v3 = vpop.f32.mrf.mxu1 }
 0x6c5   : > { %v1946_v12 = vadd.f32 %v3916_v46, %v1939_v6  ;;  %v1942_v34 = vmul.f32 0.17677669, %v3590_v3  ;;  %v1959_v53 = vsel %vm928_vm1, %v1948_v25, -inf }
 0x6c6   : > { %v1912_v10 = vpop.f32.mrf.mxu1 }
 0x6c7   : > { %v1940_v13 = vmul.f32 0.17677669, %v1912_v10  ;;  %v1953_v40 = vsel %vm928_vm1, %v1946_v12, -inf  ;;  %v1949_v18 = vadd.f32 %v3916_v46, %v1942_v34 }
 0x6c8   : > { %1954 = vmax.xlane.f32.xlu0 %v1953_v40  ;;  %v3593_v14 = vpop.f32.mrf.mxu1 }
 0x6c9   : > { %v1947_v8 = vadd.f32 %v3916_v46, %v1940_v13  ;;  %v1945_v57 = vmul.f32 0.17677669, %v3593_v14  ;;  %v1962_v24 = vsel %vm928_vm1, %v1949_v18, -inf }
 0x6ca   : > { %v1925_v23 = vpop.f32.mrf.mxu1 }
 0x6cb   : > { %v1943_v44 = vmul.f32 0.17677669, %v1925_v23  ;;  %v1956_v59 = vsel %vm928_vm1, %v1947_v8, -inf  ;;  %v1952_v63 = vadd.f32 %v3916_v46, %v1945_v57 }
 0x6cc   : > { %1960 = vmax.xlane.f32.xlu0 %v1959_v53  ;;  %1957 = vmax.xlane.f32.xlu1 %v1956_v59  ;;  %v3594_v20 = vpop.f32.mrf.mxu1 }
 0x6cd   : > { %v1950_v4 = vadd.f32 %v3916_v46, %v1943_v44  ;;  %v1971_v55 = vsel %vm947_vm2, %v1952_v63, -inf }
 0x6ce   : > { %v1928_v50 = vpop.f32.mrf.mxu1 }
 0x6cf   : > { %v1944_v9 = vmul.f32 0.17677669, %v1928_v50  ;;  %v1965_v22 = vsel %vm928_vm1, %v1950_v4, -inf }
 0x6d0   : > { %1963 = vmax.xlane.f32.xlu0 %v1962_v24 }
 0x6d1   : > { %v1951_v19 = vadd.f32 %v3916_v46, %v1944_v9 }
 0x6d3   : > { %v1968_v32 = vsel %vm928_vm1, %v1951_v19, -inf }
 0x6d4   : > { %1966 = vmax.xlane.f32.xlu0 %v1965_v22  ;;  %1969 = vmax.xlane.f32.xlu1 %v1968_v32  ;;  %v3316_v22 = vpack.c.bf16 %v4578_v45, %v4578_v45 }
 0x6d8   : > { %1972 = vmax.xlane.f32.xlu0 %v1971_v55 }
 0x6e5   : > { %2040 = vrot.lane.b32.xlu1 %v4217_v31, %s3935_s24 }
 0x751   : > { %v1955_v17 = vpop.xlane.xlu0 %1954 }
 0x752   : > { %v1974_v56 = vsub.f32 %v1946_v12, %v1955_v17 }
 0x754   : > { %v1981_v16 = vmul.f32 1.442695, %v1974_v56 }
 0x755   : > { %v1961_v39 = vpop.xlane.xlu0 %1960  ;;  %v1958_v27 = vpop.xlane.xlu1 %1957 }
 0x756   : > { %v1976_v11 = vsub.f32 %v1948_v25, %v1961_v39  ;;  %v1975_v38 = vsub.f32 %v1947_v8, %v1958_v27 }
 0x758   : > { %v1985_v36 = vmul.f32 1.442695, %v1976_v11  ;;  %v1983_v7 = vmul.f32 1.442695, %v1975_v38  ;;  %v1488_v38 = vld [vmem:[#allocation2 + $0x18] sm:$0x1] }
 0x759   : > { %v1964_v15 = vpop.xlane.xlu0 %1963 }
 0x75a   : > { %3832 = vpow2.f32 %v1985_v36  ;;  %v1977_v52 = vsub.f32 %v1949_v18, %v1964_v15 }
 0x75b   : > { %3834 = vpow2.f32 %v1981_v16 }
 0x75c   : > { %v1987_v0 = vmul.f32 1.442695, %v1977_v52 }
 0x75d   : > { %v1967_v62 = vpop.xlane.xlu0 %1966  ;;  %v1970_v49 = vpop.xlane.xlu1 %1969 }
 0x75e   : > { %3836 = vpow2.f32 %v1987_v0  ;;  %v1978_v6 = vsub.f32 %v1950_v4, %v1967_v62  ;;  %v1979_v34 = vsub.f32 %v1951_v19, %v1970_v49  ;;  %v3310_v4 = vpack.c.bf16 %v4572_v42, %v4572_v42 }
 0x75f   : > { %3838 = vpow2.f32 %v1983_v7  ;;  %v3311_v19 = vpack.c.bf16 %v4576_v43, %v4576_v43  ;;  %v3313_v42 = vpack.c.bf16 %v4574_v28, %v4574_v28  ;;  %v3319_v43 = vpack.c.bf16 %v4584_v61, %v4584_v61 }
 0x760   : > { %v1989_v10 = vmul.f32 1.442695, %v1978_v6  ;;  %v1991_v25 = vmul.f32 1.442695, %v1979_v34 }
 0x761   : > { %v1973_v31 = vpop.xlane.xlu0 %1972  ;;  %v2041_v3 = vpop.permute.xlu1 %2040 }
 0x762   : > { %v1980_v46 = vsub.f32 %v1952_v63, %v1973_v31  ;;  %v2058_v12 = vand.u32 %v2041_v3, %v4215_v21 }
 0x764   : > { %v1993_v13 = vmul.f32 1.442695, %v1980_v46  ;;  %3595 = vmatprep.subr.bf16.mxu0 %v2058_v12 }
 0x765   : > { %3596 = vmatpush3.bf16.msra.mxu0 %v2058_v12 }
 0x766   : > { %3840 = vpow2.f32 %v1993_v13 }
 0x767   : > { %v4609_v40 = vpop.eup %3832  ;;  %3842 = vpow2.f32 %v1989_v10 }
 0x768   : > { %v2001_v14 = vsel %vm928_vm1, %v4609_v40, 0.0  ;;  %v4613_v8 = vpop.eup %3834  ;;  %3844 = vpow2.f32 %v1991_v25 }
 0x769   : > { %2002 = vadd.xlane.f32.xlu1 %v2001_v14  ;;  %v1995_v44 = vsel %vm928_vm1, %v4613_v8, 0.0 }
 0x76b   : > { %v4615_v23 = vpop.eup %3836 }
 0x76c   : > { %v2004_v21 = vsel %vm928_vm1, %v4615_v23, 0.0  ;;  %v3839_v53 = vpop.eup %3838 }
 0x76d   : > { %2005 = vadd.xlane.f32.xlu0 %v2004_v21  ;;  %1996 = vadd.xlane.f32.xlu1 %v1995_v44  ;;  %v1998_v59 = vsel %vm928_vm1, %v3839_v53, 0.0 }
 0x771   : > { %1999 = vadd.xlane.f32.xlu0 %v1998_v59  ;;  %v3696_v59 = vld [vmem:[%s5095_s4 + $0x38] sm:$0xff]  }
 0x773   : > { %v4622_v18 = vpop.eup %3840 }
 0x774   : > { %v2013_v20 = vsel %vm947_vm2, %v4622_v18, 0.0  ;;  %v4626_v50 = vpop.eup %3842 }
 0x775   : > { %2014 = vadd.xlane.f32.xlu0 %v2013_v20  ;;  %v2007_v57 = vsel %vm928_vm1, %v4626_v50, 0.0  ;;  %v4630_v9 = vpop.eup %3844  ;;  %v3697_v20 = vld [vmem:[%s5095_s4 + $0x30] sm:$0xff]  }
 0x776   : > { %v2010_v24 = vsel %vm928_vm1, %v4630_v9, 0.0 }
 0x779   : > { %2008 = vadd.xlane.f32.xlu0 %v2007_v57  ;;  %v3700_v57 = vld [vmem:[%s5095_s4 + $0x18] sm:$0xff]  }
 0x77d   : > { %2011 = vadd.xlane.f32.xlu0 %v2010_v24  ;;  %v3702_v24 = vld [vmem:[%s5095_s4 + $0x8] sm:$0xff]  }
 0x77e   : > { %2036 = vrot.lane.b32.xlu1 %v4221_v35, %s3935_s24  ;;  %v3312_v35 = vpack.c.bf16 %v4570_v26, %v4570_v26  ;;  %v3318_v26 = vpack.c.bf16 %v4590_v5, %v4590_v5 }
 0x782   : > { %2034 = vrot.lane.b32.xlu1 %v4231_v41, %s3935_s24  ;;  %v3317_v41 = vpack.c.bf16 %v4586_v1, %v4586_v1 }
 0x786   : > { %1458 = vrot.lane.b32.xlu1 %v3310_v4, %s3935_s24 }
 0x78a   : > { %1460 = vrot.lane.b32.xlu1 %v3311_v19, %s3935_s24 }
 0x78e   : > { %1470 = vrot.lane.b32.xlu1 %v3316_v22, %s3935_s24 }
 0x792   : > { %1462 = vrot.lane.b32.xlu1 %v3312_v35, %s3935_s24  ;;  %v3703_v35 = vld [vmem:[%s5095_s4] sm:$0xff]  }
 0x793   : > { %2038 = vrot.lane.b32.xlu0 %v4223_v37, %s3935_s24  ;;  %v3320_v37 = vpack.c.bf16 %v4588_v54, %v4588_v54 }
 0x796   : > { %1802 = vrot.lane.b32.xlu1 %v3317_v41, %s3934_s23 }
 0x797   : > { %1464 = vrot.lane.b32.xlu0 %v3313_v42, %s3935_s24 }
 0x79a   : > { %1806 = vrot.lane.b32.xlu1 %v3319_v43, %s3934_s23 }
 0x79b   : > { %1804 = vrot.lane.b32.xlu0 %v3318_v26, %s3934_s23 }
 0x79f   : > { %1808 = vrot.lane.b32.xlu0 %v3320_v37, %s3934_s23 }
 0x7f2   : > { %v2003_v28 = vpop.xlane.xlu1 %2002 }
 0x7f6   : > { %v2006_v45 = vpop.xlane.xlu0 %2005  ;;  %v1997_v1 = vpop.xlane.xlu1 %1996 }
 0x7f7   : > { %3846 = vrcp.f32 %v1997_v1 }
 0x7fa   : > { %v2000_v32 = vpop.xlane.xlu0 %1999  ;;  %v2037_v63 = vpop.permute.xlu1 %2036 }
 0x7fb   : > { %3848 = vrcp.f32 %v2000_v32 }
 0x7fc   : > { %3850 = vrcp.f32 %v2006_v45 }
 0x7fd   : > { %3852 = vrcp.f32 %v2003_v28  ;;  %v3323_v28 = vpack.c.bf16 %v4592_v33, %v4592_v33  ;;  %v3321_v33 = vpack.c.bf16 %v4594_v60, %v4594_v60 }
 0x7fe   : > { %v2015_v61 = vpop.xlane.xlu0 %2014  ;;  %v2035_v55 = vpop.permute.xlu1 %2034 }
 0x802   : > { %v2009_v5 = vpop.xlane.xlu0 %2008  ;;  %v1459_v17 = vpop.permute.xlu1 %1458 }
 0x803   : > { %1480 = vst.msk [vmem:[#allocation2] sm:$0xf] %vm1479_vm8, %v1459_v17  ;;  %3854 = vrcp.f32 %v2009_v5 }
 0x804   : > { %v3847_v54 = vpop.eup %3846 }
 0x805   : > { %v2023_v11 = vmul.f32 %v3847_v54, %v4613_v8 }
 0x806   : > { %v2012_v56 = vpop.xlane.xlu0 %2011  ;;  %v1461_v39 = vpop.permute.xlu1 %1460 }
 0x807   : > { %3856 = vrcp.f32 %v2012_v56  ;;  %1481 = vst.msk [vmem:[#allocation2 + $0x4] sm:$0xf] %vm1479_vm8, %v1461_v39 }
 0x808   : > { %v3849_v27 = vpop.eup %3848  ;;  %3858 = vrcp.f32 %v2015_v61  ;;  %v3315_v61 = vpack.c.bf16 %v4582_v48, %v4582_v48 }
 0x809   : > { %v2024_v16 = vmul.f32 %v3849_v27, %v3839_v53  ;;  %v3851_v0 = vpop.eup %3850 }
 0x80a   : > { %v2039_v36 = vpop.permute.xlu0 %2038  ;;  %v1471_v15 = vpop.permute.xlu1 %1470  ;;  %v2026_v31 = vmul.f32 %v3851_v0, %v4615_v23 }
 0x80b   : > { %v1489_v52 = vsel %vm1487_vm10, %v1471_v15, %v1488_v38  ;;  %3597 = vmatprep.subr.bf16.mxu0 %v2039_v36  ;;  %v2030_v7 = vpack.c.bf16 %v2024_v16, %v2023_v11  ;;  %v3853_v6 = vpop.eup %3852 }
 0x80c   : > { %1490 = vst [vmem:[#allocation2 + $0x18] sm:$0x1] %v1489_v52  ;;  %3598 = vmatpush3.bf16.msra.mxu0 %v2039_v36  ;;  %v2025_v10 = vmul.f32 %v3853_v6, %v4609_v40 }
 0x80d   : > { %3599 = vmatprep.subr.bf16.mxu0 %v2037_v63  ;;  %3603 = vmatprep.mubr.msk.bf16.mxu0 %vm928_vm1, %v2030_v7 }
 0x80e   : > { %v1465_v62 = vpop.permute.xlu0 %1464  ;;  %v1463_v49 = vpop.permute.xlu1 %1462  ;;  %v2031_v13 = vpack.c.bf16 %v2026_v31, %v2025_v10  ;;  %v3251_v10 = vld [vmem:[%s5096_s5] ss:$0 sm:$0xff] }
 0x80f   : > { %1483 = vst.msk [vmem:[#allocation2 + $0xc] sm:$0xf] %vm1479_vm8, %v1465_v62  ;;  %1482 = vst.msk [vmem:[#allocation2 + $0x8] sm:$0xf] %vm1479_vm8, %v1463_v49 }
 0x810   : > { %3600 = vmatpush3.bf16.msra.mxu0 %v2037_v63  ;;  %v3855_v3 = vpop.eup %3854  ;;  %v3314_v63 = vpack.c.bf16 %v4580_v51, %v4580_v51 }
 0x811   : > { %3601 = vmatprep.subr.bf16.mxu0 %v2035_v55  ;;  %v2027_v25 = vmul.f32 %v3855_v3, %v4626_v50  ;;  %v3698_v50 = vld [vmem:[%s5095_s4 + $0x28] sm:$0xff]  }
 0x812   : > { %v1805_v46 = vpop.permute.xlu0 %1804  ;;  %v1803_v12 = vpop.permute.xlu1 %1802 }
 0x813   : > { %1825 = vst.msk [vmem:[#allocation2 + $0x4] sm:$0xf] %vm1823_vm11, %v1805_v46  ;;  %1824 = vst.msk [vmem:[#allocation2] sm:$0xf] %vm1823_vm11, %v1803_v12  ;;  %v1832_v39 = vld [vmem:[#allocation2 + $0x18] sm:$0x1] }
 0x814   : > { %v3857_v34 = vpop.eup %3856  ;;  %3602 = vmatpush3.bf16.msra.mxu0 %v2035_v55  ;;  %v3322_v55 = vpack.c.bf16 %v4596_v58, %v4596_v58 }
 0x815   : > { %v2028_v14 = vmul.f32 %v3857_v34, %v4630_v9  ;;  %v3859_v8 = vpop.eup %3858  ;;  %3611 = vmatprep.subr.bf16.mxu0 %v3696_v59  ;;  %v3701_v9 = vld [vmem:[%s5095_s4 + $0x10] sm:$0xff]  }
 0x816   : > { %v1809_v21 = vpop.permute.xlu0 %1808  ;;  %v1807_v23 = vpop.permute.xlu1 %1806  ;;  %v2029_v44 = vmul.f32 %v3859_v8, %v4622_v18  ;;  %v3699_v18 = vld [vmem:[%s5095_s4 + $0x20] sm:$0xff]  }
 0x817   : > { %1827 = vst.msk [vmem:[#allocation2 + $0xc] sm:$0xf] %vm1823_vm11, %v1809_v21  ;;  %1826 = vst.msk [vmem:[#allocation2 + $0x8] sm:$0xf] %vm1823_vm11, %v1807_v23  ;;  %3604 = vmatmul.mubr.msk.bf16.vlgmr.msra.gmra.mxu0 %vm928_vm1, %v2031_v13  ;;  %v2032_v40 = vpack.c.bf16 %v2028_v14, %v2027_v25  ;;  %v3917_v14 = vld [vmem:[%s4046_s16] sm:$0xff] }
 0x818   : > { %v2033_v53 = vpack.c.bf16 %v2029_v44, %v2029_v44  ;;  %3612 = vmatpush3.bf16.msra.mxu0 %v3696_v59  ;;  %v3918_v44 = vld [vmem:[%s4046_s16 + $0x8] sm:$0xff]  ;;  %v3919_v59 = vld [vmem:[%s4046_s16 + $0x10] sm:$0xff] }
 0x819   : > { %3607 = vmatprep.mubr.msk.bf16.mxu0 %vm928_vm1, %v2032_v40  ;;  %3613 = vmatprep.subr.bf16.mxu0 %v3697_v20 }
 0x81c   : > { %3614 = vmatpush3.bf16.msra.mxu0 %v3697_v20 }
 0x81d   : > { %3615 = vmatprep.subr.bf16.mxu0 %v3698_v50 }
 0x81f   : > { %3608 = vmatmul.mubr.msk.bf16.gmra.mxu0 %vm928_vm1, %v2033_v53 }
 0x820   : > { %3616 = vmatpush3.bf16.msra.mxu0 %v3698_v50 }
 0x821   : > { %3617 = vmatprep.subr.bf16.mxu0 %v3699_v18 }
 0x824   : > { %3618 = vmatpush3.bf16.msra.mxu0 %v3699_v18 }
 0x825   : > { %3619 = vmatprep.subr.bf16.mxu0 %v3700_v57 }
 0x828   : > { %3620 = vmatpush3.bf16.msra.mxu0 %v3700_v57  ;;  %v3920_v57 = vld [vmem:[%s4046_s16 + $0x18] sm:$0xff] }
 0x829   : > { %3621 = vmatprep.subr.bf16.mxu0 %v3701_v9 }
 0x82c   : > { %3622 = vmatpush3.bf16.msra.mxu0 %v3701_v9 }
 0x82d   : > { %3623 = vmatprep.subr.bf16.mxu0 %v3702_v24 }
 0x830   : > { %3624 = vmatpush3.bf16.msra.mxu0 %v3702_v24 }
 0x831   : > { %3625 = vmatprep.subr.bf16.mxu0 %v3703_v35 }
 0x834   : > { %3626 = vmatpush3.bf16.msra.mxu0 %v3703_v35  ;;  %v3921_v35 = vld [vmem:[%s4046_s16 + $0x20] sm:$0xff] }
 0x8d7   : > { %v3605_v4 = vpop.f32.mrf.mxu0 }
 0x8d8   : > { %v3326_v19 = vpack.c.bf16 %v3605_v4, %v3605_v4 }
 0x8d9   : > { %v2094_v22 = vpop.f32.mrf.mxu0 }
 0x8da   : > { %2150 = vrot.lane.b32.xlu1 %v3326_v19, %s3933_s22  ;;  %v3324_v42 = vpack.c.bf16 %v2094_v22, %v2094_v22 }
 0x8db   : > { %v3606_v41 = vpop.f32.mrf.mxu0 }
 0x8dc   : > { %v3327_v43 = vpack.c.bf16 %v3606_v41, %v3606_v41 }
 0x8dd   : > { %v2097_v26 = vpop.f32.mrf.mxu0 }
 0x8de   : > { %2146 = vrot.lane.b32.xlu1 %v3324_v42, %s3933_s22  ;;  %2152 = vrot.lane.b32.xlu0 %v3327_v43, %s3933_s22  ;;  %v3325_v45 = vpack.c.bf16 %v2097_v26, %v2097_v26  ;;  %v3922_v42 = vld [vmem:[%s4046_s16 + $0x30] sm:$0x1] }
 0x8df   : > { %v3609_v37 = vpop.f32.mrf.mxu0 }
 0x8e0   : > { %v3330_v48 = vpack.c.bf16 %v3609_v37, %v3609_v37 }
 0x8e1   : > { %v2110_v1 = vpop.f32.mrf.mxu0 }
 0x8e2   : > { %1814 = vrot.lane.b32.xlu1 %v3323_v28, %s3934_s23  ;;  %2148 = vrot.lane.b32.xlu0 %v3325_v45, %s3933_s22  ;;  %v3328_v17 = vpack.c.bf16 %v2110_v1, %v2110_v1  ;;  %v3923_v28 = vld [vmem:[%s4046_s16 + $0x28] sm:$0xff] }
 0x8e3   : > { %v3610_v32 = vpop.f32.mrf.mxu0 }
 0x8e4   : > { %v3708_v32 = vld [vmem:[%s5099_s8 + $0x70] ss:$8 sps:$4 sm:$0xff]  }
 0x8e5   : > { %v2113_v5 = vpop.f32.mrf.mxu0 }
 0x8e6   : > { %1468 = vrot.lane.b32.xlu1 %v3315_v61, %s3935_s24  ;;  %1466 = vrot.lane.b32.xlu0 %v3314_v63, %s3935_s24  ;;  %v3329_v51 = vpack.c.bf16 %v2113_v5, %v2113_v5  ;;  %v3710_v63 = vld [vmem:[%s5099_s8 + $0x74] ss:$8 sps:$4 sm:$0xff]   ;;  %s5076_s24 = scalar_lea.vmem %s5105_s14, %s3651_s25 }
 0x8e7   : > { %2570 = vmatprep.subr.bf16.mxu1 %v3710_v63 }
 0x8e8   : > { %2571 = vmatpush1.bf16.msra.mxu1 %v3708_v32 }
 0x8ea   : > { %1812 = vrot.lane.b32.xlu1 %v3322_v55, %s3934_s23  ;;  %1810 = vrot.lane.b32.xlu0 %v3321_v33, %s3934_s23 }
 0x8ee   : > { %2154 = vrot.lane.b32.xlu0 %v3328_v17, %s3933_s22  ;;  %2156 = vrot.lane.b32.xlu1 %v3329_v51, %s3933_s22 }
 0x8f2   : > { %2158 = vrot.lane.b32.xlu0 %v3330_v48, %s3933_s22 }
 0x94c   : > { %v2151_v54 = vpop.permute.xlu1 %2150 }
 0x94d   : > { %2170 = vst.msk [vmem:[#allocation2 + $0x8] sm:$0xf] %vm2167_vm12, %v2151_v54 }
 0x950   : > { %v2153_v60 = vpop.permute.xlu0 %2152  ;;  %v2147_v58 = vpop.permute.xlu1 %2146 }
 0x951   : > { %2171 = vst.msk [vmem:[#allocation2 + $0xc] sm:$0xf] %vm2167_vm12, %v2153_v60  ;;  %2168 = vst.msk [vmem:[#allocation2] sm:$0xf] %vm2167_vm12, %v2147_v58 }
 0x954   : > { %v2149_v56 = vpop.permute.xlu0 %2148  ;;  %v1815_v27 = vpop.permute.xlu1 %1814 }
 0x955   : > { %2169 = vst.msk [vmem:[#allocation2 + $0x4] sm:$0xf] %vm2167_vm12, %v2149_v56  ;;  %v1833_v11 = vsel %vm1831_vm14, %v1815_v27, %v1832_v39 }
 0x956   : > { %1834 = vst [vmem:[#allocation2 + $0x18] sm:$0x1] %v1833_v11 }
 0x958   : > { %v1467_v16 = vpop.permute.xlu0 %1466  ;;  %v1469_v36 = vpop.permute.xlu1 %1468  ;;  %v3705_v7 = vld [vmem:[#allocation2 + $0x8] sm:$0xff]  }
 0x959   : > { %1484 = vst.msk [vmem:[#allocation2 + $0x10] sm:$0xf] %vm1479_vm8, %v1467_v16  ;;  %1485 = vst.msk [vmem:[#allocation2 + $0x14] sm:$0xf] %vm1479_vm8, %v1469_v36 }
 0x95c   : > { %v1811_v38 = vpop.permute.xlu0 %1810  ;;  %v1813_v15 = vpop.permute.xlu1 %1812  ;;  %v3704_v52 = vld [vmem:[#allocation2] sm:$0xff]  }
 0x95d   : > { %1828 = vst.msk [vmem:[#allocation2 + $0x10] sm:$0xf] %vm1823_vm11, %v1811_v38  ;;  %1829 = vst.msk [vmem:[#allocation2 + $0x14] sm:$0xf] %vm1823_vm11, %v1813_v15  ;;  %3627 = vmatprep.mubr.bf16.mxu0 %v3704_v52  ;;  %v2176_v6 = vld [vmem:[#allocation2 + $0x18] sm:$0x1] }
 0x95e   : > { %3628 = vmatmul.mubr.bf16.vlgmr.msra.gmra.mxu0 %v3705_v7  ;;  %v3713_v52 = vld [vmem:[%s5099_s8 + $0x64] ss:$8 sps:$4 sm:$0xff]  }
 0x95f   : > { %2572 = vmatprep.subr.bf16.mxu1 %v3713_v52 }
 0x960   : > { %v2155_v0 = vpop.permute.xlu0 %2154  ;;  %v2157_v62 = vpop.permute.xlu1 %2156 }
 0x961   : > { %2172 = vst.msk [vmem:[#allocation2 + $0x10] sm:$0xf] %vm2167_vm12, %v2155_v0  ;;  %2173 = vst.msk [vmem:[#allocation2 + $0x14] sm:$0xf] %vm2167_vm12, %v2157_v62  ;;  %v3711_v0 = vld [vmem:[%s5099_s8 + $0x60] ss:$8 sps:$4 sm:$0xff]  }
 0x962   : > { %2573 = vmatpush1.bf16.msra.mxu1 %v3711_v0 }
 0x964   : > { %v2159_v49 = vpop.permute.xlu0 %2158 }
 0x965   : > { %v2177_v31 = vsel %vm2175_vm0, %v2159_v49, %v2176_v6 }
 0x966   : > { %2178 = vst [vmem:[#allocation2 + $0x18] sm:$0x1] %v2177_v31 }
 0x968   : > { %v3706_v3 = vld [vmem:[#allocation2 + $0x10] sm:$0xff]  }
 0x969   : > { %3631 = vmatprep.mubr.bf16.mxu0 %v3706_v3 }
 0x96d   : > { %v3707_v46 = vld [vmem:[#allocation2 + $0x18] ss:$0 sps:$4 sm:$0x11]  }
 0x96e   : > { %3632 = vmatmul.mubr.bf16.gmra.mxu0 %v3707_v46  ;;  %v3716_v46 = vld [vmem:[%s5099_s8 + $0x54] ss:$8 sps:$4 sm:$0xff]  }
 0x96f   : > { %2574 = vmatprep.subr.bf16.mxu1 %v3716_v46 }
 0xa1e   : > { %v3629_v12 = vpop.f32.mrf.mxu0 }
 0xa1f   : > { %v2322_v40 = vadd.f32 %v3629_v12, %v3251_v10 }
 0xa20   : > { %v2313_v34 = vpop.f32.mrf.mxu0 }
 0xa21   : > { %v2314_v13 = vadd.f32 %v3251_v10, %v2313_v34  ;;  %v2345_v20 = vadd.f32 %v3919_v59, %v2322_v40  ;;  %v3714_v34 = vld [vmem:[%s5099_s8 + $0x50] ss:$8 sps:$4 sm:$0xff]   ;;  %v3728_v59 = vld [vmem:[%s5099_s8 + $0x14] ss:$8 sps:$4 sm:$0xff]  }
 0xa22   : > { %v3630_v25 = vpop.f32.mrf.mxu0  ;;  %2575 = vmatpush1.bf16.msra.mxu1 %v3714_v34  ;;  %v3720_v40 = vld [vmem:[%s5099_s8 + $0x30] ss:$8 sps:$4 sm:$0xff]  }
 0xa23   : > { %v2343_v8 = vadd.f32 %v3917_v14, %v2314_v13  ;;  %v2325_v50 = vadd.f32 %v3630_v25, %v3251_v10  ;;  %v3719_v14 = vld [vmem:[%s5099_s8 + $0x44] ss:$8 sps:$4 sm:$0xff]  }
 0xa24   : > { %v2316_v21 = vpop.f32.mrf.mxu0  ;;  %2576 = vmatprep.subr.bf16.mxu1 %v3719_v14 }
 0xa25   : > { %v2317_v23 = vadd.f32 %v3251_v10, %v2316_v21  ;;  %2350 = vadd.xlane.f32.xlu1 %v2343_v8  ;;  %v2346_v9 = vadd.f32 %v3920_v57, %v2325_v50  ;;  %v3717_v21 = vld [vmem:[%s5099_s8 + $0x40] ss:$8 sps:$4 sm:$0xff]  }
 0xa26   : > { %2577 = vmatpush1.bf16.msra.mxu1 %v3717_v21  ;;  %v3729_v50 = vld [vmem:[%s5099_s8] ss:$8 sps:$4 sm:$0xff]  }
 0xa27   : > { %v2344_v53 = vadd.f32 %v3918_v44, %v2317_v23  ;;  %v3722_v23 = vld [vmem:[%s5099_s8 + $0x34] ss:$8 sps:$4 sm:$0xff]   ;;  %v3725_v44 = vld [vmem:[%s5099_s8 + $0x24] ss:$8 sps:$4 sm:$0xff]  }
 0xa28   : > { %2578 = vmatprep.subr.bf16.mxu1 %v3722_v23 }
 0xa29   : > { %2352 = vadd.xlane.f32.xlu0 %v2344_v53 }
 0xa2a   : > { %2579 = vmatpush1.bf16.msra.mxu1 %v3720_v40 }
 0xa2b   : > { %2580 = vmatprep.subr.bf16.mxu1 %v3725_v44 }
 0xa2d   : > { %2354 = vadd.xlane.f32.xlu0 %v2345_v20 }
 0xa2e   : > { %v3633_v18 = vpop.f32.mrf.mxu0 }
 0xa2f   : > { %v2338_v24 = vadd.f32 %v3633_v18, %v3251_v10  ;;  %v3731_v18 = vld [vmem:[%s5099_s8 + $0x4] ss:$8 sps:$4 sm:$0xff]  }
 0xa30   : > { %v2329_v4 = vpop.f32.mrf.mxu0 }
 0xa31   : > { %v2330_v19 = vadd.f32 %v3251_v10, %v2329_v4  ;;  %2356 = vadd.xlane.f32.xlu0 %v2346_v9  ;;  %v2349_v43 = vadd.f32 %v3922_v42, %v2338_v24 }
 0xa32   : > { %v3634_v22 = vpop.f32.mrf.mxu0 }
 0xa33   : > { %v2347_v41 = vadd.f32 %v3921_v35, %v2330_v19  ;;  %v2362_v1 = vsel %vm1023_vm3, %v2349_v43, 0.0 }
 0xa34   : > { %v2332_v26 = vpop.f32.mrf.mxu0 }
 0xa35   : > { %v2333_v37 = vadd.f32 %v3251_v10, %v2332_v26  ;;  %2358 = vadd.xlane.f32.xlu1 %v2347_v41 }
 0xa37   : > { %v2348_v45 = vadd.f32 %v3923_v28, %v2333_v37 }
 0xa39   : > { %2360 = vadd.xlane.f32.xlu0 %v2348_v45  ;;  %2363 = vadd.xlane.f32.xlu1 %v2362_v1 }
 0xaae   : > { %v2351_v61 = vpop.xlane.xlu1 %2350 }
 0xaaf   : > { %v2366_v33 = vmul.f32 0.0078125, %v2351_v61 }
 0xab1   : > { %v4761_v55 = vsub.f32 %v2343_v8, %v2366_v33  ;;  %v3264_v33 = vld [vmem:[%s5097_s6] ss:$0 sm:$0xff] }
 0xab2   : > { %v2353_v5 = vpop.xlane.xlu0 %2352 }
 0xab3   : > { %v2367_v17 = vmul.f32 0.0078125, %v2353_v5  ;;  %v2380_v51 = vmul.f32 %v4761_v55, %v4761_v55 }
 0xab5   : > { %v4765_v48 = vsub.f32 %v2344_v53, %v2367_v17  ;;  %2387 = vadd.xlane.f32.xlu0 %v2380_v51  ;;  %v3723_v53 = vld [vmem:[%s5099_s8 + $0x20] ss:$8 sps:$4 sm:$0xff]  }
 0xab6   : > { %v2355_v54 = vpop.xlane.xlu0 %2354  ;;  %2581 = vmatpush1.bf16.msra.mxu1 %v3723_v53 }
 0xab7   : > { %v2368_v60 = vmul.f32 0.0078125, %v2355_v54  ;;  %v2381_v58 = vmul.f32 %v4765_v48, %v4765_v48  ;;  %2582 = vmatprep.subr.bf16.mxu1 %v3728_v59  ;;  %v3733_v59 = vld [vmem:[%s5101_s10 + $0x38] sm:$0xff]  }
 0xab9   : > { %v4769_v56 = vsub.f32 %v2345_v20, %v2368_v60  ;;  %2389 = vadd.xlane.f32.xlu1 %v2381_v58  ;;  %v3726_v20 = vld [vmem:[%s5099_s8 + $0x10] ss:$8 sps:$4 sm:$0xff]  }
 0xaba   : > { %v2357_v39 = vpop.xlane.xlu0 %2356  ;;  %2583 = vmatpush1.bf16.msra.mxu1 %v3726_v20  ;;  %v3735_v20 = vld [vmem:[%s5101_s10 + $0x30] sm:$0xff]  }
 0xabb   : > { %v2369_v27 = vmul.f32 0.0078125, %v2357_v39  ;;  %v2382_v11 = vmul.f32 %v4769_v56, %v4769_v56  ;;  %2584 = vmatprep.subr.bf16.mxu1 %v3731_v18  ;;  %v3737_v18 = vld [vmem:[%s5101_s10 + $0x28] sm:$0xff]  }
 0xabd   : > { %v4773_v16 = vsub.f32 %v2346_v9, %v2369_v27  ;;  %2391 = vadd.xlane.f32.xlu0 %v2382_v11 }
 0xabe   : > { %v2359_v36 = vpop.xlane.xlu1 %2358  ;;  %2585 = vmatpush1.bf16.msra.mxu1 %v3729_v50  ;;  %v3736_v50 = vld [vmem:[%s5101_s10 + $0x68] sm:$0xff]  }
 0xabf   : > { %v2370_v38 = vmul.f32 0.0078125, %v2359_v36  ;;  %v2383_v15 = vmul.f32 %v4773_v16, %v4773_v16 }
 0xac1   : > { %v4780_v7 = vsub.f32 %v2347_v41, %v2370_v38  ;;  %2393 = vadd.xlane.f32.xlu1 %v2383_v15 }
 0xac2   : > { %v2361_v62 = vpop.xlane.xlu0 %2360  ;;  %v2364_v49 = vpop.xlane.xlu1 %2363 }
 0xac3   : > { %v2371_v6 = vmul.f32 0.0078125, %v2361_v62  ;;  %v2372_v31 = vmul.f32 0.0078125, %v2364_v49  ;;  %v2384_v3 = vmul.f32 %v4780_v7, %v4780_v7 }
 0xac5   : > { %v4790_v12 = vsub.f32 %v2348_v45, %v2371_v6  ;;  %v4792_v10 = vsub.f32 %v2349_v43, %v2372_v31  ;;  %2395 = vadd.xlane.f32.xlu0 %v2384_v3 }
 0xac7   : > { %v2385_v13 = vmul.f32 %v4790_v12, %v4790_v12  ;;  %v2386_v25 = vmul.f32 %v4792_v10, %v4792_v10 }
 0xac9   : > { %2397 = vadd.xlane.f32.xlu1 %v2385_v13  ;;  %v2399_v8 = vsel %vm1023_vm3, %v2386_v25, 0.0 }
 0xaca   : > { %2400 = vadd.xlane.f32.xlu0 %v2399_v8 }
 0xb3e   : > { %v2388_v57 = vpop.xlane.xlu0 %2387 }
 0xb3f   : > { %v2402_v9 = vmul.f32 0.0078125, %v2388_v57  ;;  %v3738_v57 = vld [vmem:[%s5101_s10 + $0x60] sm:$0xff]  }
 0xb41   : > { %v2409_v24 = vadd.f32 1e-05, %v2402_v9  ;;  %v3739_v9 = vld [vmem:[%s5101_s10 + $0x20] sm:$0xff]  }
 0xb42   : > { %v2390_v4 = vpop.xlane.xlu1 %2389 }
 0xb43   : > { %3860 = vrsqrt.f32 %v2409_v24  ;;  %v2403_v19 = vmul.f32 0.0078125, %v2390_v4  ;;  %v3740_v24 = vld [vmem:[%s5101_s10 + $0x58] sm:$0xff]  }
 0xb44   : > { %v3741_v4 = vld [vmem:[%s5101_s10 + $0x18] sm:$0xff]  }
 0xb45   : > { %v2410_v22 = vadd.f32 1e-05, %v2403_v19  ;;  %v3742_v19 = vld [vmem:[%s5101_s10 + $0x50] sm:$0xff]  }
 0xb46   : > { %v2392_v35 = vpop.xlane.xlu0 %2391 }
 0xb47   : > { %3862 = vrsqrt.f32 %v2410_v22  ;;  %v2404_v41 = vmul.f32 0.0078125, %v2392_v35  ;;  %v3743_v22 = vld [vmem:[%s5101_s10 + $0x10] sm:$0xff]   ;;  %v3744_v35 = vld [vmem:[%s5101_s10 + $0x48] sm:$0xff]  }
 0xb49   : > { %v2411_v42 = vadd.f32 1e-05, %v2404_v41  ;;  %v3745_v41 = vld [vmem:[%s5101_s10 + $0x8] sm:$0xff]  }
 0xb4a   : > { %v2394_v43 = vpop.xlane.xlu1 %2393 }
 0xb4b   : > { %3864 = vrsqrt.f32 %v2411_v42  ;;  %v2405_v26 = vmul.f32 0.0078125, %v2394_v43  ;;  %v3746_v42 = vld [vmem:[%s5101_s10 + $0x40] sm:$0xff]  }
 0xb4c   : > { %v3747_v43 = vld [vmem:[%s5101_s10] sm:$0xff]  }
 0xb4d   : > { %v2412_v37 = vadd.f32 1e-05, %v2405_v26  ;;  %v2478_v26 = vld [vmem:[%s5100_s9] sm:$0x3] }
 0xb4e   : > { %v2396_v28 = vpop.xlane.xlu0 %2395 }
 0xb4f   : > { %3866 = vrsqrt.f32 %v2412_v37  ;;  %v2406_v45 = vmul.f32 0.0078125, %v2396_v28  ;;  %v4923_v37 = vrot.slane %v2478_v26, %v531_v30  ;;  %v4927_v28 = vrot.slane %v2478_v26, %v535_v47 }
 0xb50   : > { %v3861_v1 = vpop.eup %3860 }
 0xb51   : > { %v2423_v32 = vmul.f32 %v3861_v1, %v4761_v55  ;;  %v2413_v63 = vadd.f32 1e-05, %v2406_v45  ;;  %v3265_v55 = vld [vmem:[%s5098_s7] ss:$0 sm:$0xff] }
 0xb52   : > { %v2398_v61 = vpop.xlane.xlu1 %2397 }
 0xb53   : > { %3868 = vrsqrt.f32 %v2413_v63  ;;  %v2407_v5 = vmul.f32 0.0078125, %v2398_v61  ;;  %v2401_v17 = vpop.xlane.xlu0 %2400  ;;  %v2437_v39 = vmul.f32 %v3264_v33, %v2423_v32 }
 0xb54   : > { %v3863_v51 = vpop.eup %3862  ;;  %v2408_v54 = vmul.f32 0.0078125, %v2401_v17 }
 0xb55   : > { %v2424_v60 = vmul.f32 %v3863_v51, %v4765_v48  ;;  %v2414_v58 = vadd.f32 1e-05, %v2407_v5  ;;  %v4840_v38 = vadd.f32 %v3265_v55, %v2437_v39 }
 0xb56   : > { %v2415_v27 = vadd.f32 1e-05, %v2408_v54 }
 0xb57   : > { %3870 = vrsqrt.f32 %v2414_v58  ;;  %v2438_v11 = vmul.f32 %v3264_v33, %v2424_v60 }
 0xb58   : > { %v3865_v36 = vpop.eup %3864  ;;  %3872 = vrsqrt.f32 %v2415_v27 }
 0xb59   : > { %v4842_v15 = vadd.f32 %v3265_v55, %v2438_v11  ;;  %v2425_v52 = vmul.f32 %v3865_v36, %v4769_v56 }
 0xb5b   : > { %v2458_v48 = vpack.c.bf16 %v4842_v15, %v4840_v38  ;;  %v2439_v49 = vmul.f32 %v3264_v33, %v2425_v52 }
 0xb5c   : > { %v3867_v0 = vpop.eup %3866 }
 0xb5d   : > { %2603 = vmatmul.mubr.bf16.vlgmr.msra.gmra.mxu1 %v2458_v48  ;;  %v2426_v62 = vmul.f32 %v3867_v0, %v4773_v16  ;;  %v4849_v3 = vadd.f32 %v3265_v55, %v2439_v49 }
 0xb5e   : > { %2612 = vmatprep.mubr.bf16.mxu1 %v3932_v2 }
 0xb5f   : > { %v2440_v6 = vmul.f32 %v3264_v33, %v2426_v62 }
 0xb60   : > { %v3869_v31 = vpop.eup %3868 }
 0xb61   : > { %v4851_v46 = vadd.f32 %v3265_v55, %v2440_v6  ;;  %v2427_v34 = vmul.f32 %v3869_v31, %v4780_v7 }
 0xb63   : > { %v2459_v56 = vpack.c.bf16 %v4851_v46, %v4849_v3  ;;  %v2441_v16 = vmul.f32 %v3264_v33, %v2427_v34 }
 0xb64   : > { %v3871_v13 = vpop.eup %3870 }
 0xb65   : > { %v3873_v25 = vpop.eup %3872  ;;  %2613 = vmatmul.mubr.bf16.gmra.mxu1 %v2459_v56  ;;  %v2428_v14 = vmul.f32 %v3871_v13, %v4790_v12  ;;  %v4859_v23 = vadd.f32 %v3265_v55, %v2441_v16 }
 0xb66   : > { %2622 = vmatprep.mubr.bf16.mxu1 %v3932_v2  ;;  %v2429_v21 = vmul.f32 %v3873_v25, %v4792_v10  ;;  %v3732_v10 = vld [vmem:[%s5101_s10 + $0x78] sm:$0xff]  }
 0xb67   : > { %v2442_v8 = vmul.f32 %v3264_v33, %v2428_v14  ;;  %3419 = vmatprep.subr.bf16.mxu0 %v3732_v10 }
 0xb68   : > { %v2443_v44 = vmul.f32 %v3264_v33, %v2429_v21  ;;  %3420 = vmatpush3.bf16.msra.mxu0 %v3733_v59 }
 0xb69   : > { %v4861_v40 = vadd.f32 %v3265_v55, %v2442_v8 }
 0xb6a   : > { %v4866_v53 = vadd.f32 %v3265_v55, %v2443_v44 }
 0xb6b   : > { %v2460_v7 = vpack.c.bf16 %v4861_v40, %v4859_v23 }
 0xb6c   : > { %v2461_v12 = vpack.c.bf16 %v4866_v53, %v4866_v53 }
 0xb6d   : > { %2623 = vmatmul.mubr.bf16.gmra.mxu1 %v2460_v7 }
 0xb6e   : > { %2632 = vmatprep.mubr.bf16.mxu1 %v3932_v2  ;;  %v3734_v2 = vld [vmem:[%s5101_s10 + $0x70] sm:$0xff]  }
 0xb6f   : > { %3421 = vmatprep.subr.bf16.mxu0 %v3734_v2 }
 0xb70   : > { %3422 = vmatpush3.bf16.msra.mxu0 %v3735_v20 }
 0xb71   : > { %3423 = vmatprep.subr.bf16.mxu0 %v3736_v50 }
 0xb74   : > { %3424 = vmatpush3.bf16.msra.mxu0 %v3737_v18 }
 0xb75   : > { %2633 = vmatmul.mubr.bf16.gmra.mxu1 %v2461_v12  ;;  %3425 = vmatprep.subr.bf16.mxu0 %v3738_v57 }
 0xb78   : > { %3426 = vmatpush3.bf16.msra.mxu0 %v3739_v9 }
 0xb79   : > { %3427 = vmatprep.subr.bf16.mxu0 %v3740_v24 }
 0xb7c   : > { %3428 = vmatpush3.bf16.msra.mxu0 %v3741_v4 }
 0xb7d   : > { %3429 = vmatprep.subr.bf16.mxu0 %v3742_v19 }
 0xb80   : > { %3430 = vmatpush3.bf16.msra.mxu0 %v3743_v22 }
 0xb81   : > { %3431 = vmatprep.subr.bf16.mxu0 %v3744_v35 }
 0xb84   : > { %3432 = vmatpush3.bf16.msra.mxu0 %v3745_v41 }
 0xb85   : > { %3433 = vmatprep.subr.bf16.mxu0 %v3746_v42 }
 0xb88   : > { %3434 = vmatpush3.bf16.msra.mxu0 %v3747_v43 }
 0xc1d   : > { %v2604_v45 = vpop.f32.mrf.mxu1 }
 0xc1e   : > { %v4930_v1 = vadd.f32 %v2604_v45, %v4923_v37 }
 0xc1f   : > { %v2606_v32 = vpop.f32.mrf.mxu1 }
 0xc20   : > { %v2641_v63 = vmul.f32 %v4930_v1, %v4930_v1  ;;  %v4935_v61 = vadd.f32 %v2606_v32, %v4927_v28 }
 0xc21   : > { %v2608_v33 = vpop.f32.mrf.mxu1 }
 0xc22   : > { %v2655_v5 = vmul.f32 %v2641_v63, %v4930_v1  ;;  %v2642_v30 = vmul.f32 %v4935_v61, %v4935_v61  ;;  %v4941_v29 = vadd.f32 %v2608_v33, %v4923_v37 }
 0xc23   : > { %v2610_v47 = vpop.f32.mrf.mxu1 }
 0xc24   : > { %v2669_v17 = vmul.f32 0.044715, %v2655_v5  ;;  %v2656_v51 = vmul.f32 %v2642_v30, %v4935_v61  ;;  %v2643_v54 = vmul.f32 %v4941_v29, %v4941_v29  ;;  %v4947_v60 = vadd.f32 %v2610_v47, %v4927_v28 }
 0xc25   : > { %v2614_v58 = vpop.f32.mrf.mxu1 }
 0xc26   : > { %v2683_v39 = vadd.f32 %v2669_v17, %v4930_v1  ;;  %v2670_v27 = vmul.f32 0.044715, %v2656_v51  ;;  %v2657_v55 = vmul.f32 %v2643_v54, %v4941_v29  ;;  %v2644_v11 = vmul.f32 %v4947_v60, %v4947_v60 }
 0xc27   : > { %v4954_v36 = vadd.f32 %v2614_v58, %v4923_v37  ;;  %v2616_v52 = vpop.f32.mrf.mxu1 }
 0xc28   : > { %v2697_v48 = vmul.f32 0.7978846, %v2683_v39  ;;  %v2684_v0 = vadd.f32 %v2670_v27, %v4935_v61  ;;  %v2671_v62 = vmul.f32 0.044715, %v2657_v55  ;;  %v2658_v49 = vmul.f32 %v2644_v11, %v4947_v60 }
 0xc29   : > { %v2645_v6 = vmul.f32 %v4954_v36, %v4954_v36  ;;  %v4961_v31 = vadd.f32 %v2616_v52, %v4927_v28  ;;  %v2618_v34 = vpop.f32.mrf.mxu1 }
 0xc2a   : > { %3874 = vtanh.f32 %v2697_v48  ;;  %v2698_v56 = vmul.f32 0.7978846, %v2684_v0  ;;  %v2685_v13 = vadd.f32 %v2671_v62, %v4941_v29  ;;  %v2672_v25 = vmul.f32 0.044715, %v2658_v49 }
 0xc2b   : > { %v2659_v14 = vmul.f32 %v2645_v6, %v4954_v36  ;;  %v2646_v16 = vmul.f32 %v4961_v31, %v4961_v31  ;;  %v4968_v8 = vadd.f32 %v2618_v34, %v4923_v37  ;;  %v2620_v21 = vpop.f32.mrf.mxu1 }
 0xc2c   : > { %3876 = vtanh.f32 %v2698_v56  ;;  %v2699_v7 = vmul.f32 0.7978846, %v2685_v13  ;;  %v2686_v44 = vadd.f32 %v2672_v25, %v4947_v60  ;;  %v4972_v12 = vadd.f32 %v2620_v21, %v4927_v28 }
 0xc2d   : > { %v2673_v10 = vmul.f32 0.044715, %v2659_v14  ;;  %v2660_v59 = vmul.f32 %v2646_v16, %v4961_v31  ;;  %v2647_v2 = vmul.f32 %v4968_v8, %v4968_v8  ;;  %v2624_v20 = vpop.f32.mrf.mxu1 }
 0xc2e   : > { %3878 = vtanh.f32 %v2699_v7  ;;  %v2700_v50 = vmul.f32 0.7978846, %v2686_v44  ;;  %v2648_v18 = vmul.f32 %v4972_v12, %v4972_v12  ;;  %v4980_v57 = vadd.f32 %v2624_v20, %v4923_v37 }
 0xc2f   : > { %v2687_v9 = vadd.f32 %v2673_v10, %v4954_v36  ;;  %v2674_v24 = vmul.f32 0.044715, %v2660_v59  ;;  %v2661_v4 = vmul.f32 %v2647_v2, %v4968_v8  ;;  %v2626_v19 = vpop.f32.mrf.mxu1 }
 0xc30   : > { %3880 = vtanh.f32 %v2700_v50  ;;  %v2662_v22 = vmul.f32 %v2648_v18, %v4972_v12  ;;  %v2649_v35 = vmul.f32 %v4980_v57, %v4980_v57  ;;  %v4988_v41 = vadd.f32 %v2626_v19, %v4927_v28 }
 0xc31   : > { %v2701_v42 = vmul.f32 0.7978846, %v2687_v9  ;;  %v2688_v43 = vadd.f32 %v2674_v24, %v4961_v31  ;;  %v2675_v26 = vmul.f32 0.044715, %v2661_v4  ;;  %v2628_v45 = vpop.f32.mrf.mxu1 }
 0xc32   : > { %v2676_v32 = vmul.f32 0.044715, %v2662_v22  ;;  %v2663_v63 = vmul.f32 %v2649_v35, %v4980_v57  ;;  %v2650_v33 = vmul.f32 %v4988_v41, %v4988_v41  ;;  %v4995_v5 = vadd.f32 %v2628_v45, %v4923_v37 }
 0xc33   : > { %3882 = vtanh.f32 %v2701_v42  ;;  %v2702_v30 = vmul.f32 0.7978846, %v2688_v43  ;;  %v2689_v47 = vadd.f32 %v2675_v26, %v4968_v8  ;;  %v2630_v17 = vpop.f32.mrf.mxu1 }
 0xc34   : > { %v2690_v51 = vadd.f32 %v2676_v32, %v4972_v12  ;;  %v2677_v54 = vmul.f32 0.044715, %v2663_v63  ;;  %v2664_v58 = vmul.f32 %v2650_v33, %v4988_v41  ;;  %v2651_v39 = vmul.f32 %v4995_v5, %v4995_v5 }
 0xc35   : > { %3884 = vtanh.f32 %v2702_v30  ;;  %v2703_v27 = vmul.f32 0.7978846, %v2689_v47  ;;  %v5003_v55 = vadd.f32 %v2630_v17, %v4927_v28  ;;  %v2634_v11 = vpop.f32.mrf.mxu1 }
 0xc36   : > { %v2704_v52 = vmul.f32 0.7978846, %v2690_v51  ;;  %v2691_v48 = vadd.f32 %v2677_v54, %v4980_v57  ;;  %v2678_v0 = vmul.f32 0.044715, %v2664_v58  ;;  %v2665_v62 = vmul.f32 %v2651_v39, %v4995_v5 }
 0xc37   : > { %v3875_v49 = vpop.eup %3874  ;;  %3886 = vtanh.f32 %v2703_v27  ;;  %v2652_v6 = vmul.f32 %v5003_v55, %v5003_v55  ;;  %v5010_v34 = vadd.f32 %v2634_v11, %v4923_v37  ;;  %v2636_v56 = vpop.f32.mrf.mxu1 }
 0xc38   : > { %3888 = vtanh.f32 %v2704_v52  ;;  %v2705_v13 = vmul.f32 0.7978846, %v2691_v48  ;;  %v2692_v25 = vadd.f32 %v2678_v0, %v4988_v41  ;;  %v2679_v16 = vmul.f32 0.044715, %v2665_v62 }
 0xc39   : > { %v3877_v14 = vpop.eup %3876  ;;  %v2666_v21 = vmul.f32 %v2652_v6, %v5003_v55  ;;  %v2653_v7 = vmul.f32 %v5010_v34, %v5010_v34  ;;  %v5017_v44 = vadd.f32 %v2636_v56, %v4927_v28  ;;  %v2638_v10 = vpop.f32.mrf.mxu1  ;;  %v2725_v59 = vadd.f32 1.0, %v3875_v49 }
 0xc3a   : > { %3890 = vtanh.f32 %v2705_v13  ;;  %v2706_v37 = vmul.f32 0.7978846, %v2692_v25  ;;  %v2726_v2 = vadd.f32 1.0, %v3877_v14  ;;  %v2693_v50 = vadd.f32 %v2679_v16, %v4995_v5 }
 0xc3b   : > { %v3879_v20 = vpop.eup %3878  ;;  %v2680_v18 = vmul.f32 0.044715, %v2666_v21  ;;  %v2667_v9 = vmul.f32 %v2653_v7, %v5010_v34  ;;  %v2654_v24 = vmul.f32 %v5017_v44, %v5017_v44  ;;  %v2639_v4 = vpop.f32.mrf.mxu1  ;;  %v2739_v26 = vmul.f32 0.5, %v2725_v59 }
 0xc3c   : > { %v2727_v19 = vadd.f32 1.0, %v3879_v20  ;;  %3892 = vtanh.f32 %v2706_v37  ;;  %v2707_v28 = vmul.f32 0.7978846, %v2693_v50  ;;  %v2740_v63 = vmul.f32 0.5, %v2726_v2 }
 0xc3d   : > { %v3881_v22 = vpop.eup %3880  ;;  %v2694_v35 = vadd.f32 %v2680_v18, %v5003_v55  ;;  %v2681_v42 = vmul.f32 0.044715, %v2667_v9  ;;  %v2668_v43 = vmul.f32 %v2654_v24, %v5017_v44  ;;  %v2753_v11 = vmul.f32 %v2739_v26, %v4930_v1 }
 0xc3e   : > { %v2741_v45 = vmul.f32 0.5, %v2727_v19  ;;  %v2728_v32 = vadd.f32 1.0, %v3881_v22  ;;  %3894 = vtanh.f32 %v2707_v28  ;;  %v2754_v52 = vmul.f32 %v2740_v63, %v4935_v61 }
 0xc3f   : > { %v2708_v33 = vmul.f32 0.7978846, %v2694_v35  ;;  %v2695_v30 = vadd.f32 %v2681_v42, %v5010_v34  ;;  %v2682_v47 = vmul.f32 0.044715, %v2668_v43 }
 0xc40   : > { %v3883_v17 = vpop.eup %3882  ;;  %v2742_v51 = vmul.f32 0.5, %v2728_v32  ;;  %v2755_v54 = vmul.f32 %v2741_v45, %v4941_v29 }
 0xc41   : > { %3896 = vtanh.f32 %v2708_v33  ;;  %v2709_v58 = vmul.f32 0.7978846, %v2695_v30  ;;  %v2696_v39 = vadd.f32 %v2682_v47, %v5017_v44  ;;  %v2729_v49 = vadd.f32 1.0, %v3883_v17 }
 0xc42   : > { %v3885_v27 = vpop.eup %3884  ;;  %v2756_v48 = vmul.f32 %v2742_v51, %v4947_v60  ;;  %v2767_v25 = vpack.c.bf16 %v2755_v54, %v2753_v11 }
 0xc43   : > { %3898 = vtanh.f32 %v2709_v58  ;;  %v2710_v0 = vmul.f32 0.7978846, %v2696_v39  ;;  %v2730_v62 = vadd.f32 1.0, %v3885_v27  ;;  %v2743_v1 = vmul.f32 0.5, %v2729_v49 }
 0xc44   : > { %v3887_v6 = vpop.eup %3886  ;;  %v2768_v56 = vpack.c.bf16 %v2756_v48, %v2754_v52 }
 0xc45   : > { %v3889_v13 = vpop.eup %3888  ;;  %3900 = vtanh.f32 %v2710_v0  ;;  %v2731_v29 = vadd.f32 1.0, %v3887_v6  ;;  %v2744_v16 = vmul.f32 0.5, %v2730_v62  ;;  %v2757_v2 = vmul.f32 %v2743_v1, %v4954_v36 }
 0xc46   : > { %2942 = vmatprep.mubr.bf16.mxu0 %v2768_v56  ;;  %v2732_v14 = vadd.f32 1.0, %v3889_v13 }
 0xc47   : > { %v3891_v21 = vpop.eup %3890  ;;  %2943 = vmatmul.mubr.bf16.vlgmr.msra.gmra.mxu0 %v2767_v25  ;;  %v2745_v7 = vmul.f32 0.5, %v2731_v29  ;;  %v2758_v59 = vmul.f32 %v2744_v16, %v4961_v31 }
 0xc48   : > { %v2746_v61 = vmul.f32 0.5, %v2732_v14  ;;  %v2733_v9 = vadd.f32 1.0, %v3891_v21 }
 0xc49   : > { %v3893_v10 = vpop.eup %3892  ;;  %v2759_v60 = vmul.f32 %v2745_v7, %v4968_v8 }
 0xc4a   : > { %v2760_v37 = vmul.f32 %v2746_v61, %v4972_v12  ;;  %v2734_v20 = vadd.f32 1.0, %v3893_v10  ;;  %v2747_v8 = vmul.f32 0.5, %v2733_v9 }
 0xc4b   : > { %v3895_v50 = vpop.eup %3894  ;;  %v2769_v24 = vpack.c.bf16 %v2759_v60, %v2757_v2 }
 0xc4c   : > { %v2770_v18 = vpack.c.bf16 %v2760_v37, %v2758_v59  ;;  %v2735_v4 = vadd.f32 1.0, %v3895_v50  ;;  %v2748_v28 = vmul.f32 0.5, %v2734_v20  ;;  %v2761_v63 = vmul.f32 %v2747_v8, %v4980_v57 }
 0xc4e   : > { %v3897_v19 = vpop.eup %3896  ;;  %2950 = vmatprep.mubr.bf16.mxu0 %v2770_v18  ;;  %v2749_v35 = vmul.f32 0.5, %v2735_v4  ;;  %v2762_v36 = vmul.f32 %v2748_v28, %v4988_v41 }
 0xc4f   : > { %2951 = vmatmul.mubr.bf16.gmra.mxu0 %v2769_v24  ;;  %v2736_v22 = vadd.f32 1.0, %v3897_v19 }
 0xc50   : > { %v3899_v42 = vpop.eup %3898  ;;  %v2763_v12 = vmul.f32 %v2749_v35, %v4995_v5 }
 0xc51   : > { %v2750_v43 = vmul.f32 0.5, %v2736_v22  ;;  %v2737_v26 = vadd.f32 1.0, %v3899_v42 }
 0xc52   : > { %v3901_v31 = vpop.eup %3900  ;;  %v2771_v47 = vpack.c.bf16 %v2763_v12, %v2761_v63 }
 0xc53   : > { %v2764_v45 = vmul.f32 %v2750_v43, %v5003_v55  ;;  %v2738_v32 = vadd.f32 1.0, %v3901_v31  ;;  %v2751_v17 = vmul.f32 0.5, %v2737_v26  ;;  %v3282_v55 = vld [vmem:[%s5102_s11] ss:$0 sm:$0xff] }
 0xc55   : > { %v2772_v33 = vpack.c.bf16 %v2764_v45, %v2762_v36  ;;  %v2752_v30 = vmul.f32 0.5, %v2738_v32  ;;  %v2765_v58 = vmul.f32 %v2751_v17, %v5010_v34 }
 0xc57   : > { %2958 = vmatprep.mubr.bf16.mxu0 %v2772_v33  ;;  %v2766_v51 = vmul.f32 %v2752_v30, %v5017_v44  ;;  %v2773_v5 = vpack.c.bf16 %v2765_v58, %v2765_v58 }
 0xc58   : > { %2959 = vmatmul.mubr.bf16.gmra.mxu0 %v2771_v47 }
 0xc59   : > { %v2774_v54 = vpack.c.bf16 %v2766_v51, %v2766_v51 }
 0xc5b   : > { %2966 = vmatprep.mubr.bf16.mxu0 %v2774_v54 }
 0xc60   : > { %2967 = vmatmul.mubr.bf16.gmra.mxu0 %v2773_v5 }
 0xd07   : > { %v3435_v41 = vpop.f32.mrf.mxu0 }
 0xd09   : > { %v3436_v57 = vpop.f32.mrf.mxu0 }
 0xd0a   : > { %v3437_v39 = vadd.f32 %v3436_v57, %v3435_v41 }
 0xd0b   : > { %v3438_v27 = vpop.f32.mrf.mxu0 }
 0xd0c   : > { %v2945_v11 = vadd.f32 %v3437_v39, %v3282_v55 }
 0xd0d   : > { %v3439_v52 = vpop.f32.mrf.mxu0 }
 0xd0e   : > { %v3440_v48 = vadd.f32 %v3439_v52, %v3438_v27  ;;  %v2974_v44 = vadd.f32 %v2945_v11, %v4840_v38 }
 0xd0f   : > { %v3441_v0 = vpop.f32.mrf.mxu0 }
 0xd10   : > { %v2948_v62 = vadd.f32 %v3440_v48, %v3282_v55  ;;  %2981 = vadd.xlane.f32.xlu0 %v2974_v44 }
 0xd11   : > { %v3442_v34 = vpop.f32.mrf.mxu0 }
 0xd12   : > { %v3443_v49 = vadd.f32 %v3442_v34, %v3441_v0  ;;  %v2975_v6 = vadd.f32 %v2948_v62, %v4842_v15 }
 0xd13   : > { %v3444_v56 = vpop.f32.mrf.mxu0 }
 0xd14   : > { %v2953_v13 = vadd.f32 %v3443_v49, %v3282_v55  ;;  %2983 = vadd.xlane.f32.xlu1 %v2975_v6 }
 0xd15   : > { %v3445_v25 = vpop.f32.mrf.mxu0 }
 0xd16   : > { %v3446_v29 = vadd.f32 %v3445_v25, %v3444_v56  ;;  %v2976_v14 = vadd.f32 %v2953_v13, %v4849_v3 }
 0xd18   : > { %v2956_v16 = vadd.f32 %v3446_v29, %v3282_v55  ;;  %v3447_v21 = vpop.f32.mrf.mxu0  ;;  %2985 = vadd.xlane.f32.xlu0 %v2976_v14 }
 0xd1a   : > { %v3448_v1 = vpop.f32.mrf.mxu0  ;;  %v2977_v38 = vadd.f32 %v2956_v16, %v4851_v46 }
 0xd1b   : > { %v3449_v7 = vadd.f32 %v3448_v1, %v3447_v21  ;;  %v3300_v1 = vld [vmem:[%s5104_s13] ss:$0 sm:$0xff] }
 0xd1c   : > { %v3450_v61 = vpop.f32.mrf.mxu0  ;;  %2987 = vadd.xlane.f32.xlu1 %v2977_v38 }
 0xd1d   : > { %v2961_v10 = vadd.f32 %v3449_v7, %v3282_v55 }
 0xd1e   : > { %v3451_v60 = vpop.f32.mrf.mxu0 }
 0xd1f   : > { %v2978_v15 = vadd.f32 %v2961_v10, %v4859_v23  ;;  %v3452_v20 = vadd.f32 %v3451_v60, %v3450_v61 }
 0xd20   : > { %v3453_v59 = vpop.f32.mrf.mxu0 }
 0xd21   : > { %2989 = vadd.xlane.f32.xlu0 %v2978_v15  ;;  %v2964_v24 = vadd.f32 %v3452_v20, %v3282_v55 }
 0xd22   : > { %v3454_v37 = vpop.f32.mrf.mxu0 }
 0xd23   : > { %v3455_v2 = vadd.f32 %v3454_v37, %v3453_v59  ;;  %v2979_v4 = vadd.f32 %v2964_v24, %v4861_v40 }
 0xd24   : > { %v3456_v50 = vpop.f32.mrf.mxu0 }
 0xd25   : > { %v2969_v3 = vadd.f32 %v3455_v2, %v3282_v55 }
 0xd26   : > { %v3457_v18 = vpop.f32.mrf.mxu0 }
 0xd27   : > { %v2980_v9 = vadd.f32 %v2969_v3, %v4866_v53 }
 0xd29   : > { %v2993_v46 = vsel %vm1023_vm3, %v2980_v9, 0.0 }
 0xd2a   : > { %2994 = vadd.xlane.f32.xlu1 %v2993_v46 }
 0xd2e   : > { %2991 = vadd.xlane.f32.xlu1 %v2979_v4 }
 0xd99   : > { %v2982_v19 = vpop.xlane.xlu0 %2981 }
 0xd9a   : > { %v2996_v22 = vmul.f32 0.0078125, %v2982_v19 }
 0xd9c   : > { %v3003_v23 = vsub.f32 %v2974_v44, %v2996_v22 }
 0xd9d   : > { %v2984_v28 = vpop.xlane.xlu1 %2983 }
 0xd9e   : > { %v2997_v35 = vmul.f32 0.0078125, %v2984_v28  ;;  %v3010_v42 = vmul.f32 %v3003_v23, %v3003_v23 }
 0xda0   : > { %v3004_v8 = vsub.f32 %v2975_v6, %v2997_v35  ;;  %3017 = vadd.xlane.f32.xlu0 %v3010_v42 }
 0xda1   : > { %v2986_v43 = vpop.xlane.xlu0 %2985 }
 0xda2   : > { %v2998_v31 = vmul.f32 0.0078125, %v2986_v43  ;;  %v3011_v12 = vmul.f32 %v3004_v8, %v3004_v8 }
 0xda4   : > { %v3005_v26 = vsub.f32 %v2976_v14, %v2998_v31  ;;  %3019 = vadd.xlane.f32.xlu1 %v3011_v12  ;;  %v3299_v14 = vld [vmem:[%s5103_s12] ss:$0 sm:$0xff] }
 0xda5   : > { %v2988_v53 = vpop.xlane.xlu1 %2987 }
 0xda6   : > { %v2999_v36 = vmul.f32 0.0078125, %v2988_v53  ;;  %v3012_v45 = vmul.f32 %v3005_v26, %v3005_v26 }
 0xda8   : > { %v3006_v32 = vsub.f32 %v2977_v38, %v2999_v36  ;;  %3021 = vadd.xlane.f32.xlu0 %v3012_v45 }
 0xdaa   : > { %v2990_v40 = vpop.xlane.xlu0 %2989  ;;  %v3013_v63 = vmul.f32 %v3006_v32, %v3006_v32 }
 0xdab   : > { %v3000_v33 = vmul.f32 0.0078125, %v2990_v40 }
 0xdac   : > { %3023 = vadd.xlane.f32.xlu1 %v3013_v63 }
 0xdad   : > { %v5052_v30 = vsub.f32 %v2978_v15, %v3000_v33 }
 0xdaf   : > { %v3014_v47 = vmul.f32 %v5052_v30, %v5052_v30 }
 0xdb1   : > { %3025 = vadd.xlane.f32.xlu0 %v3014_v47 }
 0xdb3   : > { %v2995_v17 = vpop.xlane.xlu1 %2994 }
 0xdb4   : > { %v3002_v51 = vmul.f32 0.0078125, %v2995_v17 }
 0xdb6   : > { %v5056_v54 = vsub.f32 %v2980_v9, %v3002_v51 }
 0xdb7   : > { %v2992_v58 = vpop.xlane.xlu1 %2991 }
 0xdb8   : > { %v3001_v5 = vmul.f32 0.0078125, %v2992_v58  ;;  %v3016_v41 = vmul.f32 %v5056_v54, %v5056_v54 }
 0xdba   : > { %v5060_v55 = vsub.f32 %v2979_v4, %v3001_v5  ;;  %v3029_v57 = vsel %vm1023_vm3, %v3016_v41, 0.0 }
 0xdbb   : > { %3030 = vadd.xlane.f32.xlu0 %v3029_v57 }
 0xdbc   : > { %v3015_v39 = vmul.f32 %v5060_v55, %v5060_v55 }
 0xdbe   : > { %3027 = vadd.xlane.f32.xlu1 %v3015_v39 }
 0xe29   : > { %v3018_v27 = vpop.xlane.xlu0 %3017 }
 0xe2a   : > { %v3032_v11 = vmul.f32 0.0078125, %v3018_v27 }
 0xe2c   : > { %v3039_v52 = vadd.f32 1e-05, %v3032_v11 }
 0xe2d   : > { %v3020_v48 = vpop.xlane.xlu1 %3019 }
 0xe2e   : > { %3902 = vrsqrt.f32 %v3039_v52  ;;  %v3033_v44 = vmul.f32 0.0078125, %v3020_v48 }
 0xe30   : > { %v3040_v0 = vadd.f32 1e-05, %v3033_v44 }
 0xe31   : > { %v3022_v62 = vpop.xlane.xlu0 %3021 }
 0xe32   : > { %3904 = vrsqrt.f32 %v3040_v0  ;;  %v3034_v34 = vmul.f32 0.0078125, %v3022_v62 }
 0xe34   : > { %v3041_v49 = vadd.f32 1e-05, %v3034_v34 }
 0xe35   : > { %v3024_v6 = vpop.xlane.xlu1 %3023 }
 0xe36   : > { %3906 = vrsqrt.f32 %v3041_v49  ;;  %v3035_v56 = vmul.f32 0.0078125, %v3024_v6 }
 0xe38   : > { %v3042_v13 = vadd.f32 1e-05, %v3035_v56 }
 0xe3a   : > { %3908 = vrsqrt.f32 %v3042_v13  ;;  %v3026_v25 = vpop.xlane.xlu0 %3025 }
 0xe3b   : > { %v3903_v29 = vpop.eup %3902  ;;  %v3036_v16 = vmul.f32 0.0078125, %v3026_v25 }
 0xe3c   : > { %v3053_v21 = vmul.f32 %v3903_v29, %v3003_v23 }
 0xe3d   : > { %v3043_v38 = vadd.f32 1e-05, %v3036_v16 }
 0xe3e   : > { %v3067_v7 = vmul.f32 %v3299_v14, %v3053_v21 }
 0xe3f   : > { %v3905_v61 = vpop.eup %3904  ;;  %3910 = vrsqrt.f32 %v3043_v38 }
 0xe40   : > { %v3081_v10 = vadd.f32 %v3300_v1, %v3067_v7  ;;  %v3054_v60 = vmul.f32 %v3905_v61, %v3004_v8 }
 0xe42   : > { %3088 = vst [vmem:[%s5076_s24] sm:$0xff] %v3081_v10  ;;  %v3068_v15 = vmul.f32 %v3299_v14, %v3054_v60 }
 0xe43   : > { %v3907_v59 = vpop.eup %3906 }
 0xe44   : > { %v3082_v37 = vadd.f32 %v3300_v1, %v3068_v15  ;;  %v3055_v2 = vmul.f32 %v3907_v59, %v3005_v26  ;;  %v3031_v20 = vpop.xlane.xlu0 %3030 }
 0xe45   : > { %v3038_v50 = vmul.f32 0.0078125, %v3031_v20 }
 0xe46   : > { %3089 = vst [vmem:[%s5076_s24 + $0x8] sm:$0xff] %v3082_v37  ;;  %v3069_v3 = vmul.f32 %v3299_v14, %v3055_v2 }
 0xe47   : > { %v3909_v18 = vpop.eup %3908  ;;  %v3045_v9 = vadd.f32 1e-05, %v3038_v50  ;;  %v3028_v24 = vpop.xlane.xlu1 %3027 }
 0xe48   : > { %v3083_v46 = vadd.f32 %v3300_v1, %v3069_v3  ;;  %v3056_v4 = vmul.f32 %v3909_v18, %v3006_v32  ;;  %v3037_v19 = vmul.f32 0.0078125, %v3028_v24 }
 0xe49   : > { %3912 = vrsqrt.f32 %v3045_v9 }
 0xe4a   : > { %3090 = vst [vmem:[%s5076_s24 + $0x10] sm:$0xff] %v3083_v46  ;;  %v3070_v22 = vmul.f32 %v3299_v14, %v3056_v4  ;;  %v3044_v23 = vadd.f32 1e-05, %v3037_v19 }
 0xe4c   : > { %v3911_v28 = vpop.eup %3910  ;;  %v3084_v35 = vadd.f32 %v3300_v1, %v3070_v22  ;;  %3914 = vrsqrt.f32 %v3044_v23 }
 0xe4d   : > { %v3057_v42 = vmul.f32 %v3911_v28, %v5052_v30 }
 0xe4e   : > { %3091 = vst [vmem:[%s5076_s24 + $0x18] sm:$0xff] %v3084_v35 }
 0xe4f   : > { %v3071_v8 = vmul.f32 %v3299_v14, %v3057_v42 }
 0xe51   : > { %v3085_v43 = vadd.f32 %v3300_v1, %v3071_v8 }
 0xe53   : > { %3092 = vst [vmem:[%s5076_s24 + $0x20] sm:$0xff] %v3085_v43 }
 0xe56   : > { %v3913_v31 = vpop.eup %3912 }
 0xe57   : > { %v3059_v12 = vmul.f32 %v3913_v31, %v5056_v54 }
 0xe59   : > { %v3915_v26 = vpop.eup %3914  ;;  %v3073_v53 = vmul.f32 %v3299_v14, %v3059_v12 }
 0xe5a   : > { %v3058_v36 = vmul.f32 %v3915_v26, %v5060_v55 }
 0xe5b   : > { %v3087_v45 = vadd.f32 %v3300_v1, %v3073_v53 }
 0xe5c   : > { %v3072_v32 = vmul.f32 %v3299_v14, %v3058_v36 }
 0xe5d   : > { %3094 = vst [vmem:[%s5076_s24 + $0x30] sm:$0x1] %v3087_v45 }
 0xe5e   : > { %v3086_v40 = vadd.f32 %v3300_v1, %v3072_v32 }
 0xe60   : > { %3093 = vst [vmem:[%s5076_s24 + $0x28] sm:$0xff] %v3086_v40 }
 0xe61 PF: > { %s24_s29 = sadd.s32 1, %s3930_s29  }
 0xe62   : > { %p21_p4 = scmp.ge.s32.totalorder %s24_s29, 6  }
 0xe64   :  { %23 = sbr.rel (!%p21_p4) target bundleno = 1 (0x1), region = 109 }

// kernel: cl_forward.9
= control target key start
LH: loop header
LB: loop body
LE: loop exit
PB: predicated region body
PF: predicated region fallthrough
CT: control target
= control target key end

     0   :  { %s4191_s29 = smov 0   ;;  %s5358_s0 = inlined_call_operand.vmem [shape: f32[4,57,128], index: 0, kind: input, shape index: {}]   ;;  %s5359_s1 = inlined_call_operand.vmem [shape: f32[4,1,57], index: 1, kind: input, shape index: {}]   ;;  %s5360_s2 = inlined_call_operand.vmem [shape: bf16[128,384], index: 2, kind: input, shape index: {}]   ;;  %s5361_s3 = inlined_call_operand.vmem [shape: f32[1,384], index: 3, kind: input, shape index: {}]   ;;  %s5362_s4 = inlined_call_operand.vmem [shape: bf16[128,128], index: 4, kind: input, shape index: {}]   ;;  %s5363_s5 = inlined_call_operand.vmem [shape: f32[1,128], index: 5, kind: input, shape index: {}]   ;;  %s5364_s6 = inlined_call_operand.vmem [shape: f32[1,128], index: 6, kind: input, shape index: {}]   ;;  %s5365_s7 = inlined_call_operand.vmem [shape: f32[1,128], index: 7, kind: input, shape index: {}]   ;;  %s5366_s8 = inlined_call_operand.vmem [shape: bf16[128,256], index: 8, kind: input, shape index: {}]   ;;  %s5367_s9 = inlined_call_operand.vmem [shape: f32[1,256], index: 9, kind: input, shape index: {}]   ;;  %s5368_s10 = inlined_call_operand.vmem [shape: bf16[256,128], index: 10, kind: input, shape index: {}]   ;;  %s5369_s11 = inlined_call_operand.vmem [shape: f32[1,128], index: 11, kind: input, shape index: {}]   ;;  %s5370_s12 = inlined_call_operand.vmem [shape: f32[1,128], index: 12, kind: input, shape index: {}]   ;;  %s5371_s13 = inlined_call_operand.vmem [shape: f32[1,128], index: 13, kind: input, shape index: {}]   ;;  %s5372_s14 = inlined_call_operand.vmem [shape: f32[4,57,128], index: 14, kind: output, shape index: {}]  }
   0x1 LB: > { %s3301_s30 = sadd.s32 4294967295, %s4109_s29   ;;  %p3305_p0 = scmp.ge.s32.totalorder %s4109_s29, 1  ;;  %s4109_s29 = sphi %s4191_s29, %s24_s29  }
   0x2   : > { %p420_p1 = scmp.lt.s32.totalorder %s4109_s29, 5 }
   0x4   : > { %p421_p2 = pnand %p3305_p0, %p420_p1 }
   0x5   : > { %p469_p3 = scmp.lt.s32.totalorder (!%p421_p2), %s3301_s30, 3  ;;  %s4112_s22 = smov (!%p421_p2), 96  }
   0x6   : > { %424 = sbr.rel (%p421_p2) target bundleno = 3686 (0xe66), region = 76  ;;  %s4114_s23 = smov (!%p421_p2), 64  }
   0x7   : > { %s4115_s24 = smov (!%p421_p2), 32  }
   0xb   : > { %v3818_v0 = vld [vmem:[%s5360_s2 + $0xac] ss:$12 sps:$4 sm:$0xff]   ;;  %v3820_v1 = vld [vmem:[%s5360_s2 + $0xa8] ss:$12 sps:$4 sm:$0xff]   ;;  %v4111_v2 = vmov 0   ;;  %s5374_s30 = smov (!%p469_p3, %s3301_s30), 3  ;;  %v530_v29 = vlaneseq }
   0xc   : > { %705 = vmatprep.mubr.bf16.mxu0 %v4111_v2  ;;  %673 = vmatprep.subr.bf16.mxu0 %v3818_v0  ;;  %v3821_v3 = vld [vmem:[%s5360_s2 + $0x94] ss:$12 sps:$4 sm:$0xff]   ;;  %v3823_v4 = vld [vmem:[%s5360_s2 + $0x90] ss:$12 sps:$4 sm:$0xff]   ;;  %s3451_s25 = sshll.u32 %s5374_s30, 6  ;;  %vm823_vm0 = vcmask 261120   ;;  %s4364_s21 = scalar_lea.vmem %s5359_s1, %s5374_s30 }
   0xd   : > { %674 = vmatpush1.bf16.msra.mxu0 %v3820_v1  ;;  %v3824_v5 = vld [vmem:[%s5360_s2 + $0x7c] ss:$12 sps:$4 sm:$0xff]   ;;  %v3826_v6 = vld [vmem:[%s5360_s2 + $0x78] ss:$12 sps:$4 sm:$0xff]   ;;  %s4226_s16 = scalar_lea.vmem %s5358_s0, %s3451_s25  ;;  %v3829_v9 = vld [vmem:[%s5360_s2 + $0x60] ss:$12 sps:$4 sm:$0xff]  }
   0xe   : > { %675 = vmatprep.subr.bf16.mxu0 %v3821_v3  ;;  %v3827_v7 = vld [vmem:[%s5360_s2 + $0x64] ss:$12 sps:$4 sm:$0xff]   ;;  %v484_v10 = vld [vmem:[%s4226_s16 + $0x8] sm:$0xff]  ;;  %v3833_v14 = vld [vmem:[%s5360_s2 + $0x34] ss:$12 sps:$4 sm:$0xff]   ;;  %v4278_v30 = vshrl.u32 %v530_v29, 7 }
   0xf   : > { %v483_v8 = vld [vmem:[%s4226_s16] sm:$0xff]  ;;  %v3830_v11 = vld [vmem:[%s5360_s2 + $0x4c] ss:$12 sps:$4 sm:$0xff]   ;;  %v3832_v13 = vld [vmem:[%s5360_s2 + $0x48] ss:$12 sps:$4 sm:$0xff]   ;;  %vm935_vm1 = vcmask 465920  }
  0x10   : > { %v492_v12 = vpack.c.bf16 %v484_v10, %v483_v8  ;;  %v3835_v15 = vld [vmem:[%s5360_s2 + $0x30] ss:$12 sps:$4 sm:$0xff]   ;;  %v3838_v17 = vld [vmem:[%s5360_s2 + $0x18] ss:$12 sps:$4 sm:$0xff]   ;;  %v3841_v19 = vld [vmem:[%s5360_s2] ss:$12 sps:$4 sm:$0xff]  }
  0x11   : > { %676 = vmatpush1.bf16.msra.mxu0 %v3823_v4  ;;  %v3836_v16 = vld [vmem:[%s5360_s2 + $0x1c] ss:$12 sps:$4 sm:$0xff]   ;;  %v3839_v18 = vld [vmem:[%s5360_s2 + $0x4] ss:$12 sps:$4 sm:$0xff]   ;;  %v490_v27 = vld [vmem:[%s4226_s16 + $0x38] sm:$0x1] }
  0x12   : > { %677 = vmatprep.subr.bf16.mxu0 %v3824_v5  ;;  %3629 = vmatprep.mubr.bf16.mxu1 %v492_v12  ;;  %v485_v20 = vld [vmem:[%s4226_s16 + $0x10] sm:$0xff]  ;;  %v486_v21 = vld [vmem:[%s4226_s16 + $0x18] sm:$0xff]  ;;  %v487_v23 = vld [vmem:[%s4226_s16 + $0x20] sm:$0xff]  ;;  %v532_v31 = vsub.s32 0, %v4278_v30  ;;  %v536_v50 = vsub.s32 1, %v4278_v30  ;;  %vm957_vm2 = vcmask 458752  }
  0x13   : > { %v4263_v22 = vpack.c.bf16 %v486_v21, %v485_v20  ;;  %v488_v24 = vld [vmem:[%s4226_s16 + $0x28] sm:$0xff]  ;;  %v489_v26 = vld [vmem:[%s4226_s16 + $0x30] sm:$0xff]  ;;  %v4284_v32 = vld [vmem:[%s5361_s3] sm:$0x7]  ;;  %vm1041_vm3 = vcmask 1043456   ;;  %vm1042_vm4 = vcmask 1044480  }
  0x14   : > { %v4269_v25 = vpack.c.bf16 %v488_v24, %v487_v23  ;;  %v4275_v28 = vpack.c.bf16 %v490_v27, %v489_v26  ;;  %v533_v34 = vrot.slane %v4284_v32, %v532_v31  ;;  %v537_v53 = vrot.slane %v4284_v32, %v536_v50  ;;  %v3845_v20 = vld [vmem:[%s5360_s2 + $0x68] ss:$12 sps:$4 sm:$0xff]   ;;  %v3846_v21 = vld [vmem:[%s5360_s2 + $0x50] ss:$12 sps:$4 sm:$0xff]   ;;  %v3847_v23 = vld [vmem:[%s5360_s2 + $0x38] ss:$12 sps:$4 sm:$0xff]  }
  0x15   : > { %678 = vmatpush1.bf16.msra.mxu0 %v3826_v6  ;;  %v3848_v24 = vld [vmem:[%s5360_s2 + $0x20] ss:$12 sps:$4 sm:$0xff]   ;;  %v3849_v26 = vld [vmem:[%s5360_s2 + $0x8] ss:$12 sps:$4 sm:$0xff]   ;;  %vm1145_vm5 = vcmask 257024   ;;  %vm1153_vm6 = vcmask 253952  }
  0x16   : > { %679 = vmatprep.subr.bf16.mxu0 %v3827_v7  ;;  %v4367_v27 = vld [vmem:[%s4364_s21] ss:$0 sm:$0xff]  ;;  %vm1154_vm7 = vsmask.f32 256  ;;  %vm1523_vm9 = vcmask 519424   ;;  %vm1531_vm10 = vcmask 516352  }
  0x17   : > { %vm1155_vm8 = vmand %vm1153_vm6, %vm1154_vm7  ;;  %vm1888_vm12 = vcmask 781824   ;;  %vm1896_vm13 = vcmask 778752   ;;  %vm2253_vm15 = vcmask 1044224  }
  0x18   : > { %vm1532_vm11 = vmand %vm1531_vm10, %vm1154_vm7 }
  0x19   : > { %680 = vmatpush1.bf16.msra.mxu0 %v3829_v9  ;;  %vm1897_vm14 = vmand %vm1896_vm13, %vm1154_vm7 }
  0x1a   : > { %681 = vmatprep.subr.bf16.mxu0 %v3830_v11 }
  0x1d   : > { %682 = vmatpush1.bf16.msra.mxu0 %v3832_v13 }
  0x1e   : > { %683 = vmatprep.subr.bf16.mxu0 %v3833_v14 }
  0x21   : > { %684 = vmatpush1.bf16.msra.mxu0 %v3835_v15 }
  0x22   : > { %685 = vmatprep.subr.bf16.mxu0 %v3836_v16 }
  0x25   : > { %686 = vmatpush1.bf16.msra.mxu0 %v3838_v17  ;;  %v3842_v17 = vld [vmem:[%s5360_s2 + $0xb0] ss:$12 sps:$4 sm:$0xff]  }
  0x26   : > { %687 = vmatprep.subr.bf16.mxu0 %v3839_v18  ;;  %v3843_v18 = vld [vmem:[%s5360_s2 + $0x98] ss:$12 sps:$4 sm:$0xff]   ;;  %3613 = vmatprep.subr.bf16.mxu1 %v3842_v17 }
  0x27   : > { %3614 = vmatpush3.bf16.msra.mxu1 %v3842_v17 }
  0x28   : > { %3615 = vmatprep.subr.bf16.mxu1 %v3843_v18 }
  0x29   : > { %688 = vmatpush1.bf16.msra.mxu0 %v3841_v19  ;;  %v3844_v19 = vld [vmem:[%s5360_s2 + $0x80] ss:$12 sps:$4 sm:$0xff]  }
  0x2b   : > { %3616 = vmatpush3.bf16.msra.mxu1 %v3843_v18 }
  0x2c   : > { %706 = vmatmul.mubr.bf16.vlgmr.msra.gmra.mxu0 %v492_v12  ;;  %3617 = vmatprep.subr.bf16.mxu1 %v3844_v19 }
  0x2d   : > { %715 = vmatprep.mubr.bf16.mxu0 %v4111_v2 }
  0x2f   : > { %3618 = vmatpush3.bf16.msra.mxu1 %v3844_v19 }
  0x30   : > { %3619 = vmatprep.subr.bf16.mxu1 %v3845_v20 }
  0x33   : > { %3620 = vmatpush3.bf16.msra.mxu1 %v3845_v20 }
  0x34   : > { %716 = vmatmul.mubr.bf16.gmra.mxu0 %v4263_v22  ;;  %3621 = vmatprep.subr.bf16.mxu1 %v3846_v21 }
  0x35   : > { %725 = vmatprep.mubr.bf16.mxu0 %v4111_v2 }
  0x37   : > { %3622 = vmatpush3.bf16.msra.mxu1 %v3846_v21 }
  0x38   : > { %3623 = vmatprep.subr.bf16.mxu1 %v3847_v23 }
  0x3b   : > { %3624 = vmatpush3.bf16.msra.mxu1 %v3847_v23 }
  0x3c   : > { %726 = vmatmul.mubr.bf16.gmra.mxu0 %v4269_v25  ;;  %3625 = vmatprep.subr.bf16.mxu1 %v3848_v24 }
  0x3d   : > { %735 = vmatprep.mubr.bf16.mxu0 %v4111_v2 }
  0x3f   : > { %3626 = vmatpush3.bf16.msra.mxu1 %v3848_v24 }
  0x40   : > { %3627 = vmatprep.subr.bf16.mxu1 %v3849_v26 }
  0x43   : > { %3628 = vmatpush3.bf16.msra.mxu1 %v3849_v26 }
  0x44   : > { %736 = vmatmul.mubr.bf16.gmra.mxu0 %v4275_v28 }
  0x46   : > { %3630 = vmatmul.mubr.bf16.vlgmr.msra.gmra.mxu1 %v4263_v22 }
  0x47   : > { %3633 = vmatprep.mubr.bf16.mxu1 %v4269_v25 }
  0x4e   : > { %3634 = vmatmul.mubr.bf16.gmra.mxu1 %v4275_v28 }
  0xec   : > { %v707_v33 = vpop.f32.mrf.mxu0 }
  0xed   : > { %v708_v37 = vadd.f32 %v707_v33, %v533_v34 }
  0xee   : > { %v709_v35 = vpop.f32.mrf.mxu0 }
  0xef   : > { %v710_v4 = vadd.f32 %v709_v35, %v537_v53 }
  0xf0   : > { %v711_v36 = vpop.f32.mrf.mxu0 }
  0xf1   : > { %v712_v38 = vadd.f32 %v711_v36, %v533_v34 }
  0xf2   : > { %v713_v39 = vpop.f32.mrf.mxu0 }
  0xf3   : > { %v4289_v40 = vpack.c.bf16 %v712_v38, %v708_v37  ;;  %v714_v3 = vadd.f32 %v713_v39, %v537_v53 }
  0xf4   : > { %v717_v41 = vpop.f32.mrf.mxu0 }
  0xf5   : > { %3645 = vmatprep.mubr.msk.bf16.mxu0 %vm823_vm0, %v4289_v40  ;;  %v4313_v5 = vpack.c.bf16 %v714_v3, %v710_v4  ;;  %v718_v10 = vadd.f32 %v717_v41, %v533_v34 }
  0xf6   : > { %v719_v42 = vpop.f32.mrf.mxu0 }
  0xf7   : > { %v720_v63 = vadd.f32 %v719_v42, %v537_v53  ;;  %v837_v7 = vsel %vm823_vm0, %v4313_v5, 0 }
  0xf8   : > { %v721_v43 = vpop.f32.mrf.mxu0 }
  0xf9   : > { %v722_v8 = vadd.f32 %v721_v43, %v533_v34 }
  0xfa   : > { %v723_v44 = vpop.f32.mrf.mxu0 }
  0xfb   : > { %v724_v62 = vadd.f32 %v723_v44, %v537_v53  ;;  %v4321_v12 = vpack.c.bf16 %v722_v8, %v718_v10  ;;  %v540_v8 = vsub.s32 2, %v4278_v30 }
  0xfc   : > { %v727_v45 = vpop.f32.mrf.mxu0 }
  0xfd   : > { %v4307_v0 = vpack.c.bf16 %v724_v62, %v720_v63  ;;  %v728_v11 = vadd.f32 %v727_v45, %v533_v34  ;;  %v541_v20 = vrot.slane %v4284_v32, %v540_v8 }
  0xfe   : > { %v729_v46 = vpop.f32.mrf.mxu0 }
  0xff   : > { %v730_v58 = vadd.f32 %v729_v46, %v537_v53  ;;  %v840_v6 = vsel %vm823_vm0, %v4307_v0, 0 }
 0x100   : > { %v731_v47 = vpop.f32.mrf.mxu0 }
 0x101   : > { %v732_v9 = vadd.f32 %v731_v47, %v533_v34 }
 0x102   : > { %v733_v48 = vpop.f32.mrf.mxu0 }
 0x103   : > { %v734_v55 = vadd.f32 %v733_v48, %v537_v53  ;;  %v4323_v13 = vpack.c.bf16 %v732_v9, %v728_v11 }
 0x104   : > { %v737_v49 = vpop.f32.mrf.mxu0 }
 0x105   : > { %v4299_v60 = vpack.c.bf16 %v734_v55, %v730_v58  ;;  %v738_v15 = vadd.f32 %v737_v49, %v533_v34 }
 0x106   : > { %v739_v51 = vpop.f32.mrf.mxu0  ;;  %v3631_v3 = vpop.f32.mrf.mxu1 }
 0x107   : > { %v740_v56 = vadd.f32 %v739_v51, %v537_v53  ;;  %v843_v1 = vsel %vm823_vm0, %v4299_v60, 0 }
 0x108   : > { %v741_v52 = vpop.f32.mrf.mxu0 }
 0x109   : > { %v742_v14 = vadd.f32 %v741_v52, %v533_v34 }
 0x10a   : > { %v743_v54 = vpop.f32.mrf.mxu0 }
 0x10b   : > { %v744_v57 = vadd.f32 %v743_v54, %v537_v53  ;;  %v4329_v16 = vpack.c.bf16 %v742_v14, %v738_v15 }
 0x10d   : > { %v4297_v59 = vpack.c.bf16 %v744_v57, %v740_v56 }
 0x10f   : > { %3789 = vmatprep.subr.msk.bf16.mxu0 %vm823_vm0, %v4297_v59  ;;  %v846_v61 = vsel %vm823_vm0, %v4297_v59, 0 }
 0x110   : > { %3638 = vmatpush3.bf16.xpose.msra.mxu0 %v846_v61 }
 0x111   : > { %3790 = vmatprep.subr.msk.bf16.mxu0 %vm823_vm0, %v4299_v60 }
 0x118   : > { %3640 = vmatpush3.bf16.xpose.msra.mxu0 %v843_v1 }
 0x119   : > { %3791 = vmatprep.subr.msk.bf16.mxu0 %vm823_vm0, %v4307_v0 }
 0x120   : > { %3642 = vmatpush3.bf16.xpose.msra.mxu0 %v840_v6  ;;  %v780_v6 = vpop.f32.mrf.mxu1 }
 0x121   : > { %3792 = vmatprep.subr.msk.bf16.mxu0 %vm823_vm0, %v4313_v5 }
 0x122   : > { %v3632_v10 = vpop.f32.mrf.mxu1 }
 0x124   : > { %v783_v17 = vpop.f32.mrf.mxu1 }
 0x126   : > { %v3635_v23 = vpop.f32.mrf.mxu1 }
 0x128   : > { %3644 = vmatpush3.bf16.xpose.msra.mxu0 %v837_v7 }
 0x12f   : > { %3646 = vmatmul.mubr.msk.bf16.vlgmr.msra.gmra.mxu0 %vm823_vm0, %v4321_v12 }
 0x130   : > { %3649 = vmatprep.mubr.msk.bf16.mxu0 %vm823_vm0, %v4323_v13 }
 0x137   : > { %3650 = vmatmul.mubr.msk.bf16.gmra.mxu0 %vm823_vm0, %v4329_v16 }
 0x1ef   : > { %v3647_v29 = vpop.f32.mrf.mxu0 }
 0x1f0   : > { %v915_v33 = vmul.f32 0.17677669, %v3647_v29  ;;  %v796_v29 = vpop.f32.mrf.mxu1 }
 0x1f1   : > { %v882_v34 = vpop.f32.mrf.mxu0 }
 0x1f2   : > { %v913_v35 = vmul.f32 0.17677669, %v882_v34  ;;  %v929_v36 = vadd.f32 %v4367_v27, %v915_v33  ;;  %v805_v34 = vadd.f32 %v3635_v23, %v541_v20 }
 0x1f3   : > { %v3648_v22 = vpop.f32.mrf.mxu0 }
 0x1f4   : > { %v916_v37 = vmul.f32 0.17677669, %v3648_v22  ;;  %v942_v25 = vsel %vm935_vm1, %v929_v36, -inf  ;;  %v927_v28 = vadd.f32 %v4367_v27, %v913_v35  ;;  %v3636_v35 = vpop.f32.mrf.mxu1 }
 0x1f5   : > { %943 = vmax.xlane.f32.xlu1 %v942_v25  ;;  %v885_v38 = vpop.f32.mrf.mxu0  ;;  %v797_v25 = vadd.f32 %v796_v29, %v541_v20 }
 0x1f6   : > { %v914_v39 = vmul.f32 0.17677669, %v885_v38  ;;  %v936_v41 = vsel %vm935_vm1, %v927_v28, -inf  ;;  %v930_v42 = vadd.f32 %v4367_v27, %v916_v37  ;;  %v808_v37 = vadd.f32 %v3636_v35, %v541_v20 }
 0x1f7   : > { %937 = vmax.xlane.f32.xlu0 %v936_v41  ;;  %v3651_v43 = vpop.f32.mrf.mxu0 }
 0x1f8   : > { %v945_v44 = vsel %vm935_vm1, %v930_v42, -inf  ;;  %v928_v45 = vadd.f32 %v4367_v27, %v914_v39  ;;  %v919_v47 = vmul.f32 0.17677669, %v3651_v43  ;;  %v4403_v38 = vpack.c.bf16 %v808_v37, %v805_v34 }
 0x1f9   : > { %946 = vmax.xlane.f32.xlu1 %v945_v44  ;;  %v898_v46 = vpop.f32.mrf.mxu0  ;;  %v789_v43 = vadd.f32 %v3631_v3, %v541_v20  ;;  %v792_v44 = vadd.f32 %v3632_v10, %v541_v20 }
 0x1fa   : > { %v917_v48 = vmul.f32 0.17677669, %v898_v46  ;;  %v939_v49 = vsel %vm935_vm1, %v928_v45, -inf  ;;  %v4386_v58 = vadd.f32 %v4367_v27, %v919_v47 }
 0x1fb   : > { %940 = vmax.xlane.f32.xlu0 %v939_v49  ;;  %v3652_v51 = vpop.f32.mrf.mxu0  ;;  %v784_v49 = vadd.f32 %v783_v17, %v541_v20 }
 0x1fc   : > { %v920_v52 = vmul.f32 0.17677669, %v3652_v51  ;;  %v4378_v53 = vadd.f32 %v4367_v27, %v917_v48  ;;  %v954_v63 = vsel %vm935_vm1, %v4386_v58, -inf  ;;  %v781_v48 = vadd.f32 %v780_v6, %v541_v20 }
 0x1fd   : > { %v901_v54 = vpop.f32.mrf.mxu0  ;;  %v4418_v51 = vpack.c.bf16 %v792_v44, %v789_v43 }
 0x1fe   : > { %v918_v55 = vmul.f32 0.17677669, %v901_v54  ;;  %v948_v56 = vsel %vm935_vm1, %v4378_v53, -inf  ;;  %v4383_v57 = vadd.f32 %v4367_v27, %v920_v52 }
 0x1ff   : > { %949 = vmax.xlane.f32.xlu0 %v948_v56 }
 0x200   : > { %v958_v61 = vsel %vm957_vm2, %v4383_v57, -inf  ;;  %v4391_v62 = vadd.f32 %v4367_v27, %v918_v55 }
 0x201   : > { %959 = vmax.xlane.f32.xlu1 %v958_v61  ;;  %v4429_v61 = vpack.c.bf16 %v784_v49, %v781_v48 }
 0x202   : > { %v951_v1 = vsel %vm935_vm1, %v4391_v62, -inf }
 0x203   : > { %955 = vmax.xlane.f32.xlu0 %v954_v63 }
 0x205   : > { %952 = vmax.xlane.f32.xlu1 %v951_v1 }
 0x216   : > { %1179 = vrot.lane.b32.xlu1 %v4299_v60, %s4112_s22 }
 0x21a   : > { %1177 = vrot.lane.b32.xlu1 %v4307_v0, %s4112_s22 }
 0x27e   : > { %v944_v4 = vpop.xlane.xlu1 %943 }
 0x27f   : > { %v963_v7 = vsub.f32 %v929_v36, %v944_v4  ;;  %v4113_v36 = vmov 65535  }
 0x280   : > { %v938_v9 = vpop.xlane.xlu0 %937  ;;  %v1043_v22 = vsel %vm1041_vm3, 4294967295, %v4113_v36 }
 0x281   : > { %v973_v11 = vmul.f32 1.442695, %v963_v7  ;;  %v961_v14 = vsub.f32 %v927_v28, %v938_v9  ;;  %v799_v28 = vpop.f32.mrf.mxu1  ;;  %v4405_v39 = vsel %vm1042_vm4, %v1043_v22, 0 }
 0x282   : > { %v947_v15 = vpop.xlane.xlu1 %946  ;;  %v800_v32 = vadd.f32 %v799_v28, %v541_v20 }
 0x283   : > { %3902 = vpow2.f32 %v973_v11  ;;  %v969_v18 = vmul.f32 1.442695, %v961_v14  ;;  %v964_v19 = vsub.f32 %v930_v42, %v947_v15  ;;  %v1046_v42 = vand.u32 %v4405_v39, %v4403_v38 }
 0x284   : > { %v941_v21 = vpop.xlane.xlu0 %940  ;;  %v4407_v41 = vpack.c.bf16 %v800_v32, %v797_v25 }
 0x285   : > { %3904 = vpow2.f32 %v969_v18  ;;  %v975_v24 = vmul.f32 1.442695, %v964_v19  ;;  %v962_v26 = vsub.f32 %v928_v45, %v941_v21  ;;  %3653 = vmatprep.subr.bf16.mxu1 %v1046_v42 }
 0x286   : > { %3654 = vmatpush3.bf16.msra.mxu1 %v1046_v42 }
 0x287   : > { %3906 = vpow2.f32 %v975_v24  ;;  %v971_v33 = vmul.f32 1.442695, %v962_v26  ;;  %3655 = vmatprep.subr.bf16.mxu1 %v4407_v41 }
 0x288   : > { %v950_v1 = vpop.xlane.xlu0 %949 }
 0x289   : > { %3908 = vpow2.f32 %v971_v33  ;;  %v965_v7 = vsub.f32 %v4378_v53, %v950_v1 }
 0x28a   : > { %3656 = vmatpush3.bf16.msra.mxu1 %v4407_v41  ;;  %v960_v4 = vpop.xlane.xlu1 %959 }
 0x28b   : > { %3657 = vmatprep.subr.bf16.mxu1 %v4418_v51  ;;  %v968_v8 = vsub.f32 %v4383_v57, %v960_v4  ;;  %v977_v11 = vmul.f32 1.442695, %v965_v7 }
 0x28c   : > { %v956_v3 = vpop.xlane.xlu0 %955 }
 0x28d   : > { %v967_v6 = vsub.f32 %v4386_v58, %v956_v3  ;;  %v983_v14 = vmul.f32 1.442695, %v968_v8 }
 0x28e   : > { %3658 = vmatpush3.bf16.msra.mxu1 %v4418_v51  ;;  %v953_v10 = vpop.xlane.xlu1 %952 }
 0x28f   : > { %3659 = vmatprep.subr.bf16.mxu1 %v4429_v61  ;;  %v981_v9 = vmul.f32 1.442695, %v967_v6  ;;  %v966_v15 = vsub.f32 %v4391_v62, %v953_v10 }
 0x290   : > { %v4411_v45 = vpop.eup %3902 }
 0x291   : > { %v991_v46 = vsel %vm935_vm1, %v4411_v45, 0.0  ;;  %3910 = vpow2.f32 %v981_v9  ;;  %v979_v17 = vmul.f32 1.442695, %v966_v15 }
 0x292   : > { %v4415_v47 = vpop.eup %3904  ;;  %992 = vadd.xlane.f32.xlu0 %v991_v46  ;;  %3660 = vmatpush3.bf16.msra.mxu1 %v4429_v61  ;;  %3912 = vpow2.f32 %v977_v11  ;;  %v1180_v23 = vpop.permute.xlu1 %1179 }
 0x293   : > { %v985_v54 = vsel %vm935_vm1, %v4415_v47, 0.0  ;;  %3914 = vpow2.f32 %v983_v14 }
 0x294   : > { %v4420_v52 = vpop.eup %3906  ;;  %3916 = vpow2.f32 %v979_v17 }
 0x295   : > { %v994_v55 = vsel %vm935_vm1, %v4420_v52, 0.0 }
 0x296   : > { %v4427_v56 = vpop.eup %3908  ;;  %986 = vadd.xlane.f32.xlu0 %v985_v54  ;;  %995 = vadd.xlane.f32.xlu1 %v994_v55  ;;  %v1178_v24 = vpop.permute.xlu1 %1177  ;;  %v1202_v55 = vsel %vm823_vm0, %v1180_v23, 0 }
 0x297   : > { %v988_v63 = vsel %vm935_vm1, %v4427_v56, 0.0 }
 0x29a   : > { %989 = vadd.xlane.f32.xlu1 %v988_v63 }
 0x29e   : > { %v4445_v18 = vpop.eup %3910 }
 0x29f   : > { %v4447_v19 = vpop.eup %3912  ;;  %v1003_v53 = vsel %vm935_vm1, %v4445_v18, 0.0 }
 0x2a0   : > { %v4451_v58 = vpop.eup %3914  ;;  %v997_v57 = vsel %vm935_vm1, %v4447_v19, 0.0 }
 0x2a1   : > { %v1006_v62 = vsel %vm957_vm2, %v4451_v58, 0.0  ;;  %v4457_v20 = vpop.eup %3916 }
 0x2a2   : > { %v1000_v21 = vsel %vm935_vm1, %v4457_v20, 0.0 }
 0x2ab   : > { %1550 = vrot.lane.b32.xlu1 %v4297_v59, %s4114_s23 }
 0x2ac   : > { %1181 = vrot.lane.b32.xlu0 %v4297_v59, %s4112_s22 }
 0x2cb   : > { %1004 = vadd.xlane.f32.xlu0 %v1003_v53 }
 0x2cf   : > { %998 = vadd.xlane.f32.xlu0 %v997_v57  ;;  %1007 = vadd.xlane.f32.xlu1 %v1006_v62 }
 0x2d3   : > { %1001 = vadd.xlane.f32.xlu1 %v1000_v21 }
 0x2e4   : > { %1548 = vrot.lane.b32.xlu1 %v4299_v60, %s4114_s23 }
 0x2e5   : > { %1175 = vrot.lane.b32.xlu0 %v4313_v5, %s4112_s22 }
 0x2e8   : > { %1165 = vrot.lane.b32.xlu1 %v4321_v12, %s4112_s22 }
 0x2e9   : > { %1163 = vrot.lane.b32.xlu0 %v4289_v40, %s4112_s22 }
 0x2ec   : > { %1167 = vrot.lane.b32.xlu1 %v4323_v13, %s4112_s22 }
 0x2ed   : > { %1546 = vrot.lane.b32.xlu0 %v4307_v0, %s4114_s23 }
 0x2f0   : > { %1544 = vrot.lane.b32.xlu1 %v4313_v5, %s4114_s23 }
 0x2f1   : > { %1169 = vrot.lane.b32.xlu0 %v4329_v16, %s4112_s22 }
 0x2f4   : > { %1538 = vrot.lane.b32.xlu1 %v4321_v12, %s4114_s23 }
 0x2f5   : > { %1536 = vrot.lane.b32.xlu0 %v4289_v40, %s4114_s23 }
 0x2f8   : > { %1542 = vrot.lane.b32.xlu1 %v4329_v16, %s4114_s23 }
 0x2f9   : > { %1540 = vrot.lane.b32.xlu0 %v4323_v13, %s4114_s23 }
 0x31b   : > { %v993_v26 = vpop.xlane.xlu0 %992 }
 0x31f   : > { %v987_v29 = vpop.xlane.xlu0 %986  ;;  %v996_v33 = vpop.xlane.xlu1 %995 }
 0x320   : > { %3918 = vrcp.f32 %v996_v33 }
 0x321   : > { %3920 = vrcp.f32 %v987_v29 }
 0x322   : > { %3922 = vrcp.f32 %v993_v26 }
 0x323   : > { %v1182_v34 = vpop.permute.xlu0 %1181  ;;  %v990_v35 = vpop.xlane.xlu1 %989 }
 0x324   : > { %3924 = vrcp.f32 %v990_v35  ;;  %3793 = vmatprep.subr.msk.bf16.mxu1 %vm823_vm0, %v1182_v34  ;;  %v1205_v54 = vsel %vm823_vm0, %v1182_v34, 0 }
 0x327   : > { %v1551_v36 = vpop.permute.xlu1 %1550 }
 0x328   : > { %3797 = vmatprep.subr.msk.bf16.mxu0 %vm823_vm0, %v1551_v36  ;;  %v1574_v22 = vsel %vm823_vm0, %v1551_v36, 0 }
 0x329   : > { %3702 = vmatpush3.bf16.xpose.msra.mxu0 %v1574_v22 }
 0x32d   : > { %v3919_v37 = vpop.eup %3918 }
 0x32e   : > { %v3921_v25 = vpop.eup %3920  ;;  %v1020_v42 = vmul.f32 %v3919_v37, %v4420_v52 }
 0x32f   : > { %v3923_v28 = vpop.eup %3922  ;;  %v1017_v43 = vmul.f32 %v3921_v25, %v4415_v47  ;;  %v1199_v47 = vsel %vm823_vm0, %v1178_v24, 0 }
 0x330   : > { %v1019_v46 = vmul.f32 %v3923_v28, %v4411_v45 }
 0x331   : > { %v3925_v32 = vpop.eup %3924 }
 0x332   : > { %v1018_v44 = vmul.f32 %v3925_v32, %v4427_v56  ;;  %v1026_v49 = vpack.c.bf16 %v1020_v42, %v1019_v46 }
 0x334   : > { %v1025_v48 = vpack.c.bf16 %v1018_v44, %v1017_v43 }
 0x336   : > { %3661 = vmatprep.mubr.msk.bf16.mxu1 %vm935_vm1, %v1025_v48 }
 0x337   : > { %3662 = vmatmul.mubr.msk.bf16.vlgmr.msra.gmra.mxu1 %vm935_vm1, %v1026_v49 }
 0x338   : > { %3670 = vmatpush3.bf16.xpose.msra.mxu1 %v1205_v54  ;;  %v1156_v54 = vld [vmem:[#allocation2 + $0x1c] sm:$0x1] }
 0x339   : > { %3794 = vmatprep.subr.msk.bf16.mxu1 %vm823_vm0, %v1180_v23 }
 0x340   : > { %3672 = vmatpush3.bf16.xpose.msra.mxu1 %v1202_v55 }
 0x341   : > { %3795 = vmatprep.subr.msk.bf16.mxu1 %vm823_vm0, %v1178_v24 }
 0x348   : > { %3674 = vmatpush3.bf16.xpose.msra.mxu1 %v1199_v47 }
 0x354   : > { %v1005_v45 = vpop.xlane.xlu0 %1004 }
 0x358   : > { %v999_v52 = vpop.xlane.xlu0 %998  ;;  %v1008_v56 = vpop.xlane.xlu1 %1007 }
 0x359   : > { %3926 = vrcp.f32 %v1008_v56 }
 0x35a   : > { %3928 = vrcp.f32 %v999_v52 }
 0x35b   : > { %3930 = vrcp.f32 %v1005_v45 }
 0x35c   : > { %v1176_v63 = vpop.permute.xlu0 %1175  ;;  %v1002_v1 = vpop.xlane.xlu1 %1001 }
 0x35d   : > { %3932 = vrcp.f32 %v1002_v1  ;;  %3796 = vmatprep.subr.msk.bf16.mxu1 %vm823_vm0, %v1176_v63  ;;  %v1196_v3 = vsel %vm823_vm0, %v1176_v63, 0 }
 0x35e   : > { %3676 = vmatpush3.bf16.xpose.msra.mxu1 %v1196_v3 }
 0x360   : > { %v1164_v4 = vpop.permute.xlu0 %1163  ;;  %v1549_v6 = vpop.permute.xlu1 %1548 }
 0x361   : > { %3798 = vmatprep.subr.msk.bf16.mxu0 %vm823_vm0, %v1549_v6  ;;  %v1571_v7 = vsel %vm823_vm0, %v1549_v6, 0 }
 0x362   : > { %3704 = vmatpush3.bf16.xpose.msra.mxu0 %v1571_v7 }
 0x364   : > { %v1547_v8 = vpop.permute.xlu0 %1546  ;;  %v1166_v9 = vpop.permute.xlu1 %1165 }
 0x365   : > { %3799 = vmatprep.subr.msk.bf16.mxu0 %vm823_vm0, %v1547_v8  ;;  %v1568_v53 = vsel %vm823_vm0, %v1547_v8, 0 }
 0x366   : > { %v3927_v10 = vpop.eup %3926 }
 0x367   : > { %v3929_v11 = vpop.eup %3928  ;;  %v1024_v62 = vmul.f32 %v3927_v10, %v4451_v58 }
 0x368   : > { %v1170_v14 = vpop.permute.xlu0 %1169  ;;  %v1168_v15 = vpop.permute.xlu1 %1167  ;;  %v1021_v21 = vmul.f32 %v3929_v11, %v4447_v19 }
 0x369   : > { %v3931_v17 = vpop.eup %3930 }
 0x36a   : > { %v3933_v57 = vpop.eup %3932  ;;  %3706 = vmatpush3.bf16.xpose.msra.mxu0 %v1568_v53  ;;  %v1023_v29 = vmul.f32 %v3931_v17, %v4445_v18 }
 0x36b   : > { %v1022_v23 = vmul.f32 %v3933_v57, %v4457_v20 }
 0x36c   : > { %v1537_v24 = vpop.permute.xlu0 %1536  ;;  %v1545_v26 = vpop.permute.xlu1 %1544  ;;  %v1028_v34 = vpack.c.bf16 %v1024_v62, %v1023_v29 }
 0x36d   : > { %3800 = vmatprep.subr.msk.bf16.mxu0 %vm823_vm0, %v1545_v26  ;;  %3709 = vmatprep.mubr.msk.bf16.mxu0 %vm823_vm0, %v1537_v24  ;;  %v1027_v33 = vpack.c.bf16 %v1022_v23, %v1021_v21  ;;  %v1565_v19 = vsel %vm823_vm0, %v1545_v26, 0 }
 0x36f   : > { %3665 = vmatprep.mubr.msk.bf16.mxu1 %vm935_vm1, %v1027_v33 }
 0x370   : > { %3666 = vmatmul.mubr.msk.bf16.gmra.mxu1 %vm935_vm1, %v1028_v34  ;;  %v1539_v58 = vpop.permute.xlu1 %1538  ;;  %v1541_v20 = vpop.permute.xlu0 %1540 }
 0x371   : > { %3677 = vmatprep.mubr.msk.bf16.mxu1 %vm823_vm0, %v1164_v4 }
 0x372   : > { %3708 = vmatpush3.bf16.xpose.msra.mxu0 %v1565_v19 }
 0x374   : > { %v1543_v18 = vpop.permute.xlu1 %1542 }
 0x378   : > { %3678 = vmatmul.mubr.msk.bf16.vlgmr.msra.gmra.mxu1 %vm823_vm0, %v1166_v9 }
 0x379   : > { %3681 = vmatprep.mubr.msk.bf16.mxu1 %vm823_vm0, %v1168_v15  ;;  %3710 = vmatmul.mubr.msk.bf16.vlgmr.msra.gmra.mxu0 %vm823_vm0, %v1539_v58 }
 0x37a   : > { %3713 = vmatprep.mubr.msk.bf16.mxu0 %vm823_vm0, %v1541_v20 }
 0x380   : > { %3682 = vmatmul.mubr.msk.bf16.gmra.mxu1 %vm823_vm0, %v1170_v14 }
 0x381   : > { %3714 = vmatmul.mubr.msk.bf16.gmra.mxu0 %vm823_vm0, %v1543_v18 }
 0x3f7   : > { %v3663_v35 = vpop.f32.mrf.mxu1 }
 0x3f8   : > { %v3455_v36 = vpack.c.bf16 %v3663_v35, %v3663_v35 }
 0x3f9   : > { %v1082_v22 = vpop.f32.mrf.mxu1 }
 0x3fa   : > { %1148 = vst.msk [vmem:[#allocation2 + $0x8] sm:$0xf] %vm1145_vm5, %v3455_v36  ;;  %v3453_v37 = vpack.c.bf16 %v1082_v22, %v1082_v22 }
 0x3fb   : > { %v3664_v25 = vpop.f32.mrf.mxu1 }
 0x3fc   : > { %1146 = vst.msk [vmem:[#allocation2] sm:$0xf] %vm1145_vm5, %v3453_v37  ;;  %v3456_v28 = vpack.c.bf16 %v3664_v25, %v3664_v25 }
 0x3fd   : > { %v1085_v32 = vpop.f32.mrf.mxu1 }
 0x3fe   : > { %1149 = vst.msk [vmem:[#allocation2 + $0xc] sm:$0xf] %vm1145_vm5, %v3456_v28  ;;  %v3454_v42 = vpack.c.bf16 %v1085_v32, %v1085_v32 }
 0x400   : > { %1147 = vst.msk [vmem:[#allocation2 + $0x4] sm:$0xf] %vm1145_vm5, %v3454_v42 }
 0x430   : > { %v3667_v43 = vpop.f32.mrf.mxu1 }
 0x431   : > { %v3459_v44 = vpack.c.bf16 %v3667_v43, %v3667_v43 }
 0x432   : > { %v1098_v46 = vpop.f32.mrf.mxu1 }
 0x433   : > { %1152 = vst.msk [vmem:[#allocation2 + $0x18] sm:$0xf] %vm1145_vm5, %v3459_v44  ;;  %v3457_v48 = vpack.c.bf16 %v1098_v46, %v1098_v46 }
 0x434   : > { %v3668_v49 = vpop.f32.mrf.mxu1 }
 0x435   : > { %1150 = vst.msk [vmem:[#allocation2 + $0x10] sm:$0xf] %vm1145_vm5, %v3457_v48  ;;  %v3460_v55 = vpack.c.bf16 %v3668_v49, %v3668_v49 }
 0x436   : > { %v1101_v47 = vpop.f32.mrf.mxu1 }
 0x437   : > { %v1157_v45 = vsel %vm1155_vm8, %v3460_v55, %v1156_v54  ;;  %v3458_v52 = vpack.c.bf16 %v1101_v47, %v1101_v47 }
 0x438   : > { %1158 = vst [vmem:[#allocation2 + $0x1c] sm:$0x1] %v1157_v45  ;;  %v3679_v56 = vpop.f32.mrf.mxu1 }
 0x439   : > { %1151 = vst.msk [vmem:[#allocation2 + $0x14] sm:$0xf] %vm1145_vm5, %v3458_v52  ;;  %v3711_v63 = vpop.f32.mrf.mxu0  ;;  %v1274_v21 = vmul.f32 0.17677669, %v3679_v56 }
 0x43a   : > { %v1241_v1 = vpop.f32.mrf.mxu1  ;;  %v1643_v4 = vmul.f32 0.17677669, %v3711_v63 }
 0x43b   : > { %v1610_v3 = vpop.f32.mrf.mxu0  ;;  %v1272_v20 = vmul.f32 0.17677669, %v1241_v1  ;;  %v4551_v35 = vadd.f32 %v4367_v27, %v1274_v21 }
 0x43c   : > { %v1641_v6 = vmul.f32 0.17677669, %v1610_v3  ;;  %v3680_v7 = vpop.f32.mrf.mxu1  ;;  %v4535_v17 = vadd.f32 %v4367_v27, %v1643_v4 }
 0x43d   : > { %v3712_v8 = vpop.f32.mrf.mxu0  ;;  %v1275_v42 = vmul.f32 0.17677669, %v3680_v7  ;;  %v4561_v43 = vadd.f32 %v4367_v27, %v1272_v20  ;;  %v1294_v46 = vsel %vm935_vm1, %v4551_v35, -inf }
 0x43e   : > { %v4530_v9 = vadd.f32 %v4367_v27, %v1641_v6  ;;  %v1644_v11 = vmul.f32 0.17677669, %v3712_v8  ;;  %v1244_v53 = vpop.f32.mrf.mxu1  ;;  %v1663_v26 = vsel %vm935_vm1, %v4535_v17, -inf }
 0x43f   : > { %v1613_v10 = vpop.f32.mrf.mxu0  ;;  %v1273_v36 = vmul.f32 0.17677669, %v1244_v53  ;;  %v1288_v55 = vsel %vm935_vm1, %v4561_v43, -inf  ;;  %v4573_v47 = vadd.f32 %v4367_v27, %v1275_v42 }
 0x440   : > { %v1642_v14 = vmul.f32 0.17677669, %v1613_v10  ;;  %v1657_v15 = vsel %vm935_vm1, %v4530_v9, -inf  ;;  %v4545_v33 = vadd.f32 %v4367_v27, %v1644_v11  ;;  %v3683_v34 = vpop.f32.mrf.mxu1 }
 0x441   : > { %1658 = vmax.xlane.f32.xlu0 %v1657_v15  ;;  %v3715_v57 = vpop.f32.mrf.mxu0  ;;  %v4568_v49 = vadd.f32 %v4367_v27, %v1273_v36  ;;  %v1278_v45 = vmul.f32 0.17677669, %v3683_v34  ;;  %v1297_v4 = vsel %vm935_vm1, %v4573_v47, -inf }
 0x442   : > { %v4538_v62 = vadd.f32 %v4367_v27, %v1642_v14  ;;  %v1666_v37 = vsel %vm935_vm1, %v4545_v33, -inf  ;;  %v1257_v28 = vpop.f32.mrf.mxu1  ;;  %v1647_v11 = vmul.f32 0.17677669, %v3715_v57 }
 0x443   : > { %v1626_v23 = vpop.f32.mrf.mxu0  ;;  %v1291_v56 = vsel %vm935_vm1, %v4568_v49, -inf  ;;  %v1276_v3 = vmul.f32 0.17677669, %v1257_v28  ;;  %v4585_v8 = vadd.f32 %v4367_v27, %v1278_v45 }
 0x444   : > { %v1645_v24 = vmul.f32 0.17677669, %v1626_v23  ;;  %v1660_v29 = vsel %vm935_vm1, %v4538_v62, -inf  ;;  %v3684_v54 = vpop.f32.mrf.mxu1 }
 0x445   : > { %1664 = vmax.xlane.f32.xlu0 %v1663_v26  ;;  %1661 = vmax.xlane.f32.xlu1 %v1660_v29  ;;  %v3716_v19 = vpop.f32.mrf.mxu0  ;;  %v1279_v52 = vmul.f32 0.17677669, %v3684_v54  ;;  %v1306_v14 = vsel %vm935_vm1, %v4585_v8, -inf  ;;  %v4595_v53 = vadd.f32 %v4367_v27, %v1276_v3 }
 0x446   : > { %v4548_v58 = vadd.f32 %v4367_v27, %v1645_v24  ;;  %v1648_v44 = vmul.f32 0.17677669, %v3716_v19  ;;  %v1260_v1 = vpop.f32.mrf.mxu1  ;;  %v4605_v24 = vadd.f32 %v4367_v27, %v1647_v11 }
 0x447   : > { %v1629_v18 = vpop.f32.mrf.mxu0  ;;  %v1277_v6 = vmul.f32 0.17677669, %v1260_v1  ;;  %v4588_v10 = vadd.f32 %v4367_v27, %v1279_v52  ;;  %v1300_v23 = vsel %vm935_vm1, %v4595_v53, -inf }
 0x448   : > { %v1646_v22 = vmul.f32 0.17677669, %v1629_v18  ;;  %v1669_v25 = vsel %vm935_vm1, %v4548_v58, -inf  ;;  %v4578_v63 = vadd.f32 %v4367_v27, %v1648_v44  ;;  %v1675_v26 = vsel %vm935_vm1, %v4605_v24, -inf }
 0x449   : > { %1667 = vmax.xlane.f32.xlu1 %v1666_v37  ;;  %1670 = vmax.xlane.f32.xlu0 %v1669_v25  ;;  %v1309_v15 = vsel %vm957_vm2, %v4588_v10, -inf  ;;  %v4598_v21 = vadd.f32 %v4367_v27, %v1277_v6 }
 0x44a   : > { %v4558_v32 = vadd.f32 %v4367_v27, %v1646_v22  ;;  %v1678_v7 = vsel %vm957_vm2, %v4578_v63, -inf }
 0x44b   : > { %v1303_v57 = vsel %vm935_vm1, %v4598_v21, -inf }
 0x44c   : > { %v1672_v48 = vsel %vm935_vm1, %v4558_v32, -inf }
 0x44d   : > { %1295 = vmax.xlane.f32.xlu0 %v1294_v46  ;;  %1673 = vmax.xlane.f32.xlu1 %v1672_v48 }
 0x451   : > { %1289 = vmax.xlane.f32.xlu0 %v1288_v55  ;;  %1292 = vmax.xlane.f32.xlu1 %v1291_v56 }
 0x455   : > { %1298 = vmax.xlane.f32.xlu0 %v1297_v4  ;;  %1679 = vmax.xlane.f32.xlu1 %v1678_v7 }
 0x459   : > { %1307 = vmax.xlane.f32.xlu0 %v1306_v14  ;;  %1310 = vmax.xlane.f32.xlu1 %v1309_v15 }
 0x45d   : > { %1301 = vmax.xlane.f32.xlu0 %v1300_v23  ;;  %1304 = vmax.xlane.f32.xlu1 %v1303_v57 }
 0x461   : > { %1676 = vmax.xlane.f32.xlu0 %v1675_v26 }
 0x477   : > { %1390 = vrot.lane.b32.xlu0 %v4403_v38, %s4112_s22 }
 0x47b   : > { %1386 = vrot.lane.b32.xlu0 %v4418_v51, %s4112_s22 }
 0x47f   : > { %1384 = vrot.lane.b32.xlu0 %v4429_v61, %s4112_s22 }
 0x483   : > { %1755 = vrot.lane.b32.xlu0 %v4403_v38, %s4114_s23 }
 0x487   : > { %1751 = vrot.lane.b32.xlu0 %v4418_v51, %s4114_s23 }
 0x4ca   : > { %v1659_v27 = vpop.xlane.xlu0 %1658 }
 0x4cb   : > { %v1681_v29 = vsub.f32 %v4530_v9, %v1659_v27 }
 0x4cd   : > { %v1689_v34 = vmul.f32 1.442695, %v1681_v29 }
 0x4ce   : > { %v1665_v19 = vpop.xlane.xlu0 %1664  ;;  %v1662_v20 = vpop.xlane.xlu1 %1661 }
 0x4cf   : > { %3934 = vpow2.f32 %v1689_v34  ;;  %v1683_v18 = vsub.f32 %v4535_v17, %v1665_v19  ;;  %v1682_v36 = vsub.f32 %v4538_v62, %v1662_v20 }
 0x4d1   : > { %v1691_v22 = vmul.f32 1.442695, %v1682_v36  ;;  %v1693_v37 = vmul.f32 1.442695, %v1683_v18 }
 0x4d2   : > { %v4622_v25 = vpop.xlane.xlu0 %1670  ;;  %v1668_v28 = vpop.xlane.xlu1 %1667 }
 0x4d3   : > { %v1684_v42 = vsub.f32 %v4545_v33, %v1668_v28  ;;  %3936 = vpow2.f32 %v1691_v22 }
 0x4d4   : > { %3938 = vpow2.f32 %v1693_v37 }
 0x4d5   : > { %v1695_v44 = vmul.f32 1.442695, %v1684_v42 }
 0x4d6   : > { %v1296_v46 = vpop.xlane.xlu0 %1295  ;;  %v1674_v9 = vpop.xlane.xlu1 %1673 }
 0x4d7   : > { %v1314_v48 = vsub.f32 %v4551_v35, %v1296_v46  ;;  %v1686_v54 = vsub.f32 %v4558_v32, %v1674_v9  ;;  %3940 = vpow2.f32 %v1695_v44 }
 0x4d9   : > { %v1699_v55 = vmul.f32 1.442695, %v1686_v54  ;;  %v1324_v17 = vmul.f32 1.442695, %v1314_v48 }
 0x4da   : > { %v1290_v62 = vpop.xlane.xlu0 %1289  ;;  %v1293_v35 = vpop.xlane.xlu1 %1292 }
 0x4db   : > { %v1312_v45 = vsub.f32 %v4561_v43, %v1290_v62  ;;  %3942 = vpow2.f32 %v1699_v55  ;;  %v1685_v62 = vsub.f32 %v4548_v58, %v4622_v25 }
 0x4dc   : > { %v4628_v52 = vpop.eup %3934  ;;  %3944 = vpow2.f32 %v1324_v17 }
 0x4dd   : > { %v1705_v33 = vsel %vm935_vm1, %v4628_v52, 0.0  ;;  %v1320_v56 = vmul.f32 1.442695, %v1312_v45  ;;  %v1697_v45 = vmul.f32 1.442695, %v1685_v62 }
 0x4de   : > { %v1299_v1 = vpop.xlane.xlu0 %1298  ;;  %1706 = vadd.xlane.f32.xlu1 %v1705_v33  ;;  %v1680_v23 = vpop.xlane.xlu1 %1679 }
 0x4df   : > { %3946 = vpow2.f32 %v1320_v56  ;;  %v1688_v29 = vsub.f32 %v4578_v63, %v1680_v23  ;;  %v1315_v33 = vsub.f32 %v4573_v47, %v1299_v1 }
 0x4e0   : > { %v4632_v3 = vpop.eup %3936 }
 0x4e1   : > { %v1708_v4 = vsel %vm935_vm1, %v4632_v3, 0.0  ;;  %v4636_v6 = vpop.eup %3938  ;;  %v1703_v36 = vmul.f32 1.442695, %v1688_v29 }
 0x4e2   : > { %v1308_v32 = vpop.xlane.xlu0 %1307  ;;  %1709 = vadd.xlane.f32.xlu1 %v1708_v4  ;;  %v1711_v14 = vsel %vm935_vm1, %v4636_v6, 0.0  ;;  %v1311_v56 = vpop.xlane.xlu1 %1310  ;;  %v1326_v4 = vmul.f32 1.442695, %v1315_v33 }
 0x4e3   : > { %v1318_v43 = vsub.f32 %v4585_v8, %v1308_v32  ;;  %v1313_v32 = vsub.f32 %v4568_v49, %v1293_v35 }
 0x4e4   : > { %v4641_v15 = vpop.eup %3940 }
 0x4e5   : > { %v1332_v7 = vmul.f32 1.442695, %v1318_v43  ;;  %v1714_v8 = vsel %vm935_vm1, %v4641_v15, 0.0  ;;  %v1322_v43 = vmul.f32 1.442695, %v1313_v32 }
 0x4e6   : > { %v1302_v11 = vpop.xlane.xlu0 %1301  ;;  %1712 = vadd.xlane.f32.xlu1 %v1711_v14 }
 0x4e7   : > { %3948 = vpow2.f32 %v1332_v7  ;;  %v1316_v57 = vsub.f32 %v4595_v53, %v1302_v11  ;;  %v1319_v7 = vsub.f32 %v4588_v10, %v1311_v56  ;;  %v1305_v11 = vpop.xlane.xlu1 %1304 }
 0x4e8   : > { %v4644_v26 = vpop.eup %3942  ;;  %v1317_v58 = vsub.f32 %v4598_v21, %v1305_v11 }
 0x4e9   : > { %v1328_v27 = vmul.f32 1.442695, %v1316_v57  ;;  %v1720_v19 = vsel %vm935_vm1, %v4644_v26, 0.0  ;;  %v4651_v20 = vpop.eup %3944  ;;  %v1334_v14 = vmul.f32 1.442695, %v1319_v7 }
 0x4ea   : > { %v1677_v34 = vpop.xlane.xlu0 %1676  ;;  %1715 = vadd.xlane.f32.xlu1 %v1714_v8  ;;  %1721 = vadd.xlane.f32.xlu0 %v1720_v19  ;;  %v1342_v63 = vsel %vm935_vm1, %v4651_v20, 0.0  ;;  %v1330_v47 = vmul.f32 1.442695, %v1317_v58 }
 0x4eb   : > { %3950 = vpow2.f32 %v1328_v27  ;;  %v1687_v18 = vsub.f32 %v4605_v24, %v1677_v34 }
 0x4ec   : > { %v4656_v37 = vpop.eup %3946 }
 0x4ed   : > { %v1701_v53 = vmul.f32 1.442695, %v1687_v18  ;;  %v1336_v24 = vsel %vm935_vm1, %v4656_v37, 0.0 }
 0x4ee   : > { %v1391_v22 = vpop.permute.xlu0 %1390  ;;  %1343 = vadd.xlane.f32.xlu0 %v1342_v63 }
 0x4ef   : > { %3952 = vpow2.f32 %v1701_v53  ;;  %v1408_v28 = vand.u32 %v1391_v22, %v4405_v39 }
 0x4f0   : > { %3954 = vpow2.f32 %v1703_v36 }
 0x4f1   : > { %3685 = vmatprep.subr.bf16.mxu1 %v1408_v28  ;;  %3956 = vpow2.f32 %v1697_v45 }
 0x4f2   : > { %3686 = vmatpush3.bf16.msra.mxu1 %v1408_v28  ;;  %1337 = vadd.xlane.f32.xlu0 %v1336_v24  ;;  %3958 = vpow2.f32 %v1326_v4  ;;  %v1387_v34 = vpop.permute.xlu0 %1386 }
 0x4f3   : > { %3960 = vpow2.f32 %v1322_v43 }
 0x4f4   : > { %v4661_v42 = vpop.eup %3948  ;;  %3962 = vpow2.f32 %v1334_v14 }
 0x4f5   : > { %v1354_v44 = vsel %vm935_vm1, %v4661_v42, 0.0  ;;  %3964 = vpow2.f32 %v1330_v47 }
 0x4f6   : > { %1355 = vadd.xlane.f32.xlu0 %v1354_v44  ;;  %v1385_v19 = vpop.permute.xlu0 %1384 }
 0x4f8   : > { %v4665_v46 = vpop.eup %3950 }
 0x4f9   : > { %v1348_v9 = vsel %vm935_vm1, %v4665_v46, 0.0 }
 0x4fa   : > { %1349 = vadd.xlane.f32.xlu0 %v1348_v9 }
 0x4fb   : > { %1388 = vrot.lane.b32.xlu1 %v4407_v41, %s4112_s22 }
 0x4fc   : > { %v4669_v48 = vpop.eup %3952 }
 0x4fd   : > { %v1723_v54 = vsel %vm935_vm1, %v4669_v48, 0.0  ;;  %v4675_v55 = vpop.eup %3954 }
 0x4fe   : > { %1724 = vadd.xlane.f32.xlu0 %v1723_v54  ;;  %v1726_v17 = vsel %vm957_vm2, %v4675_v55, 0.0  ;;  %v4691_v49 = vpop.eup %3956 }
 0x4ff   : > { %1753 = vrot.lane.b32.xlu1 %v4407_v41, %s4114_s23  ;;  %v1717_v10 = vsel %vm935_vm1, %v4691_v49, 0.0  ;;  %v4697_v25 = vpop.eup %3958 }
 0x500   : > { %v4701_v21 = vpop.eup %3960 }
 0x501   : > { %v4705_v1 = vpop.eup %3962 }
 0x502   : > { %1727 = vadd.xlane.f32.xlu0 %v1726_v17  ;;  %v4709_v35 = vpop.eup %3964 }
 0x503   : > { %v1351_v23 = vsel %vm935_vm1, %v4709_v35, 0.0 }
 0x518   : > { %1915 = vrot.lane.b32.xlu0 %v4297_v59, %s4115_s24  ;;  %v1345_v59 = vsel %vm935_vm1, %v4697_v25, 0.0 }
 0x51c   : > { %1901 = vrot.lane.b32.xlu0 %v4289_v40, %s4115_s24  ;;  %v1339_v40 = vsel %vm935_vm1, %v4701_v21, 0.0 }
 0x520   : > { %1905 = vrot.lane.b32.xlu0 %v4323_v13, %s4115_s24  ;;  %v1357_v13 = vsel %vm957_vm2, %v4705_v1, 0.0 }
 0x523   : > { %1718 = vadd.xlane.f32.xlu1 %v1717_v10 }
 0x527   : > { %1346 = vadd.xlane.f32.xlu1 %v1345_v59 }
 0x52b   : > { %1340 = vadd.xlane.f32.xlu1 %v1339_v40 }
 0x52f   : > { %1358 = vadd.xlane.f32.xlu1 %v1357_v13 }
 0x533   : > { %1352 = vadd.xlane.f32.xlu1 %v1351_v23 }
 0x544   : > { %1749 = vrot.lane.b32.xlu1 %v4429_v61, %s4114_s23 }
 0x548   : > { %1913 = vrot.lane.b32.xlu1 %v4299_v60, %s4115_s24  ;;  %v1756_v60 = vpop.permute.xlu0 %1755 }
 0x54c   : > { %1911 = vrot.lane.b32.xlu1 %v4307_v0, %s4115_s24  ;;  %v1773_v0 = vand.u32 %v1756_v60, %v4405_v39 }
 0x550   : > { %1909 = vrot.lane.b32.xlu1 %v4313_v5, %s4115_s24  ;;  %v4726_v5 = vpop.permute.xlu0 %1751 }
 0x554   : > { %1903 = vrot.lane.b32.xlu1 %v4321_v12, %s4115_s24 }
 0x558   : > { %1907 = vrot.lane.b32.xlu1 %v4329_v16, %s4115_s24 }
 0x567   : > { %v1707_v57 = vpop.xlane.xlu1 %1706 }
 0x56b   : > { %v1710_v27 = vpop.xlane.xlu1 %1709 }
 0x56f   : > { %v1713_v29 = vpop.xlane.xlu1 %1712 }
 0x573   : > { %v1716_v8 = vpop.xlane.xlu1 %1715  ;;  %v1722_v12 = vpop.xlane.xlu0 %1721 }
 0x577   : > { %v1389_v18 = vpop.permute.xlu1 %1388  ;;  %v1344_v16 = vpop.xlane.xlu0 %1343 }
 0x578   : > { %3687 = vmatprep.subr.bf16.mxu1 %v1389_v18 }
 0x579   : > { %3688 = vmatpush3.bf16.msra.mxu1 %v1389_v18 }
 0x57a   : > { %3689 = vmatprep.subr.bf16.mxu1 %v1387_v34 }
 0x57b   : > { %v1754_v53 = vpop.permute.xlu1 %1753  ;;  %v1338_v36 = vpop.xlane.xlu0 %1337 }
 0x57d   : > { %3690 = vmatpush3.bf16.msra.mxu1 %v1387_v34 }
 0x57e   : > { %3691 = vmatprep.subr.bf16.mxu1 %v1385_v19 }
 0x57f   : > { %v1356_v28 = vpop.xlane.xlu0 %1355 }
 0x581   : > { %3692 = vmatpush3.bf16.msra.mxu1 %v1385_v19 }
 0x582   : > { %3717 = vmatprep.subr.bf16.mxu1 %v1773_v0 }
 0x583   : > { %v1350_v44 = vpop.xlane.xlu0 %1349 }
 0x587   : > { %v1725_v33 = vpop.xlane.xlu0 %1724 }
 0x58b   : > { %v1728_v59 = vpop.xlane.xlu0 %1727 }
 0x58f   : > { %v1916_v60 = vpop.permute.xlu0 %1915 }
 0x5ac   : > { %v1719_v22 = vpop.xlane.xlu1 %1718 }
 0x5b0   : > { %v1347_v63 = vpop.xlane.xlu1 %1346 }
 0x5b1   : > { %3966 = vrcp.f32 %v1347_v63 }
 0x5b2   : > { %3968 = vrcp.f32 %v1338_v36 }
 0x5b3   : > { %3970 = vrcp.f32 %v1344_v16 }
 0x5b4   : > { %v1341_v24 = vpop.xlane.xlu1 %1340 }
 0x5b5   : > { %3972 = vrcp.f32 %v1341_v24 }
 0x5b6   : > { %3974 = vrcp.f32 %v1707_v57 }
 0x5b7   : > { %3976 = vrcp.f32 %v1710_v27 }
 0x5b8   : > { %v1359_v9 = vpop.xlane.xlu1 %1358 }
 0x5b9   : > { %3978 = vrcp.f32 %v1359_v9 }
 0x5ba   : > { %3980 = vrcp.f32 %v1350_v44 }
 0x5bb   : > { %3982 = vrcp.f32 %v1356_v28 }
 0x5bc   : > { %v1353_v54 = vpop.xlane.xlu1 %1352 }
 0x5bd   : > { %3984 = vrcp.f32 %v1353_v54 }
 0x5be   : > { %v3967_v17 = vpop.eup %3966  ;;  %3986 = vrcp.f32 %v1716_v8 }
 0x5bf   : > { %v3969_v62 = vpop.eup %3968  ;;  %v1371_v32 = vmul.f32 %v3967_v17, %v4697_v25  ;;  %3988 = vrcp.f32 %v1719_v22  ;;  %v1902_v22 = vpop.permute.xlu0 %1901 }
 0x5c0   : > { %v3971_v45 = vpop.eup %3970  ;;  %v1368_v4 = vmul.f32 %v3969_v62, %v4656_v37  ;;  %3990 = vrcp.f32 %v1713_v29 }
 0x5c1   : > { %v1370_v7 = vmul.f32 %v3971_v45, %v4651_v20  ;;  %3992 = vrcp.f32 %v1722_v12 }
 0x5c2   : > { %v3973_v56 = vpop.eup %3972  ;;  %3994 = vrcp.f32 %v1728_v59 }
 0x5c3   : > { %v1369_v43 = vmul.f32 %v3973_v56, %v4701_v21  ;;  %v3975_v11 = vpop.eup %3974  ;;  %v1377_v47 = vpack.c.bf16 %v1371_v32, %v1370_v7  ;;  %3996 = vrcp.f32 %v1725_v33  ;;  %v1906_v9 = vpop.permute.xlu0 %1905 }
 0x5c4   : > { %v3977_v58 = vpop.eup %3976  ;;  %v1737_v29 = vmul.f32 %v3975_v11, %v4628_v52 }
 0x5c5   : > { %v1376_v14 = vpack.c.bf16 %v1369_v43, %v1368_v4  ;;  %v1738_v23 = vmul.f32 %v3977_v58, %v4632_v3 }
 0x5c6   : > { %v3979_v10 = vpop.eup %3978 }
 0x5c7   : > { %3693 = vmatprep.mubr.msk.bf16.mxu1 %vm935_vm1, %v1376_v14  ;;  %v3981_v40 = vpop.eup %3980  ;;  %v1375_v21 = vmul.f32 %v3979_v10, %v4705_v1  ;;  %v1745_v1 = vpack.c.bf16 %v1738_v23, %v1737_v29  ;;  %v4094_v23 = vld [vmem:[%s4364_s21] ss:$0 sm:$0xff] }
 0x5c8   : > { %3694 = vmatmul.mubr.msk.bf16.vlgmr.msra.gmra.mxu1 %vm935_vm1, %v1377_v47  ;;  %v3983_v25 = vpop.eup %3982  ;;  %v1372_v20 = vmul.f32 %v3981_v40, %v4665_v46 }
 0x5c9   : > { %3718 = vmatpush3.bf16.msra.mxu1 %v1773_v0  ;;  %v1374_v57 = vmul.f32 %v3983_v25, %v4661_v42 }
 0x5ca   : > { %v3985_v37 = vpop.eup %3984  ;;  %3719 = vmatprep.subr.bf16.mxu1 %v1754_v53 }
 0x5cb   : > { %v1373_v13 = vmul.f32 %v3985_v37, %v4709_v35  ;;  %v1379_v34 = vpack.c.bf16 %v1375_v21, %v1374_v57  ;;  %v3987_v8 = vpop.eup %3986  ;;  %v1750_v35 = vpop.permute.xlu1 %1749 }
 0x5cc   : > { %v3989_v19 = vpop.eup %3988  ;;  %v1740_v42 = vmul.f32 %v3987_v8, %v4641_v15 }
 0x5cd   : > { %3720 = vmatpush3.bf16.msra.mxu1 %v1754_v53  ;;  %v1378_v27 = vpack.c.bf16 %v1373_v13, %v1372_v20  ;;  %v3991_v46 = vpop.eup %3990  ;;  %v1741_v52 = vmul.f32 %v3989_v19, %v4691_v49 }
 0x5ce   : > { %3721 = vmatprep.subr.bf16.mxu1 %v4726_v5  ;;  %v3993_v3 = vpop.eup %3992  ;;  %v1739_v18 = vmul.f32 %v3991_v46, %v4636_v6 }
 0x5cf   : > { %3697 = vmatprep.mubr.msk.bf16.mxu1 %vm935_vm1, %v1378_v27  ;;  %v1742_v0 = vmul.f32 %v3993_v3, %v4644_v26  ;;  %v3995_v16 = vpop.eup %3994  ;;  %v1914_v15 = vpop.permute.xlu1 %1913 }
 0x5d0   : > { %3698 = vmatmul.mubr.msk.bf16.gmra.mxu1 %vm935_vm1, %v1379_v34  ;;  %v1746_v12 = vpack.c.bf16 %v1740_v42, %v1739_v18  ;;  %v3997_v36 = vpop.eup %3996  ;;  %v1744_v6 = vmul.f32 %v3995_v16, %v4675_v55  ;;  %v1936_v63 = vsel %vm823_vm0, %v1914_v15, 0 }
 0x5d1   : > { %3722 = vmatpush3.bf16.msra.mxu1 %v4726_v5  ;;  %3725 = vmatprep.mubr.msk.bf16.mxu1 %vm935_vm1, %v1745_v1  ;;  %v1747_v53 = vpack.c.bf16 %v1742_v0, %v1741_v52  ;;  %v1939_v5 = vsel %vm823_vm0, %v1916_v60, 0  ;;  %v1743_v26 = vmul.f32 %v3997_v36, %v4669_v48 }
 0x5d2   : > { %3723 = vmatprep.subr.bf16.mxu1 %v1750_v35 }
 0x5d3   : > { %v1748_v49 = vpack.c.bf16 %v1744_v6, %v1743_v26  ;;  %v1912_v28 = vpop.permute.xlu1 %1911 }
 0x5d4   : > { %v1933_v24 = vsel %vm823_vm0, %v1912_v28, 0 }
 0x5d5   : > { %3724 = vmatpush3.bf16.msra.mxu1 %v1750_v35 }
 0x5d6   : > { %3801 = vmatprep.subr.msk.bf16.mxu1 %vm823_vm0, %v1916_v60 }
 0x5d7   : > { %v1910_v44 = vpop.permute.xlu1 %1909 }
 0x5d8   : > { %3726 = vmatmul.mubr.msk.bf16.vlgmr.msra.gmra.mxu1 %vm935_vm1, %v1746_v12  ;;  %v1930_v48 = vsel %vm823_vm0, %v1910_v44, 0 }
 0x5d9   : > { %3734 = vmatpush3.bf16.xpose.msra.mxu1 %v1939_v5  ;;  %3729 = vmatprep.mubr.msk.bf16.mxu1 %vm935_vm1, %v1747_v53 }
 0x5da   : > { %3802 = vmatprep.subr.msk.bf16.mxu1 %vm823_vm0, %v1914_v15 }
 0x5db   : > { %v1904_v55 = vpop.permute.xlu1 %1903 }
 0x5df   : > { %v1908_v54 = vpop.permute.xlu1 %1907 }
 0x5e0   : > { %3730 = vmatmul.mubr.msk.bf16.gmra.mxu1 %vm935_vm1, %v1748_v49 }
 0x5e1   : > { %3736 = vmatpush3.bf16.xpose.msra.mxu1 %v1936_v63  ;;  %3741 = vmatprep.mubr.msk.bf16.mxu1 %vm823_vm0, %v1902_v22 }
 0x5e2   : > { %3803 = vmatprep.subr.msk.bf16.mxu1 %vm823_vm0, %v1912_v28 }
 0x5e9   : > { %3738 = vmatpush3.bf16.xpose.msra.mxu1 %v1933_v24 }
 0x5ea   : > { %3804 = vmatprep.subr.msk.bf16.mxu1 %vm823_vm0, %v1910_v44 }
 0x5f1   : > { %3740 = vmatpush3.bf16.xpose.msra.mxu1 %v1930_v48 }
 0x5f8   : > { %3742 = vmatmul.mubr.msk.bf16.vlgmr.msra.gmra.mxu1 %vm823_vm0, %v1904_v55 }
 0x5f9   : > { %3745 = vmatprep.mubr.msk.bf16.mxu1 %vm823_vm0, %v1906_v9 }
 0x600   : > { %3746 = vmatmul.mubr.msk.bf16.gmra.mxu1 %vm823_vm0, %v1908_v54  ;;  %vm2261_vm0 = vcmask 1041152  }
 0x601   : > { %2708 = vmatprep.mubr.bf16.mxu1 %v4111_v2 }
 0x688   : > { %v4767_v17 = vpop.f32.mrf.mxu1 }
 0x68a   : > { %v4769_v62 = vpop.f32.mrf.mxu1 }
 0x68c   : > { %v4771_v45 = vpop.f32.mrf.mxu1 }
 0x68e   : > { %v4773_v33 = vpop.f32.mrf.mxu1 }
 0x690   : > { %v4775_v56 = vpop.f32.mrf.mxu1 }
 0x692   : > { %v4777_v32 = vpop.f32.mrf.mxu1 }
 0x694   : > { %v4779_v4 = vpop.f32.mrf.mxu1 }
 0x696   : > { %v4781_v43 = vpop.f32.mrf.mxu1 }
 0x698   : > { %v4783_v7 = vpop.f32.mrf.mxu1 }
 0x69a   : > { %v4785_v11 = vpop.f32.mrf.mxu1 }
 0x69c   : > { %v4787_v14 = vpop.f32.mrf.mxu1 }
 0x69e   : > { %v4789_v58 = vpop.f32.mrf.mxu1 }
 0x6a0   : > { %v4791_v47 = vpop.f32.mrf.mxu1 }
 0x6a2   : > { %v4793_v10 = vpop.f32.mrf.mxu1 }
 0x6a4   : > { %v4795_v59 = vpop.f32.mrf.mxu1 }
 0x6a6   : > { %v4797_v40 = vpop.f32.mrf.mxu1 }
 0x6b8   : > { %v3743_v25 = vpop.f32.mrf.mxu1 }
 0x6b9   : > { %v2008_v21 = vmul.f32 0.17677669, %v3743_v25 }
 0x6ba   : > { %v1975_v37 = vpop.f32.mrf.mxu1 }
 0x6bb   : > { %v2006_v20 = vmul.f32 0.17677669, %v1975_v37  ;;  %v2016_v1 = vadd.f32 %v4094_v23, %v2008_v21 }
 0x6bc   : > { %v3744_v13 = vpop.f32.mrf.mxu1 }
 0x6bd   : > { %v2014_v57 = vadd.f32 %v4094_v23, %v2006_v20  ;;  %v2009_v29 = vmul.f32 0.17677669, %v3744_v13  ;;  %v2028_v42 = vsel %vm935_vm1, %v2016_v1, -inf }
 0x6be   : > { %v1978_v27 = vpop.f32.mrf.mxu1 }
 0x6bf   : > { %v2007_v34 = vmul.f32 0.17677669, %v1978_v27  ;;  %v2022_v8 = vsel %vm935_vm1, %v2014_v57, -inf  ;;  %v2017_v18 = vadd.f32 %v4094_v23, %v2009_v29 }
 0x6c0   : > { %2023 = vmax.xlane.f32.xlu0 %v2022_v8  ;;  %v3747_v19 = vpop.f32.mrf.mxu1 }
 0x6c1   : > { %v2015_v46 = vadd.f32 %v4094_v23, %v2007_v34  ;;  %v2012_v0 = vmul.f32 0.17677669, %v3747_v19  ;;  %v2031_v5 = vsel %vm935_vm1, %v2017_v18, -inf }
 0x6c2   : > { %v1991_v35 = vpop.f32.mrf.mxu1 }
 0x6c3   : > { %v2010_v3 = vmul.f32 0.17677669, %v1991_v35  ;;  %v2025_v52 = vsel %vm935_vm1, %v2015_v46, -inf  ;;  %v2020_v49 = vadd.f32 %v4094_v23, %v2012_v0 }
 0x6c4   : > { %2029 = vmax.xlane.f32.xlu0 %v2028_v42  ;;  %2026 = vmax.xlane.f32.xlu1 %v2025_v52  ;;  %v3748_v60 = vpop.f32.mrf.mxu1 }
 0x6c5   : > { %v2013_v16 = vmul.f32 0.17677669, %v3748_v60  ;;  %v2018_v36 = vadd.f32 %v4094_v23, %v2010_v3  ;;  %v2040_v63 = vsel %vm935_vm1, %v2020_v49, -inf }
 0x6c6   : > { %v1994_v12 = vpop.f32.mrf.mxu1 }
 0x6c7   : > { %v2011_v53 = vmul.f32 0.17677669, %v1994_v12  ;;  %v2034_v6 = vsel %vm935_vm1, %v2018_v36, -inf  ;;  %v2021_v22 = vadd.f32 %v4094_v23, %v2013_v16 }
 0x6c8   : > { %2032 = vmax.xlane.f32.xlu0 %v2031_v5 }
 0x6c9   : > { %v2019_v15 = vadd.f32 %v4094_v23, %v2011_v53  ;;  %v2043_v28 = vsel %vm957_vm2, %v2021_v22, -inf }
 0x6cb   : > { %v2037_v26 = vsel %vm935_vm1, %v2019_v15, -inf }
 0x6cc   : > { %2035 = vmax.xlane.f32.xlu0 %v2034_v6  ;;  %2038 = vmax.xlane.f32.xlu1 %v2037_v26 }
 0x6d0   : > { %2041 = vmax.xlane.f32.xlu0 %v2040_v63  ;;  %2044 = vmax.xlane.f32.xlu1 %v2043_v28 }
 0x6e6   : > { %2120 = vrot.lane.b32.xlu0 %v4403_v38, %s4115_s24 }
 0x749   : > { %v2024_v24 = vpop.xlane.xlu0 %2023 }
 0x74a   : > { %v2046_v44 = vsub.f32 %v2014_v57, %v2024_v24 }
 0x74c   : > { %v2054_v54 = vmul.f32 1.442695, %v2046_v44  ;;  %v3461_v44 = vpack.c.bf16 %v4769_v62, %v4769_v62  ;;  %v3463_v62 = vpack.c.bf16 %v4767_v17, %v4767_v17  ;;  %v3471_v17 = vpack.c.bf16 %v4783_v7, %v4783_v7 }
 0x74d   : > { %v2030_v48 = vpop.xlane.xlu0 %2029  ;;  %v2027_v55 = vpop.xlane.xlu1 %2026 }
 0x74e   : > { %v2048_v9 = vsub.f32 %v2016_v1, %v2030_v48  ;;  %v2047_v37 = vsub.f32 %v2015_v46, %v2027_v55  ;;  %v3468_v48 = vpack.c.bf16 %v4779_v4, %v4779_v4  ;;  %v3464_v55 = vpack.c.bf16 %v4771_v45, %v4771_v45 }
 0x74f   : > { %v3472_v45 = vpack.c.bf16 %v4787_v14, %v4787_v14  ;;  %v3476_v4 = vpack.c.bf16 %v4795_v59, %v4795_v59 }
 0x750   : > { %v2058_v25 = vmul.f32 1.442695, %v2048_v9  ;;  %v2056_v13 = vmul.f32 1.442695, %v2047_v37 }
 0x751   : > { %v2033_v21 = vpop.xlane.xlu0 %2032 }
 0x752   : > { %3998 = vpow2.f32 %v2058_v25  ;;  %v2049_v20 = vsub.f32 %v2017_v18, %v2033_v21  ;;  %v1533_v21 = vld [vmem:[#allocation2 + $0x1c] sm:$0x1] }
 0x753   : > { %4000 = vpow2.f32 %v2054_v54 }
 0x754   : > { %v2060_v23 = vmul.f32 1.442695, %v2049_v20 }
 0x755   : > { %v2036_v27 = vpop.xlane.xlu0 %2035  ;;  %v2039_v29 = vpop.xlane.xlu1 %2038 }
 0x756   : > { %4002 = vpow2.f32 %v2060_v23  ;;  %v2050_v34 = vsub.f32 %v2018_v36, %v2036_v27  ;;  %v2051_v52 = vsub.f32 %v2019_v15, %v2039_v29 }
 0x757   : > { %4004 = vpow2.f32 %v2056_v13 }
 0x758   : > { %v2062_v19 = vmul.f32 1.442695, %v2050_v34  ;;  %v2064_v16 = vmul.f32 1.442695, %v2051_v52 }
 0x759   : > { %v2042_v38 = vpop.xlane.xlu0 %2041  ;;  %v2045_v8 = vpop.xlane.xlu1 %2044 }
 0x75a   : > { %v2052_v57 = vsub.f32 %v2020_v49, %v2042_v38  ;;  %v2053_v1 = vsub.f32 %v2021_v22, %v2045_v8 }
 0x75c   : > { %v2066_v35 = vmul.f32 1.442695, %v2052_v57  ;;  %v2068_v18 = vmul.f32 1.442695, %v2053_v1 }
 0x75d   : > { %v2121_v3 = vpop.permute.xlu0 %2120 }
 0x75e   : > { %4006 = vpow2.f32 %v2066_v35  ;;  %v2138_v46 = vand.u32 %v2121_v3, %v4405_v39 }
 0x75f   : > { %v4811_v42 = vpop.eup %3998  ;;  %4008 = vpow2.f32 %v2062_v19 }
 0x760   : > { %3749 = vmatprep.subr.bf16.mxu0 %v2138_v46  ;;  %v2076_v60 = vsel %vm935_vm1, %v4811_v42, 0.0  ;;  %v4815_v0 = vpop.eup %4000  ;;  %4010 = vpow2.f32 %v2068_v18 }
 0x761   : > { %2077 = vadd.xlane.f32.xlu0 %v2076_v60  ;;  %3750 = vmatpush3.bf16.msra.mxu0 %v2138_v46  ;;  %v2070_v39 = vsel %vm935_vm1, %v4815_v0, 0.0  ;;  %4012 = vpow2.f32 %v2064_v16 }
 0x763   : > { %v4817_v12 = vpop.eup %4002 }
 0x764   : > { %v2079_v53 = vsel %vm935_vm1, %v4817_v12, 0.0  ;;  %v4823_v5 = vpop.eup %4004 }
 0x765   : > { %2071 = vadd.xlane.f32.xlu0 %v2070_v39  ;;  %2080 = vadd.xlane.f32.xlu1 %v2079_v53  ;;  %v2073_v36 = vsel %vm935_vm1, %v4823_v5, 0.0 }
 0x769   : > { %2074 = vadd.xlane.f32.xlu1 %v2073_v36 }
 0x76b   : > { %v4827_v15 = vpop.eup %4006 }
 0x76c   : > { %v2088_v6 = vsel %vm935_vm1, %v4827_v15, 0.0  ;;  %v4831_v26 = vpop.eup %4008 }
 0x76d   : > { %2089 = vadd.xlane.f32.xlu1 %v2088_v6  ;;  %v2082_v49 = vsel %vm935_vm1, %v4831_v26, 0.0  ;;  %v4835_v22 = vpop.eup %4010 }
 0x76e   : > { %v2091_v63 = vsel %vm957_vm2, %v4835_v22, 0.0  ;;  %v4839_v28 = vpop.eup %4012  ;;  %vm2456_vm2 = vcmask 1040384  }
 0x76f   : > { %v2085_v24 = vsel %vm935_vm1, %v4839_v28, 0.0 }
 0x771   : > { %2083 = vadd.xlane.f32.xlu1 %v2082_v49 }
 0x775   : > { %2092 = vadd.xlane.f32.xlu1 %v2091_v63 }
 0x779   : > { %2086 = vadd.xlane.f32.xlu1 %v2085_v24 }
 0x77b   : > { %2116 = vrot.lane.b32.xlu0 %v4418_v51, %s4115_s24  ;;  %v3462_v51 = vpack.c.bf16 %v4773_v33, %v4773_v33  ;;  %v3465_v33 = vpack.c.bf16 %v4777_v32, %v4777_v32 }
 0x77f   : > { %2114 = vrot.lane.b32.xlu0 %v4429_v61, %s4115_s24  ;;  %v3470_v61 = vpack.c.bf16 %v4789_v58, %v4789_v58 }
 0x783   : > { %1499 = vrot.lane.b32.xlu0 %v3461_v44, %s4115_s24 }
 0x787   : > { %1513 = vrot.lane.b32.xlu0 %v3468_v48, %s4115_s24 }
 0x78a   : > { %2118 = vrot.lane.b32.xlu1 %v4407_v41, %s4115_s24  ;;  %v3469_v41 = vpack.c.bf16 %v4785_v11, %v4785_v11 }
 0x78b   : > { %1505 = vrot.lane.b32.xlu0 %v3464_v55, %s4115_s24 }
 0x78e   : > { %1501 = vrot.lane.b32.xlu1 %v3462_v51, %s4115_s24 }
 0x78f   : > { %1866 = vrot.lane.b32.xlu0 %v3470_v61, %s4114_s23  ;;  %v3850_v61 = vld [vmem:[%s5362_s4 + $0x38] sm:$0xff]  }
 0x792   : > { %1503 = vrot.lane.b32.xlu1 %v3463_v62, %s4115_s24  ;;  %v3853_v62 = vld [vmem:[%s5362_s4 + $0x20] sm:$0xff]  }
 0x793   : > { %1870 = vrot.lane.b32.xlu0 %v3472_v45, %s4114_s23  ;;  %v3854_v45 = vld [vmem:[%s5362_s4 + $0x18] sm:$0xff]  }
 0x796   : > { %1864 = vrot.lane.b32.xlu1 %v3469_v41, %s4114_s23  ;;  %v3855_v41 = vld [vmem:[%s5362_s4 + $0x10] sm:$0xff]  }
 0x797   : > { %1507 = vrot.lane.b32.xlu0 %v3465_v33, %s4115_s24  ;;  %v3856_v33 = vld [vmem:[%s5362_s4 + $0x8] sm:$0xff]  }
 0x79a   : > { %1868 = vrot.lane.b32.xlu1 %v3471_v17, %s4114_s23 }
 0x79e   : > { %1878 = vrot.lane.b32.xlu1 %v3476_v4, %s4114_s23 }
 0x7ea   : > { %v2078_v14 = vpop.xlane.xlu0 %2077 }
 0x7ee   : > { %v2072_v58 = vpop.xlane.xlu0 %2071  ;;  %v2081_v11 = vpop.xlane.xlu1 %2080 }
 0x7ef   : > { %4014 = vrcp.f32 %v2072_v58  ;;  %v3857_v58 = vld [vmem:[%s5362_s4] sm:$0xff]  }
 0x7f2   : > { %v2117_v9 = vpop.permute.xlu0 %2116  ;;  %v2075_v32 = vpop.xlane.xlu1 %2074 }
 0x7f3   : > { %4016 = vrcp.f32 %v2075_v32 }
 0x7f4   : > { %4018 = vrcp.f32 %v2081_v11 }
 0x7f5   : > { %4020 = vrcp.f32 %v2078_v14 }
 0x7f6   : > { %v2115_v54 = vpop.permute.xlu0 %2114  ;;  %v2090_v25 = vpop.xlane.xlu1 %2089 }
 0x7fa   : > { %v1500_v37 = vpop.permute.xlu0 %1499  ;;  %v2084_v7 = vpop.xlane.xlu1 %2083 }
 0x7fb   : > { %1524 = vst.msk [vmem:[#allocation2] sm:$0xf] %vm1523_vm9, %v1500_v37  ;;  %4022 = vrcp.f32 %v2084_v7  ;;  %v3466_v37 = vpack.c.bf16 %v4781_v43, %v4781_v43  ;;  %v3475_v43 = vpack.c.bf16 %v4791_v47, %v4791_v47 }
 0x7fc   : > { %v4015_v59 = vpop.eup %4014 }
 0x7fd   : > { %v2102_v29 = vmul.f32 %v4015_v59, %v4815_v0 }
 0x7fe   : > { %v1514_v20 = vpop.permute.xlu0 %1513  ;;  %v2093_v13 = vpop.xlane.xlu1 %2092 }
 0x7ff   : > { %v1534_v23 = vsel %vm1532_vm11, %v1514_v20, %v1533_v21  ;;  %v3467_v21 = vpack.c.bf16 %v4775_v56, %v4775_v56  ;;  %v3473_v20 = vpack.c.bf16 %v4793_v10, %v4793_v10 }
 0x800   : > { %v4017_v27 = vpop.eup %4016  ;;  %1535 = vst [vmem:[#allocation2 + $0x1c] sm:$0x1] %v1534_v23  ;;  %v3474_v23 = vpack.c.bf16 %v4797_v40, %v4797_v40 }
 0x801   : > { %v2103_v34 = vmul.f32 %v4017_v27, %v4823_v5  ;;  %v4019_v1 = vpop.eup %4018 }
 0x802   : > { %v1506_v38 = vpop.permute.xlu0 %1505  ;;  %v2087_v8 = vpop.xlane.xlu1 %2086  ;;  %v2105_v18 = vmul.f32 %v4019_v1, %v4817_v12 }
 0x803   : > { %1527 = vst.msk [vmem:[#allocation2 + $0xc] sm:$0xf] %vm1523_vm9, %v1506_v38  ;;  %4024 = vrcp.f32 %v2087_v8  ;;  %v2110_v57 = vpack.c.bf16 %v2103_v34, %v2102_v29  ;;  %v4021_v52 = vpop.eup %4020 }
 0x804   : > { %4026 = vrcp.f32 %v2093_v13  ;;  %v2104_v39 = vmul.f32 %v4021_v52, %v4811_v42 }
 0x805   : > { %3757 = vmatprep.mubr.msk.bf16.mxu0 %vm935_vm1, %v2110_v57  ;;  %4028 = vrcp.f32 %v2090_v25 }
 0x806   : > { %v1867_v19 = vpop.permute.xlu0 %1866  ;;  %v2119_v35 = vpop.permute.xlu1 %2118  ;;  %v2111_v5 = vpack.c.bf16 %v2105_v18, %v2104_v39 }
 0x807   : > { %3751 = vmatprep.subr.bf16.mxu0 %v2119_v35  ;;  %v1898_v48 = vld [vmem:[#allocation2 + $0x1c] sm:$0x1] }
 0x808   : > { %3752 = vmatpush3.bf16.msra.mxu0 %v2119_v35  ;;  %v4023_v60 = vpop.eup %4022 }
 0x809   : > { %3753 = vmatprep.subr.bf16.mxu0 %v2117_v9  ;;  %v2106_v36 = vmul.f32 %v4023_v60, %v4831_v26 }
 0x80a   : > { %v1871_v3 = vpop.permute.xlu0 %1870  ;;  %v1502_v46 = vpop.permute.xlu1 %1501 }
 0x80b   : > { %1892 = vst.msk [vmem:[#allocation2 + $0xc] sm:$0xf] %vm1888_vm12, %v1871_v3 }
 0x80c   : > { %1525 = vst.msk [vmem:[#allocation2 + $0x4] sm:$0xf] %vm1523_vm9, %v1502_v46  ;;  %3754 = vmatpush3.bf16.msra.mxu0 %v2117_v9 }
 0x80d   : > { %1890 = vst.msk [vmem:[#allocation2 + $0x4] sm:$0xf] %vm1888_vm12, %v1867_v19  ;;  %3755 = vmatprep.subr.bf16.mxu0 %v2115_v54 }
 0x80e   : > { %v1508_v0 = vpop.permute.xlu0 %1507  ;;  %v1504_v16 = vpop.permute.xlu1 %1503 }
 0x80f   : > { %1528 = vst.msk [vmem:[#allocation2 + $0x10] sm:$0xf] %vm1523_vm9, %v1508_v0  ;;  %1526 = vst.msk [vmem:[#allocation2 + $0x8] sm:$0xf] %vm1523_vm9, %v1504_v16 }
 0x810   : > { %v4025_v53 = vpop.eup %4024  ;;  %3756 = vmatpush3.bf16.msra.mxu0 %v2115_v54 }
 0x811   : > { %v2107_v6 = vmul.f32 %v4025_v53, %v4839_v28  ;;  %v4027_v49 = vpop.eup %4026  ;;  %3765 = vmatprep.subr.bf16.mxu0 %v3850_v61 }
 0x812   : > { %v1865_v63 = vpop.permute.xlu1 %1864  ;;  %v4029_v24 = vpop.eup %4028  ;;  %v2109_v42 = vmul.f32 %v4027_v49, %v4835_v22  ;;  %v3851_v22 = vld [vmem:[%s5362_s4 + $0x30] sm:$0xff]   ;;  %v3399_v49 = vld [vmem:[%s5363_s5] ss:$0 sm:$0xff] }
 0x813   : > { %1889 = vst.msk [vmem:[#allocation2] sm:$0xf] %vm1888_vm12, %v1865_v63  ;;  %3758 = vmatmul.mubr.msk.bf16.vlgmr.msra.gmra.mxu0 %vm935_vm1, %v2111_v5  ;;  %v2112_v12 = vpack.c.bf16 %v2107_v6, %v2106_v36  ;;  %v2108_v26 = vmul.f32 %v4029_v24, %v4827_v15  ;;  %v3852_v15 = vld [vmem:[%s5362_s4 + $0x28] sm:$0xff]  }
 0x814   : > { %3766 = vmatpush3.bf16.msra.mxu0 %v3850_v61 }
 0x815   : > { %3761 = vmatprep.mubr.msk.bf16.mxu0 %vm935_vm1, %v2112_v12  ;;  %v2113_v28 = vpack.c.bf16 %v2109_v42, %v2108_v26  ;;  %3767 = vmatprep.subr.bf16.mxu0 %v3851_v22 }
 0x816   : > { %v1869_v44 = vpop.permute.xlu1 %1868 }
 0x817   : > { %1891 = vst.msk [vmem:[#allocation2 + $0x8] sm:$0xf] %vm1888_vm12, %v1869_v44  ;;  %v4095_v44 = vld [vmem:[%s4226_s16] sm:$0xff] }
 0x818   : > { %3768 = vmatpush3.bf16.msra.mxu0 %v3851_v22  ;;  %v4097_v22 = vld [vmem:[%s4226_s16 + $0x8] sm:$0xff] }
 0x819   : > { %3769 = vmatprep.subr.bf16.mxu0 %v3852_v15 }
 0x81a   : > { %v1879_v55 = vpop.permute.xlu1 %1878 }
 0x81b   : > { %v1899_v51 = vsel %vm1897_vm14, %v1879_v55, %v1898_v48  ;;  %3762 = vmatmul.mubr.msk.bf16.gmra.mxu0 %vm935_vm1, %v2113_v28  ;;  %vm2262_vm1 = vmand %vm2261_vm0, %vm1154_vm7  ;;  %v4096_v55 = vld [vmem:[%s4226_s16 + $0x10] sm:$0xff] }
 0x81c   : > { %1900 = vst [vmem:[#allocation2 + $0x1c] sm:$0x1] %v1899_v51  ;;  %3770 = vmatpush3.bf16.msra.mxu0 %v3852_v15 }
 0x81d   : > { %3771 = vmatprep.subr.bf16.mxu0 %v3853_v62 }
 0x820   : > { %3772 = vmatpush3.bf16.msra.mxu0 %v3853_v62  ;;  %v4098_v62 = vld [vmem:[%s4226_s16 + $0x18] sm:$0xff] }
 0x821   : > { %3773 = vmatprep.subr.bf16.mxu0 %v3854_v45 }
 0x823   : > { %v2263_v16 = vld [vmem:[#allocation2 + $0x1c] sm:$0x1] }
 0x824   : > { %3774 = vmatpush3.bf16.msra.mxu0 %v3854_v45 }
 0x825   : > { %3775 = vmatprep.subr.bf16.mxu0 %v3855_v41 }
 0x828   : > { %3776 = vmatpush3.bf16.msra.mxu0 %v3855_v41 }
 0x829   : > { %3777 = vmatprep.subr.bf16.mxu0 %v3856_v33 }
 0x82c   : > { %3778 = vmatpush3.bf16.msra.mxu0 %v3856_v33 }
 0x82d   : > { %3779 = vmatprep.subr.bf16.mxu0 %v3857_v58 }
 0x830   : > { %3780 = vmatpush3.bf16.msra.mxu0 %v3857_v58 }
 0x8d3   : > { %v3759_v17 = vpop.f32.mrf.mxu0 }
 0x8d4   : > { %v3479_v4 = vpack.c.bf16 %v3759_v17, %v3759_v17 }
 0x8d5   : > { %v2174_v14 = vpop.f32.mrf.mxu0 }
 0x8d6   : > { %2233 = vrot.lane.b32.xlu1 %v3479_v4, %s4112_s22  ;;  %v3477_v9 = vpack.c.bf16 %v2174_v14, %v2174_v14  ;;  %v4099_v14 = vld [vmem:[%s4226_s16 + $0x20] sm:$0xff] }
 0x8d7   : > { %v3760_v11 = vpop.f32.mrf.mxu0 }
 0x8d8   : > { %v3480_v32 = vpack.c.bf16 %v3760_v11, %v3760_v11 }
 0x8d9   : > { %v2177_v54 = vpop.f32.mrf.mxu0 }
 0x8da   : > { %2229 = vrot.lane.b32.xlu1 %v3477_v9, %s4112_s22  ;;  %2235 = vrot.lane.b32.xlu0 %v3480_v32, %s4112_s22  ;;  %v3478_v7 = vpack.c.bf16 %v2177_v54, %v2177_v54  ;;  %v4100_v32 = vld [vmem:[%s4226_s16 + $0x38] sm:$0x1] }
 0x8db   : > { %v3763_v25 = vpop.f32.mrf.mxu0 }
 0x8dc   : > { %v3483_v10 = vpack.c.bf16 %v3763_v25, %v3763_v25 }
 0x8dd   : > { %v2190_v59 = vpop.f32.mrf.mxu0 }
 0x8de   : > { %1509 = vrot.lane.b32.xlu1 %v3466_v37, %s4115_s24  ;;  %2231 = vrot.lane.b32.xlu0 %v3478_v7, %s4112_s22  ;;  %v3481_v56 = vpack.c.bf16 %v2190_v59, %v2190_v59  ;;  %v4101_v7 = vld [vmem:[%s4226_s16 + $0x28] sm:$0xff] }
 0x8df   : > { %v3764_v13 = vpop.f32.mrf.mxu0 }
 0x8e0   : > { %v3484_v34 = vpack.c.bf16 %v3764_v13, %v3764_v13 }
 0x8e1   : > { %v2193_v27 = vpop.f32.mrf.mxu0 }
 0x8e2   : > { %1872 = vrot.lane.b32.xlu1 %v3473_v20, %s4114_s23  ;;  %1511 = vrot.lane.b32.xlu0 %v3467_v21, %s4115_s24  ;;  %v3482_v29 = vpack.c.bf16 %v2193_v27, %v2193_v27  ;;  %v4102_v20 = vld [vmem:[%s4226_s16 + $0x30] sm:$0xff]  ;;  %s5338_s24 = scalar_lea.vmem %s5372_s14, %s3451_s25 }
 0x8e6   : > { %1876 = vrot.lane.b32.xlu1 %v3475_v43, %s4114_s23  ;;  %1874 = vrot.lane.b32.xlu0 %v3474_v23, %s4114_s23  ;;  %v3862_v43 = vld [vmem:[%s5366_s8 + $0x70] ss:$8 sps:$4 sm:$0xff]   ;;  %v3864_v23 = vld [vmem:[%s5366_s8 + $0x74] ss:$8 sps:$4 sm:$0xff]  }
 0x8e7   : > { %2676 = vmatprep.subr.bf16.mxu1 %v3864_v23 }
 0x8e8   : > { %2677 = vmatpush1.bf16.msra.mxu1 %v3862_v43 }
 0x8ea   : > { %2237 = vrot.lane.b32.xlu0 %v3481_v56, %s4112_s22  ;;  %2239 = vrot.lane.b32.xlu1 %v3482_v29, %s4112_s22 }
 0x8ee   : > { %2243 = vrot.lane.b32.xlu0 %v3484_v34, %s4112_s22  ;;  %2241 = vrot.lane.b32.xlu1 %v3483_v10, %s4112_s22 }
 0x948   : > { %v2234_v47 = vpop.permute.xlu1 %2233 }
 0x949   : > { %2256 = vst.msk [vmem:[#allocation2 + $0x8] sm:$0xf] %vm2253_vm15, %v2234_v47 }
 0x94c   : > { %v2236_v40 = vpop.permute.xlu0 %2235  ;;  %v2230_v38 = vpop.permute.xlu1 %2229 }
 0x94d   : > { %2257 = vst.msk [vmem:[#allocation2 + $0xc] sm:$0xf] %vm2253_vm15, %v2236_v40  ;;  %2254 = vst.msk [vmem:[#allocation2] sm:$0xf] %vm2253_vm15, %v2230_v38 }
 0x950   : > { %v2232_v8 = vpop.permute.xlu0 %2231  ;;  %v1510_v57 = vpop.permute.xlu1 %1509 }
 0x951   : > { %2255 = vst.msk [vmem:[#allocation2 + $0x4] sm:$0xf] %vm2253_vm15, %v2232_v8 }
 0x952   : > { %1529 = vst.msk [vmem:[#allocation2 + $0x14] sm:$0xf] %vm1523_vm9, %v1510_v57 }
 0x954   : > { %v1512_v19 = vpop.permute.xlu0 %1511  ;;  %v1873_v35 = vpop.permute.xlu1 %1872  ;;  %v3859_v52 = vld [vmem:[#allocation2 + $0x8] sm:$0xff]  }
 0x955   : > { %1530 = vst.msk [vmem:[#allocation2 + $0x18] sm:$0xf] %vm1523_vm9, %v1512_v19 }
 0x956   : > { %1893 = vst.msk [vmem:[#allocation2 + $0x10] sm:$0xf] %vm1888_vm12, %v1873_v35 }
 0x958   : > { %v1875_v1 = vpop.permute.xlu0 %1874  ;;  %v1877_v3 = vpop.permute.xlu1 %1876  ;;  %v3858_v46 = vld [vmem:[#allocation2] sm:$0xff]  }
 0x959   : > { %1894 = vst.msk [vmem:[#allocation2 + $0x14] sm:$0xf] %vm1888_vm12, %v1875_v1  ;;  %1895 = vst.msk [vmem:[#allocation2 + $0x18] sm:$0xf] %vm1888_vm12, %v1877_v3  ;;  %3781 = vmatprep.mubr.bf16.mxu0 %v3858_v46 }
 0x95a   : > { %3782 = vmatmul.mubr.bf16.vlgmr.msra.gmra.mxu0 %v3859_v52 }
 0x95c   : > { %v2238_v18 = vpop.permute.xlu0 %2237  ;;  %v2240_v60 = vpop.permute.xlu1 %2239 }
 0x95d   : > { %2258 = vst.msk [vmem:[#allocation2 + $0x10] sm:$0xf] %vm2253_vm15, %v2238_v18  ;;  %2259 = vst.msk [vmem:[#allocation2 + $0x14] sm:$0xf] %vm2253_vm15, %v2240_v60 }
 0x960   : > { %v2244_v0 = vpop.permute.xlu0 %2243  ;;  %v2242_v39 = vpop.permute.xlu1 %2241 }
 0x961   : > { %v2264_v53 = vsel %vm2262_vm1, %v2244_v0, %v2263_v16  ;;  %2260 = vst.msk [vmem:[#allocation2 + $0x18] sm:$0xf] %vm2253_vm15, %v2242_v39  ;;  %v3867_v0 = vld [vmem:[%s5366_s8 + $0x64] ss:$8 sps:$4 sm:$0xff]   ;;  %v3865_v39 = vld [vmem:[%s5366_s8 + $0x60] ss:$8 sps:$4 sm:$0xff]  }
 0x962   : > { %2265 = vst [vmem:[#allocation2 + $0x1c] sm:$0x1] %v2264_v53  ;;  %2678 = vmatprep.subr.bf16.mxu1 %v3867_v0 }
 0x963   : > { %2679 = vmatpush1.bf16.msra.mxu1 %v3865_v39 }
 0x964   : > { %v3860_v5 = vld [vmem:[#allocation2 + $0x10] sm:$0xff]  }
 0x965   : > { %3785 = vmatprep.mubr.bf16.mxu0 %v3860_v5 }
 0x969   : > { %v3861_v36 = vld [vmem:[#allocation2 + $0x18] sm:$0x1f]  }
 0x96a   : > { %3786 = vmatmul.mubr.bf16.gmra.mxu0 %v3861_v36 }
 0xa1a   : > { %v3783_v6 = vpop.f32.mrf.mxu0 }
 0xa1b   : > { %v2412_v42 = vadd.f32 %v3783_v6, %v3399_v49 }
 0xa1c   : > { %v2403_v63 = vpop.f32.mrf.mxu0 }
 0xa1d   : > { %v2404_v12 = vadd.f32 %v3399_v49, %v2403_v63  ;;  %v2436_v51 = vadd.f32 %v4096_v55, %v2412_v42  ;;  %v3870_v63 = vld [vmem:[%s5366_s8 + $0x54] ss:$8 sps:$4 sm:$0xff]   ;;  %v3868_v42 = vld [vmem:[%s5366_s8 + $0x50] ss:$8 sps:$4 sm:$0xff]   ;;  %v3873_v55 = vld [vmem:[%s5366_s8 + $0x44] ss:$8 sps:$4 sm:$0xff]  }
 0xa1e   : > { %v3784_v24 = vpop.f32.mrf.mxu0  ;;  %2680 = vmatprep.subr.bf16.mxu1 %v3870_v63 }
 0xa1f   : > { %v2434_v26 = vadd.f32 %v4095_v44, %v2404_v12  ;;  %v2415_v61 = vadd.f32 %v3784_v24, %v3399_v49  ;;  %2681 = vmatpush1.bf16.msra.mxu1 %v3868_v42 }
 0xa20   : > { %v2406_v28 = vpop.f32.mrf.mxu0  ;;  %2682 = vmatprep.subr.bf16.mxu1 %v3873_v55 }
 0xa21   : > { %v2407_v48 = vadd.f32 %v3399_v49, %v2406_v28  ;;  %2442 = vadd.xlane.f32.xlu0 %v2434_v26  ;;  %v2437_v45 = vadd.f32 %v4098_v62, %v2415_v61  ;;  %v3871_v61 = vld [vmem:[%s5366_s8 + $0x40] ss:$8 sps:$4 sm:$0xff]   ;;  %v3876_v62 = vld [vmem:[%s5366_s8 + $0x34] ss:$8 sps:$4 sm:$0xff]  }
 0xa23   : > { %v2435_v15 = vadd.f32 %v4097_v22, %v2407_v48  ;;  %2683 = vmatpush1.bf16.msra.mxu1 %v3871_v61 }
 0xa24   : > { %2684 = vmatprep.subr.bf16.mxu1 %v3876_v62 }
 0xa25   : > { %2444 = vadd.xlane.f32.xlu1 %v2435_v15  ;;  %2446 = vadd.xlane.f32.xlu0 %v2436_v51 }
 0xa29   : > { %2448 = vadd.xlane.f32.xlu0 %v2437_v45 }
 0xa2a   : > { %v3787_v41 = vpop.f32.mrf.mxu0 }
 0xa2b   : > { %v2428_v37 = vadd.f32 %v3787_v41, %v3399_v49  ;;  %v3879_v41 = vld [vmem:[%s5366_s8 + $0x24] ss:$8 sps:$4 sm:$0xff]  }
 0xa2c   : > { %v2419_v33 = vpop.f32.mrf.mxu0 }
 0xa2d   : > { %v2420_v17 = vadd.f32 %v3399_v49, %v2419_v33  ;;  %v2440_v13 = vadd.f32 %v4102_v20, %v2428_v37  ;;  %v3877_v33 = vld [vmem:[%s5366_s8 + $0x20] ss:$8 sps:$4 sm:$0xff]  }
 0xa2e   : > { %v3788_v4 = vpop.f32.mrf.mxu0 }
 0xa2f   : > { %v2438_v58 = vadd.f32 %v4099_v14, %v2420_v17  ;;  %v2431_v11 = vadd.f32 %v3788_v4, %v3399_v49  ;;  %v3882_v17 = vld [vmem:[%s5366_s8 + $0x14] ss:$8 sps:$4 sm:$0xff]   ;;  %v3880_v4 = vld [vmem:[%s5366_s8 + $0x10] ss:$8 sps:$4 sm:$0xff]   ;;  %v3885_v14 = vld [vmem:[%s5366_s8 + $0x4] ss:$8 sps:$4 sm:$0xff]  }
 0xa30   : > { %v2422_v9 = vpop.f32.mrf.mxu0 }
 0xa31   : > { %v2441_v54 = vadd.f32 %v4100_v32, %v2431_v11  ;;  %v2423_v25 = vadd.f32 %v3399_v49, %v2422_v9  ;;  %2450 = vadd.xlane.f32.xlu0 %v2438_v58 }
 0xa33   : > { %v2439_v59 = vadd.f32 %v4101_v7, %v2423_v25  ;;  %v2457_v21 = vsel %vm2456_vm2, %v2441_v54, 0.0 }
 0xa35   : > { %2452 = vadd.xlane.f32.xlu1 %v2439_v59  ;;  %2458 = vadd.xlane.f32.xlu0 %v2457_v21 }
 0xa39   : > { %2454 = vadd.xlane.f32.xlu1 %v2440_v13 }
 0xaaa   : > { %v2443_v27 = vpop.xlane.xlu0 %2442 }
 0xaab   : > { %v2461_v56 = vmul.f32 0.0078125, %v2443_v27 }
 0xaad   : > { %v4983_v29 = vsub.f32 %v2434_v26, %v2461_v56 }
 0xaae   : > { %v2447_v10 = vpop.xlane.xlu0 %2446  ;;  %v2445_v34 = vpop.xlane.xlu1 %2444 }
 0xaaf   : > { %v2463_v47 = vmul.f32 0.0078125, %v2447_v10  ;;  %v2462_v40 = vmul.f32 0.0078125, %v2445_v34  ;;  %v2477_v38 = vmul.f32 %v4983_v29, %v4983_v29 }
 0xab1   : > { %v4987_v8 = vsub.f32 %v2436_v51, %v2463_v47  ;;  %v4989_v57 = vsub.f32 %v2435_v15, %v2462_v40  ;;  %2485 = vadd.xlane.f32.xlu0 %v2477_v38  ;;  %v3412_v38 = vld [vmem:[%s5364_s6] ss:$0 sm:$0xff] }
 0xab2   : > { %v2449_v19 = vpop.xlane.xlu0 %2448 }
 0xab3   : > { %v2464_v35 = vmul.f32 0.0078125, %v2449_v19  ;;  %v2479_v1 = vmul.f32 %v4987_v8, %v4987_v8  ;;  %v2478_v3 = vmul.f32 %v4989_v57, %v4989_v57 }
 0xab5   : > { %v4995_v46 = vsub.f32 %v2437_v45, %v2464_v35  ;;  %2489 = vadd.xlane.f32.xlu0 %v2479_v1  ;;  %2487 = vadd.xlane.f32.xlu1 %v2478_v3  ;;  %v3874_v45 = vld [vmem:[%s5366_s8 + $0x30] ss:$8 sps:$4 sm:$0xff]  }
 0xab6   : > { %2685 = vmatpush1.bf16.msra.mxu1 %v3874_v45 }
 0xab7   : > { %v2480_v52 = vmul.f32 %v4995_v46, %v4995_v46  ;;  %2686 = vmatprep.subr.bf16.mxu1 %v3879_v41 }
 0xab9   : > { %2491 = vadd.xlane.f32.xlu1 %v2480_v52 }
 0xaba   : > { %v2451_v18 = vpop.xlane.xlu0 %2450  ;;  %2687 = vmatpush1.bf16.msra.mxu1 %v3877_v33 }
 0xabb   : > { %v2465_v60 = vmul.f32 0.0078125, %v2451_v18  ;;  %2688 = vmatprep.subr.bf16.mxu1 %v3882_v17 }
 0xabd   : > { %v5002_v16 = vsub.f32 %v2438_v58, %v2465_v60  ;;  %v3883_v58 = vld [vmem:[%s5366_s8] ss:$8 sps:$4 sm:$0xff]  }
 0xabe   : > { %v2459_v53 = vpop.xlane.xlu0 %2458  ;;  %v2453_v5 = vpop.xlane.xlu1 %2452  ;;  %2689 = vmatpush1.bf16.msra.mxu1 %v3880_v4 }
 0xabf   : > { %v2468_v36 = vmul.f32 0.0078125, %v2459_v53  ;;  %v2466_v6 = vmul.f32 0.0078125, %v2453_v5  ;;  %v2481_v49 = vmul.f32 %v5002_v16, %v5002_v16  ;;  %2690 = vmatprep.subr.bf16.mxu1 %v3885_v14 }
 0xac1   : > { %v5012_v12 = vsub.f32 %v2441_v54, %v2468_v36  ;;  %v5014_v24 = vsub.f32 %v2439_v59, %v2466_v6  ;;  %2493 = vadd.xlane.f32.xlu0 %v2481_v49 }
 0xac2   : > { %v2455_v44 = vpop.xlane.xlu1 %2454  ;;  %2691 = vmatpush1.bf16.msra.mxu1 %v3883_v58 }
 0xac3   : > { %v2467_v26 = vmul.f32 0.0078125, %v2455_v44  ;;  %v2482_v28 = vmul.f32 %v5014_v24, %v5014_v24  ;;  %v2484_v48 = vmul.f32 %v5012_v12, %v5012_v12 }
 0xac5   : > { %v5026_v51 = vsub.f32 %v2440_v13, %v2467_v26  ;;  %2495 = vadd.xlane.f32.xlu1 %v2482_v28  ;;  %v2499_v15 = vsel %vm2456_vm2, %v2484_v48, 0.0 }
 0xac7   : > { %v2483_v22 = vmul.f32 %v5026_v51, %v5026_v51 }
 0xac9   : > { %2500 = vadd.xlane.f32.xlu1 %v2499_v15  ;;  %2497 = vadd.xlane.f32.xlu0 %v2483_v22 }
 0xb3a   : > { %v2486_v11 = vpop.xlane.xlu0 %2485 }
 0xb3b   : > { %v2502_v9 = vmul.f32 0.0078125, %v2486_v11 }
 0xb3d   : > { %v2510_v32 = vadd.f32 1e-05, %v2502_v9 }
 0xb3e   : > { %v2490_v54 = vpop.xlane.xlu0 %2489  ;;  %v2488_v25 = vpop.xlane.xlu1 %2487 }
 0xb3f   : > { %4030 = vrsqrt.f32 %v2510_v32  ;;  %v2504_v37 = vmul.f32 0.0078125, %v2490_v54  ;;  %v2503_v7 = vmul.f32 0.0078125, %v2488_v25  ;;  %v3889_v25 = vld [vmem:[%s5368_s10 + $0x30] sm:$0xff]  }
 0xb41   : > { %v2511_v59 = vadd.f32 1e-05, %v2503_v7  ;;  %v2512_v21 = vadd.f32 1e-05, %v2504_v37  ;;  %v3890_v37 = vld [vmem:[%s5368_s10 + $0x68] sm:$0xff]  }
 0xb42   : > { %v2492_v20 = vpop.xlane.xlu1 %2491  ;;  %v3891_v7 = vld [vmem:[%s5368_s10 + $0x28] sm:$0xff]  }
 0xb43   : > { %v2505_v13 = vmul.f32 0.0078125, %v2492_v20  ;;  %4032 = vrsqrt.f32 %v2511_v59  ;;  %v3892_v59 = vld [vmem:[%s5368_s10 + $0x60] sm:$0xff]   ;;  %v3894_v20 = vld [vmem:[%s5368_s10 + $0x58] sm:$0xff]  }
 0xb44   : > { %4034 = vrsqrt.f32 %v2512_v21  ;;  %v3893_v21 = vld [vmem:[%s5368_s10 + $0x20] sm:$0xff]  }
 0xb45   : > { %v2513_v43 = vadd.f32 1e-05, %v2505_v13  ;;  %v3895_v13 = vld [vmem:[%s5368_s10 + $0x18] sm:$0xff]  }
 0xb47   : > { %4036 = vrsqrt.f32 %v2513_v43  ;;  %v3896_v43 = vld [vmem:[%s5368_s10 + $0x50] sm:$0xff]  }
 0xb4a   : > { %v2494_v23 = vpop.xlane.xlu0 %2493 }
 0xb4b   : > { %v2506_v27 = vmul.f32 0.0078125, %v2494_v23  ;;  %v3897_v23 = vld [vmem:[%s5368_s10 + $0x10] sm:$0xff]  }
 0xb4c   : > { %v4031_v56 = vpop.eup %4030 }
 0xb4d   : > { %v2514_v10 = vadd.f32 1e-05, %v2506_v27  ;;  %v2526_v34 = vmul.f32 %v4031_v56, %v4983_v29  ;;  %v3413_v29 = vld [vmem:[%s5365_s7] ss:$0 sm:$0xff]  ;;  %v3898_v27 = vld [vmem:[%s5368_s10 + $0x48] sm:$0xff]  }
 0xb4e   : > { %v2496_v47 = vpop.xlane.xlu1 %2495  ;;  %v3899_v56 = vld [vmem:[%s5368_s10 + $0x8] sm:$0xff]  }
 0xb4f   : > { %4038 = vrsqrt.f32 %v2514_v10  ;;  %v2507_v40 = vmul.f32 0.0078125, %v2496_v47  ;;  %v2541_v18 = vmul.f32 %v3412_v38, %v2526_v34  ;;  %v3900_v10 = vld [vmem:[%s5368_s10 + $0x40] sm:$0xff]  }
 0xb50   : > { %v4033_v19 = vpop.eup %4032  ;;  %v3901_v34 = vld [vmem:[%s5368_s10] sm:$0xff]  }
 0xb51   : > { %v2515_v35 = vadd.f32 1e-05, %v2507_v40  ;;  %v2527_v1 = vmul.f32 %v4033_v19, %v4989_v57  ;;  %v4035_v60 = vpop.eup %4034  ;;  %v5067_v63 = vadd.f32 %v3413_v29, %v2541_v18  ;;  %v2584_v47 = vld [vmem:[%s5367_s9] sm:$0x3] }
 0xb52   : > { %v2498_v3 = vpop.xlane.xlu0 %2497  ;;  %v2501_v52 = vpop.xlane.xlu1 %2500  ;;  %v2528_v42 = vmul.f32 %v4035_v60, %v4987_v8  ;;  %v5152_v40 = vrot.slane %v2584_v47, %v532_v31 }
 0xb53   : > { %4040 = vrsqrt.f32 %v2515_v35  ;;  %v2508_v0 = vmul.f32 0.0078125, %v2498_v3  ;;  %v2509_v39 = vmul.f32 0.0078125, %v2501_v52  ;;  %v2542_v5 = vmul.f32 %v3412_v38, %v2527_v1 }
 0xb54   : > { %v4037_v53 = vpop.eup %4036  ;;  %v2543_v28 = vmul.f32 %v3412_v38, %v2528_v42 }
 0xb55   : > { %v2516_v36 = vadd.f32 1e-05, %v2508_v0  ;;  %v2517_v6 = vadd.f32 1e-05, %v2509_v39  ;;  %v2529_v49 = vmul.f32 %v4037_v53, %v4995_v46  ;;  %v5069_v57 = vadd.f32 %v3413_v29, %v2542_v5 }
 0xb56   : > { %v5078_v61 = vadd.f32 %v3413_v29, %v2543_v28 }
 0xb57   : > { %4042 = vrsqrt.f32 %v2516_v36  ;;  %v2564_v44 = vpack.c.bf16 %v5069_v57, %v5067_v63  ;;  %v2544_v26 = vmul.f32 %v3412_v38, %v2529_v49 }
 0xb58   : > { %4044 = vrsqrt.f32 %v2517_v6 }
 0xb59   : > { %2709 = vmatmul.mubr.bf16.vlgmr.msra.gmra.mxu1 %v2564_v44  ;;  %v5075_v55 = vadd.f32 %v3413_v29, %v2544_v26 }
 0xb5a   : > { %2718 = vmatprep.mubr.bf16.mxu1 %v4111_v2 }
 0xb5b   : > { %v2565_v8 = vpack.c.bf16 %v5075_v55, %v5078_v61 }
 0xb5c   : > { %v4039_v48 = vpop.eup %4038 }
 0xb5d   : > { %v2530_v46 = vmul.f32 %v4039_v48, %v5002_v16 }
 0xb5f   : > { %v2545_v62 = vmul.f32 %v3412_v38, %v2530_v46 }
 0xb60   : > { %v4041_v22 = vpop.eup %4040 }
 0xb61   : > { %v2531_v15 = vmul.f32 %v4041_v22, %v5014_v24  ;;  %2719 = vmatmul.mubr.bf16.gmra.mxu1 %v2565_v8  ;;  %v5084_v17 = vadd.f32 %v3413_v29, %v2545_v62 }
 0xb62   : > { %2728 = vmatprep.mubr.bf16.mxu1 %v4111_v2 }
 0xb63   : > { %v2546_v45 = vmul.f32 %v3412_v38, %v2531_v15 }
 0xb64   : > { %v4043_v41 = vpop.eup %4042 }
 0xb65   : > { %v4045_v33 = vpop.eup %4044  ;;  %v5086_v4 = vadd.f32 %v3413_v29, %v2546_v45  ;;  %v2532_v16 = vmul.f32 %v4043_v41, %v5026_v51  ;;  %v3887_v51 = vld [vmem:[%s5368_s10 + $0x38] sm:$0xff]  }
 0xb66   : > { %v2533_v14 = vmul.f32 %v4045_v33, %v5012_v12  ;;  %v3886_v12 = vld [vmem:[%s5368_s10 + $0x78] sm:$0xff]  }
 0xb67   : > { %v2566_v58 = vpack.c.bf16 %v5086_v4, %v5084_v17  ;;  %v2547_v11 = vmul.f32 %v3412_v38, %v2532_v16  ;;  %3573 = vmatprep.subr.bf16.mxu0 %v3886_v12 }
 0xb68   : > { %v2548_v24 = vmul.f32 %v3412_v38, %v2533_v14  ;;  %3574 = vmatpush3.bf16.msra.mxu0 %v3887_v51  ;;  %v5156_v38 = vrot.slane %v2584_v47, %v536_v50 }
 0xb69   : > { %2729 = vmatmul.mubr.bf16.gmra.mxu1 %v2566_v58  ;;  %v5093_v9 = vadd.f32 %v3413_v29, %v2547_v11 }
 0xb6a   : > { %2738 = vmatprep.mubr.bf16.mxu1 %v4111_v2  ;;  %v5095_v32 = vadd.f32 %v3413_v29, %v2548_v24  ;;  %v3888_v2 = vld [vmem:[%s5368_s10 + $0x70] sm:$0xff]  }
 0xb6b   : > { %3575 = vmatprep.subr.bf16.mxu0 %v3888_v2 }
 0xb6c   : > { %v2567_v54 = vpack.c.bf16 %v5095_v32, %v5093_v9  ;;  %3576 = vmatpush3.bf16.msra.mxu0 %v3889_v25 }
 0xb6d   : > { %3577 = vmatprep.subr.bf16.mxu0 %v3890_v37 }
 0xb70   : > { %3578 = vmatpush3.bf16.msra.mxu0 %v3891_v7 }
 0xb71   : > { %2739 = vmatmul.mubr.bf16.gmra.mxu1 %v2567_v54  ;;  %3579 = vmatprep.subr.bf16.mxu0 %v3892_v59 }
 0xb74   : > { %3580 = vmatpush3.bf16.msra.mxu0 %v3893_v21 }
 0xb75   : > { %3581 = vmatprep.subr.bf16.mxu0 %v3894_v20 }
 0xb78   : > { %3582 = vmatpush3.bf16.msra.mxu0 %v3895_v13 }
 0xb79   : > { %3583 = vmatprep.subr.bf16.mxu0 %v3896_v43 }
 0xb7c   : > { %3584 = vmatpush3.bf16.msra.mxu0 %v3897_v23 }
 0xb7d   : > { %3585 = vmatprep.subr.bf16.mxu0 %v3898_v27 }
 0xb80   : > { %3586 = vmatpush3.bf16.msra.mxu0 %v3899_v56 }
 0xb81   : > { %3587 = vmatprep.subr.bf16.mxu0 %v3900_v10 }
 0xb84   : > { %3588 = vmatpush3.bf16.msra.mxu0 %v3901_v34 }
 0xc19   : > { %v2710_v19 = vpop.f32.mrf.mxu1 }
 0xc1a   : > { %v5159_v35 = vadd.f32 %v2710_v19, %v5152_v40 }
 0xc1b   : > { %v2712_v1 = vpop.f32.mrf.mxu1 }
 0xc1c   : > { %v2749_v3 = vmul.f32 %v5159_v35, %v5159_v35  ;;  %v5164_v52 = vadd.f32 %v2712_v1, %v5156_v38 }
 0xc1d   : > { %v2714_v18 = vpop.f32.mrf.mxu1 }
 0xc1e   : > { %v2765_v60 = vmul.f32 %v2749_v3, %v5159_v35  ;;  %v2750_v31 = vmul.f32 %v5164_v52, %v5164_v52  ;;  %v5170_v30 = vadd.f32 %v2714_v18, %v5152_v40 }
 0xc1f   : > { %v2716_v50 = vpop.f32.mrf.mxu1 }
 0xc20   : > { %v2781_v0 = vmul.f32 0.044715, %v2765_v60  ;;  %v2766_v39 = vmul.f32 %v2750_v31, %v5164_v52  ;;  %v2751_v29 = vmul.f32 %v5170_v30, %v5170_v30  ;;  %v5176_v53 = vadd.f32 %v2716_v50, %v5156_v38 }
 0xc21   : > { %v2720_v5 = vpop.f32.mrf.mxu1 }
 0xc22   : > { %v2797_v36 = vadd.f32 %v2781_v0, %v5159_v35  ;;  %v2782_v6 = vmul.f32 0.044715, %v2766_v39  ;;  %v2767_v49 = vmul.f32 %v2751_v29, %v5170_v30  ;;  %v2752_v42 = vmul.f32 %v5176_v53, %v5176_v53 }
 0xc23   : > { %v5183_v44 = vadd.f32 %v2720_v5, %v5152_v40  ;;  %v2722_v26 = vpop.f32.mrf.mxu1 }
 0xc24   : > { %v2813_v28 = vmul.f32 0.7978846, %v2797_v36  ;;  %v2798_v48 = vadd.f32 %v2782_v6, %v5164_v52  ;;  %v2783_v46 = vmul.f32 0.044715, %v2767_v49  ;;  %v2768_v22 = vmul.f32 %v2752_v42, %v5176_v53 }
 0xc25   : > { %v2753_v8 = vmul.f32 %v5183_v44, %v5183_v44  ;;  %v5190_v15 = vadd.f32 %v2722_v26, %v5156_v38  ;;  %v2724_v62 = vpop.f32.mrf.mxu1 }
 0xc26   : > { %4046 = vtanh.f32 %v2813_v28  ;;  %v2814_v45 = vmul.f32 0.7978846, %v2798_v48  ;;  %v2799_v41 = vadd.f32 %v2783_v46, %v5170_v30  ;;  %v2784_v33 = vmul.f32 0.044715, %v2768_v22 }
 0xc27   : > { %v2769_v16 = vmul.f32 %v2753_v8, %v5183_v44  ;;  %v2754_v14 = vmul.f32 %v5190_v15, %v5190_v15  ;;  %v5197_v58 = vadd.f32 %v2724_v62, %v5152_v40  ;;  %v2726_v11 = vpop.f32.mrf.mxu1 }
 0xc28   : > { %v2815_v24 = vmul.f32 0.7978846, %v2799_v41  ;;  %v2800_v54 = vadd.f32 %v2784_v33, %v5176_v53  ;;  %v5201_v12 = vadd.f32 %v2726_v11, %v5156_v38  ;;  %4048 = vtanh.f32 %v2814_v45 }
 0xc29   : > { %v2785_v51 = vmul.f32 0.044715, %v2769_v16  ;;  %v2770_v2 = vmul.f32 %v2754_v14, %v5190_v15  ;;  %v2755_v25 = vmul.f32 %v5197_v58, %v5197_v58  ;;  %v2730_v37 = vpop.f32.mrf.mxu1 }
 0xc2a   : > { %4050 = vtanh.f32 %v2815_v24  ;;  %v2816_v7 = vmul.f32 0.7978846, %v2800_v54  ;;  %v2756_v59 = vmul.f32 %v5201_v12, %v5201_v12  ;;  %v5209_v21 = vadd.f32 %v2730_v37, %v5152_v40 }
 0xc2b   : > { %v2801_v20 = vadd.f32 %v2785_v51, %v5183_v44  ;;  %v2786_v13 = vmul.f32 0.044715, %v2770_v2  ;;  %v2771_v43 = vmul.f32 %v2755_v25, %v5197_v58  ;;  %v2732_v23 = vpop.f32.mrf.mxu1 }
 0xc2c   : > { %4052 = vtanh.f32 %v2816_v7  ;;  %v2772_v27 = vmul.f32 %v2756_v59, %v5201_v12  ;;  %v2757_v56 = vmul.f32 %v5209_v21, %v5209_v21  ;;  %v5217_v10 = vadd.f32 %v2732_v23, %v5156_v38 }
 0xc2d   : > { %v2817_v34 = vmul.f32 0.7978846, %v2801_v20  ;;  %v2802_v47 = vadd.f32 %v2786_v13, %v5190_v15  ;;  %v2787_v19 = vmul.f32 0.044715, %v2771_v43  ;;  %v2734_v1 = vpop.f32.mrf.mxu1 }
 0xc2e   : > { %v2788_v3 = vmul.f32 0.044715, %v2772_v27  ;;  %v2773_v18 = vmul.f32 %v2757_v56, %v5209_v21  ;;  %v2758_v60 = vmul.f32 %v5217_v10, %v5217_v10  ;;  %v5224_v31 = vadd.f32 %v2734_v1, %v5152_v40 }
 0xc2f   : > { %4054 = vtanh.f32 %v2817_v34  ;;  %v2818_v50 = vmul.f32 0.7978846, %v2802_v47  ;;  %v2803_v0 = vadd.f32 %v2787_v19, %v5197_v58  ;;  %v2736_v39 = vpop.f32.mrf.mxu1 }
 0xc30   : > { %v2804_v29 = vadd.f32 %v2788_v3, %v5201_v12  ;;  %v2789_v5 = vmul.f32 0.044715, %v2773_v18  ;;  %v2774_v36 = vmul.f32 %v2758_v60, %v5217_v10  ;;  %v2759_v6 = vmul.f32 %v5224_v31, %v5224_v31 }
 0xc31   : > { %4056 = vtanh.f32 %v2818_v50  ;;  %v2819_v49 = vmul.f32 0.7978846, %v2803_v0  ;;  %v5232_v42 = vadd.f32 %v2736_v39, %v5156_v38  ;;  %v2740_v26 = vpop.f32.mrf.mxu1 }
 0xc32   : > { %v2820_v28 = vmul.f32 0.7978846, %v2804_v29  ;;  %v2805_v48 = vadd.f32 %v2789_v5, %v5209_v21  ;;  %v2790_v46 = vmul.f32 0.044715, %v2774_v36  ;;  %v2775_v22 = vmul.f32 %v2759_v6, %v5224_v31 }
 0xc33   : > { %v4047_v8 = vpop.eup %4046  ;;  %4058 = vtanh.f32 %v2819_v49  ;;  %v2760_v62 = vmul.f32 %v5232_v42, %v5232_v42  ;;  %v5239_v45 = vadd.f32 %v2740_v26, %v5152_v40  ;;  %v2742_v41 = vpop.f32.mrf.mxu1 }
 0xc34   : > { %v2845_v33 = vadd.f32 1.0, %v4047_v8  ;;  %4060 = vtanh.f32 %v2820_v28  ;;  %v2821_v16 = vmul.f32 0.7978846, %v2805_v48  ;;  %v2806_v14 = vadd.f32 %v2790_v46, %v5217_v10 }
 0xc35   : > { %v2791_v11 = vmul.f32 0.044715, %v2775_v22  ;;  %v2776_v24 = vmul.f32 %v2760_v62, %v5232_v42  ;;  %v2761_v54 = vmul.f32 %v5239_v45, %v5239_v45  ;;  %v5246_v51 = vadd.f32 %v2742_v41, %v5156_v38  ;;  %v2744_v2 = vpop.f32.mrf.mxu1  ;;  %v4049_v25 = vpop.eup %4048 }
 0xc36   : > { %4062 = vtanh.f32 %v2821_v16  ;;  %v2822_v37 = vmul.f32 0.7978846, %v2806_v14  ;;  %v5249_v7 = vadd.f32 %v2744_v2, %v5152_v40  ;;  %v2861_v56 = vmul.f32 0.5, %v2845_v33 }
 0xc37   : > { %v4051_v59 = vpop.eup %4050  ;;  %v2807_v20 = vadd.f32 %v2791_v11, %v5224_v31  ;;  %v2792_v13 = vmul.f32 0.044715, %v2776_v24  ;;  %v2777_v43 = vmul.f32 %v2761_v54, %v5239_v45  ;;  %v2762_v23 = vmul.f32 %v5246_v51, %v5246_v51  ;;  %v2746_v27 = vpop.f32.mrf.mxu1 }
 0xc38   : > { %v2847_v34 = vadd.f32 1.0, %v4051_v59  ;;  %4064 = vtanh.f32 %v2822_v37  ;;  %v2763_v47 = vmul.f32 %v5249_v7, %v5249_v7  ;;  %v5261_v0 = vadd.f32 %v2746_v27, %v5156_v38 }
 0xc39   : > { %v4053_v19 = vpop.eup %4052  ;;  %v2823_v1 = vmul.f32 0.7978846, %v2807_v20  ;;  %v2808_v40 = vadd.f32 %v2792_v13, %v5232_v42  ;;  %v2793_v3 = vmul.f32 0.044715, %v2777_v43  ;;  %v2778_v18 = vmul.f32 %v2762_v23, %v5246_v51 }
 0xc3a   : > { %v2863_v60 = vmul.f32 0.5, %v2847_v34  ;;  %v2779_v50 = vmul.f32 %v2763_v47, %v5249_v7  ;;  %v2846_v39 = vadd.f32 1.0, %v4049_v25  ;;  %v2764_v26 = vmul.f32 %v5261_v0, %v5261_v0 }
 0xc3b   : > { %4066 = vtanh.f32 %v2823_v1  ;;  %v2824_v29 = vmul.f32 0.7978846, %v2808_v40  ;;  %v2809_v5 = vadd.f32 %v2793_v3, %v5239_v45  ;;  %v2794_v36 = vmul.f32 0.044715, %v2778_v18 }
 0xc3c   : > { %v4055_v6 = vpop.eup %4054  ;;  %v2795_v49 = vmul.f32 0.044715, %v2779_v50  ;;  %v2848_v28 = vadd.f32 1.0, %v4053_v19  ;;  %v2862_v22 = vmul.f32 0.5, %v2846_v39  ;;  %v2877_v38 = vmul.f32 %v2861_v56, %v5159_v35 }
 0xc3d   : > { %4068 = vtanh.f32 %v2824_v29  ;;  %v2825_v48 = vmul.f32 0.7978846, %v2809_v5  ;;  %v2810_v46 = vadd.f32 %v2794_v36, %v5246_v51  ;;  %v2780_v41 = vmul.f32 %v2764_v26, %v5261_v0 }
 0xc3e   : > { %v4057_v8 = vpop.eup %4056  ;;  %v2811_v62 = vadd.f32 %v2795_v49, %v5249_v7  ;;  %v2864_v33 = vmul.f32 0.5, %v2848_v28  ;;  %v2879_v16 = vmul.f32 %v2863_v60, %v5170_v30  ;;  %v2878_v25 = vmul.f32 %v2862_v22, %v5164_v52 }
 0xc3f   : > { %4070 = vtanh.f32 %v2825_v48  ;;  %v2826_v14 = vmul.f32 0.7978846, %v2810_v46  ;;  %v2850_v11 = vadd.f32 1.0, %v4057_v8  ;;  %v2796_v2 = vmul.f32 0.044715, %v2780_v41 }
 0xc40   : > { %v4059_v24 = vpop.eup %4058  ;;  %v2827_v54 = vmul.f32 0.7978846, %v2811_v62  ;;  %v2880_v37 = vmul.f32 %v2864_v33, %v5176_v53  ;;  %v2849_v20 = vadd.f32 1.0, %v4055_v6  ;;  %v2893_v56 = vpack.c.bf16 %v2879_v16, %v2877_v38 }
 0xc41   : > { %v4061_v59 = vpop.eup %4060  ;;  %4072 = vtanh.f32 %v2826_v14  ;;  %v2866_v35 = vmul.f32 0.5, %v2850_v11  ;;  %v2851_v13 = vadd.f32 1.0, %v4059_v24  ;;  %v2812_v43 = vadd.f32 %v2796_v2, %v5261_v0 }
 0xc42   : > { %4074 = vtanh.f32 %v2827_v54  ;;  %v2894_v23 = vpack.c.bf16 %v2880_v37, %v2878_v25  ;;  %v2852_v30 = vadd.f32 1.0, %v4061_v59  ;;  %v2865_v52 = vmul.f32 0.5, %v2849_v20 }
 0xc43   : > { %v4063_v27 = vpop.eup %4062  ;;  %v2867_v34 = vmul.f32 0.5, %v2851_v13  ;;  %v2828_v47 = vmul.f32 0.7978846, %v2812_v43  ;;  %v2882_v53 = vmul.f32 %v2866_v35, %v5190_v15  ;;  %v3430_v13 = vld [vmem:[%s5369_s11] ss:$0 sm:$0xff] }
 0xc44   : > { %3068 = vmatprep.mubr.bf16.mxu0 %v2894_v23  ;;  %v2868_v19 = vmul.f32 0.5, %v2852_v30  ;;  %v2881_v39 = vmul.f32 %v2865_v52, %v5183_v44  ;;  %v2853_v29 = vadd.f32 1.0, %v4063_v27 }
 0xc45   : > { %v4065_v1 = vpop.eup %4064  ;;  %3069 = vmatmul.mubr.bf16.vlgmr.msra.gmra.mxu0 %v2893_v56  ;;  %4076 = vtanh.f32 %v2828_v47  ;;  %v2883_v3 = vmul.f32 %v2867_v34, %v5197_v58 }
 0xc46   : > { %v2884_v40 = vmul.f32 %v2868_v19, %v5201_v12  ;;  %v2854_v18 = vadd.f32 1.0, %v4065_v1  ;;  %v2869_v46 = vmul.f32 0.5, %v2853_v29 }
 0xc47   : > { %v2895_v6 = vpack.c.bf16 %v2883_v3, %v2881_v39 }
 0xc48   : > { %v4067_v60 = vpop.eup %4066  ;;  %v2896_v50 = vpack.c.bf16 %v2884_v40, %v2882_v53  ;;  %v2870_v26 = vmul.f32 0.5, %v2854_v18  ;;  %v2885_v33 = vmul.f32 %v2869_v46, %v5209_v21 }
 0xc49   : > { %v2855_v5 = vadd.f32 1.0, %v4067_v60 }
 0xc4a   : > { %v4069_v36 = vpop.eup %4068  ;;  %3076 = vmatprep.mubr.bf16.mxu0 %v2896_v50  ;;  %v2886_v58 = vmul.f32 %v2870_v26, %v5217_v10 }
 0xc4b   : > { %v2856_v49 = vadd.f32 1.0, %v4069_v36  ;;  %v2871_v28 = vmul.f32 0.5, %v2855_v5 }
 0xc4c   : > { %v4071_v48 = vpop.eup %4070 }
 0xc4d   : > { %3077 = vmatmul.mubr.bf16.gmra.mxu0 %v2895_v6  ;;  %v2872_v15 = vmul.f32 0.5, %v2856_v49  ;;  %v2887_v44 = vmul.f32 %v2871_v28, %v5224_v31  ;;  %v2857_v16 = vadd.f32 1.0, %v4071_v48 }
 0xc4e   : > { %v4073_v12 = vpop.eup %4072 }
 0xc4f   : > { %v4075_v22 = vpop.eup %4074  ;;  %v2888_v8 = vmul.f32 %v2872_v15, %v5232_v42  ;;  %v2858_v38 = vadd.f32 1.0, %v4073_v12  ;;  %v2897_v11 = vpack.c.bf16 %v2887_v44, %v2885_v33  ;;  %v2873_v25 = vmul.f32 0.5, %v2857_v16 }
 0xc50   : > { %v2859_v62 = vadd.f32 1.0, %v4075_v22 }
 0xc51   : > { %v2898_v41 = vpack.c.bf16 %v2888_v8, %v2886_v58  ;;  %v2874_v2 = vmul.f32 0.5, %v2858_v38  ;;  %v2889_v59 = vmul.f32 %v2873_v25, %v5239_v45 }
 0xc52   : > { %v4077_v14 = vpop.eup %4076  ;;  %v2875_v24 = vmul.f32 0.5, %v2859_v62 }
 0xc53   : > { %3084 = vmatprep.mubr.bf16.mxu0 %v2898_v41  ;;  %v2860_v54 = vadd.f32 1.0, %v4077_v14  ;;  %v2890_v42 = vmul.f32 %v2874_v2, %v5246_v51 }
 0xc54   : > { %v2891_v10 = vmul.f32 %v2875_v24, %v5249_v7 }
 0xc55   : > { %3085 = vmatmul.mubr.bf16.gmra.mxu0 %v2897_v11  ;;  %v2876_v37 = vmul.f32 0.5, %v2860_v54 }
 0xc56   : > { %v2899_v21 = vpack.c.bf16 %v2891_v10, %v2889_v59 }
 0xc57   : > { %v2892_v31 = vmul.f32 %v2876_v37, %v5261_v0 }
 0xc59   : > { %v2900_v35 = vpack.c.bf16 %v2892_v31, %v2890_v42 }
 0xc5b   : > { %3092 = vmatprep.mubr.bf16.mxu0 %v2900_v35 }
 0xc5d   : > { %3093 = vmatmul.mubr.bf16.gmra.mxu0 %v2899_v21 }
 0xd05   : > { %v3589_v20 = vpop.f32.mrf.mxu0 }
 0xd07   : > { %v3590_v43 = vpop.f32.mrf.mxu0 }
 0xd08   : > { %v3591_v23 = vadd.f32 %v3590_v43, %v3589_v20 }
 0xd09   : > { %v3592_v30 = vpop.f32.mrf.mxu0 }
 0xd0a   : > { %v3071_v27 = vadd.f32 %v3591_v23, %v3430_v13 }
 0xd0b   : > { %v3593_v7 = vpop.f32.mrf.mxu0 }
 0xd0c   : > { %v3594_v56 = vadd.f32 %v3593_v7, %v3592_v30  ;;  %v3101_v51 = vadd.f32 %v3071_v27, %v5067_v63 }
 0xd0d   : > { %v3595_v0 = vpop.f32.mrf.mxu0 }
 0xd0e   : > { %v3074_v34 = vadd.f32 %v3594_v56, %v3430_v13  ;;  %3109 = vadd.xlane.f32.xlu1 %v3101_v51 }
 0xd0f   : > { %v3596_v45 = vpop.f32.mrf.mxu0 }
 0xd10   : > { %v3597_v47 = vadd.f32 %v3596_v45, %v3595_v0  ;;  %v3102_v19 = vadd.f32 %v3074_v34, %v5069_v57 }
 0xd11   : > { %v3598_v1 = vpop.f32.mrf.mxu0 }
 0xd12   : > { %v3079_v52 = vadd.f32 %v3597_v47, %v3430_v13  ;;  %3111 = vadd.xlane.f32.xlu0 %v3102_v19 }
 0xd13   : > { %v3599_v53 = vpop.f32.mrf.mxu0 }
 0xd14   : > { %v3600_v40 = vadd.f32 %v3599_v53, %v3598_v1  ;;  %v3103_v3 = vadd.f32 %v3079_v52, %v5078_v61 }
 0xd15   : > { %v3601_v18 = vpop.f32.mrf.mxu0 }
 0xd16   : > { %v3082_v60 = vadd.f32 %v3600_v40, %v3430_v13  ;;  %3113 = vadd.xlane.f32.xlu1 %v3103_v3 }
 0xd17   : > { %v3602_v50 = vpop.f32.mrf.mxu0 }
 0xd18   : > { %v3603_v39 = vadd.f32 %v3602_v50, %v3601_v18  ;;  %v3104_v63 = vadd.f32 %v3082_v60, %v5075_v55 }
 0xd19   : > { %v3604_v29 = vpop.f32.mrf.mxu0 }
 0xd1a   : > { %v3087_v5 = vadd.f32 %v3603_v39, %v3430_v13  ;;  %3115 = vadd.xlane.f32.xlu0 %v3104_v63 }
 0xd1b   : > { %v3605_v36 = vpop.f32.mrf.mxu0 }
 0xd1c   : > { %v3105_v57 = vadd.f32 %v3087_v5, %v5084_v17  ;;  %v3606_v12 = vadd.f32 %v3605_v36, %v3604_v29  ;;  %v3447_v36 = vld [vmem:[%s5370_s12] ss:$0 sm:$0xff] }
 0xd1d   : > { %v3607_v6 = vpop.f32.mrf.mxu0 }
 0xd1e   : > { %3117 = vadd.xlane.f32.xlu1 %v3105_v57  ;;  %v3090_v58 = vadd.f32 %v3606_v12, %v3430_v13 }
 0xd1f   : > { %v3608_v49 = vpop.f32.mrf.mxu0 }
 0xd20   : > { %v3609_v26 = vadd.f32 %v3608_v49, %v3607_v6  ;;  %v3106_v17 = vadd.f32 %v3090_v58, %v5086_v4  ;;  %v3448_v49 = vld [vmem:[%s5371_s13] ss:$0 sm:$0xff] }
 0xd21   : > { %v3610_v28 = vpop.f32.mrf.mxu0 }
 0xd22   : > { %v3095_v48 = vadd.f32 %v3609_v26, %v3430_v13 }
 0xd23   : > { %v3611_v61 = vpop.f32.mrf.mxu0 }
 0xd24   : > { %v3612_v15 = vadd.f32 %v3611_v61, %v3610_v28  ;;  %v3107_v46 = vadd.f32 %v3095_v48, %v5093_v9 }
 0xd26   : > { %v3098_v22 = vadd.f32 %v3612_v15, %v3430_v13  ;;  %3121 = vadd.xlane.f32.xlu1 %v3107_v46 }
 0xd28   : > { %v3108_v55 = vadd.f32 %v3098_v22, %v5095_v32 }
 0xd2a   : > { %v3123_v8 = vsel %vm2456_vm2, %v3108_v55, 0.0 }
 0xd2b   : > { %3124 = vadd.xlane.f32.xlu0 %v3123_v8 }
 0xd2f   : > { %3119 = vadd.xlane.f32.xlu0 %v3106_v17 }
 0xd97   : > { %v3110_v44 = vpop.xlane.xlu1 %3109 }
 0xd98   : > { %v3126_v38 = vmul.f32 0.0078125, %v3110_v44 }
 0xd9a   : > { %v3134_v62 = vsub.f32 %v3101_v51, %v3126_v38 }
 0xd9b   : > { %v3112_v41 = vpop.xlane.xlu0 %3111 }
 0xd9c   : > { %v3127_v33 = vmul.f32 0.0078125, %v3112_v41  ;;  %v3142_v16 = vmul.f32 %v3134_v62, %v3134_v62 }
 0xd9e   : > { %v5298_v14 = vsub.f32 %v3102_v19, %v3127_v33  ;;  %3150 = vadd.xlane.f32.xlu0 %v3142_v16 }
 0xd9f   : > { %v3114_v9 = vpop.xlane.xlu1 %3113 }
 0xda0   : > { %v3128_v11 = vmul.f32 0.0078125, %v3114_v9  ;;  %v3143_v32 = vmul.f32 %v5298_v14, %v5298_v14 }
 0xda2   : > { %v5302_v24 = vsub.f32 %v3103_v3, %v3128_v11  ;;  %3152 = vadd.xlane.f32.xlu1 %v3143_v32 }
 0xda3   : > { %v3116_v54 = vpop.xlane.xlu0 %3115 }
 0xda4   : > { %v3129_v4 = vmul.f32 0.0078125, %v3116_v54  ;;  %v3144_v2 = vmul.f32 %v5302_v24, %v5302_v24 }
 0xda6   : > { %v5306_v25 = vsub.f32 %v3104_v63, %v3129_v4  ;;  %3154 = vadd.xlane.f32.xlu0 %v3144_v2 }
 0xda7   : > { %v3118_v37 = vpop.xlane.xlu1 %3117 }
 0xda8   : > { %v3130_v10 = vmul.f32 0.0078125, %v3118_v37  ;;  %v3145_v42 = vmul.f32 %v5306_v25, %v5306_v25 }
 0xdaa   : > { %v5310_v31 = vsub.f32 %v3105_v57, %v3130_v10  ;;  %3156 = vadd.xlane.f32.xlu1 %v3145_v42 }
 0xdac   : > { %v3146_v59 = vmul.f32 %v5310_v31, %v5310_v31 }
 0xdae   : > { %3158 = vadd.xlane.f32.xlu0 %v3146_v59 }
 0xdaf   : > { %v3122_v35 = vpop.xlane.xlu1 %3121 }
 0xdb0   : > { %v3132_v21 = vmul.f32 0.0078125, %v3122_v35 }
 0xdb2   : > { %v5314_v20 = vsub.f32 %v3107_v46, %v3132_v21 }
 0xdb4   : > { %v3125_v13 = vpop.xlane.xlu0 %3124  ;;  %v3148_v43 = vmul.f32 %v5314_v20, %v5314_v20 }
 0xdb5   : > { %v3133_v23 = vmul.f32 0.0078125, %v3125_v13 }
 0xdb6   : > { %3162 = vadd.xlane.f32.xlu0 %v3148_v43 }
 0xdb7   : > { %v5318_v7 = vsub.f32 %v3108_v55, %v3133_v23 }
 0xdb8   : > { %v3120_v30 = vpop.xlane.xlu0 %3119 }
 0xdb9   : > { %v3131_v27 = vmul.f32 0.0078125, %v3120_v30  ;;  %v3149_v0 = vmul.f32 %v5318_v7, %v5318_v7 }
 0xdbb   : > { %v5320_v56 = vsub.f32 %v3106_v17, %v3131_v27  ;;  %v3164_v34 = vsel %vm2456_vm2, %v3149_v0, 0.0 }
 0xdbd   : > { %v3147_v51 = vmul.f32 %v5320_v56, %v5320_v56 }
 0xdbf   : > { %3160 = vadd.xlane.f32.xlu1 %v3147_v51 }
 0xdc3   : > { %3165 = vadd.xlane.f32.xlu1 %v3164_v34 }
 0xe27   : > { %v3151_v45 = vpop.xlane.xlu0 %3150 }
 0xe28   : > { %v3167_v47 = vmul.f32 0.0078125, %v3151_v45 }
 0xe2a   : > { %v3175_v19 = vadd.f32 1e-05, %v3167_v47 }
 0xe2b   : > { %v3153_v1 = vpop.xlane.xlu1 %3152 }
 0xe2c   : > { %4078 = vrsqrt.f32 %v3175_v19  ;;  %v3168_v52 = vmul.f32 0.0078125, %v3153_v1 }
 0xe2e   : > { %v3176_v53 = vadd.f32 1e-05, %v3168_v52 }
 0xe2f   : > { %v3155_v40 = vpop.xlane.xlu0 %3154 }
 0xe30   : > { %4080 = vrsqrt.f32 %v3176_v53  ;;  %v3169_v3 = vmul.f32 0.0078125, %v3155_v40 }
 0xe32   : > { %v3177_v18 = vadd.f32 1e-05, %v3169_v3 }
 0xe33   : > { %v3157_v60 = vpop.xlane.xlu1 %3156 }
 0xe34   : > { %4082 = vrsqrt.f32 %v3177_v18  ;;  %v3170_v50 = vmul.f32 0.0078125, %v3157_v60 }
 0xe36   : > { %v3178_v39 = vadd.f32 1e-05, %v3170_v50 }
 0xe37   : > { %v3159_v63 = vpop.xlane.xlu0 %3158 }
 0xe38   : > { %4084 = vrsqrt.f32 %v3178_v39  ;;  %v3171_v29 = vmul.f32 0.0078125, %v3159_v63 }
 0xe39   : > { %v4079_v5 = vpop.eup %4078 }
 0xe3a   : > { %v3191_v57 = vmul.f32 %v4079_v5, %v3134_v62  ;;  %v3179_v6 = vadd.f32 1e-05, %v3171_v29 }
 0xe3c   : > { %v3206_v26 = vmul.f32 %v3447_v36, %v3191_v57  ;;  %4086 = vrsqrt.f32 %v3179_v6 }
 0xe3d   : > { %v4081_v28 = vpop.eup %4080 }
 0xe3e   : > { %v3221_v48 = vadd.f32 %v3448_v49, %v3206_v26  ;;  %v3192_v61 = vmul.f32 %v4081_v28, %v5298_v14 }
 0xe3f   : > { %v3163_v15 = vpop.xlane.xlu0 %3162 }
 0xe40   : > { %3229 = vst [vmem:[%s5338_s24] sm:$0xff] %v3221_v48  ;;  %v3207_v46 = vmul.f32 %v3447_v36, %v3192_v61  ;;  %v3173_v12 = vmul.f32 0.0078125, %v3163_v15 }
 0xe41   : > { %v4083_v22 = vpop.eup %4082 }
 0xe42   : > { %v3222_v55 = vadd.f32 %v3448_v49, %v3207_v46  ;;  %v3193_v58 = vmul.f32 %v4083_v22, %v5302_v24  ;;  %v3181_v8 = vadd.f32 1e-05, %v3173_v12 }
 0xe44   : > { %3230 = vst [vmem:[%s5338_s24 + $0x8] sm:$0xff] %v3222_v55  ;;  %v3208_v17 = vmul.f32 %v3447_v36, %v3193_v58  ;;  %4088 = vrsqrt.f32 %v3181_v8 }
 0xe45   : > { %v4085_v44 = vpop.eup %4084 }
 0xe46   : > { %v3223_v38 = vadd.f32 %v3448_v49, %v3208_v17  ;;  %v3194_v62 = vmul.f32 %v4085_v44, %v5306_v25 }
 0xe48   : > { %3231 = vst [vmem:[%s5338_s24 + $0x10] sm:$0xff] %v3223_v38  ;;  %v3209_v41 = vmul.f32 %v3447_v36, %v3194_v62  ;;  %v3161_v33 = vpop.xlane.xlu1 %3160 }
 0xe49   : > { %v4087_v16 = vpop.eup %4086  ;;  %v3172_v14 = vmul.f32 0.0078125, %v3161_v33 }
 0xe4a   : > { %v3224_v9 = vadd.f32 %v3448_v49, %v3209_v41  ;;  %v3195_v11 = vmul.f32 %v4087_v16, %v5310_v31 }
 0xe4b   : > { %v3180_v32 = vadd.f32 1e-05, %v3172_v14 }
 0xe4c   : > { %3232 = vst [vmem:[%s5338_s24 + $0x18] sm:$0xff] %v3224_v9  ;;  %v3210_v24 = vmul.f32 %v3447_v36, %v3195_v11  ;;  %v3166_v54 = vpop.xlane.xlu1 %3165 }
 0xe4d   : > { %4090 = vrsqrt.f32 %v3180_v32  ;;  %v3174_v4 = vmul.f32 0.0078125, %v3166_v54 }
 0xe4e   : > { %v3225_v2 = vadd.f32 %v3448_v49, %v3210_v24 }
 0xe4f   : > { %v3182_v37 = vadd.f32 1e-05, %v3174_v4 }
 0xe50   : > { %3233 = vst [vmem:[%s5338_s24 + $0x20] sm:$0xff] %v3225_v2 }
 0xe51   : > { %v4089_v25 = vpop.eup %4088  ;;  %4092 = vrsqrt.f32 %v3182_v37 }
 0xe52   : > { %v3197_v10 = vmul.f32 %v4089_v25, %v5314_v20 }
 0xe54   : > { %v3212_v42 = vmul.f32 %v3447_v36, %v3197_v10 }
 0xe56   : > { %v3227_v59 = vadd.f32 %v3448_v49, %v3212_v42 }
 0xe58   : > { %3235 = vst [vmem:[%s5338_s24 + $0x30] sm:$0xff] %v3227_v59 }
 0xe5a   : > { %v4091_v35 = vpop.eup %4090 }
 0xe5b   : > { %v3196_v31 = vmul.f32 %v4091_v35, %v5320_v56 }
 0xe5d   : > { %v3211_v21 = vmul.f32 %v3447_v36, %v3196_v31 }
 0xe5e   : > { %v4093_v13 = vpop.eup %4092 }
 0xe5f   : > { %v3226_v43 = vadd.f32 %v3448_v49, %v3211_v21  ;;  %v3198_v23 = vmul.f32 %v4093_v13, %v5318_v7 }
 0xe61   : > { %3234 = vst [vmem:[%s5338_s24 + $0x28] sm:$0xff] %v3226_v43  ;;  %v3213_v30 = vmul.f32 %v3447_v36, %v3198_v23 }
 0xe63   : > { %v3228_v27 = vadd.f32 %v3448_v49, %v3213_v30 }
 0xe65   : > { %3236 = vst [vmem:[%s5338_s24 + $0x38] sm:$0x1] %v3228_v27 }
 0xe66 PF: > { %s24_s29 = sadd.s32 1, %s4109_s29  }
 0xe67   : > { %p21_p4 = scmp.ge.s32.totalorder %s24_s29, 6  }
 0xe69   :  { %23 = sbr.rel (!%p21_p4) target bundleno = 1 (0x1), region = 109 }

</bundles_post_ra>
